<compile_context>
chip_gen: v7x
topology: tpu7x:2x2x1
jax: 0.10.0
libtpu: 0.0.40
codegen_flags: <defaults>
</compile_context>

<pallas_src>
import jax
import jax.numpy as jnp
from jax import lax
from jax.experimental import pallas as pl
from jax.experimental.pallas import tpu as pltpu


# ------------------------------------------------------------------ conv kernel ---

def _conv_fused_kernel(xp_ref, w1_ref, b1_ref, w2_ref, b2_ref, o_ref,
                       y1p_ref, acc_ref):
    """conv1 + bias + ReLU -> conv2 + bias -> 2x2 max-pool, one image per grid step.

    xp_ref : (1, 960, 48) bf16  3x5-window im2col, row = oh*32 + ow, col = (i*5+j)*3 + ci
    w1_ref : (48, 96)     bf16  conv1 weight emitting the 3-shift lane-packed layout
    y1p_ref: (960, 96)    bf16  scratch; [oh*32+ow, 32*j2+c] = relu(conv1)[oh, ow+j2, c]
    w2_ref : (3, 96, 64)  bf16  conv2 weight, one (96, 64) block per vertical tap
    acc_ref: (896, 64)    f32   conv2 accumulator, row = oh2*32 + ow2 (ow2 < 28 valid)
    o_ref  : (1, 98, 128) bf16  pooled output, [p*7+v, t*64+d] = maxpool[p, v+7t, d] + b2[d]
    """
    # conv1 (+bias, +ReLU): a single dense MXU matmul, result kept only in VMEM.
    y1 = jnp.dot(xp_ref[0], w1_ref[...], preferred_element_type=jnp.float32)
    y1p_ref[...] = jnp.maximum(y1 + b1_ref[...], 0.0).astype(y1p_ref.dtype)

    # conv2: 3 vertical taps, each a dense (896, 96) @ (96, 64) bf16 matmul (f32 acc).
    for i2 in range(3):
        contrib = jnp.dot(y1p_ref[pl.ds(i2 * 32, 896), :], w2_ref[i2],
                          preferred_element_type=jnp.float32)
        if i2 == 0:
            acc_ref[...] = contrib
        else:
            acc_ref[...] += contrib

    # Fused 2x2 max-pool (w then h) + bias; pack two pooled columns per 128-lane row.
    wa = acc_ref[pl.ds(0, 448, stride=2), :]                 # even wide-columns
    wb = acc_ref[pl.ds(1, 448, stride=2), :]                 # odd  wide-columns
    wm = jnp.maximum(wa, wb).reshape(14, 2, 16, 64)           # (p, dh, v, c)
    vm = jnp.maximum(wm[:, 0], wm[:, 1])                      # (14, 16, 64); v < 14 valid
    packed = jnp.concatenate([vm[:, 0:7, :], vm[:, 7:14, :]], axis=-1)   # (14, 7, 128)
    o_ref[0] = (packed.reshape(98, 128) + b2_ref[...]).astype(o_ref.dtype)


def conv_fused(xpatch, w1p, b1p, w2p, b2p):
    """(B, 960, 48) packed patches -> (B, 98, 128) packed pooled conv2 output (bf16)."""
    B = xpatch.shape[0]
    return pl.pallas_call(
        _conv_fused_kernel,
        out_shape=jax.ShapeDtypeStruct((B, 98, 128), jnp.bfloat16),
        grid_spec=pltpu.PrefetchScalarGridSpec(
            num_scalar_prefetch=0,
            grid=(B,),
            in_specs=[
                pl.BlockSpec((1, 960, 48), lambda b: (b, 0, 0)),
                pl.BlockSpec((48, 96), lambda b: (0, 0)),
                pl.BlockSpec((1, 96), lambda b: (0, 0)),
                pl.BlockSpec((3, 96, 64), lambda b: (0, 0, 0)),
                pl.BlockSpec((1, 128), lambda b: (0, 0)),
            ],
            out_specs=pl.BlockSpec((1, 98, 128), lambda b: (b, 0, 0)),
            scratch_shapes=[
                pltpu.VMEM((960, 96), jnp.bfloat16),   # lane-packed relu(conv1)
                pltpu.VMEM((896, 64), jnp.float32),    # conv2 accumulator
            ],
        ),
        compiler_params=pltpu.CompilerParams(dimension_semantics=("parallel",)),
    )(xpatch, w1p, b1p, w2p, b2p)


# -------------------------------------------------------------------- fc kernel ---

def _fc_fused_kernel(x_ref, w1_ref, b1_ref, w2_ref, b2_ref, o_ref):
    """fc1 + bias + ReLU + fc2 + bias + softmax (== exp(log_softmax)) in one kernel."""
    h = jnp.dot(x_ref[...], w1_ref[...], preferred_element_type=jnp.float32)
    h = jnp.maximum(h + b1_ref[...], 0.0)
    logits = jnp.dot(h.astype(jnp.bfloat16), w2_ref[...],
                     preferred_element_type=jnp.float32) + b2_ref[...]
    m = jnp.max(logits, axis=-1, keepdims=True)
    e = jnp.exp(logits - m)
    o_ref[...] = e / jnp.sum(e, axis=-1, keepdims=True)


def fc_fused(xflat, wf1, bf1, wf2, bf2):
    """y = softmax(relu(x @ wf1 + bf1) @ wf2 + bf2); single K tile (weight = 3.2 MB bf16,
    comfortably inside the default scoped VMEM on v5e/v6e/v7x even double-buffered)."""
    M, K = xflat.shape
    _, H = wf1.shape
    _, N = wf2.shape
    m_tile = M if M <= 256 else 256
    if M % m_tile:
        m_tile = M
    nm = M // m_tile
    return pl.pallas_call(
        _fc_fused_kernel,
        out_shape=jax.ShapeDtypeStruct((M, N), jnp.float32),
        grid_spec=pltpu.PrefetchScalarGridSpec(
            num_scalar_prefetch=0,
            grid=(nm,),
            in_specs=[
                pl.BlockSpec((m_tile, K), lambda i: (i, 0)),
                pl.BlockSpec((K, H), lambda i: (0, 0)),
                pl.BlockSpec((1, H), lambda i: (0, 0)),
                pl.BlockSpec((H, N), lambda i: (0, 0)),
                pl.BlockSpec((1, N), lambda i: (0, 0)),
            ],
            out_specs=pl.BlockSpec((m_tile, N), lambda i: (i, 0)),
        ),
        compiler_params=pltpu.CompilerParams(dimension_semantics=("parallel",)),
    )(xflat, wf1, bf1.reshape(1, -1), wf2, bf2.reshape(1, -1))


# ------------------------------------------------------------------------ params ---

def init_params(key):
    """Random parameters in PyTorch's native layouts."""
    ks = jax.random.split(key, 8)

    def w(k, shape, scale):
        return jax.random.normal(k, shape, jnp.float32) * scale

    return {
        "conv1_w": w(ks[0], (32, 3, 3, 3), 0.15),   # (cout, cin, kh, kw)
        "conv1_b": w(ks[1], (32,), 0.15),
        "conv2_w": w(ks[2], (64, 32, 3, 3), 0.08),
        "conv2_b": w(ks[3], (64,), 0.08),
        "fc1_w": w(ks[4], (128, 12544), 0.02),      # (out, in); in = c*196 + h*14 + w
        "fc1_b": w(ks[5], (128,), 0.02),
        "fc2_w": w(ks[6], (10, 128), 0.07),
        "fc2_b": w(ks[7], (10,), 0.07),
    }


def prepare_params(p):
    """One-time conversion from PyTorch layouts to kernel layouts (weights bf16, biases f32)."""
    bf16 = jnp.bfloat16

    # conv1 -> W1wide (48, 96): row (i*5 + j)*3 + ci over a 3x5 input window, column
    # 32*j2 + co so the matmul emits 3 horizontally shifted copies packed into lanes.
    w1 = p["conv1_w"]                                        # (co, ci, kh, kw)
    w1wide = jnp.zeros((45, 96), jnp.float32)
    for j2 in range(3):
        for i in range(3):
            for jj in range(3):
                r0 = (i * 5 + j2 + jj) * 3
                w1wide = w1wide.at[r0:r0 + 3, 32 * j2:32 * j2 + 32].set(w1[:, :, i, jj].T)
    w1wide = jnp.pad(w1wide, ((0, 3), (0, 0)))               # K 45 -> 48
    b1p = jnp.tile(p["conv1_b"], 3).reshape(1, 96)

    # conv2 -> 3 vertical taps, each (96, 64): row 32*j2 + ci, column co.
    w2p = jnp.transpose(p["conv2_w"], (2, 3, 1, 0)).reshape(3, 96, 64)
    b2p = jnp.tile(p["conv2_b"], 2).reshape(1, 128)

    # fc1 rows permuted from torch-flatten order (c, h, w) to the packed conv output
    # order (p, v, t, d) with width q = v + 7*t  (output row = p*7+v, lane = t*64+d).
    wf1 = p["fc1_w"].reshape(128, 64, 14, 14)                # (o, d, p, q)
    wf1 = jnp.transpose(wf1, (2, 3, 1, 0))                   # (p, q, d, o)
    wf1 = wf1.reshape(14, 2, 7, 64, 128)                     # (p, t, v, d, o)
    wf1 = jnp.transpose(wf1, (0, 2, 1, 3, 4)).reshape(12544, 128)
    wf2 = p["fc2_w"].T                                       # (128, 10)

    return {
        "w1p": w1wide.astype(bf16), "b1p": b1p.astype(jnp.float32),
        "w2p": w2p.astype(bf16), "b2p": b2p.astype(jnp.float32),
        "wf1": wf1.astype(bf16), "bf1": p["fc1_b"].astype(jnp.float32),
        "wf2": wf2.astype(bf16), "bf2": p["fc2_b"].astype(jnp.float32),
    }


# ----------------------------------------------------------------------- forward ---

def lenet_forward(x_nchw, kp):
    """Inference forward pass: dropout = identity, output = exp(log_softmax) = softmax."""
    B = x_nchw.shape[0]

    # Input prep (small fused XLA op): NCHW -> NHWC, pad width by 4 zero cols, build the
    # 3x5-window im2col (K = 45 -> 48) in rows r = oh*32 + ow.  Review-sanctioned wrapper
    # pre-pack; ~90 KB/image in bf16.
    x = jnp.transpose(x_nchw, (0, 2, 3, 1))
    x = jnp.pad(x, ((0, 0), (0, 0), (0, 4), (0, 0)))
    patch = jnp.concatenate(
        [x[:, i:i + 30, j:j + 32, :] for i in range(3) for j in range(5)], axis=-1)
    patch = jnp.pad(patch, ((0, 0), (0, 0), (0, 0), (0, 3)))
    patch = patch.reshape(B, 960, 48).astype(jnp.bfloat16)

    # conv1 + ReLU + conv2 + 2x2 max-pool + bias, fused -> (B, 98, 128) bf16 packed.
    y2 = conv_fused(patch, kp["w1p"], kp["b1p"], kp["w2p"], kp["b2p"])

    # dropout1 / dropout2: identity at inference time.
    flat = y2.reshape(B, 98 * 128)                           # layout-preserving reshape
    return fc_fused(flat, kp["wf1"], kp["bf1"], kp["wf2"], kp["bf2"])


def lenet_reference(x, p):
    """Pure-JAX f32 reference of the PyTorch forward (for validation)."""
    y = lax.conv_general_dilated(x, p["conv1_w"], (1, 1), "VALID",
                                 dimension_numbers=("NCHW", "OIHW", "NCHW"))
    y = jnp.maximum(y + p["conv1_b"][None, :, None, None], 0.0)
    y = lax.conv_general_dilated(y, p["conv2_w"], (1, 1), "VALID",
                                 dimension_numbers=("NCHW", "OIHW", "NCHW"))
    y = y + p["conv2_b"][None, :, None, None]
    y = lax.reduce_window(y, -jnp.inf, lax.max, (1, 1, 2, 2), (1, 1, 2, 2), "VALID")
    y = y.reshape(x.shape[0], -1)
    y = jnp.maximum(y @ p["fc1_w"].T + p["fc1_b"], 0.0)
    y = y @ p["fc2_w"].T + p["fc2_b"]
    return jax.nn.softmax(y, axis=-1)                        # exp(log_softmax) == softmax


if __name__ == "__main__":
    key = jax.random.PRNGKey(0)
    kx, kparam = jax.random.split(key)
    # fc1's 12544 = 64*14*14 input features imply 3x32x32 images; batch = 2.
    x = jax.random.normal(kx, (2, 3, 32, 32), jnp.float32)
    params = init_params(kparam)
    kparams = prepare_params(params)

    fwd = jax.jit(lenet_forward)
    out = jax.block_until_ready(fwd(x, kparams))

    assert out.shape == (2, 10)
    assert bool(jnp.all(jnp.isfinite(out)))
    # rows are softmax distributions -> sum to 1
    assert bool(jnp.allclose(jnp.sum(out, axis=1), 1.0, atol=1e-4))
    # end-to-end check against the f32 reference (tolerance covers bf16 matmul rounding)
    ref = lenet_reference(x, params)
    assert bool(jnp.allclose(out, ref, atol=4e-2)), float(jnp.max(jnp.abs(out - ref)))

    print("KERNEL_OK")
</pallas_src>

<mosaic_0001>
module attributes {stable_mosaic.version = 11 : i64} {
  func.func @_conv_fused_kernel(%arg0: i32, %arg1: memref<1x960x48xbf16, #tpu.memory_space<vmem>>, %arg2: memref<48x96xbf16, #tpu.memory_space<vmem>>, %arg3: memref<1x96xf32, #tpu.memory_space<vmem>>, %arg4: memref<3x96x64xbf16, #tpu.memory_space<vmem>>, %arg5: memref<1x128xf32, #tpu.memory_space<vmem>>, %arg6: memref<1x98x128xbf16, #tpu.memory_space<vmem>>, %arg7: memref<960x96xbf16, #tpu.memory_space<vmem>>, %arg8: memref<896x64xf32, #tpu.memory_space<vmem>>) attributes {dimension_semantics = [#tpu.dimension_semantics<parallel>], iteration_bounds = array<i64: 2>, scalar_prefetch = 0 : i64, scratch_operands = 2 : i64, tpu.core_type = #tpu.core_type<tc>, window_params = [{transform_indices = @transform_0, window_bounds = array<i64: 1, 960, 48>}, {pipeline_mode = #tpu.pipeline_mode<synchronous>, transform_indices = @transform_1, window_bounds = array<i64: 48, 96>}, {pipeline_mode = #tpu.pipeline_mode<synchronous>, transform_indices = @transform_2, window_bounds = array<i64: 1, 96>}, {pipeline_mode = #tpu.pipeline_mode<synchronous>, transform_indices = @transform_3, window_bounds = array<i64: 3, 96, 64>}, {pipeline_mode = #tpu.pipeline_mode<synchronous>, transform_indices = @transform_4, window_bounds = array<i64: 1, 128>}, {transform_indices = @transform_5, window_bounds = array<i64: 1, 98, 128>}]} {
    %c0 = arith.constant 0 : index
    %c0_0 = arith.constant 0 : index
    %c0_1 = arith.constant 0 : index
    %0 = vector.load %arg1[%c0, %c0_0, %c0_1] : memref<1x960x48xbf16, #tpu.memory_space<vmem>>, vector<1x960x48xbf16>
    %1 = vector.shape_cast %0 : vector<1x960x48xbf16> to vector<960x48xbf16>
    %c0_2 = arith.constant 0 : index
    %c0_3 = arith.constant 0 : index
    %2 = vector.load %arg2[%c0_2, %c0_3] : memref<48x96xbf16, #tpu.memory_space<vmem>>, vector<48x96xbf16>
    %cst = arith.constant dense<0.000000e+00> : vector<960x96xf32>
    %3 = tpu.matmul %1, %2, %cst {dimension_numbers = #tpu.dot_dimension_numbers<[1], [0], [0], [1], [0, 0, 1, 1], [], []>} : vector<960x48xbf16>, vector<48x96xbf16>, vector<960x96xf32> -> vector<960x96xf32>
    %c0_4 = arith.constant 0 : index
    %c0_5 = arith.constant 0 : index
    %4 = vector.load %arg3[%c0_4, %c0_5] : memref<1x96xf32, #tpu.memory_space<vmem>>, vector<1x96xf32>
    %5 = vector.broadcast %4 : vector<1x96xf32> to vector<960x96xf32>
    %6 = arith.addf %3, %5 : vector<960x96xf32>
    %cst_6 = arith.constant 0.000000e+00 : f32
    %7 = vector.broadcast %cst_6 : f32 to vector<960x96xf32>
    %8 = arith.maximumf %6, %7 : vector<960x96xf32>
    %9 = arith.truncf %8 : vector<960x96xf32> to vector<960x96xbf16>
    %c0_7 = arith.constant 0 : index
    %c0_8 = arith.constant 0 : index
    %10 = vector.load %arg7[%c0_7, %c0_8] : memref<960x96xbf16, #tpu.memory_space<vmem>>, vector<960x96xbf16>
    tpu.vector_store %arg7[%c0_7, %c0_8], %9 {strides = array<i32>} : memref<960x96xbf16, #tpu.memory_space<vmem>>, vector<960x96xbf16>,
    %c0_9 = arith.constant 0 : index
    %c0_10 = arith.constant 0 : index
    %11 = vector.load %arg7[%c0_9, %c0_10] : memref<960x96xbf16, #tpu.memory_space<vmem>>, vector<896x96xbf16>
    %c0_11 = arith.constant 0 : index
    %c0_12 = arith.constant 0 : index
    %c0_13 = arith.constant 0 : index
    %12 = vector.load %arg4[%c0_11, %c0_12, %c0_13] : memref<3x96x64xbf16, #tpu.memory_space<vmem>>, vector<1x96x64xbf16>
    %13 = vector.shape_cast %12 : vector<1x96x64xbf16> to vector<96x64xbf16>
    %cst_14 = arith.constant dense<0.000000e+00> : vector<896x64xf32>
    %14 = tpu.matmul %11, %13, %cst_14 {dimension_numbers = #tpu.dot_dimension_numbers<[1], [0], [0], [1], [0, 0, 1, 1], [], []>} : vector<896x96xbf16>, vector<96x64xbf16>, vector<896x64xf32> -> vector<896x64xf32>
    %c0_15 = arith.constant 0 : index
    %c0_16 = arith.constant 0 : index
    %15 = vector.load %arg8[%c0_15, %c0_16] : memref<896x64xf32, #tpu.memory_space<vmem>>, vector<896x64xf32>
    tpu.vector_store %arg8[%c0_15, %c0_16], %14 {strides = array<i32>} : memref<896x64xf32, #tpu.memory_space<vmem>>, vector<896x64xf32>,
    %c32 = arith.constant 32 : index
    %c0_17 = arith.constant 0 : index
    %16 = vector.load %arg7[%c32, %c0_17] : memref<960x96xbf16, #tpu.memory_space<vmem>>, vector<896x96xbf16>
    %c1 = arith.constant 1 : index
    %c0_18 = arith.constant 0 : index
    %c0_19 = arith.constant 0 : index
    %17 = vector.load %arg4[%c1, %c0_18, %c0_19] : memref<3x96x64xbf16, #tpu.memory_space<vmem>>, vector<1x96x64xbf16>
    %18 = vector.shape_cast %17 : vector<1x96x64xbf16> to vector<96x64xbf16>
    %cst_20 = arith.constant dense<0.000000e+00> : vector<896x64xf32>
    %19 = tpu.matmul %16, %18, %cst_20 {dimension_numbers = #tpu.dot_dimension_numbers<[1], [0], [0], [1], [0, 0, 1, 1], [], []>} : vector<896x96xbf16>, vector<96x64xbf16>, vector<896x64xf32> -> vector<896x64xf32>
    %c0_21 = arith.constant 0 : index
    %c0_22 = arith.constant 0 : index
    %20 = vector.load %arg8[%c0_21, %c0_22] : memref<896x64xf32, #tpu.memory_space<vmem>>, vector<896x64xf32>
    %21 = arith.addf %20, %19 : vector<896x64xf32>
    %c0_23 = arith.constant 0 : index
    %c0_24 = arith.constant 0 : index
    %22 = vector.load %arg8[%c0_23, %c0_24] : memref<896x64xf32, #tpu.memory_space<vmem>>, vector<896x64xf32>
    tpu.vector_store %arg8[%c0_23, %c0_24], %21 {strides = array<i32>} : memref<896x64xf32, #tpu.memory_space<vmem>>, vector<896x64xf32>,
    %c64 = arith.constant 64 : index
    %c0_25 = arith.constant 0 : index
    %23 = vector.load %arg7[%c64, %c0_25] : memref<960x96xbf16, #tpu.memory_space<vmem>>, vector<896x96xbf16>
    %c2 = arith.constant 2 : index
    %c0_26 = arith.constant 0 : index
    %c0_27 = arith.constant 0 : index
    %24 = vector.load %arg4[%c2, %c0_26, %c0_27] : memref<3x96x64xbf16, #tpu.memory_space<vmem>>, vector<1x96x64xbf16>
    %25 = vector.shape_cast %24 : vector<1x96x64xbf16> to vector<96x64xbf16>
    %cst_28 = arith.constant dense<0.000000e+00> : vector<896x64xf32>
    %26 = tpu.matmul %23, %25, %cst_28 {dimension_numbers = #tpu.dot_dimension_numbers<[1], [0], [0], [1], [0, 0, 1, 1], [], []>} : vector<896x96xbf16>, vector<96x64xbf16>, vector<896x64xf32> -> vector<896x64xf32>
    %c0_29 = arith.constant 0 : index
    %c0_30 = arith.constant 0 : index
    %27 = vector.load %arg8[%c0_29, %c0_30] : memref<896x64xf32, #tpu.memory_space<vmem>>, vector<896x64xf32>
    %28 = arith.addf %27, %26 : vector<896x64xf32>
    %c0_31 = arith.constant 0 : index
    %c0_32 = arith.constant 0 : index
    %29 = vector.load %arg8[%c0_31, %c0_32] : memref<896x64xf32, #tpu.memory_space<vmem>>, vector<896x64xf32>
    tpu.vector_store %arg8[%c0_31, %c0_32], %28 {strides = array<i32>} : memref<896x64xf32, #tpu.memory_space<vmem>>, vector<896x64xf32>,
    %c0_33 = arith.constant 0 : index
    %c0_34 = arith.constant 0 : index
    %30 = tpu.strided_load %arg8[%c0_33, %c0_34] {strides = array<i32: 2, 1>} : memref<896x64xf32, #tpu.memory_space<vmem>>, vector<448x64xf32>
    %c1_35 = arith.constant 1 : index
    %c0_36 = arith.constant 0 : index
    %31 = tpu.strided_load %arg8[%c1_35, %c0_36] {strides = array<i32: 2, 1>} : memref<896x64xf32, #tpu.memory_space<vmem>>, vector<448x64xf32>
    %32 = arith.maximumf %30, %31 : vector<448x64xf32>
    %33 = vector.shape_cast %32 : vector<448x64xf32> to vector<14x2x16x64xf32>
    %34 = vector.extract_strided_slice %33 {offsets = [0, 0, 0, 0], sizes = [14, 1, 16, 64], strides = [1, 1, 1, 1]} : vector<14x2x16x64xf32> to vector<14x1x16x64xf32>
    %35 = vector.shape_cast %34 : vector<14x1x16x64xf32> to vector<14x16x64xf32>
    %36 = vector.extract_strided_slice %33 {offsets = [0, 1, 0, 0], sizes = [14, 1, 16, 64], strides = [1, 1, 1, 1]} : vector<14x2x16x64xf32> to vector<14x1x16x64xf32>
    %37 = vector.shape_cast %36 : vector<14x1x16x64xf32> to vector<14x16x64xf32>
    %38 = arith.maximumf %35, %37 : vector<14x16x64xf32>
    %39 = vector.extract_strided_slice %38 {offsets = [0, 0, 0], sizes = [14, 7, 64], strides = [1, 1, 1]} : vector<14x16x64xf32> to vector<14x7x64xf32>
    %40 = vector.extract_strided_slice %38 {offsets = [0, 7, 0], sizes = [14, 7, 64], strides = [1, 1, 1]} : vector<14x16x64xf32> to vector<14x7x64xf32>
    %41 = tpu.concatenate %39, %40 in 2 : vector<14x7x64xf32>, vector<14x7x64xf32> -> vector<14x7x128xf32>
    %42 = vector.shape_cast %41 : vector<14x7x128xf32> to vector<98x128xf32>
    %c0_37 = arith.constant 0 : index
    %c0_38 = arith.constant 0 : index
    %43 = vector.load %arg5[%c0_37, %c0_38] : memref<1x128xf32, #tpu.memory_space<vmem>>, vector<1x128xf32>
    %44 = vector.broadcast %43 : vector<1x128xf32> to vector<98x128xf32>
    %45 = arith.addf %42, %44 : vector<98x128xf32>
    %46 = arith.truncf %45 : vector<98x128xf32> to vector<98x128xbf16>
    %c0_39 = arith.constant 0 : index
    %c0_40 = arith.constant 0 : index
    %c0_41 = arith.constant 0 : index
    %47 = vector.load %arg6[%c0_39, %c0_40, %c0_41] : memref<1x98x128xbf16, #tpu.memory_space<vmem>>, vector<1x98x128xbf16>
    %48 = vector.shape_cast %47 : vector<1x98x128xbf16> to vector<98x128xbf16>
    %49 = vector.shape_cast %46 : vector<98x128xbf16> to vector<1x98x128xbf16>
    tpu.vector_store %arg6[%c0_39, %c0_40, %c0_41], %49 {strides = array<i32>} : memref<1x98x128xbf16, #tpu.memory_space<vmem>>, vector<1x98x128xbf16>,
    return
  }
  func.func @transform_0(%arg0: i32) -> (i32, i32, i32) {
    %c0_i32 = arith.constant 0 : i32
    %c0_i32_0 = arith.constant 0 : i32
    %c0_i32_1 = arith.constant 0 : i32
    return %arg0, %c0_i32, %c0_i32_0 : i32, i32, i32
  }
  func.func @transform_1(%arg0: i32) -> (i32, i32) {
    %c0_i32 = arith.constant 0 : i32
    %c0_i32_0 = arith.constant 0 : i32
    %c0_i32_1 = arith.constant 0 : i32
    return %c0_i32, %c0_i32_0 : i32, i32
  }
  func.func @transform_2(%arg0: i32) -> (i32, i32) {
    %c0_i32 = arith.constant 0 : i32
    %c0_i32_0 = arith.constant 0 : i32
    %c0_i32_1 = arith.constant 0 : i32
    return %c0_i32, %c0_i32_0 : i32, i32
  }
  func.func @transform_3(%arg0: i32) -> (i32, i32, i32) {
    %c0_i32 = arith.constant 0 : i32
    %c0_i32_0 = arith.constant 0 : i32
    %c0_i32_1 = arith.constant 0 : i32
    %c0_i32_2 = arith.constant 0 : i32
    return %c0_i32, %c0_i32_0, %c0_i32_1 : i32, i32, i32
  }
  func.func @transform_4(%arg0: i32) -> (i32, i32) {
    %c0_i32 = arith.constant 0 : i32
    %c0_i32_0 = arith.constant 0 : i32
    %c0_i32_1 = arith.constant 0 : i32
    return %c0_i32, %c0_i32_0 : i32, i32
  }
  func.func @transform_5(%arg0: i32) -> (i32, i32, i32) {
    %c0_i32 = arith.constant 0 : i32
    %c0_i32_0 = arith.constant 0 : i32
    %c0_i32_1 = arith.constant 0 : i32
    return %arg0, %c0_i32, %c0_i32_0 : i32, i32, i32
  }
}

module attributes {stable_mosaic.version = 11 : i64} {
  func.func @_fc_fused_kernel(%arg0: i32, %arg1: memref<2x12544xbf16, #tpu.memory_space<vmem>>, %arg2: memref<12544x128xbf16, #tpu.memory_space<vmem>>, %arg3: memref<1x128xf32, #tpu.memory_space<vmem>>, %arg4: memref<128x10xbf16, #tpu.memory_space<vmem>>, %arg5: memref<1x10xf32, #tpu.memory_space<vmem>>, %arg6: memref<2x10xf32, #tpu.memory_space<vmem>>) attributes {dimension_semantics = [#tpu.dimension_semantics<parallel>], iteration_bounds = array<i64: 1>, scalar_prefetch = 0 : i64, scratch_operands = 0 : i64, tpu.core_type = #tpu.core_type<tc>, window_params = [{transform_indices = @transform_0, window_bounds = array<i64: 2, 12544>}, {pipeline_mode = #tpu.pipeline_mode<synchronous>, transform_indices = @transform_1, window_bounds = array<i64: 12544, 128>}, {pipeline_mode = #tpu.pipeline_mode<synchronous>, transform_indices = @transform_2, window_bounds = array<i64: 1, 128>}, {pipeline_mode = #tpu.pipeline_mode<synchronous>, transform_indices = @transform_3, window_bounds = array<i64: 128, 10>}, {pipeline_mode = #tpu.pipeline_mode<synchronous>, transform_indices = @transform_4, window_bounds = array<i64: 1, 10>}, {transform_indices = @transform_5, window_bounds = array<i64: 2, 10>}]} {
    %c0 = arith.constant 0 : index
    %c0_0 = arith.constant 0 : index
    %0 = vector.load %arg1[%c0, %c0_0] : memref<2x12544xbf16, #tpu.memory_space<vmem>>, vector<2x12544xbf16>
    %c0_1 = arith.constant 0 : index
    %c0_2 = arith.constant 0 : index
    %1 = vector.load %arg2[%c0_1, %c0_2] : memref<12544x128xbf16, #tpu.memory_space<vmem>>, vector<12544x128xbf16>
    %cst = arith.constant dense<0.000000e+00> : vector<2x128xf32>
    %2 = tpu.matmul %0, %1, %cst {dimension_numbers = #tpu.dot_dimension_numbers<[1], [0], [0], [1], [0, 0, 1, 1], [], []>} : vector<2x12544xbf16>, vector<12544x128xbf16>, vector<2x128xf32> -> vector<2x128xf32>
    %c0_3 = arith.constant 0 : index
    %c0_4 = arith.constant 0 : index
    %3 = vector.load %arg3[%c0_3, %c0_4] : memref<1x128xf32, #tpu.memory_space<vmem>>, vector<1x128xf32>
    %4 = vector.broadcast %3 : vector<1x128xf32> to vector<2x128xf32>
    %5 = arith.addf %2, %4 : vector<2x128xf32>
    %cst_5 = arith.constant 0.000000e+00 : f32
    %6 = vector.broadcast %cst_5 : f32 to vector<2x128xf32>
    %7 = arith.maximumf %5, %6 : vector<2x128xf32>
    %8 = arith.truncf %7 : vector<2x128xf32> to vector<2x128xbf16>
    %c0_6 = arith.constant 0 : index
    %c0_7 = arith.constant 0 : index
    %9 = vector.load %arg4[%c0_6, %c0_7] : memref<128x10xbf16, #tpu.memory_space<vmem>>, vector<128x10xbf16>
    %cst_8 = arith.constant dense<0.000000e+00> : vector<2x10xf32>
    %10 = tpu.matmul %8, %9, %cst_8 {dimension_numbers = #tpu.dot_dimension_numbers<[1], [0], [0], [1], [0, 0, 1, 1], [], []>} : vector<2x128xbf16>, vector<128x10xbf16>, vector<2x10xf32> -> vector<2x10xf32>
    %c0_9 = arith.constant 0 : index
    %c0_10 = arith.constant 0 : index
    %11 = vector.load %arg5[%c0_9, %c0_10] : memref<1x10xf32, #tpu.memory_space<vmem>>, vector<1x10xf32>
    %12 = vector.broadcast %11 : vector<1x10xf32> to vector<2x10xf32>
    %13 = arith.addf %10, %12 : vector<2x10xf32>
    %cst_11 = arith.constant dense<0xFF800000> : vector<2xf32>
    %14 = vector.multi_reduction <maximumf>, %13, %cst_11 [1] : vector<2x10xf32> to vector<2xf32>
    %15 = vector.shape_cast %14 : vector<2xf32> to vector<2x1xf32>
    %16 = vector.broadcast %15 : vector<2x1xf32> to vector<2x10xf32>
    %17 = arith.subf %13, %16 : vector<2x10xf32>
    %18 = math.exp %17 : vector<2x10xf32>
    %cst_12 = arith.constant dense<0.000000e+00> : vector<2xf32>
    %19 = vector.multi_reduction <add>, %18, %cst_12 [1] : vector<2x10xf32> to vector<2xf32>
    %20 = vector.shape_cast %19 : vector<2xf32> to vector<2x1xf32>
    %21 = vector.broadcast %20 : vector<2x1xf32> to vector<2x10xf32>
    %22 = arith.divf %18, %21 : vector<2x10xf32>
    %c0_13 = arith.constant 0 : index
    %c0_14 = arith.constant 0 : index
    %23 = vector.load %arg6[%c0_13, %c0_14] : memref<2x10xf32, #tpu.memory_space<vmem>>, vector<2x10xf32>
    tpu.vector_store %arg6[%c0_13, %c0_14], %22 {strides = array<i32>} : memref<2x10xf32, #tpu.memory_space<vmem>>, vector<2x10xf32>,
    return
  }
  func.func @transform_0(%arg0: i32) -> (i32, i32) {
    %c0_i32 = arith.constant 0 : i32
    %c0_i32_0 = arith.constant 0 : i32
    return %arg0, %c0_i32 : i32, i32
  }
  func.func @transform_1(%arg0: i32) -> (i32, i32) {
    %c0_i32 = arith.constant 0 : i32
    %c0_i32_0 = arith.constant 0 : i32
    %c0_i32_1 = arith.constant 0 : i32
    return %c0_i32, %c0_i32_0 : i32, i32
  }
  func.func @transform_2(%arg0: i32) -> (i32, i32) {
    %c0_i32 = arith.constant 0 : i32
    %c0_i32_0 = arith.constant 0 : i32
    %c0_i32_1 = arith.constant 0 : i32
    return %c0_i32, %c0_i32_0 : i32, i32
  }
  func.func @transform_3(%arg0: i32) -> (i32, i32) {
    %c0_i32 = arith.constant 0 : i32
    %c0_i32_0 = arith.constant 0 : i32
    %c0_i32_1 = arith.constant 0 : i32
    return %c0_i32, %c0_i32_0 : i32, i32
  }
  func.func @transform_4(%arg0: i32) -> (i32, i32) {
    %c0_i32 = arith.constant 0 : i32
    %c0_i32_0 = arith.constant 0 : i32
    %c0_i32_1 = arith.constant 0 : i32
    return %c0_i32, %c0_i32_0 : i32, i32
  }
  func.func @transform_5(%arg0: i32) -> (i32, i32) {
    %c0_i32 = arith.constant 0 : i32
    %c0_i32_0 = arith.constant 0 : i32
    return %arg0, %c0_i32 : i32, i32
  }
}

</mosaic_0001>

<bundles_post_ra>
// kernel: lenet_forward.2
= control target key start
LH: loop header
LB: loop body
LE: loop exit
PB: predicated region body
PF: predicated region fallthrough
CT: control target
= control target key end

     0   :  { %s8158_s18 = smov 0   ;;  %s9988_s0 = inlined_call_operand.vmem [shape: bf16[2,960,48], index: 0, kind: input, shape index: {}]   ;;  %s9989_s1 = inlined_call_operand.vmem [shape: bf16[48,96], index: 1, kind: input, shape index: {}]   ;;  %s9990_s2 = inlined_call_operand.vmem [shape: f32[1,96], index: 2, kind: input, shape index: {}]   ;;  %s9991_s3 = inlined_call_operand.vmem [shape: bf16[3,96,64], index: 3, kind: input, shape index: {}]   ;;  %s9992_s4 = inlined_call_operand.vmem [shape: f32[1,128], index: 4, kind: input, shape index: {}]   ;;  %s9993_s5 = inlined_call_operand.vmem [shape: bf16[2,98,128], index: 5, kind: output, shape index: {}]  }
   0x1 LB: > { %s6872_s19 = sadd.s32 4294967295, %s8124_s18   ;;  %p6876_p0 = scmp.ge.s32.totalorder %s8124_s18, 1  ;;  %s8124_s18 = sphi %s8158_s18, %s15_s18  }
   0x2   : > { %p187_p1 = scmp.lt.s32.totalorder %s8124_s18, 3 }
   0x4   : > { %p188_p2 = pnand %p6876_p0, %p187_p1 }
   0x6   : > { %191 = sbr.rel (%p188_p2) target bundleno = 1077 (0x435), region = 40 }
   0xd   : > { %v8036_v0 = vld [vmem:[%s9989_s1] sm:$0xff]   ;;  %p215_p3 = scmp.lt.s32.totalorder %s6872_s19, 1  ;;  %v8037_v1 = vld [vmem:[%s9989_s1 + $0x8] sm:$0xff]   ;;  %vm677_vm0 = vcmask 392192   ;;  %v8038_v2 = vld [vmem:[%s9989_s1 + $0x10] sm:$0xff]   ;;  %vm1551_vm1 = vcmask 785408  }
   0xe   : > { %7526 = vmatprep.subr.bf16.mxu0 %v8036_v0  ;;  %v8091_v24 = vld [vmem:[%s9991_s3] sm:$0xff]   ;;  %v8094_v27 = vld [vmem:[%s9991_s3 + $0x8] sm:$0xff]   ;;  %v8095_v29 = vld [vmem:[%s9991_s3 + $0x10] sm:$0xff]   ;;  %vm2365_vm2 = vcmask 523264   ;;  %vm4993_vm3 = vcmask 1040384   ;;  %s8126_s24 = smov 64  }
   0xf   : > { %s10117_s19 = smov (!%p215_p3, %s6872_s19), 1  ;;  %7527 = vmatpush3.bf16.msra.mxu0 %v8036_v0  ;;  %7652 = vmatprep.subr.bf16.mxu1 %v8091_v24  ;;  %v8098_v31 = vld [vmem:[%s9991_s3 + $0x18] sm:$0xff]   ;;  %v8099_v33 = vld [vmem:[%s9991_s3 + $0x20] sm:$0xff]   ;;  %v8101_v36 = vld [vmem:[%s9991_s3 + $0x28] sm:$0xff]  }
  0x10   : > { %7528 = vmatprep.subr.bf16.mxu0 %v8037_v1  ;;  %s8024_s26 = smul.u32 480, %s10117_s19  ;;  %7653 = vmatpush3.bf16.msra.mxu1 %v8091_v24  ;;  %v8100_v34 = vld [vmem:[%s9991_s3 + $0x60] sm:$0xff]   ;;  %v8102_v37 = vld [vmem:[%s9991_s3 + $0x68] sm:$0xff]   ;;  %v8106_v39 = vld [vmem:[%s9991_s3 + $0x70] sm:$0xff]  }
  0x11   : > { %7654 = vmatprep.subr.bf16.mxu1 %v8094_v27  ;;  %v8107_v41 = vld [vmem:[%s9991_s3 + $0x78] sm:$0xff]   ;;  %v8275_v43 = vld [vmem:[%s9991_s3 + $0x30] sm:$0xff]   ;;  %v8110_v44 = vld [vmem:[%s9991_s3 + $0x80] sm:$0xff]   ;;  %s8025_s27 = smul.u32 52, %s10117_s19 }
  0x12   : > { %s8181_s29 = scalar_lea.vmem %s9988_s0, %s8024_s26  ;;  %v8111_v46 = vld [vmem:[%s9991_s3 + $0x88] sm:$0xff]  }
  0x13   : > { %7529 = vmatpush3.bf16.msra.mxu0 %v8037_v1  ;;  %v8039_v3 = vld [vmem:[%s8181_s29] sm:$0xff]   ;;  %v8040_v4 = vld [vmem:[%s8181_s29 + $0x8] sm:$0xff]   ;;  %v8041_v5 = vld [vmem:[%s8181_s29 + $0x10] sm:$0xff]   ;;  %s9642_s6 = scalar_lea.vmem %s9993_s5, %s8025_s27 }
  0x14   : > { %7530 = vmatprep.subr.bf16.mxu0 %v8038_v2  ;;  %7532 = vmatprep.mubr.msk.bf16.mxu0 %vm677_vm0, %v8039_v3  ;;  %v8042_v6 = vld [vmem:[%s8181_s29 + $0x18] sm:$0xff]   ;;  %v8043_v7 = vld [vmem:[%s8181_s29 + $0x20] sm:$0xff]   ;;  %v8044_v8 = vld [vmem:[%s8181_s29 + $0x28] sm:$0xff]  }
  0x15   : > { %v8045_v9 = vld [vmem:[%s8181_s29 + $0x30] sm:$0xff]   ;;  %v8046_v10 = vld [vmem:[%s8181_s29 + $0x38] sm:$0xff]   ;;  %v8047_v11 = vld [vmem:[%s8181_s29 + $0x40] sm:$0xff]   ;;  %7655 = vmatpush3.bf16.msra.mxu1 %v8094_v27 }
  0x16   : > { %v8048_v12 = vld [vmem:[%s8181_s29 + $0x48] sm:$0xff]   ;;  %v8049_v13 = vld [vmem:[%s8181_s29 + $0x50] sm:$0xff]   ;;  %v8050_v14 = vld [vmem:[%s8181_s29 + $0x58] sm:$0xff]   ;;  %7656 = vmatprep.subr.bf16.mxu1 %v8095_v29 }
  0x17   : > { %7531 = vmatpush3.bf16.msra.mxu0 %v8038_v2  ;;  %v8051_v15 = vld [vmem:[%s8181_s29 + $0x60] sm:$0xff]   ;;  %v8052_v16 = vld [vmem:[%s8181_s29 + $0x68] sm:$0xff]   ;;  %v8053_v17 = vld [vmem:[%s8181_s29 + $0x70] sm:$0xff]  }
  0x18   : > { %v8054_v18 = vld [vmem:[%s8181_s29 + $0x78] sm:$0xff]   ;;  %v8055_v19 = vld [vmem:[%s8181_s29 + $0x80] sm:$0xff]   ;;  %v8056_v20 = vld [vmem:[%s8181_s29 + $0x88] sm:$0xff]   ;;  %7900 = vmatprep.subr.bf16.mxu0 %v8100_v34 }
  0x19   : > { %v8057_v21 = vld [vmem:[%s8181_s29 + $0x90] sm:$0xff]   ;;  %v8058_v22 = vld [vmem:[%s8181_s29 + $0x98] sm:$0xff]   ;;  %v8059_v23 = vld [vmem:[%s8181_s29 + $0xa0] sm:$0xff]   ;;  %7657 = vmatpush3.bf16.msra.mxu1 %v8095_v29 }
  0x1a   : > { %7533 = vmatmul.mubr.msk.bf16.vlgmr.msra.gmra.mrb[0].mxu0 %vm677_vm0, %v8040_v4  ;;  %v8060_v25 = vld [vmem:[%s8181_s29 + $0xa8] sm:$0xff]   ;;  %v8061_v26 = vld [vmem:[%s8181_s29 + $0xb0] sm:$0xff]   ;;  %v8062_v28 = vld [vmem:[%s8181_s29 + $0xb8] sm:$0xff]   ;;  %7658 = vmatprep.subr.bf16.mxu1 %v8098_v31 }
  0x1b   : > { %7536 = vmatprep.mubr.msk.bf16.mxu0 %vm677_vm0, %v8041_v5  ;;  %v8063_v30 = vld [vmem:[%s8181_s29 + $0xc0] sm:$0xff]   ;;  %v8064_v32 = vld [vmem:[%s8181_s29 + $0xc8] sm:$0xff]   ;;  %v8065_v35 = vld [vmem:[%s8181_s29 + $0xd0] sm:$0xff]   ;;  %7901 = vmatpush3.bf16.msra.mxu0 %v8100_v34 }
  0x1c   : > { %7902 = vmatprep.subr.bf16.mxu0 %v8102_v37  ;;  %v8066_v38 = vld [vmem:[%s8181_s29 + $0xd8] sm:$0xff]   ;;  %v8067_v40 = vld [vmem:[%s8181_s29 + $0xe0] sm:$0xff]   ;;  %v8068_v42 = vld [vmem:[%s8181_s29 + $0xe8] sm:$0xff]  }
  0x1d   : > { %7659 = vmatpush3.bf16.msra.mxu1 %v8098_v31  ;;  %v8069_v45 = vld [vmem:[%s8181_s29 + $0xf0] sm:$0xff]   ;;  %v8070_v47 = vld [vmem:[%s8181_s29 + $0xf8] sm:$0xff]   ;;  %v8071_v48 = vld [vmem:[%s8181_s29 + $0x100] sm:$0xff]  }
  0x1e   : > { %7660 = vmatprep.subr.bf16.mxu1 %v8099_v33  ;;  %v8072_v49 = vld [vmem:[%s8181_s29 + $0x108] sm:$0xff]   ;;  %v8073_v50 = vld [vmem:[%s8181_s29 + $0x110] sm:$0xff]   ;;  %v8074_v51 = vld [vmem:[%s8181_s29 + $0x118] sm:$0xff]  }
  0x1f   : > { %7903 = vmatpush3.bf16.msra.mxu0 %v8102_v37  ;;  %v8075_v52 = vld [vmem:[%s8181_s29 + $0x120] sm:$0xff]   ;;  %v8076_v53 = vld [vmem:[%s8181_s29 + $0x128] sm:$0xff]   ;;  %v8077_v54 = vld [vmem:[%s8181_s29 + $0x130] sm:$0xff]  }
  0x20   : > { %7904 = vmatprep.subr.bf16.mxu0 %v8106_v39  ;;  %v8078_v55 = vld [vmem:[%s8181_s29 + $0x138] sm:$0xff]   ;;  %v8079_v56 = vld [vmem:[%s8181_s29 + $0x140] sm:$0xff]   ;;  %v8080_v57 = vld [vmem:[%s8181_s29 + $0x148] sm:$0xff]  }
  0x21   : > { %7661 = vmatpush3.bf16.msra.mxu1 %v8099_v33  ;;  %v8081_v58 = vld [vmem:[%s8181_s29 + $0x150] sm:$0xff]   ;;  %v8082_v59 = vld [vmem:[%s8181_s29 + $0x158] sm:$0xff]   ;;  %v8083_v60 = vld [vmem:[%s8181_s29 + $0x160] sm:$0xff]  }
  0x22   : > { %7537 = vmatmul.mubr.msk.bf16.gmra.mrb[4].mxu0 %vm677_vm0, %v8042_v6  ;;  %7662 = vmatprep.subr.bf16.mxu1 %v8101_v36  ;;  %v8084_v61 = vld [vmem:[%s8181_s29 + $0x168] sm:$0xff]   ;;  %v8085_v62 = vld [vmem:[%s8181_s29 + $0x170] sm:$0xff]   ;;  %v8086_v63 = vld [vmem:[%s8181_s29 + $0x178] sm:$0xff]  }
  0x23   : > { %7540 = vmatprep.mubr.msk.bf16.mxu0 %vm677_vm0, %v8043_v7  ;;  %7905 = vmatpush3.bf16.msra.mxu0 %v8106_v39  ;;  %v8087_v0 = vld [vmem:[%s8181_s29 + $0x180] sm:$0xff]   ;;  %v8088_v1 = vld [vmem:[%s8181_s29 + $0x188] sm:$0xff]   ;;  %v8089_v2 = vld [vmem:[%s8181_s29 + $0x190] sm:$0xff]  }
  0x24   : > { %7906 = vmatprep.subr.bf16.mxu0 %v8107_v41  ;;  %v8090_v3 = vld [vmem:[%s8181_s29 + $0x198] sm:$0xff]   ;;  %v8092_v4 = vld [vmem:[%s8181_s29 + $0x1a0] sm:$0xff]   ;;  %v8093_v5 = vld [vmem:[%s8181_s29 + $0x1a8] sm:$0xff]  }
  0x25   : > { %7663 = vmatpush3.bf16.msra.mxu1 %v8101_v36  ;;  %v8096_v6 = vld [vmem:[%s8181_s29 + $0x1b0] sm:$0xff]   ;;  %v8337_v7 = vld [vmem:[%s9990_s2] ss:$0 sm:$0xff]  ;;  %v8105_v27 = vld [vmem:[%s8181_s29 + $0x1c8] sm:$0xff]  }
  0x26   : > { %7776 = vmatprep.subr.bf16.mxu1 %v8275_v43 }
  0x27   : > { %7907 = vmatpush3.bf16.msra.mxu0 %v8107_v41 }
  0x28   : > { %7908 = vmatprep.subr.bf16.mxu0 %v8110_v44 }
  0x2a   : > { %7541 = vmatmul.mubr.msk.bf16.gmra.mrb[8].mxu0 %vm677_vm0, %v8044_v8 }
  0x2b   : > { %7544 = vmatprep.mubr.msk.bf16.mxu0 %vm677_vm0, %v8045_v9  ;;  %7909 = vmatpush3.bf16.msra.mxu0 %v8110_v44 }
  0x2c   : > { %7910 = vmatprep.subr.bf16.mxu0 %v8111_v46 }
  0x2f   : > { %7911 = vmatpush3.bf16.msra.mxu0 %v8111_v46  ;;  %v8112_v46 = vld [vmem:[%s9991_s3 + $0x38] sm:$0xff]  }
  0x32   : > { %7545 = vmatmul.mubr.msk.bf16.gmra.mrb[12].mxu0 %vm677_vm0, %v8046_v10 }
  0x33   : > { %7548 = vmatprep.mubr.msk.bf16.mxu0 %vm677_vm0, %v8047_v11  ;;  %v8097_v11 = vld [vmem:[%s8181_s29 + $0x1b8] sm:$0xff]  }
  0x3a   : > { %7549 = vmatmul.mubr.msk.bf16.gmra.mrb[16].mxu0 %vm677_vm0, %v8048_v12 }
  0x3b   : > { %7552 = vmatprep.mubr.msk.bf16.mxu0 %vm677_vm0, %v8049_v13 }
  0x42   : > { %7553 = vmatmul.mubr.msk.bf16.gmra.mrb[20].mxu0 %vm677_vm0, %v8050_v14  ;;  %v8103_v14 = vld [vmem:[%s8181_s29 + $0x1c0] sm:$0xff]  }
  0x43   : > { %7556 = vmatprep.mubr.msk.bf16.mxu0 %vm677_vm0, %v8051_v15 }
  0x4a   : > { %7557 = vmatmul.mubr.msk.bf16.gmra.mrb[24].mxu0 %vm677_vm0, %v8052_v16 }
  0x4b   : > { %7560 = vmatprep.mubr.msk.bf16.mxu0 %vm677_vm0, %v8053_v17 }
  0x52   : > { %7561 = vmatmul.mubr.msk.bf16.gmra.mrb[28].mxu0 %vm677_vm0, %v8054_v18 }
  0x53   : > { %7564 = vmatprep.mubr.msk.bf16.mxu0 %vm677_vm0, %v8055_v19 }
  0x5a   : > { %7565 = vmatmul.mubr.msk.bf16.gmra.mrb[32].mxu0 %vm677_vm0, %v8056_v20 }
  0x5b   : > { %7568 = vmatprep.mubr.msk.bf16.mxu0 %vm677_vm0, %v8057_v21 }
  0x62   : > { %7569 = vmatmul.mubr.msk.bf16.gmra.mrb[36].mxu0 %vm677_vm0, %v8058_v22 }
  0x63   : > { %7572 = vmatprep.mubr.msk.bf16.mxu0 %vm677_vm0, %v8059_v23 }
  0x6a   : > { %7573 = vmatmul.mubr.msk.bf16.gmra.mrb[40].mxu0 %vm677_vm0, %v8060_v25 }
  0x6b   : > { %7576 = vmatprep.mubr.msk.bf16.mxu0 %vm677_vm0, %v8061_v26 }
  0x72   : > { %7577 = vmatmul.mubr.msk.bf16.gmra.mrb[44].mxu0 %vm677_vm0, %v8062_v28 }
  0x73   : > { %7580 = vmatprep.mubr.msk.bf16.mxu0 %vm677_vm0, %v8063_v30  ;;  %v8108_v30 = vld [vmem:[%s8181_s29 + $0x1d0] sm:$0xff]  }
  0x7a   : > { %7581 = vmatmul.mubr.msk.bf16.gmra.mrb[48].mxu0 %vm677_vm0, %v8064_v32 }
  0x7b   : > { %7584 = vmatprep.mubr.msk.bf16.mxu0 %vm677_vm0, %v8065_v35 }
  0x82   : > { %7585 = vmatmul.mubr.msk.bf16.gmra.mrb[52].mxu0 %vm677_vm0, %v8066_v38 }
  0x83   : > { %7588 = vmatprep.mubr.msk.bf16.mxu0 %vm677_vm0, %v8067_v40 }
  0x8a   : > { %7589 = vmatmul.mubr.msk.bf16.gmra.mrb[56].mxu0 %vm677_vm0, %v8068_v42 }
  0x8b   : > { %7592 = vmatprep.mubr.msk.bf16.mxu0 %vm677_vm0, %v8069_v45  ;;  %v8109_v45 = vld [vmem:[%s8181_s29 + $0x1d8] sm:$0xff]  }
  0x92   : > { %7593 = vmatmul.mubr.msk.bf16.gmra.mrb[60].mxu0 %vm677_vm0, %v8070_v47 }
  0x93   : > { %7596 = vmatprep.mubr.msk.bf16.mxu0 %vm677_vm0, %v8071_v48 }
  0x9a   : > { %7597 = vmatmul.mubr.msk.bf16.gmra.mrb[64].mxu0 %vm677_vm0, %v8072_v49 }
  0x9b   : > { %7600 = vmatprep.mubr.msk.bf16.mxu0 %vm677_vm0, %v8073_v50 }
  0xa2   : > { %7601 = vmatmul.mubr.msk.bf16.gmra.mrb[68].mxu0 %vm677_vm0, %v8074_v51 }
  0xa3   : > { %7604 = vmatprep.mubr.msk.bf16.mxu0 %vm677_vm0, %v8075_v52 }
  0xaa   : > { %7605 = vmatmul.mubr.msk.bf16.gmra.mrb[72].mxu0 %vm677_vm0, %v8076_v53 }
  0xab   : > { %7608 = vmatprep.mubr.msk.bf16.mxu0 %vm677_vm0, %v8077_v54 }
  0xb2   : > { %7609 = vmatmul.mubr.msk.bf16.gmra.mrb[76].mxu0 %vm677_vm0, %v8078_v55  ;;  %v8113_v55 = vld [vmem:[%s9991_s3 + $0x40] sm:$0xff]  }
  0xb3   : > { %7612 = vmatprep.mubr.msk.bf16.mxu0 %vm677_vm0, %v8079_v56 }
  0xba   : > { %7613 = vmatmul.mubr.msk.bf16.gmra.mrb[80].mxu0 %vm677_vm0, %v8080_v57 }
  0xbb   : > { %7616 = vmatprep.mubr.msk.bf16.mxu0 %vm677_vm0, %v8081_v58 }
  0xc2   : > { %7617 = vmatmul.mubr.msk.bf16.gmra.mrb[84].mxu0 %vm677_vm0, %v8082_v59 }
  0xc3   : > { %7620 = vmatprep.mubr.msk.bf16.mxu0 %vm677_vm0, %v8083_v60 }
  0xca   : > { %7621 = vmatmul.mubr.msk.bf16.gmra.mrb[88].mxu0 %vm677_vm0, %v8084_v61 }
  0xcb   : > { %7624 = vmatprep.mubr.msk.bf16.mxu0 %vm677_vm0, %v8085_v62 }
  0xd2   : > { %7625 = vmatmul.mubr.msk.bf16.gmra.mrb[92].mxu0 %vm677_vm0, %v8086_v63  ;;  %v8114_v63 = vld [vmem:[%s9991_s3 + $0x48] sm:$0xff]  }
  0xd3   : > { %7628 = vmatprep.mubr.msk.bf16.mxu0 %vm677_vm0, %v8087_v0 }
  0xda   : > { %7629 = vmatmul.mubr.msk.bf16.gmra.mrb[96].mxu0 %vm677_vm0, %v8088_v1 }
  0xdb   : > { %7632 = vmatprep.mubr.msk.bf16.mxu0 %vm677_vm0, %v8089_v2 }
  0xe2   : > { %7633 = vmatmul.mubr.msk.bf16.gmra.mrb[100].mxu0 %vm677_vm0, %v8090_v3 }
  0xe3   : > { %7636 = vmatprep.mubr.msk.bf16.mxu0 %vm677_vm0, %v8092_v4 }
  0xea   : > { %7637 = vmatmul.mubr.msk.bf16.gmra.mrb[104].mxu0 %vm677_vm0, %v8093_v5 }
  0xeb   : > { %7640 = vmatprep.mubr.msk.bf16.mxu0 %vm677_vm0, %v8096_v6 }
  0xed   : > { %v7534_v8 = vpop.f32.mrb[0].mxu0 }
  0xee   : > { %v901_v9 = vadd.f32 %v7534_v8, %v8337_v7  ;;  %v892_v10 = vpop.f32.mrb[1].mxu0 }
  0xef   : > { %v893_v12 = vadd.f32 %v8337_v7, %v892_v10  ;;  %v7535_v13 = vpop.f32.mrb[2].mxu0 }
  0xf0   : > { %v904_v15 = vadd.f32 %v7535_v13, %v8337_v7  ;;  %v895_v16 = vpop.f32.mrb[3].mxu0  ;;  %v1373_v18 = vmax.f32 %v901_v9, 0.0 }
  0xf1   : > { %v896_v17 = vadd.f32 %v8337_v7, %v895_v16  ;;  %v1371_v20 = vmax.f32 %v893_v12, 0.0 }
  0xf2   : > { %v1374_v19 = vmax.f32 %v904_v15, 0.0  ;;  %7641 = vmatmul.mubr.msk.bf16.gmra.mrb[108].mxu0 %vm677_vm0, %v8097_v11 }
  0xf3   : > { %v1372_v21 = vmax.f32 %v896_v17, 0.0  ;;  %7644 = vmatprep.mubr.msk.bf16.mxu0 %vm677_vm0, %v8103_v14 }
  0xf4   : > { %v1492_v22 = vpack.c.bf16 %v1374_v19, %v1373_v18 }
  0xf5   : > { %v1491_v23 = vpack.c.bf16 %v1372_v21, %v1371_v20  ;;  %v7538_v24 = vpop.f32.mrb[4].mxu0 }
  0xf6   : > { %1553 = vst.msk [vmem:[#allocation2 + $0x8] sm:$0xff] %vm1551_vm1, %v1492_v22  ;;  %v917_v25 = vadd.f32 %v7538_v24, %v8337_v7  ;;  %v908_v26 = vpop.f32.mrb[5].mxu0 }
  0xf7   : > { %1552 = vst.msk [vmem:[#allocation2] sm:$0xff] %vm1551_vm1, %v1491_v23  ;;  %v909_v28 = vadd.f32 %v8337_v7, %v908_v26  ;;  %v7539_v29 = vpop.f32.mrb[6].mxu0 }
  0xf8   : > { %v920_v31 = vadd.f32 %v7539_v29, %v8337_v7  ;;  %v911_v32 = vpop.f32.mrb[7].mxu0  ;;  %v1377_v34 = vmax.f32 %v917_v25, 0.0 }
  0xf9   : > { %v912_v33 = vadd.f32 %v8337_v7, %v911_v32  ;;  %v1375_v36 = vmax.f32 %v909_v28, 0.0 }
  0xfa   : > { %v1378_v35 = vmax.f32 %v920_v31, 0.0  ;;  %7645 = vmatmul.mubr.msk.bf16.gmra.mrb[112].mxu0 %vm677_vm0, %v8105_v27 }
  0xfb   : > { %v1376_v37 = vmax.f32 %v912_v33, 0.0  ;;  %7648 = vmatprep.mubr.msk.bf16.mxu0 %vm677_vm0, %v8108_v30 }
  0xfc   : > { %v1494_v38 = vpack.c.bf16 %v1378_v35, %v1377_v34 }
  0xfd   : > { %v1493_v39 = vpack.c.bf16 %v1376_v37, %v1375_v36  ;;  %v7542_v40 = vpop.f32.mrb[8].mxu0  ;;  %v1613_v49 = vld [vmem:[#allocation2 + $0x8] sm:$0xff] }
  0xfe   : > { %1555 = vst.msk [vmem:[#allocation2 + $0x18] sm:$0xff] %vm1551_vm1, %v1494_v38  ;;  %v933_v41 = vadd.f32 %v7542_v40, %v8337_v7  ;;  %v924_v42 = vpop.f32.mrb[9].mxu0  ;;  %v1612_v44 = vld [vmem:[#allocation2] sm:$0xff]  ;;  %v8115_v38 = vld [vmem:[%s9991_s3 + $0x50] sm:$0xff]  }
  0xff   : > { %1554 = vst.msk [vmem:[#allocation2 + $0x10] sm:$0xff] %vm1551_vm1, %v1493_v39  ;;  %v925_v47 = vadd.f32 %v8337_v7, %v924_v42  ;;  %v7543_v48 = vpop.f32.mrb[10].mxu0  ;;  %7664 = vmatprep.mubr.msk.bf16.mxu1 %vm1551_vm1, %v1612_v44 }
 0x100   : > { %v936_v50 = vadd.f32 %v7543_v48, %v8337_v7  ;;  %v927_v51 = vpop.f32.mrb[11].mxu0  ;;  %7665 = vmatmul.mubr.msk.bf16.vlgmr.msra.gmra.mrb[0].mxu1 %vm1551_vm1, %v1613_v49  ;;  %v1381_v53 = vmax.f32 %v933_v41, 0.0 }
 0x101   : > { %v928_v52 = vadd.f32 %v8337_v7, %v927_v51  ;;  %7777 = vmatpush3.bf16.msra.mxu1 %v8275_v43  ;;  %v1379_v56 = vmax.f32 %v925_v47, 0.0 }
 0x102   : > { %v1382_v54 = vmax.f32 %v936_v50, 0.0  ;;  %7649 = vmatmul.mubr.msk.bf16.gmra.mrb[116].mxu0 %vm677_vm0, %v8109_v45  ;;  %7778 = vmatprep.subr.bf16.mxu1 %v8112_v46 }
 0x103   : > { %v1380_v57 = vmax.f32 %v928_v52, 0.0 }
 0x104   : > { %v1496_v58 = vpack.c.bf16 %v1382_v54, %v1381_v53 }
 0x105   : > { %v1495_v59 = vpack.c.bf16 %v1380_v57, %v1379_v56  ;;  %v7546_v60 = vpop.f32.mrb[12].mxu0  ;;  %7779 = vmatpush3.bf16.msra.mxu1 %v8112_v46  ;;  %v1615_v2 = vld [vmem:[#allocation2 + $0x18] sm:$0xff] }
 0x106   : > { %1557 = vst.msk [vmem:[#allocation2 + $0x28] sm:$0xff] %vm1551_vm1, %v1496_v58  ;;  %v949_v61 = vadd.f32 %v7546_v60, %v8337_v7  ;;  %v940_v43 = vpop.f32.mrb[13].mxu0  ;;  %v1614_v62 = vld [vmem:[#allocation2 + $0x10] sm:$0xff]  ;;  %7780 = vmatprep.subr.bf16.mxu1 %v8113_v55 }
 0x107   : > { %1556 = vst.msk [vmem:[#allocation2 + $0x20] sm:$0xff] %vm1551_vm1, %v1495_v59  ;;  %v941_v0 = vadd.f32 %v8337_v7, %v940_v43  ;;  %v7547_v1 = vpop.f32.mrb[14].mxu0  ;;  %7668 = vmatprep.mubr.msk.bf16.mxu1 %vm1551_vm1, %v1614_v62 }
 0x108   : > { %v952_v3 = vadd.f32 %v7547_v1, %v8337_v7  ;;  %v943_v4 = vpop.f32.mrb[15].mxu0  ;;  %7669 = vmatmul.mubr.msk.bf16.gmra.mrb[4].mxu1 %vm1551_vm1, %v1615_v2  ;;  %v1385_v6 = vmax.f32 %v949_v61, 0.0 }
 0x109   : > { %v944_v5 = vadd.f32 %v8337_v7, %v943_v4  ;;  %7781 = vmatpush3.bf16.msra.mxu1 %v8113_v55  ;;  %v1383_v9 = vmax.f32 %v941_v0, 0.0 }
 0x10a   : > { %v1386_v8 = vmax.f32 %v952_v3, 0.0  ;;  %7782 = vmatprep.subr.bf16.mxu1 %v8114_v63 }
 0x10b   : > { %v1384_v10 = vmax.f32 %v944_v5, 0.0 }
 0x10c   : > { %v1498_v11 = vpack.c.bf16 %v1386_v8, %v1385_v6 }
 0x10d   : > { %v1497_v12 = vpack.c.bf16 %v1384_v10, %v1383_v9  ;;  %v7550_v13 = vpop.f32.mrb[16].mxu0  ;;  %7783 = vmatpush3.bf16.msra.mxu1 %v8114_v63  ;;  %v1617_v19 = vld [vmem:[#allocation2 + $0x28] sm:$0xff] }
 0x10e   : > { %1559 = vst.msk [vmem:[#allocation2 + $0x38] sm:$0xff] %vm1551_vm1, %v1498_v11  ;;  %v965_v14 = vadd.f32 %v7550_v13, %v8337_v7  ;;  %v956_v15 = vpop.f32.mrb[17].mxu0  ;;  %v1616_v16 = vld [vmem:[#allocation2 + $0x20] sm:$0xff]  ;;  %7784 = vmatprep.subr.bf16.mxu1 %v8115_v38 }
 0x10f   : > { %1558 = vst.msk [vmem:[#allocation2 + $0x30] sm:$0xff] %vm1551_vm1, %v1497_v12  ;;  %v957_v17 = vadd.f32 %v8337_v7, %v956_v15  ;;  %v7551_v18 = vpop.f32.mrb[18].mxu0  ;;  %7672 = vmatprep.mubr.msk.bf16.mxu1 %vm1551_vm1, %v1616_v16  ;;  %7912 = vmatprep.mubr.msk.bf16.mxu0 %vm1551_vm1, %v1616_v16 }
 0x110   : > { %v968_v20 = vadd.f32 %v7551_v18, %v8337_v7  ;;  %v959_v21 = vpop.f32.mrb[19].mxu0  ;;  %7673 = vmatmul.mubr.msk.bf16.gmra.mrb[8].mxu1 %vm1551_vm1, %v1617_v19  ;;  %7913 = vmatmul.mubr.msk.bf16.vlgmr.msra.gmra.mrb[120].mxu0 %vm1551_vm1, %v1617_v19  ;;  %v1389_v23 = vmax.f32 %v965_v14, 0.0 }
 0x111   : > { %v960_v22 = vadd.f32 %v8337_v7, %v959_v21  ;;  %v1387_v25 = vmax.f32 %v957_v17, 0.0  ;;  %7785 = vmatpush3.bf16.msra.mxu1 %v8115_v38 }
 0x112   : > { %v1390_v24 = vmax.f32 %v968_v20, 0.0 }
 0x113   : > { %v1388_v26 = vmax.f32 %v960_v22, 0.0 }
 0x114   : > { %v1500_v27 = vpack.c.bf16 %v1390_v24, %v1389_v23 }
 0x115   : > { %v1499_v28 = vpack.c.bf16 %v1388_v26, %v1387_v25  ;;  %v7554_v29 = vpop.f32.mrb[20].mxu0  ;;  %v1619_v35 = vld [vmem:[#allocation2 + $0x38] sm:$0xff] }
 0x116   : > { %1561 = vst.msk [vmem:[#allocation2 + $0x48] sm:$0xff] %vm1551_vm1, %v1500_v27  ;;  %v981_v30 = vadd.f32 %v7554_v29, %v8337_v7  ;;  %v972_v31 = vpop.f32.mrb[21].mxu0  ;;  %v1618_v32 = vld [vmem:[#allocation2 + $0x30] sm:$0xff] }
 0x117   : > { %1560 = vst.msk [vmem:[#allocation2 + $0x40] sm:$0xff] %vm1551_vm1, %v1499_v28  ;;  %v973_v33 = vadd.f32 %v8337_v7, %v972_v31  ;;  %v7555_v34 = vpop.f32.mrb[22].mxu0  ;;  %7676 = vmatprep.mubr.msk.bf16.mxu1 %vm1551_vm1, %v1618_v32  ;;  %7916 = vmatprep.mubr.msk.bf16.mxu0 %vm1551_vm1, %v1618_v32 }
 0x118   : > { %v984_v36 = vadd.f32 %v7555_v34, %v8337_v7  ;;  %v975_v37 = vpop.f32.mrb[23].mxu0  ;;  %7677 = vmatmul.mubr.msk.bf16.gmra.mrb[12].mxu1 %vm1551_vm1, %v1619_v35  ;;  %7917 = vmatmul.mubr.msk.bf16.gmra.mrb[124].mxu0 %vm1551_vm1, %v1619_v35  ;;  %v1393_v40 = vmax.f32 %v981_v30, 0.0 }
 0x119   : > { %v976_v39 = vadd.f32 %v8337_v7, %v975_v37  ;;  %v1391_v42 = vmax.f32 %v973_v33, 0.0 }
 0x11a   : > { %v1394_v41 = vmax.f32 %v984_v36, 0.0 }
 0x11b   : > { %v1392_v44 = vmax.f32 %v976_v39, 0.0 }
 0x11c   : > { %v1502_v45 = vpack.c.bf16 %v1394_v41, %v1393_v40 }
 0x11d   : > { %v1501_v46 = vpack.c.bf16 %v1392_v44, %v1391_v42  ;;  %v7558_v47 = vpop.f32.mrb[24].mxu0  ;;  %v1621_v53 = vld [vmem:[#allocation2 + $0x48] sm:$0xff] }
 0x11e   : > { %1563 = vst.msk [vmem:[#allocation2 + $0x58] sm:$0xff] %vm1551_vm1, %v1502_v45  ;;  %v997_v48 = vadd.f32 %v7558_v47, %v8337_v7  ;;  %v988_v49 = vpop.f32.mrb[25].mxu0  ;;  %v1620_v50 = vld [vmem:[#allocation2 + $0x40] sm:$0xff] }
 0x11f   : > { %1562 = vst.msk [vmem:[#allocation2 + $0x50] sm:$0xff] %vm1551_vm1, %v1501_v46  ;;  %v989_v51 = vadd.f32 %v8337_v7, %v988_v49  ;;  %v7559_v52 = vpop.f32.mrb[26].mxu0  ;;  %7680 = vmatprep.mubr.msk.bf16.mxu1 %vm1551_vm1, %v1620_v50  ;;  %7920 = vmatprep.mubr.msk.bf16.mxu0 %vm1551_vm1, %v1620_v50 }
 0x120   : > { %v1000_v54 = vadd.f32 %v7559_v52, %v8337_v7  ;;  %v991_v55 = vpop.f32.mrb[27].mxu0  ;;  %7681 = vmatmul.mubr.msk.bf16.gmra.mrb[16].mxu1 %vm1551_vm1, %v1621_v53  ;;  %7921 = vmatmul.mubr.msk.bf16.gmra.mrb[128].mxu0 %vm1551_vm1, %v1621_v53  ;;  %v1397_v57 = vmax.f32 %v997_v48, 0.0 }
 0x121   : > { %v992_v56 = vadd.f32 %v8337_v7, %v991_v55  ;;  %v1395_v59 = vmax.f32 %v989_v51, 0.0  ;;  %v8116_v55 = vld [vmem:[%s9991_s3 + $0x58] sm:$0xff]  }
 0x122   : > { %v1398_v58 = vmax.f32 %v1000_v54, 0.0  ;;  %7786 = vmatprep.subr.bf16.mxu1 %v8116_v55 }
 0x123   : > { %v1396_v60 = vmax.f32 %v992_v56, 0.0  ;;  %7787 = vmatpush3.bf16.msra.mxu1 %v8116_v55 }
 0x124   : > { %v1504_v61 = vpack.c.bf16 %v1398_v58, %v1397_v57 }
 0x125   : > { %v1503_v43 = vpack.c.bf16 %v1396_v60, %v1395_v59  ;;  %v7562_v62 = vpop.f32.mrb[28].mxu0  ;;  %v1623_v4 = vld [vmem:[#allocation2 + $0x58] sm:$0xff] }
 0x126   : > { %1565 = vst.msk [vmem:[#allocation2 + $0x68] sm:$0xff] %vm1551_vm1, %v1504_v61  ;;  %v1013_v63 = vadd.f32 %v7562_v62, %v8337_v7  ;;  %v1004_v0 = vpop.f32.mrb[29].mxu0  ;;  %v1622_v1 = vld [vmem:[#allocation2 + $0x50] sm:$0xff] }
 0x127   : > { %1564 = vst.msk [vmem:[#allocation2 + $0x60] sm:$0xff] %vm1551_vm1, %v1503_v43  ;;  %v1005_v2 = vadd.f32 %v8337_v7, %v1004_v0  ;;  %v7563_v3 = vpop.f32.mrb[30].mxu0  ;;  %7684 = vmatprep.mubr.msk.bf16.mxu1 %vm1551_vm1, %v1622_v1  ;;  %7924 = vmatprep.mubr.msk.bf16.mxu0 %vm1551_vm1, %v1622_v1 }
 0x128   : > { %v1016_v5 = vadd.f32 %v7563_v3, %v8337_v7  ;;  %v1007_v6 = vpop.f32.mrb[31].mxu0  ;;  %7685 = vmatmul.mubr.msk.bf16.gmra.mrb[20].mxu1 %vm1551_vm1, %v1623_v4  ;;  %7925 = vmatmul.mubr.msk.bf16.gmra.mrb[132].mxu0 %vm1551_vm1, %v1623_v4  ;;  %v1401_v9 = vmax.f32 %v1013_v63, 0.0 }
 0x129   : > { %v1008_v8 = vadd.f32 %v8337_v7, %v1007_v6  ;;  %v1399_v11 = vmax.f32 %v1005_v2, 0.0 }
 0x12a   : > { %v1402_v10 = vmax.f32 %v1016_v5, 0.0 }
 0x12b   : > { %v1400_v12 = vmax.f32 %v1008_v8, 0.0 }
 0x12c   : > { %v1506_v13 = vpack.c.bf16 %v1402_v10, %v1401_v9 }
 0x12d   : > { %v1505_v14 = vpack.c.bf16 %v1400_v12, %v1399_v11  ;;  %v7566_v15 = vpop.f32.mrb[32].mxu0  ;;  %v1625_v21 = vld [vmem:[#allocation2 + $0x68] sm:$0xff] }
 0x12e   : > { %1567 = vst.msk [vmem:[#allocation2 + $0x78] sm:$0xff] %vm1551_vm1, %v1506_v13  ;;  %v1029_v16 = vadd.f32 %v7566_v15, %v8337_v7  ;;  %v1020_v17 = vpop.f32.mrb[33].mxu0  ;;  %v1624_v18 = vld [vmem:[#allocation2 + $0x60] sm:$0xff] }
 0x12f   : > { %1566 = vst.msk [vmem:[#allocation2 + $0x70] sm:$0xff] %vm1551_vm1, %v1505_v14  ;;  %v1021_v19 = vadd.f32 %v8337_v7, %v1020_v17  ;;  %v7567_v20 = vpop.f32.mrb[34].mxu0  ;;  %7688 = vmatprep.mubr.msk.bf16.mxu1 %vm1551_vm1, %v1624_v18  ;;  %7928 = vmatprep.mubr.msk.bf16.mxu0 %vm1551_vm1, %v1624_v18 }
 0x130   : > { %v1032_v22 = vadd.f32 %v7567_v20, %v8337_v7  ;;  %v1023_v23 = vpop.f32.mrb[35].mxu0  ;;  %7689 = vmatmul.mubr.msk.bf16.gmra.mrb[24].mxu1 %vm1551_vm1, %v1625_v21  ;;  %7929 = vmatmul.mubr.msk.bf16.gmra.mrb[136].mxu0 %vm1551_vm1, %v1625_v21  ;;  %v1405_v25 = vmax.f32 %v1029_v16, 0.0 }
 0x131   : > { %v1024_v24 = vadd.f32 %v8337_v7, %v1023_v23  ;;  %v1403_v27 = vmax.f32 %v1021_v19, 0.0 }
 0x132   : > { %v1406_v26 = vmax.f32 %v1032_v22, 0.0 }
 0x133   : > { %v1404_v28 = vmax.f32 %v1024_v24, 0.0 }
 0x134   : > { %v1508_v29 = vpack.c.bf16 %v1406_v26, %v1405_v25 }
 0x135   : > { %v1507_v30 = vpack.c.bf16 %v1404_v28, %v1403_v27  ;;  %v7570_v31 = vpop.f32.mrb[36].mxu0  ;;  %v1627_v37 = vld [vmem:[#allocation2 + $0x78] sm:$0xff] }
 0x136   : > { %1569 = vst.msk [vmem:[#allocation2 + $0x88] sm:$0xff] %vm1551_vm1, %v1508_v29  ;;  %v1045_v32 = vadd.f32 %v7570_v31, %v8337_v7  ;;  %v1036_v33 = vpop.f32.mrb[37].mxu0  ;;  %v1626_v34 = vld [vmem:[#allocation2 + $0x70] sm:$0xff] }
 0x137   : > { %1568 = vst.msk [vmem:[#allocation2 + $0x80] sm:$0xff] %vm1551_vm1, %v1507_v30  ;;  %v1037_v35 = vadd.f32 %v8337_v7, %v1036_v33  ;;  %v7571_v36 = vpop.f32.mrb[38].mxu0  ;;  %7692 = vmatprep.mubr.msk.bf16.mxu1 %vm1551_vm1, %v1626_v34  ;;  %7932 = vmatprep.mubr.msk.bf16.mxu0 %vm1551_vm1, %v1626_v34 }
 0x138   : > { %v1048_v38 = vadd.f32 %v7571_v36, %v8337_v7  ;;  %v1039_v39 = vpop.f32.mrb[39].mxu0  ;;  %7693 = vmatmul.mubr.msk.bf16.gmra.mrb[28].mxu1 %vm1551_vm1, %v1627_v37  ;;  %7933 = vmatmul.mubr.msk.bf16.gmra.mrb[140].mxu0 %vm1551_vm1, %v1627_v37  ;;  %v1409_v41 = vmax.f32 %v1045_v32, 0.0 }
 0x139   : > { %v1040_v40 = vadd.f32 %v8337_v7, %v1039_v39  ;;  %v1407_v44 = vmax.f32 %v1037_v35, 0.0 }
 0x13a   : > { %v1410_v42 = vmax.f32 %v1048_v38, 0.0 }
 0x13b   : > { %v1408_v45 = vmax.f32 %v1040_v40, 0.0 }
 0x13c   : > { %v1510_v46 = vpack.c.bf16 %v1410_v42, %v1409_v41 }
 0x13d   : > { %v1509_v47 = vpack.c.bf16 %v1408_v45, %v1407_v44  ;;  %v7574_v48 = vpop.f32.mrb[40].mxu0  ;;  %v1629_v54 = vld [vmem:[#allocation2 + $0x88] sm:$0xff] }
 0x13e   : > { %1571 = vst.msk [vmem:[#allocation2 + $0x98] sm:$0xff] %vm1551_vm1, %v1510_v46  ;;  %v1061_v49 = vadd.f32 %v7574_v48, %v8337_v7  ;;  %v1052_v50 = vpop.f32.mrb[41].mxu0  ;;  %v1628_v51 = vld [vmem:[#allocation2 + $0x80] sm:$0xff] }
 0x13f   : > { %1570 = vst.msk [vmem:[#allocation2 + $0x90] sm:$0xff] %vm1551_vm1, %v1509_v47  ;;  %v1053_v52 = vadd.f32 %v8337_v7, %v1052_v50  ;;  %v7575_v53 = vpop.f32.mrb[42].mxu0  ;;  %7696 = vmatprep.mubr.msk.bf16.mxu1 %vm1551_vm1, %v1628_v51  ;;  %7936 = vmatprep.mubr.msk.bf16.mxu0 %vm1551_vm1, %v1628_v51 }
 0x140   : > { %v1064_v56 = vadd.f32 %v7575_v53, %v8337_v7  ;;  %v1055_v57 = vpop.f32.mrb[43].mxu0  ;;  %7697 = vmatmul.mubr.msk.bf16.gmra.mrb[32].mxu1 %vm1551_vm1, %v1629_v54  ;;  %7937 = vmatmul.mubr.msk.bf16.gmra.mrb[144].mxu0 %vm1551_vm1, %v1629_v54  ;;  %v1413_v59 = vmax.f32 %v1061_v49, 0.0 }
 0x141   : > { %v1056_v58 = vadd.f32 %v8337_v7, %v1055_v57  ;;  %v1411_v61 = vmax.f32 %v1053_v52, 0.0 }
 0x142   : > { %v1414_v60 = vmax.f32 %v1064_v56, 0.0 }
 0x143   : > { %v1412_v43 = vmax.f32 %v1056_v58, 0.0 }
 0x144   : > { %v1512_v62 = vpack.c.bf16 %v1414_v60, %v1413_v59 }
 0x145   : > { %v1511_v63 = vpack.c.bf16 %v1412_v43, %v1411_v61  ;;  %v7578_v0 = vpop.f32.mrb[44].mxu0  ;;  %v1631_v6 = vld [vmem:[#allocation2 + $0x98] sm:$0xff] }
 0x146   : > { %1573 = vst.msk [vmem:[#allocation2 + $0xa8] sm:$0xff] %vm1551_vm1, %v1512_v62  ;;  %v1077_v1 = vadd.f32 %v7578_v0, %v8337_v7  ;;  %v1068_v2 = vpop.f32.mrb[45].mxu0  ;;  %v1630_v3 = vld [vmem:[#allocation2 + $0x90] sm:$0xff] }
 0x147   : > { %1572 = vst.msk [vmem:[#allocation2 + $0xa0] sm:$0xff] %vm1551_vm1, %v1511_v63  ;;  %v1069_v4 = vadd.f32 %v8337_v7, %v1068_v2  ;;  %v7579_v5 = vpop.f32.mrb[46].mxu0  ;;  %7700 = vmatprep.mubr.msk.bf16.mxu1 %vm1551_vm1, %v1630_v3  ;;  %7940 = vmatprep.mubr.msk.bf16.mxu0 %vm1551_vm1, %v1630_v3 }
 0x148   : > { %v1080_v8 = vadd.f32 %v7579_v5, %v8337_v7  ;;  %v1071_v9 = vpop.f32.mrb[47].mxu0  ;;  %7701 = vmatmul.mubr.msk.bf16.gmra.mrb[36].mxu1 %vm1551_vm1, %v1631_v6  ;;  %7941 = vmatmul.mubr.msk.bf16.gmra.mrb[148].mxu0 %vm1551_vm1, %v1631_v6  ;;  %v1417_v11 = vmax.f32 %v1077_v1, 0.0 }
 0x149   : > { %v1072_v10 = vadd.f32 %v8337_v7, %v1071_v9  ;;  %v1415_v13 = vmax.f32 %v1069_v4, 0.0 }
 0x14a   : > { %v1418_v12 = vmax.f32 %v1080_v8, 0.0 }
 0x14b   : > { %v1416_v14 = vmax.f32 %v1072_v10, 0.0 }
 0x14c   : > { %v1514_v15 = vpack.c.bf16 %v1418_v12, %v1417_v11 }
 0x14d   : > { %v1513_v16 = vpack.c.bf16 %v1416_v14, %v1415_v13  ;;  %v7582_v17 = vpop.f32.mrb[48].mxu0  ;;  %v1633_v23 = vld [vmem:[#allocation2 + $0xa8] sm:$0xff] }
 0x14e   : > { %1575 = vst.msk [vmem:[#allocation2 + $0xb8] sm:$0xff] %vm1551_vm1, %v1514_v15  ;;  %v1093_v18 = vadd.f32 %v7582_v17, %v8337_v7  ;;  %v1084_v19 = vpop.f32.mrb[49].mxu0  ;;  %v1632_v20 = vld [vmem:[#allocation2 + $0xa0] sm:$0xff] }
 0x14f   : > { %1574 = vst.msk [vmem:[#allocation2 + $0xb0] sm:$0xff] %vm1551_vm1, %v1513_v16  ;;  %v1085_v21 = vadd.f32 %v8337_v7, %v1084_v19  ;;  %v7583_v22 = vpop.f32.mrb[50].mxu0  ;;  %7704 = vmatprep.mubr.msk.bf16.mxu1 %vm1551_vm1, %v1632_v20  ;;  %7944 = vmatprep.mubr.msk.bf16.mxu0 %vm1551_vm1, %v1632_v20 }
 0x150   : > { %v1096_v24 = vadd.f32 %v7583_v22, %v8337_v7  ;;  %v1087_v25 = vpop.f32.mrb[51].mxu0  ;;  %7705 = vmatmul.mubr.msk.bf16.gmra.mrb[40].mxu1 %vm1551_vm1, %v1633_v23  ;;  %7945 = vmatmul.mubr.msk.bf16.gmra.mrb[152].mxu0 %vm1551_vm1, %v1633_v23  ;;  %v1421_v27 = vmax.f32 %v1093_v18, 0.0 }
 0x151   : > { %v1088_v26 = vadd.f32 %v8337_v7, %v1087_v25  ;;  %v1419_v29 = vmax.f32 %v1085_v21, 0.0 }
 0x152   : > { %v1422_v28 = vmax.f32 %v1096_v24, 0.0 }
 0x153   : > { %v1420_v30 = vmax.f32 %v1088_v26, 0.0 }
 0x154   : > { %v1516_v31 = vpack.c.bf16 %v1422_v28, %v1421_v27 }
 0x155   : > { %v1515_v32 = vpack.c.bf16 %v1420_v30, %v1419_v29  ;;  %v7586_v33 = vpop.f32.mrb[52].mxu0  ;;  %v1635_v39 = vld [vmem:[#allocation2 + $0xb8] sm:$0xff] }
 0x156   : > { %1577 = vst.msk [vmem:[#allocation2 + $0xc8] sm:$0xff] %vm1551_vm1, %v1516_v31  ;;  %v1109_v34 = vadd.f32 %v7586_v33, %v8337_v7  ;;  %v1100_v35 = vpop.f32.mrb[53].mxu0  ;;  %v1634_v36 = vld [vmem:[#allocation2 + $0xb0] sm:$0xff] }
 0x157   : > { %1576 = vst.msk [vmem:[#allocation2 + $0xc0] sm:$0xff] %vm1551_vm1, %v1515_v32  ;;  %v1101_v37 = vadd.f32 %v8337_v7, %v1100_v35  ;;  %v7587_v38 = vpop.f32.mrb[54].mxu0  ;;  %7708 = vmatprep.mubr.msk.bf16.mxu1 %vm1551_vm1, %v1634_v36  ;;  %7948 = vmatprep.mubr.msk.bf16.mxu0 %vm1551_vm1, %v1634_v36 }
 0x158   : > { %v1112_v40 = vadd.f32 %v7587_v38, %v8337_v7  ;;  %v1103_v41 = vpop.f32.mrb[55].mxu0  ;;  %7709 = vmatmul.mubr.msk.bf16.gmra.mrb[44].mxu1 %vm1551_vm1, %v1635_v39  ;;  %7949 = vmatmul.mubr.msk.bf16.gmra.mrb[156].mxu0 %vm1551_vm1, %v1635_v39  ;;  %v1425_v44 = vmax.f32 %v1109_v34, 0.0 }
 0x159   : > { %v1104_v42 = vadd.f32 %v8337_v7, %v1103_v41  ;;  %v1423_v46 = vmax.f32 %v1101_v37, 0.0 }
 0x15a   : > { %v1426_v45 = vmax.f32 %v1112_v40, 0.0 }
 0x15b   : > { %v1424_v47 = vmax.f32 %v1104_v42, 0.0 }
 0x15c   : > { %v1518_v48 = vpack.c.bf16 %v1426_v45, %v1425_v44 }
 0x15d   : > { %v1517_v49 = vpack.c.bf16 %v1424_v47, %v1423_v46  ;;  %v7590_v50 = vpop.f32.mrb[56].mxu0  ;;  %v1637_v56 = vld [vmem:[#allocation2 + $0xc8] sm:$0xff] }
 0x15e   : > { %1579 = vst.msk [vmem:[#allocation2 + $0xd8] sm:$0xff] %vm1551_vm1, %v1518_v48  ;;  %v1125_v51 = vadd.f32 %v7590_v50, %v8337_v7  ;;  %v1116_v52 = vpop.f32.mrb[57].mxu0  ;;  %v1636_v53 = vld [vmem:[#allocation2 + $0xc0] sm:$0xff] }
 0x15f   : > { %1578 = vst.msk [vmem:[#allocation2 + $0xd0] sm:$0xff] %vm1551_vm1, %v1517_v49  ;;  %v1117_v54 = vadd.f32 %v8337_v7, %v1116_v52  ;;  %v7591_v55 = vpop.f32.mrb[58].mxu0  ;;  %7712 = vmatprep.mubr.msk.bf16.mxu1 %vm1551_vm1, %v1636_v53  ;;  %7952 = vmatprep.mubr.msk.bf16.mxu0 %vm1551_vm1, %v1636_v53 }
 0x160   : > { %v1128_v57 = vadd.f32 %v7591_v55, %v8337_v7  ;;  %v1119_v58 = vpop.f32.mrb[59].mxu0  ;;  %7713 = vmatmul.mubr.msk.bf16.gmra.mrb[48].mxu1 %vm1551_vm1, %v1637_v56  ;;  %7953 = vmatmul.mubr.msk.bf16.gmra.mrb[160].mxu0 %vm1551_vm1, %v1637_v56  ;;  %v1429_v60 = vmax.f32 %v1125_v51, 0.0 }
 0x161   : > { %v1120_v59 = vadd.f32 %v8337_v7, %v1119_v58  ;;  %v1427_v43 = vmax.f32 %v1117_v54, 0.0 }
 0x162   : > { %v1430_v61 = vmax.f32 %v1128_v57, 0.0 }
 0x163   : > { %v1428_v62 = vmax.f32 %v1120_v59, 0.0 }
 0x164   : > { %v1520_v63 = vpack.c.bf16 %v1430_v61, %v1429_v60 }
 0x165   : > { %v1519_v0 = vpack.c.bf16 %v1428_v62, %v1427_v43  ;;  %v7594_v1 = vpop.f32.mrb[60].mxu0  ;;  %v1639_v8 = vld [vmem:[#allocation2 + $0xd8] sm:$0xff] }
 0x166   : > { %1581 = vst.msk [vmem:[#allocation2 + $0xe8] sm:$0xff] %vm1551_vm1, %v1520_v63  ;;  %v1141_v2 = vadd.f32 %v7594_v1, %v8337_v7  ;;  %v1132_v3 = vpop.f32.mrb[61].mxu0  ;;  %v1638_v4 = vld [vmem:[#allocation2 + $0xd0] sm:$0xff] }
 0x167   : > { %1580 = vst.msk [vmem:[#allocation2 + $0xe0] sm:$0xff] %vm1551_vm1, %v1519_v0  ;;  %v1133_v5 = vadd.f32 %v8337_v7, %v1132_v3  ;;  %v7595_v6 = vpop.f32.mrb[62].mxu0  ;;  %7716 = vmatprep.mubr.msk.bf16.mxu1 %vm1551_vm1, %v1638_v4  ;;  %7956 = vmatprep.mubr.msk.bf16.mxu0 %vm1551_vm1, %v1638_v4 }
 0x168   : > { %v1144_v9 = vadd.f32 %v7595_v6, %v8337_v7  ;;  %v1135_v10 = vpop.f32.mrb[63].mxu0  ;;  %7717 = vmatmul.mubr.msk.bf16.gmra.mrb[52].mxu1 %vm1551_vm1, %v1639_v8  ;;  %7957 = vmatmul.mubr.msk.bf16.gmra.mrb[164].mxu0 %vm1551_vm1, %v1639_v8  ;;  %v1433_v12 = vmax.f32 %v1141_v2, 0.0 }
 0x169   : > { %v1136_v11 = vadd.f32 %v8337_v7, %v1135_v10  ;;  %v1431_v14 = vmax.f32 %v1133_v5, 0.0 }
 0x16a   : > { %v1434_v13 = vmax.f32 %v1144_v9, 0.0 }
 0x16b   : > { %v1432_v15 = vmax.f32 %v1136_v11, 0.0 }
 0x16c   : > { %v1522_v16 = vpack.c.bf16 %v1434_v13, %v1433_v12 }
 0x16d   : > { %v1521_v17 = vpack.c.bf16 %v1432_v15, %v1431_v14  ;;  %v7598_v18 = vpop.f32.mrb[64].mxu0  ;;  %v1641_v24 = vld [vmem:[#allocation2 + $0xe8] sm:$0xff] }
 0x16e   : > { %1583 = vst.msk [vmem:[#allocation2 + $0xf8] sm:$0xff] %vm1551_vm1, %v1522_v16  ;;  %v1157_v19 = vadd.f32 %v7598_v18, %v8337_v7  ;;  %v1148_v20 = vpop.f32.mrb[65].mxu0  ;;  %v1640_v21 = vld [vmem:[#allocation2 + $0xe0] sm:$0xff] }
 0x16f   : > { %1582 = vst.msk [vmem:[#allocation2 + $0xf0] sm:$0xff] %vm1551_vm1, %v1521_v17  ;;  %v1149_v22 = vadd.f32 %v8337_v7, %v1148_v20  ;;  %v7599_v23 = vpop.f32.mrb[66].mxu0  ;;  %7720 = vmatprep.mubr.msk.bf16.mxu1 %vm1551_vm1, %v1640_v21  ;;  %7960 = vmatprep.mubr.msk.bf16.mxu0 %vm1551_vm1, %v1640_v21 }
 0x170   : > { %v1160_v25 = vadd.f32 %v7599_v23, %v8337_v7  ;;  %v1151_v26 = vpop.f32.mrb[67].mxu0  ;;  %7721 = vmatmul.mubr.msk.bf16.gmra.mrb[56].mxu1 %vm1551_vm1, %v1641_v24  ;;  %7961 = vmatmul.mubr.msk.bf16.gmra.mrb[168].mxu0 %vm1551_vm1, %v1641_v24  ;;  %v1437_v28 = vmax.f32 %v1157_v19, 0.0 }
 0x171   : > { %v1152_v27 = vadd.f32 %v8337_v7, %v1151_v26  ;;  %v1435_v30 = vmax.f32 %v1149_v22, 0.0 }
 0x172   : > { %v1438_v29 = vmax.f32 %v1160_v25, 0.0 }
 0x173   : > { %v1436_v31 = vmax.f32 %v1152_v27, 0.0 }
 0x174   : > { %v1524_v32 = vpack.c.bf16 %v1438_v29, %v1437_v28 }
 0x175   : > { %v1523_v33 = vpack.c.bf16 %v1436_v31, %v1435_v30  ;;  %v7602_v34 = vpop.f32.mrb[68].mxu0  ;;  %v1643_v40 = vld [vmem:[#allocation2 + $0xf8] sm:$0xff] }
 0x176   : > { %1585 = vst.msk [vmem:[#allocation2 + $0x108] sm:$0xff] %vm1551_vm1, %v1524_v32  ;;  %v1173_v35 = vadd.f32 %v7602_v34, %v8337_v7  ;;  %v1164_v36 = vpop.f32.mrb[69].mxu0  ;;  %v1642_v37 = vld [vmem:[#allocation2 + $0xf0] sm:$0xff] }
 0x177   : > { %1584 = vst.msk [vmem:[#allocation2 + $0x100] sm:$0xff] %vm1551_vm1, %v1523_v33  ;;  %v1165_v38 = vadd.f32 %v8337_v7, %v1164_v36  ;;  %v7603_v39 = vpop.f32.mrb[70].mxu0  ;;  %7724 = vmatprep.mubr.msk.bf16.mxu1 %vm1551_vm1, %v1642_v37  ;;  %7964 = vmatprep.mubr.msk.bf16.mxu0 %vm1551_vm1, %v1642_v37 }
 0x178   : > { %v1176_v41 = vadd.f32 %v7603_v39, %v8337_v7  ;;  %v1167_v42 = vpop.f32.mrb[71].mxu0  ;;  %7725 = vmatmul.mubr.msk.bf16.gmra.mrb[60].mxu1 %vm1551_vm1, %v1643_v40  ;;  %7965 = vmatmul.mubr.msk.bf16.gmra.mrb[172].mxu0 %vm1551_vm1, %v1643_v40  ;;  %v1441_v45 = vmax.f32 %v1173_v35, 0.0 }
 0x179   : > { %v1168_v44 = vadd.f32 %v8337_v7, %v1167_v42  ;;  %v1439_v47 = vmax.f32 %v1165_v38, 0.0 }
 0x17a   : > { %v1442_v46 = vmax.f32 %v1176_v41, 0.0 }
 0x17b   : > { %v1440_v48 = vmax.f32 %v1168_v44, 0.0 }
 0x17c   : > { %v1526_v49 = vpack.c.bf16 %v1442_v46, %v1441_v45 }
 0x17d   : > { %v1525_v50 = vpack.c.bf16 %v1440_v48, %v1439_v47  ;;  %v7606_v51 = vpop.f32.mrb[72].mxu0  ;;  %v1645_v57 = vld [vmem:[#allocation2 + $0x108] sm:$0xff] }
 0x17e   : > { %1587 = vst.msk [vmem:[#allocation2 + $0x118] sm:$0xff] %vm1551_vm1, %v1526_v49  ;;  %v1189_v52 = vadd.f32 %v7606_v51, %v8337_v7  ;;  %v1180_v53 = vpop.f32.mrb[73].mxu0  ;;  %v1644_v54 = vld [vmem:[#allocation2 + $0x100] sm:$0xff] }
 0x17f   : > { %1586 = vst.msk [vmem:[#allocation2 + $0x110] sm:$0xff] %vm1551_vm1, %v1525_v50  ;;  %v1181_v55 = vadd.f32 %v8337_v7, %v1180_v53  ;;  %v7607_v56 = vpop.f32.mrb[74].mxu0  ;;  %7728 = vmatprep.mubr.msk.bf16.mxu1 %vm1551_vm1, %v1644_v54  ;;  %7968 = vmatprep.mubr.msk.bf16.mxu0 %vm1551_vm1, %v1644_v54 }
 0x180   : > { %v1192_v58 = vadd.f32 %v7607_v56, %v8337_v7  ;;  %v1183_v59 = vpop.f32.mrb[75].mxu0  ;;  %7729 = vmatmul.mubr.msk.bf16.gmra.mrb[64].mxu1 %vm1551_vm1, %v1645_v57  ;;  %7969 = vmatmul.mubr.msk.bf16.gmra.mrb[176].mxu0 %vm1551_vm1, %v1645_v57  ;;  %v1445_v61 = vmax.f32 %v1189_v52, 0.0 }
 0x181   : > { %v1184_v60 = vadd.f32 %v8337_v7, %v1183_v59  ;;  %v1443_v62 = vmax.f32 %v1181_v55, 0.0 }
 0x182   : > { %v1446_v43 = vmax.f32 %v1192_v58, 0.0 }
 0x183   : > { %v1444_v63 = vmax.f32 %v1184_v60, 0.0 }
 0x184   : > { %v1528_v0 = vpack.c.bf16 %v1446_v43, %v1445_v61 }
 0x185   : > { %v1527_v1 = vpack.c.bf16 %v1444_v63, %v1443_v62  ;;  %v7610_v2 = vpop.f32.mrb[76].mxu0  ;;  %v1647_v9 = vld [vmem:[#allocation2 + $0x118] sm:$0xff] }
 0x186   : > { %1589 = vst.msk [vmem:[#allocation2 + $0x128] sm:$0xff] %vm1551_vm1, %v1528_v0  ;;  %v1205_v3 = vadd.f32 %v7610_v2, %v8337_v7  ;;  %v1196_v4 = vpop.f32.mrb[77].mxu0  ;;  %v1646_v5 = vld [vmem:[#allocation2 + $0x110] sm:$0xff] }
 0x187   : > { %1588 = vst.msk [vmem:[#allocation2 + $0x120] sm:$0xff] %vm1551_vm1, %v1527_v1  ;;  %v1197_v6 = vadd.f32 %v8337_v7, %v1196_v4  ;;  %v7611_v8 = vpop.f32.mrb[78].mxu0  ;;  %7732 = vmatprep.mubr.msk.bf16.mxu1 %vm1551_vm1, %v1646_v5  ;;  %7972 = vmatprep.mubr.msk.bf16.mxu0 %vm1551_vm1, %v1646_v5  ;;  %v8602_v4 = vld [vmem:[%s9990_s2] ss:$0 sm:$0xff] }
 0x188   : > { %v1208_v10 = vadd.f32 %v7611_v8, %v8337_v7  ;;  %v1199_v11 = vpop.f32.mrb[79].mxu0  ;;  %7733 = vmatmul.mubr.msk.bf16.gmra.mrb[68].mxu1 %vm1551_vm1, %v1647_v9  ;;  %7973 = vmatmul.mubr.msk.bf16.gmra.mrb[180].mxu0 %vm1551_vm1, %v1647_v9  ;;  %v1449_v13 = vmax.f32 %v1205_v3, 0.0 }
 0x189   : > { %v1200_v12 = vadd.f32 %v8337_v7, %v1199_v11  ;;  %v1447_v15 = vmax.f32 %v1197_v6, 0.0 }
 0x18a   : > { %v1450_v14 = vmax.f32 %v1208_v10, 0.0 }
 0x18b   : > { %v1448_v16 = vmax.f32 %v1200_v12, 0.0 }
 0x18c   : > { %v1530_v17 = vpack.c.bf16 %v1450_v14, %v1449_v13 }
 0x18d   : > { %v1529_v18 = vpack.c.bf16 %v1448_v16, %v1447_v15  ;;  %v7614_v19 = vpop.f32.mrb[80].mxu0  ;;  %v1649_v25 = vld [vmem:[#allocation2 + $0x128] sm:$0xff] }
 0x18e   : > { %1591 = vst.msk [vmem:[#allocation2 + $0x138] sm:$0xff] %vm1551_vm1, %v1530_v17  ;;  %v1221_v20 = vadd.f32 %v7614_v19, %v8337_v7  ;;  %v1212_v21 = vpop.f32.mrb[81].mxu0  ;;  %v1648_v22 = vld [vmem:[#allocation2 + $0x120] sm:$0xff] }
 0x18f   : > { %1590 = vst.msk [vmem:[#allocation2 + $0x130] sm:$0xff] %vm1551_vm1, %v1529_v18  ;;  %v1213_v23 = vadd.f32 %v8337_v7, %v1212_v21  ;;  %v7615_v24 = vpop.f32.mrb[82].mxu0  ;;  %7736 = vmatprep.mubr.msk.bf16.mxu1 %vm1551_vm1, %v1648_v22  ;;  %7976 = vmatprep.mubr.msk.bf16.mxu0 %vm1551_vm1, %v1648_v22 }
 0x190   : > { %v1224_v26 = vadd.f32 %v7615_v24, %v8337_v7  ;;  %v1215_v27 = vpop.f32.mrb[83].mxu0  ;;  %7737 = vmatmul.mubr.msk.bf16.gmra.mrb[72].mxu1 %vm1551_vm1, %v1649_v25  ;;  %7977 = vmatmul.mubr.msk.bf16.gmra.mrb[184].mxu0 %vm1551_vm1, %v1649_v25  ;;  %v1453_v29 = vmax.f32 %v1221_v20, 0.0 }
 0x191   : > { %v1216_v28 = vadd.f32 %v8337_v7, %v1215_v27  ;;  %v1451_v31 = vmax.f32 %v1213_v23, 0.0 }
 0x192   : > { %v1454_v30 = vmax.f32 %v1224_v26, 0.0 }
 0x193   : > { %v1452_v32 = vmax.f32 %v1216_v28, 0.0 }
 0x194   : > { %v1532_v33 = vpack.c.bf16 %v1454_v30, %v1453_v29 }
 0x195   : > { %v1531_v34 = vpack.c.bf16 %v1452_v32, %v1451_v31  ;;  %v7618_v35 = vpop.f32.mrb[84].mxu0  ;;  %v8572_v41 = vld [vmem:[#allocation2 + $0x138] sm:$0xff] }
 0x196   : > { %1593 = vst.msk [vmem:[#allocation2 + $0x148] sm:$0xff] %vm1551_vm1, %v1532_v33  ;;  %v1237_v36 = vadd.f32 %v7618_v35, %v8337_v7  ;;  %v1228_v37 = vpop.f32.mrb[85].mxu0  ;;  %v8564_v38 = vld [vmem:[#allocation2 + $0x130] sm:$0xff] }
 0x197   : > { %1592 = vst.msk [vmem:[#allocation2 + $0x140] sm:$0xff] %vm1551_vm1, %v1531_v34  ;;  %v1229_v39 = vadd.f32 %v8337_v7, %v1228_v37  ;;  %v7619_v40 = vpop.f32.mrb[86].mxu0  ;;  %7740 = vmatprep.mubr.msk.bf16.mxu1 %vm1551_vm1, %v8564_v38  ;;  %7980 = vmatprep.mubr.msk.bf16.mxu0 %vm1551_vm1, %v8564_v38 }
 0x198   : > { %v1240_v42 = vadd.f32 %v7619_v40, %v8337_v7  ;;  %v1231_v44 = vpop.f32.mrb[87].mxu0  ;;  %7741 = vmatmul.mubr.msk.bf16.gmra.mrb[76].mxu1 %vm1551_vm1, %v8572_v41  ;;  %7981 = vmatmul.mubr.msk.bf16.gmra.mrb[188].mxu0 %vm1551_vm1, %v8572_v41  ;;  %v1457_v46 = vmax.f32 %v1237_v36, 0.0 }
 0x199   : > { %v1232_v45 = vadd.f32 %v8337_v7, %v1231_v44  ;;  %v1455_v48 = vmax.f32 %v1229_v39, 0.0 }
 0x19a   : > { %v1458_v47 = vmax.f32 %v1240_v42, 0.0 }
 0x19b   : > { %v1456_v49 = vmax.f32 %v1232_v45, 0.0 }
 0x19c   : > { %v1534_v50 = vpack.c.bf16 %v1458_v47, %v1457_v46 }
 0x19d   : > { %v1533_v51 = vpack.c.bf16 %v1456_v49, %v1455_v48  ;;  %v7622_v52 = vpop.f32.mrb[88].mxu0  ;;  %v8590_v58 = vld [vmem:[#allocation2 + $0x148] sm:$0xff] }
 0x19e   : > { %1595 = vst.msk [vmem:[#allocation2 + $0x158] sm:$0xff] %vm1551_vm1, %v1534_v50  ;;  %v1253_v53 = vadd.f32 %v7622_v52, %v8337_v7  ;;  %v1244_v54 = vpop.f32.mrb[89].mxu0  ;;  %v8582_v55 = vld [vmem:[#allocation2 + $0x140] sm:$0xff] }
 0x19f   : > { %1594 = vst.msk [vmem:[#allocation2 + $0x150] sm:$0xff] %vm1551_vm1, %v1533_v51  ;;  %v1245_v56 = vadd.f32 %v8337_v7, %v1244_v54  ;;  %v7623_v57 = vpop.f32.mrb[90].mxu0  ;;  %7744 = vmatprep.mubr.msk.bf16.mxu1 %vm1551_vm1, %v8582_v55  ;;  %7984 = vmatprep.mubr.msk.bf16.mxu0 %vm1551_vm1, %v8582_v55 }
 0x1a0   : > { %v1256_v59 = vadd.f32 %v7623_v57, %v8337_v7  ;;  %v1247_v60 = vpop.f32.mrb[91].mxu0  ;;  %7745 = vmatmul.mubr.msk.bf16.gmra.mrb[80].mxu1 %vm1551_vm1, %v8590_v58  ;;  %7985 = vmatmul.mubr.msk.bf16.gmra.mrb[192].mxu0 %vm1551_vm1, %v8590_v58  ;;  %v1461_v43 = vmax.f32 %v1253_v53, 0.0 }
 0x1a1   : > { %v1248_v61 = vadd.f32 %v8337_v7, %v1247_v60  ;;  %v1459_v63 = vmax.f32 %v1245_v56, 0.0 }
 0x1a2   : > { %v1462_v62 = vmax.f32 %v1256_v59, 0.0 }
 0x1a3   : > { %v1460_v0 = vmax.f32 %v1248_v61, 0.0 }
 0x1a4   : > { %v1536_v1 = vpack.c.bf16 %v1462_v62, %v1461_v43 }
 0x1a5   : > { %v1535_v2 = vpack.c.bf16 %v1460_v0, %v1459_v63  ;;  %v7626_v3 = vpop.f32.mrb[92].mxu0  ;;  %v8613_v10 = vld [vmem:[#allocation2 + $0x158] sm:$0xff] }
 0x1a6   : > { %1597 = vst.msk [vmem:[#allocation2 + $0x168] sm:$0xff] %vm1551_vm1, %v1536_v1  ;;  %v1269_v5 = vadd.f32 %v8602_v4, %v7626_v3  ;;  %v1260_v6 = vpop.f32.mrb[93].mxu0  ;;  %v8605_v8 = vld [vmem:[#allocation2 + $0x150] sm:$0xff] }
 0x1a7   : > { %1596 = vst.msk [vmem:[#allocation2 + $0x160] sm:$0xff] %vm1551_vm1, %v1535_v2  ;;  %v1261_v7 = vadd.f32 %v8602_v4, %v1260_v6  ;;  %v7627_v9 = vpop.f32.mrb[94].mxu0  ;;  %7748 = vmatprep.mubr.msk.bf16.mxu1 %vm1551_vm1, %v8605_v8  ;;  %7988 = vmatprep.mubr.msk.bf16.mxu0 %vm1551_vm1, %v8605_v8 }
 0x1a8   : > { %v1272_v11 = vadd.f32 %v8602_v4, %v7627_v9  ;;  %v1263_v12 = vpop.f32.mrb[95].mxu0  ;;  %7749 = vmatmul.mubr.msk.bf16.gmra.mrb[84].mxu1 %vm1551_vm1, %v8613_v10  ;;  %7989 = vmatmul.mubr.msk.bf16.gmra.mrb[196].mxu0 %vm1551_vm1, %v8613_v10  ;;  %v1465_v14 = vmax.f32 %v1269_v5, 0.0 }
 0x1a9   : > { %v1264_v13 = vadd.f32 %v8602_v4, %v1263_v12  ;;  %v1463_v16 = vmax.f32 %v1261_v7, 0.0 }
 0x1aa   : > { %v1466_v15 = vmax.f32 %v1272_v11, 0.0 }
 0x1ab   : > { %v1464_v17 = vmax.f32 %v1264_v13, 0.0 }
 0x1ac   : > { %v1538_v18 = vpack.c.bf16 %v1466_v15, %v1465_v14 }
 0x1ad   : > { %v1537_v19 = vpack.c.bf16 %v1464_v17, %v1463_v16  ;;  %v7630_v20 = vpop.f32.mrb[96].mxu0  ;;  %v8631_v26 = vld [vmem:[#allocation2 + $0x168] sm:$0xff] }
 0x1ae   : > { %1599 = vst.msk [vmem:[#allocation2 + $0x178] sm:$0xff] %vm1551_vm1, %v1538_v18  ;;  %v1285_v21 = vadd.f32 %v8602_v4, %v7630_v20  ;;  %v1276_v22 = vpop.f32.mrb[97].mxu0  ;;  %v8623_v23 = vld [vmem:[#allocation2 + $0x160] sm:$0xff] }
 0x1af   : > { %1598 = vst.msk [vmem:[#allocation2 + $0x170] sm:$0xff] %vm1551_vm1, %v1537_v19  ;;  %v1277_v24 = vadd.f32 %v8602_v4, %v1276_v22  ;;  %v7631_v25 = vpop.f32.mrb[98].mxu0  ;;  %7752 = vmatprep.mubr.msk.bf16.mxu1 %vm1551_vm1, %v8623_v23  ;;  %7992 = vmatprep.mubr.msk.bf16.mxu0 %vm1551_vm1, %v8623_v23 }
 0x1b0   : > { %v1288_v27 = vadd.f32 %v8602_v4, %v7631_v25  ;;  %v1279_v28 = vpop.f32.mrb[99].mxu0  ;;  %7753 = vmatmul.mubr.msk.bf16.gmra.mrb[88].mxu1 %vm1551_vm1, %v8631_v26  ;;  %7993 = vmatmul.mubr.msk.bf16.gmra.mrb[200].mxu0 %vm1551_vm1, %v8631_v26  ;;  %v1469_v30 = vmax.f32 %v1285_v21, 0.0 }
 0x1b1   : > { %v1280_v29 = vadd.f32 %v8602_v4, %v1279_v28  ;;  %v1467_v32 = vmax.f32 %v1277_v24, 0.0 }
 0x1b2   : > { %v1470_v31 = vmax.f32 %v1288_v27, 0.0 }
 0x1b3   : > { %v1468_v33 = vmax.f32 %v1280_v29, 0.0 }
 0x1b4   : > { %v1540_v34 = vpack.c.bf16 %v1470_v31, %v1469_v30 }
 0x1b5   : > { %v1539_v35 = vpack.c.bf16 %v1468_v33, %v1467_v32  ;;  %v7634_v36 = vpop.f32.mrb[100].mxu0  ;;  %v8649_v45 = vld [vmem:[#allocation2 + $0x178] sm:$0xff] }
 0x1b6   : > { %1601 = vst.msk [vmem:[#allocation2 + $0x188] sm:$0xff] %vm1551_vm1, %v1540_v34  ;;  %v1301_v37 = vadd.f32 %v8602_v4, %v7634_v36  ;;  %v1292_v39 = vpop.f32.mrb[101].mxu0  ;;  %v8641_v40 = vld [vmem:[#allocation2 + $0x170] sm:$0xff] }
 0x1b7   : > { %1600 = vst.msk [vmem:[#allocation2 + $0x180] sm:$0xff] %vm1551_vm1, %v1539_v35  ;;  %v1293_v42 = vadd.f32 %v8602_v4, %v1292_v39  ;;  %v7635_v44 = vpop.f32.mrb[102].mxu0  ;;  %7756 = vmatprep.mubr.msk.bf16.mxu1 %vm1551_vm1, %v8641_v40  ;;  %7996 = vmatprep.mubr.msk.bf16.mxu0 %vm1551_vm1, %v8641_v40 }
 0x1b8   : > { %v1304_v46 = vadd.f32 %v8602_v4, %v7635_v44  ;;  %v1295_v47 = vpop.f32.mrb[103].mxu0  ;;  %7757 = vmatmul.mubr.msk.bf16.gmra.mrb[92].mxu1 %vm1551_vm1, %v8649_v45  ;;  %7997 = vmatmul.mubr.msk.bf16.gmra.mrb[204].mxu0 %vm1551_vm1, %v8649_v45  ;;  %v1473_v49 = vmax.f32 %v1301_v37, 0.0 }
 0x1b9   : > { %v1296_v48 = vadd.f32 %v8602_v4, %v1295_v47  ;;  %v1471_v51 = vmax.f32 %v1293_v42, 0.0 }
 0x1ba   : > { %v1474_v50 = vmax.f32 %v1304_v46, 0.0 }
 0x1bb   : > { %v1472_v52 = vmax.f32 %v1296_v48, 0.0 }
 0x1bc   : > { %v1542_v53 = vpack.c.bf16 %v1474_v50, %v1473_v49 }
 0x1bd   : > { %v1541_v54 = vpack.c.bf16 %v1472_v52, %v1471_v51  ;;  %v7638_v56 = vpop.f32.mrb[104].mxu0  ;;  %v8667_v62 = vld [vmem:[#allocation2 + $0x188] sm:$0xff] }
 0x1be   : > { %1603 = vst.msk [vmem:[#allocation2 + $0x198] sm:$0xff] %vm1551_vm1, %v1542_v53  ;;  %v1317_v57 = vadd.f32 %v8602_v4, %v7638_v56  ;;  %v1308_v59 = vpop.f32.mrb[105].mxu0  ;;  %v8659_v60 = vld [vmem:[#allocation2 + $0x180] sm:$0xff] }
 0x1bf   : > { %1602 = vst.msk [vmem:[#allocation2 + $0x190] sm:$0xff] %vm1551_vm1, %v1541_v54  ;;  %v1309_v61 = vadd.f32 %v8602_v4, %v1308_v59  ;;  %v7639_v43 = vpop.f32.mrb[106].mxu0  ;;  %7760 = vmatprep.mubr.msk.bf16.mxu1 %vm1551_vm1, %v8659_v60  ;;  %8000 = vmatprep.mubr.msk.bf16.mxu0 %vm1551_vm1, %v8659_v60 }
 0x1c0   : > { %v1320_v63 = vadd.f32 %v8602_v4, %v7639_v43  ;;  %v1311_v0 = vpop.f32.mrb[107].mxu0  ;;  %7761 = vmatmul.mubr.msk.bf16.gmra.mrb[96].mxu1 %vm1551_vm1, %v8667_v62  ;;  %8001 = vmatmul.mubr.msk.bf16.gmra.mrb[208].mxu0 %vm1551_vm1, %v8667_v62  ;;  %v1477_v2 = vmax.f32 %v1317_v57, 0.0 }
 0x1c1   : > { %v1312_v1 = vadd.f32 %v8602_v4, %v1311_v0  ;;  %v1475_v5 = vmax.f32 %v1309_v61, 0.0  ;;  %v2478_v0 = vld [vmem:[#allocation2 + $0x10] sm:$0xff] }
 0x1c2   : > { %v1478_v3 = vmax.f32 %v1320_v63, 0.0 }
 0x1c3   : > { %v1476_v6 = vmax.f32 %v1312_v1, 0.0 }
 0x1c4   : > { %v1544_v7 = vpack.c.bf16 %v1478_v3, %v1477_v2 }
 0x1c5   : > { %v1543_v9 = vpack.c.bf16 %v1476_v6, %v1475_v5  ;;  %v7642_v11 = vpop.f32.mrb[108].mxu0  ;;  %v8685_v17 = vld [vmem:[#allocation2 + $0x198] sm:$0xff] }
 0x1c6   : > { %1605 = vst.msk [vmem:[#allocation2 + $0x1a8] sm:$0xff] %vm1551_vm1, %v1544_v7  ;;  %v1333_v12 = vadd.f32 %v8602_v4, %v7642_v11  ;;  %v1324_v13 = vpop.f32.mrb[109].mxu0  ;;  %v8677_v14 = vld [vmem:[#allocation2 + $0x190] sm:$0xff] }
 0x1c7   : > { %1604 = vst.msk [vmem:[#allocation2 + $0x1a0] sm:$0xff] %vm1551_vm1, %v1543_v9  ;;  %v1325_v15 = vadd.f32 %v8602_v4, %v1324_v13  ;;  %v7643_v16 = vpop.f32.mrb[110].mxu0  ;;  %7764 = vmatprep.mubr.msk.bf16.mxu1 %vm1551_vm1, %v8677_v14  ;;  %8004 = vmatprep.mubr.msk.bf16.mxu0 %vm1551_vm1, %v8677_v14 }
 0x1c8   : > { %v1336_v18 = vadd.f32 %v8602_v4, %v7643_v16  ;;  %v1327_v19 = vpop.f32.mrb[111].mxu0  ;;  %7765 = vmatmul.mubr.msk.bf16.gmra.mrb[100].mxu1 %vm1551_vm1, %v8685_v17  ;;  %8005 = vmatmul.mubr.msk.bf16.gmra.mrb[212].mxu0 %vm1551_vm1, %v8685_v17  ;;  %v1481_v21 = vmax.f32 %v1333_v12, 0.0 }
 0x1c9   : > { %v1328_v20 = vadd.f32 %v8602_v4, %v1327_v19  ;;  %v1479_v24 = vmax.f32 %v1325_v15, 0.0  ;;  %v2479_v19 = vld [vmem:[#allocation2 + $0x18] sm:$0xff] }
 0x1ca   : > { %v1482_v22 = vmax.f32 %v1336_v18, 0.0 }
 0x1cb   : > { %v1480_v25 = vmax.f32 %v1328_v20, 0.0 }
 0x1cc   : > { %v1546_v27 = vpack.c.bf16 %v1482_v22, %v1481_v21 }
 0x1cd   : > { %v1545_v28 = vpack.c.bf16 %v1480_v25, %v1479_v24  ;;  %v7646_v29 = vpop.f32.mrb[112].mxu0  ;;  %v8702_v33 = vld [vmem:[#allocation2 + $0x1a8] sm:$0xff] }
 0x1ce   : > { %1607 = vst.msk [vmem:[#allocation2 + $0x1b8] sm:$0xff] %vm1551_vm1, %v1546_v27  ;;  %v8694_v30 = vld [vmem:[#allocation2 + $0x1a0] sm:$0xff]  ;;  %v1349_v31 = vadd.f32 %v8602_v4, %v7646_v29  ;;  %v1340_v32 = vpop.f32.mrb[113].mxu0 }
 0x1cf   : > { %1606 = vst.msk [vmem:[#allocation2 + $0x1b0] sm:$0xff] %vm1551_vm1, %v1545_v28  ;;  %7768 = vmatprep.mubr.msk.bf16.mxu1 %vm1551_vm1, %v8694_v30  ;;  %8008 = vmatprep.mubr.msk.bf16.mxu0 %vm1551_vm1, %v8694_v30  ;;  %v1341_v34 = vadd.f32 %v8602_v4, %v1340_v32  ;;  %v7647_v35 = vpop.f32.mrb[114].mxu0  ;;  %v2482_v32 = vld [vmem:[#allocation2 + $0x30] sm:$0xff] }
 0x1d0   : > { %7769 = vmatmul.mubr.msk.bf16.gmra.mrb[104].mxu1 %vm1551_vm1, %v8702_v33  ;;  %8009 = vmatmul.mubr.msk.bf16.gmra.mrb[216].mxu0 %vm1551_vm1, %v8702_v33  ;;  %v1485_v36 = vmax.f32 %v1349_v31, 0.0  ;;  %v1352_v37 = vadd.f32 %v8602_v4, %v7647_v35  ;;  %v1343_v39 = vpop.f32.mrb[115].mxu0  ;;  %v2481_v31 = vld [vmem:[#allocation2 + $0x28] sm:$0xff] }
 0x1d1   : > { %v1483_v42 = vmax.f32 %v1341_v34, 0.0  ;;  %v1344_v44 = vadd.f32 %v8602_v4, %v1343_v39 }
 0x1d2   : > { %v1486_v46 = vmax.f32 %v1352_v37, 0.0 }
 0x1d3   : > { %v7666_v47 = vpop.f32.mrb[0].mxu1  ;;  %v1484_v48 = vmax.f32 %v1344_v44, 0.0 }
 0x1d4   : > { %2368 = vst.msk [vmem:[#allocation3 + $0x10] sm:$0xff] %vm2365_vm2, %v7666_v47  ;;  %v1918_v49 = vpop.f32.mrb[1].mxu1  ;;  %v1548_v50 = vpack.c.bf16 %v1486_v46, %v1485_v36  ;;  %v2483_v47 = vld [vmem:[#allocation2 + $0x38] sm:$0xff] }
 0x1d5   : > { %2366 = vst.msk [vmem:[#allocation3] sm:$0xff] %vm2365_vm2, %v1918_v49  ;;  %v7667_v51 = vpop.f32.mrb[2].mxu1  ;;  %v1547_v52 = vpack.c.bf16 %v1484_v48, %v1483_v42  ;;  %v7650_v53 = vpop.f32.mrb[116].mxu0  ;;  %v8723_v61 = vld [vmem:[#allocation2 + $0x1b8] sm:$0xff]  ;;  %v2484_v48 = vld [vmem:[#allocation2 + $0x40] sm:$0xff] }
 0x1d6   : > { %2369 = vst.msk [vmem:[#allocation3 + $0x18] sm:$0xff] %vm2365_vm2, %v7667_v51  ;;  %v1921_v54 = vpop.f32.mrb[3].mxu1  ;;  %v8714_v56 = vld [vmem:[#allocation2 + $0x1b0] sm:$0xff]  ;;  %v1365_v57 = vadd.f32 %v8602_v4, %v7650_v53  ;;  %v1356_v59 = vpop.f32.mrb[117].mxu0 }
 0x1d7   : > { %1609 = vst.msk [vmem:[#allocation2 + $0x1c8] sm:$0xff] %vm1551_vm1, %v1548_v50  ;;  %7772 = vmatprep.mubr.msk.bf16.mxu1 %vm1551_vm1, %v8714_v56  ;;  %8012 = vmatprep.mubr.msk.bf16.mxu0 %vm1551_vm1, %v8714_v56  ;;  %1608 = vst.msk [vmem:[#allocation2 + $0x1c0] sm:$0xff] %vm1551_vm1, %v1547_v52  ;;  %v1357_v43 = vadd.f32 %v8602_v4, %v1356_v59  ;;  %v7651_v63 = vpop.f32.mrb[118].mxu0 }
 0x1d8   : > { %2367 = vst.msk [vmem:[#allocation3 + $0x8] sm:$0xff] %vm2365_vm2, %v1921_v54  ;;  %7773 = vmatmul.mubr.msk.bf16.gmra.mrb[108].mxu1 %vm1551_vm1, %v8723_v61  ;;  %8013 = vmatmul.mubr.msk.bf16.gmra.mrb[220].mxu0 %vm1551_vm1, %v8723_v61  ;;  %v1489_v1 = vmax.f32 %v1365_v57, 0.0  ;;  %v1368_v2 = vadd.f32 %v8602_v4, %v7651_v63  ;;  %v1359_v3 = vpop.f32.mrb[119].mxu0  ;;  %v2486_v63 = vld [vmem:[#allocation2 + $0x50] sm:$0xff] }
 0x1d9   : > { %7788 = vmatprep.mubr.msk.bf16.mxu1 %vm1551_vm1, %v2478_v0  ;;  %v1487_v5 = vmax.f32 %v1357_v43, 0.0  ;;  %v1360_v6 = vadd.f32 %v8602_v4, %v1359_v3  ;;  %v2480_v4 = vld [vmem:[#allocation2 + $0x20] sm:$0xff]  ;;  %v2485_v43 = vld [vmem:[#allocation2 + $0x48] sm:$0xff] }
 0x1da   : > { %v1490_v7 = vmax.f32 %v1368_v2, 0.0 }
 0x1db   : > { %v7670_v9 = vpop.f32.mrb[4].mxu1  ;;  %v1488_v11 = vmax.f32 %v1360_v6, 0.0 }
 0x1dc   : > { %2372 = vst.msk [vmem:[#allocation3 + $0x30] sm:$0xff] %vm2365_vm2, %v7670_v9  ;;  %v1934_v12 = vpop.f32.mrb[5].mxu1  ;;  %v1550_v13 = vpack.c.bf16 %v1490_v7, %v1489_v1 }
 0x1dd   : > { %2370 = vst.msk [vmem:[#allocation3 + $0x20] sm:$0xff] %vm2365_vm2, %v1934_v12  ;;  %v7671_v15 = vpop.f32.mrb[6].mxu1  ;;  %v1549_v16 = vpack.c.bf16 %v1488_v11, %v1487_v5  ;;  %v2487_v11 = vld [vmem:[#allocation2 + $0x58] sm:$0xff]  ;;  %v2488_v12 = vld [vmem:[#allocation2 + $0x60] sm:$0xff] }
 0x1de   : > { %2373 = vst.msk [vmem:[#allocation3 + $0x38] sm:$0xff] %vm2365_vm2, %v7671_v15  ;;  %v1937_v18 = vpop.f32.mrb[7].mxu1 }
 0x1df   : > { %1611 = vst.msk [vmem:[#allocation2 + $0x1d8] sm:$0xff] %vm1551_vm1, %v1550_v13  ;;  %1610 = vst.msk [vmem:[#allocation2 + $0x1d0] sm:$0xff] %vm1551_vm1, %v1549_v16 }
 0x1e0   : > { %2371 = vst.msk [vmem:[#allocation3 + $0x28] sm:$0xff] %vm2365_vm2, %v1937_v18  ;;  %7789 = vmatmul.mubr.msk.bf16.vlgmr.msra.gmra.mrb[112].mxu1 %vm1551_vm1, %v2479_v19 }
 0x1e1   : > { %7792 = vmatprep.mubr.msk.bf16.mxu1 %vm1551_vm1, %v2480_v4 }
 0x1e3   : > { %v7674_v20 = vpop.f32.mrb[8].mxu1  ;;  %v8742_v21 = vpop.f32.mrb[120].mxu0 }
 0x1e4   : > { %2376 = vst.msk [vmem:[#allocation3 + $0x50] sm:$0xff] %vm2365_vm2, %v7674_v20  ;;  %v1950_v22 = vpop.f32.mrb[9].mxu1  ;;  %v8745_v24 = vpop.f32.mrb[121].mxu0 }
 0x1e5   : > { %2374 = vst.msk [vmem:[#allocation3 + $0x40] sm:$0xff] %vm2365_vm2, %v1950_v22  ;;  %v7675_v25 = vpop.f32.mrb[10].mxu1  ;;  %v8748_v27 = vpop.f32.mrb[122].mxu0 }
 0x1e6   : > { %2377 = vst.msk [vmem:[#allocation3 + $0x58] sm:$0xff] %vm2365_vm2, %v7675_v25  ;;  %v1953_v28 = vpop.f32.mrb[11].mxu1  ;;  %v8751_v29 = vpop.f32.mrb[123].mxu0  ;;  %v2489_v25 = vld [vmem:[#allocation2 + $0x68] sm:$0xff] }
 0x1e7   : > { %2375 = vst.msk [vmem:[#allocation3 + $0x48] sm:$0xff] %vm2365_vm2, %v1953_v28  ;;  %v2490_v28 = vld [vmem:[#allocation2 + $0x70] sm:$0xff] }
 0x1e8   : > { %7793 = vmatmul.mubr.msk.bf16.gmra.mrb[116].mxu1 %vm1551_vm1, %v2481_v31 }
 0x1e9   : > { %7796 = vmatprep.mubr.msk.bf16.mxu1 %vm1551_vm1, %v2482_v32 }
 0x1eb   : > { %v7678_v34 = vpop.f32.mrb[12].mxu1  ;;  %v8756_v35 = vpop.f32.mrb[124].mxu0 }
 0x1ec   : > { %2380 = vst.msk [vmem:[#allocation3 + $0x70] sm:$0xff] %vm2365_vm2, %v7678_v34  ;;  %v1966_v36 = vpop.f32.mrb[13].mxu1  ;;  %v8759_v37 = vpop.f32.mrb[125].mxu0 }
 0x1ed   : > { %2378 = vst.msk [vmem:[#allocation3 + $0x60] sm:$0xff] %vm2365_vm2, %v1966_v36  ;;  %v7679_v39 = vpop.f32.mrb[14].mxu1  ;;  %v8762_v42 = vpop.f32.mrb[126].mxu0 }
 0x1ee   : > { %2381 = vst.msk [vmem:[#allocation3 + $0x78] sm:$0xff] %vm2365_vm2, %v7679_v39  ;;  %v1969_v44 = vpop.f32.mrb[15].mxu1  ;;  %v8765_v46 = vpop.f32.mrb[127].mxu0 }
 0x1ef   : > { %2379 = vst.msk [vmem:[#allocation3 + $0x68] sm:$0xff] %vm2365_vm2, %v1969_v44 }
 0x1f0   : > { %7797 = vmatmul.mubr.msk.bf16.gmra.mrb[120].mxu1 %vm1551_vm1, %v2483_v47 }
 0x1f1   : > { %7800 = vmatprep.mubr.msk.bf16.mxu1 %vm1551_vm1, %v2484_v48 }
 0x1f3   : > { %v7682_v49 = vpop.f32.mrb[16].mxu1  ;;  %v8770_v50 = vpop.f32.mrb[128].mxu0 }
 0x1f4   : > { %2384 = vst.msk [vmem:[#allocation3 + $0x90] sm:$0xff] %vm2365_vm2, %v7682_v49  ;;  %v1982_v51 = vpop.f32.mrb[17].mxu1  ;;  %v8773_v52 = vpop.f32.mrb[129].mxu0  ;;  %v2491_v49 = vld [vmem:[#allocation2 + $0x78] sm:$0xff] }
 0x1f5   : > { %2382 = vst.msk [vmem:[#allocation3 + $0x80] sm:$0xff] %vm2365_vm2, %v1982_v51  ;;  %v7683_v53 = vpop.f32.mrb[18].mxu1  ;;  %v8776_v54 = vpop.f32.mrb[130].mxu0  ;;  %v2492_v51 = vld [vmem:[#allocation2 + $0x80] sm:$0xff] }
 0x1f6   : > { %2385 = vst.msk [vmem:[#allocation3 + $0x98] sm:$0xff] %vm2365_vm2, %v7683_v53  ;;  %v1985_v57 = vpop.f32.mrb[19].mxu1  ;;  %v8779_v59 = vpop.f32.mrb[131].mxu0 }
 0x1f7   : > { %2383 = vst.msk [vmem:[#allocation3 + $0x88] sm:$0xff] %vm2365_vm2, %v1985_v57 }
 0x1f8   : > { %7801 = vmatmul.mubr.msk.bf16.gmra.mrb[124].mxu1 %vm1551_vm1, %v2485_v43 }
 0x1f9   : > { %7804 = vmatprep.mubr.msk.bf16.mxu1 %vm1551_vm1, %v2486_v63 }
 0x1fb   : > { %v7686_v0 = vpop.f32.mrb[20].mxu1  ;;  %v8784_v1 = vpop.f32.mrb[132].mxu0 }
 0x1fc   : > { %2388 = vst.msk [vmem:[#allocation3 + $0xb0] sm:$0xff] %vm2365_vm2, %v7686_v0  ;;  %v1998_v2 = vpop.f32.mrb[21].mxu1  ;;  %v8787_v3 = vpop.f32.mrb[133].mxu0 }
 0x1fd   : > { %2386 = vst.msk [vmem:[#allocation3 + $0xa0] sm:$0xff] %vm2365_vm2, %v1998_v2  ;;  %v7687_v5 = vpop.f32.mrb[22].mxu1  ;;  %v8790_v6 = vpop.f32.mrb[134].mxu0 }
 0x1fe   : > { %2389 = vst.msk [vmem:[#allocation3 + $0xb8] sm:$0xff] %vm2365_vm2, %v7687_v5  ;;  %v2001_v7 = vpop.f32.mrb[23].mxu1  ;;  %v8793_v9 = vpop.f32.mrb[135].mxu0 }
 0x1ff   : > { %2387 = vst.msk [vmem:[#allocation3 + $0xa8] sm:$0xff] %vm2365_vm2, %v2001_v7 }
 0x200   : > { %7805 = vmatmul.mubr.msk.bf16.gmra.mrb[128].mxu1 %vm1551_vm1, %v2487_v11  ;;  %v2493_v11 = vld [vmem:[#allocation2 + $0x88] sm:$0xff] }
 0x201   : > { %7808 = vmatprep.mubr.msk.bf16.mxu1 %vm1551_vm1, %v2488_v12  ;;  %v2494_v12 = vld [vmem:[#allocation2 + $0x90] sm:$0xff] }
 0x203   : > { %v7690_v13 = vpop.f32.mrb[24].mxu1  ;;  %v8798_v15 = vpop.f32.mrb[136].mxu0 }
 0x204   : > { %2392 = vst.msk [vmem:[#allocation3 + $0xd0] sm:$0xff] %vm2365_vm2, %v7690_v13  ;;  %v2014_v16 = vpop.f32.mrb[25].mxu1  ;;  %v8801_v18 = vpop.f32.mrb[137].mxu0 }
 0x205   : > { %2390 = vst.msk [vmem:[#allocation3 + $0xc0] sm:$0xff] %vm2365_vm2, %v2014_v16  ;;  %v7691_v19 = vpop.f32.mrb[26].mxu1  ;;  %v8804_v4 = vpop.f32.mrb[138].mxu0 }
 0x206   : > { %2393 = vst.msk [vmem:[#allocation3 + $0xd8] sm:$0xff] %vm2365_vm2, %v7691_v19  ;;  %v2017_v20 = vpop.f32.mrb[27].mxu1  ;;  %v8807_v22 = vpop.f32.mrb[139].mxu0 }
 0x207   : > { %2391 = vst.msk [vmem:[#allocation3 + $0xc8] sm:$0xff] %vm2365_vm2, %v2017_v20 }
 0x208   : > { %7809 = vmatmul.mubr.msk.bf16.gmra.mrb[132].mxu1 %vm1551_vm1, %v2489_v25 }
 0x209   : > { %7812 = vmatprep.mubr.msk.bf16.mxu1 %vm1551_vm1, %v2490_v28 }
 0x20b   : > { %v7694_v31 = vpop.f32.mrb[28].mxu1  ;;  %v8812_v32 = vpop.f32.mrb[140].mxu0 }
 0x20c   : > { %2396 = vst.msk [vmem:[#allocation3 + $0xf0] sm:$0xff] %vm2365_vm2, %v7694_v31  ;;  %v2030_v34 = vpop.f32.mrb[29].mxu1  ;;  %v8815_v36 = vpop.f32.mrb[141].mxu0 }
 0x20d   : > { %2394 = vst.msk [vmem:[#allocation3 + $0xe0] sm:$0xff] %vm2365_vm2, %v2030_v34  ;;  %v7695_v39 = vpop.f32.mrb[30].mxu1  ;;  %v8818_v44 = vpop.f32.mrb[142].mxu0 }
 0x20e   : > { %2397 = vst.msk [vmem:[#allocation3 + $0xf8] sm:$0xff] %vm2365_vm2, %v7695_v39  ;;  %v2033_v47 = vpop.f32.mrb[31].mxu1  ;;  %v8821_v48 = vpop.f32.mrb[143].mxu0  ;;  %v2495_v39 = vld [vmem:[#allocation2 + $0x98] sm:$0xff] }
 0x20f   : > { %2395 = vst.msk [vmem:[#allocation3 + $0xe8] sm:$0xff] %vm2365_vm2, %v2033_v47  ;;  %v2496_v47 = vld [vmem:[#allocation2 + $0xa0] sm:$0xff] }
 0x210   : > { %7813 = vmatmul.mubr.msk.bf16.gmra.mrb[136].mxu1 %vm1551_vm1, %v2491_v49 }
 0x211   : > { %7816 = vmatprep.mubr.msk.bf16.mxu1 %vm1551_vm1, %v2492_v51 }
 0x213   : > { %v7698_v53 = vpop.f32.mrb[32].mxu1  ;;  %v8826_v57 = vpop.f32.mrb[144].mxu0 }
 0x214   : > { %2400 = vst.msk [vmem:[#allocation3 + $0x110] sm:$0xff] %vm2365_vm2, %v7698_v53  ;;  %v2046_v43 = vpop.f32.mrb[33].mxu1  ;;  %v8829_v63 = vpop.f32.mrb[145].mxu0 }
 0x215   : > { %2398 = vst.msk [vmem:[#allocation3 + $0x100] sm:$0xff] %vm2365_vm2, %v2046_v43  ;;  %v7699_v0 = vpop.f32.mrb[34].mxu1  ;;  %v8832_v2 = vpop.f32.mrb[146].mxu0 }
 0x216   : > { %2401 = vst.msk [vmem:[#allocation3 + $0x118] sm:$0xff] %vm2365_vm2, %v7699_v0  ;;  %v2049_v5 = vpop.f32.mrb[35].mxu1  ;;  %v8835_v7 = vpop.f32.mrb[147].mxu0 }
 0x217   : > { %2399 = vst.msk [vmem:[#allocation3 + $0x108] sm:$0xff] %vm2365_vm2, %v2049_v5 }
 0x218   : > { %7817 = vmatmul.mubr.msk.bf16.gmra.mrb[140].mxu1 %vm1551_vm1, %v2493_v11 }
 0x219   : > { %7820 = vmatprep.mubr.msk.bf16.mxu1 %vm1551_vm1, %v2494_v12 }
 0x21b   : > { %v7702_v13 = vpop.f32.mrb[36].mxu1  ;;  %v8840_v16 = vpop.f32.mrb[148].mxu0 }
 0x21c   : > { %2404 = vst.msk [vmem:[#allocation3 + $0x130] sm:$0xff] %vm2365_vm2, %v7702_v13  ;;  %v2062_v19 = vpop.f32.mrb[37].mxu1  ;;  %v8843_v20 = vpop.f32.mrb[149].mxu0  ;;  %v2497_v13 = vld [vmem:[#allocation2 + $0xa8] sm:$0xff] }
 0x21d   : > { %2402 = vst.msk [vmem:[#allocation3 + $0x120] sm:$0xff] %vm2365_vm2, %v2062_v19  ;;  %v7703_v25 = vpop.f32.mrb[38].mxu1  ;;  %v8846_v28 = vpop.f32.mrb[150].mxu0  ;;  %v2498_v19 = vld [vmem:[#allocation2 + $0xb0] sm:$0xff] }
 0x21e   : > { %2405 = vst.msk [vmem:[#allocation3 + $0x138] sm:$0xff] %vm2365_vm2, %v7703_v25  ;;  %v2065_v31 = vpop.f32.mrb[39].mxu1  ;;  %v8849_v34 = vpop.f32.mrb[151].mxu0 }
 0x21f   : > { %2403 = vst.msk [vmem:[#allocation3 + $0x128] sm:$0xff] %vm2365_vm2, %v2065_v31 }
 0x220   : > { %7821 = vmatmul.mubr.msk.bf16.gmra.mrb[144].mxu1 %vm1551_vm1, %v2495_v39 }
 0x221   : > { %7824 = vmatprep.mubr.msk.bf16.mxu1 %vm1551_vm1, %v2496_v47 }
 0x223   : > { %v7706_v49 = vpop.f32.mrb[40].mxu1  ;;  %v8854_v51 = vpop.f32.mrb[152].mxu0 }
 0x224   : > { %2408 = vst.msk [vmem:[#allocation3 + $0x150] sm:$0xff] %vm2365_vm2, %v7706_v49  ;;  %v2078_v53 = vpop.f32.mrb[41].mxu1  ;;  %v8857_v43 = vpop.f32.mrb[153].mxu0 }
 0x225   : > { %2406 = vst.msk [vmem:[#allocation3 + $0x140] sm:$0xff] %vm2365_vm2, %v2078_v53  ;;  %v7707_v0 = vpop.f32.mrb[42].mxu1  ;;  %v8860_v5 = vpop.f32.mrb[154].mxu0 }
 0x226   : > { %9997 = vst [vmem:[#allocation4_spill] sm:$0xff] %v8860_v5  ;;  %2409 = vst.msk [vmem:[#allocation3 + $0x158] sm:$0xff] %vm2365_vm2, %v7707_v0  ;;  %v2081_v11 = vpop.f32.mrb[43].mxu1  ;;  %v8863_v12 = vpop.f32.mrb[155].mxu0 }
 0x227   : > { %9998 = vst [vmem:[#allocation5_spill] sm:$0xff] %v8863_v12  ;;  %2407 = vst.msk [vmem:[#allocation3 + $0x148] sm:$0xff] %vm2365_vm2, %v2081_v11  ;;  %v2501_v12 = vld [vmem:[#allocation2 + $0xc8] sm:$0xff] }
 0x228   : > { %7825 = vmatmul.mubr.msk.bf16.gmra.mrb[148].mxu1 %vm1551_vm1, %v2497_v13  ;;  %v2499_v13 = vld [vmem:[#allocation2 + $0xb8] sm:$0xff] }
 0x229   : > { %7828 = vmatprep.mubr.msk.bf16.mxu1 %vm1551_vm1, %v2498_v19  ;;  %v8880_v19 = vld [vmem:[#allocation2 + $0x1c0] sm:$0xff] }
 0x22a   : > { %8016 = vmatprep.mubr.msk.bf16.mxu0 %vm1551_vm1, %v8880_v19 }
 0x22b   : > { %v7710_v25 = vpop.f32.mrb[44].mxu1  ;;  %v8868_v31 = vpop.f32.mrb[156].mxu0 }
 0x22c   : > { %9999 = vst [vmem:[#allocation6_spill] sm:$0xff] %v8868_v31  ;;  %2412 = vst.msk [vmem:[#allocation3 + $0x170] sm:$0xff] %vm2365_vm2, %v7710_v25  ;;  %v2094_v39 = vpop.f32.mrb[45].mxu1  ;;  %v8871_v47 = vpop.f32.mrb[157].mxu0  ;;  %v2500_v25 = vld [vmem:[#allocation2 + $0xc0] sm:$0xff] }
 0x22d   : > { %10000 = vst [vmem:[#allocation7_spill] sm:$0xff] %v8871_v47  ;;  %2410 = vst.msk [vmem:[#allocation3 + $0x160] sm:$0xff] %vm2365_vm2, %v2094_v39  ;;  %v7711_v49 = vpop.f32.mrb[46].mxu1  ;;  %v8874_v53 = vpop.f32.mrb[158].mxu0  ;;  %v8885_v39 = vld [vmem:[#allocation2 + $0x1c8] sm:$0xff] }
 0x22e   : > { %10001 = vst [vmem:[#allocation8_spill] sm:$0xff] %v8874_v53  ;;  %2413 = vst.msk [vmem:[#allocation3 + $0x178] sm:$0xff] %vm2365_vm2, %v7711_v49  ;;  %v2097_v0 = vpop.f32.mrb[47].mxu1  ;;  %v8877_v11 = vpop.f32.mrb[159].mxu0  ;;  %8017 = vmatmul.mubr.msk.bf16.gmra.mrb[224].mxu0 %vm1551_vm1, %v8885_v39 }
 0x22f   : > { %10002 = vst [vmem:[#allocation9_spill] sm:$0xff] %v8877_v11  ;;  %2411 = vst.msk [vmem:[#allocation3 + $0x168] sm:$0xff] %vm2365_vm2, %v2097_v0 }
 0x230   : > { %7829 = vmatmul.mubr.msk.bf16.gmra.mrb[152].mxu1 %vm1551_vm1, %v2499_v13 }
 0x231   : > { %7832 = vmatprep.mubr.msk.bf16.mxu1 %vm1551_vm1, %v2500_v25 }
 0x233   : > { %v7714_v49 = vpop.f32.mrb[48].mxu1  ;;  %v8890_v11 = vpop.f32.mrb[160].mxu0 }
 0x234   : > { %10003 = vst [vmem:[#allocation10_spill] sm:$0xff] %v8890_v11  ;;  %2416 = vst.msk [vmem:[#allocation3 + $0x190] sm:$0xff] %vm2365_vm2, %v7714_v49  ;;  %v2110_v0 = vpop.f32.mrb[49].mxu1  ;;  %v8893_v53 = vpop.f32.mrb[161].mxu0  ;;  %v2502_v11 = vld [vmem:[#allocation2 + $0xd0] sm:$0xff] }
 0x235   : > { %10004 = vst [vmem:[#allocation11_spill] sm:$0xff] %v8893_v53  ;;  %2414 = vst.msk [vmem:[#allocation3 + $0x180] sm:$0xff] %vm2365_vm2, %v2110_v0  ;;  %v7715_v13 = vpop.f32.mrb[50].mxu1  ;;  %v8896_v47 = vpop.f32.mrb[162].mxu0  ;;  %v3622_v49 = vld [vmem:[#allocation2 + $0x1d0] sm:$0xff]  ;;  %v3623_v0 = vld [vmem:[#allocation2 + $0x1d8] sm:$0xff] }
 0x236   : > { %2417 = vst.msk [vmem:[#allocation3 + $0x198] sm:$0xff] %vm2365_vm2, %v7715_v13  ;;  %v2113_v31 = vpop.f32.mrb[51].mxu1  ;;  %v8899_v25 = vpop.f32.mrb[163].mxu0  ;;  %8020 = vmatprep.mubr.msk.bf16.mxu0 %vm1551_vm1, %v3622_v49 }
 0x237   : > { %10005 = vst [vmem:[#allocation12_spill] sm:$0xff] %v8899_v25  ;;  %2415 = vst.msk [vmem:[#allocation3 + $0x188] sm:$0xff] %vm2365_vm2, %v2113_v31  ;;  %8021 = vmatmul.mubr.msk.bf16.gmra.mrb[228].mxu0 %vm1551_vm1, %v3623_v0  ;;  %v2504_v0 = vld [vmem:[#allocation2 + $0xe0] sm:$0xff] }
 0x238   : > { %7833 = vmatmul.mubr.msk.bf16.gmra.mrb[156].mxu1 %vm1551_vm1, %v2501_v12 }
 0x239   : > { %7836 = vmatprep.mubr.msk.bf16.mxu1 %vm1551_vm1, %v2502_v11 }
 0x23b   : > { %v7718_v53 = vpop.f32.mrb[52].mxu1  ;;  %v8905_v5 = vpop.f32.mrb[164].mxu0 }
 0x23c   : > { %10006 = vst [vmem:[#allocation13_spill] sm:$0xff] %v8905_v5  ;;  %2420 = vst.msk [vmem:[#allocation3 + $0x1b0] sm:$0xff] %vm2365_vm2, %v7718_v53  ;;  %v2126_v13 = vpop.f32.mrb[53].mxu1  ;;  %v8909_v25 = vpop.f32.mrb[165].mxu0  ;;  %v2503_v5 = vld [vmem:[#allocation2 + $0xd8] sm:$0xff] }
 0x23d   : > { %10007 = vst [vmem:[#allocation14_spill] sm:$0xff] %v8909_v25  ;;  %2418 = vst.msk [vmem:[#allocation3 + $0x1a0] sm:$0xff] %vm2365_vm2, %v2126_v13  ;;  %v7719_v12 = vpop.f32.mrb[54].mxu1  ;;  %v8912_v31 = vpop.f32.mrb[166].mxu0 }
 0x23e   : > { %10008 = vst [vmem:[#allocation15_spill] sm:$0xff] %v8912_v31  ;;  %2421 = vst.msk [vmem:[#allocation3 + $0x1b8] sm:$0xff] %vm2365_vm2, %v7719_v12  ;;  %v2129_v11 = vpop.f32.mrb[55].mxu1  ;;  %v8915_v49 = vpop.f32.mrb[167].mxu0 }
 0x23f   : > { %10009 = vst [vmem:[#allocation16_spill] sm:$0xff] %v8915_v49  ;;  %2419 = vst.msk [vmem:[#allocation3 + $0x1a8] sm:$0xff] %vm2365_vm2, %v2129_v11 }
 0x240   : > { %7837 = vmatmul.mubr.msk.bf16.gmra.mrb[160].mxu1 %vm1551_vm1, %v2503_v5 }
 0x241   : > { %7840 = vmatprep.mubr.msk.bf16.mxu1 %vm1551_vm1, %v2504_v0  ;;  %v2505_v0 = vld [vmem:[#allocation2 + $0xe8] sm:$0xff] }
 0x243   : > { %v7722_v53 = vpop.f32.mrb[56].mxu1  ;;  %v8920_v25 = vpop.f32.mrb[168].mxu0 }
 0x244   : > { %10010 = vst [vmem:[#allocation17_spill] sm:$0xff] %v8920_v25  ;;  %2424 = vst.msk [vmem:[#allocation3 + $0x1d0] sm:$0xff] %vm2365_vm2, %v7722_v53  ;;  %v2142_v13 = vpop.f32.mrb[57].mxu1  ;;  %v8923_v31 = vpop.f32.mrb[169].mxu0  ;;  %v2506_v25 = vld [vmem:[#allocation2 + $0xf0] sm:$0xff] }
 0x245   : > { %10011 = vst [vmem:[#allocation18_spill] sm:$0xff] %v8923_v31  ;;  %2422 = vst.msk [vmem:[#allocation3 + $0x1c0] sm:$0xff] %vm2365_vm2, %v2142_v13  ;;  %v7723_v12 = vpop.f32.mrb[58].mxu1  ;;  %v8926_v49 = vpop.f32.mrb[170].mxu0 }
 0x246   : > { %10012 = vst [vmem:[#allocation19_spill] sm:$0xff] %v8926_v49  ;;  %2425 = vst.msk [vmem:[#allocation3 + $0x1d8] sm:$0xff] %vm2365_vm2, %v7723_v12  ;;  %v2145_v11 = vpop.f32.mrb[59].mxu1  ;;  %v8929_v5 = vpop.f32.mrb[171].mxu0 }
 0x247   : > { %10013 = vst [vmem:[#allocation20_spill] sm:$0xff] %v8929_v5  ;;  %2423 = vst.msk [vmem:[#allocation3 + $0x1c8] sm:$0xff] %vm2365_vm2, %v2145_v11 }
 0x248   : > { %7841 = vmatmul.mubr.msk.bf16.gmra.mrb[164].mxu1 %vm1551_vm1, %v2505_v0 }
 0x249   : > { %7844 = vmatprep.mubr.msk.bf16.mxu1 %vm1551_vm1, %v2506_v25  ;;  %v2507_v25 = vld [vmem:[#allocation2 + $0xf8] sm:$0xff] }
 0x24b   : > { %v7726_v53 = vpop.f32.mrb[60].mxu1  ;;  %v8934_v31 = vpop.f32.mrb[172].mxu0 }
 0x24c   : > { %10014 = vst [vmem:[#allocation21_spill] sm:$0xff] %v8934_v31  ;;  %2428 = vst.msk [vmem:[#allocation3 + $0x1f0] sm:$0xff] %vm2365_vm2, %v7726_v53  ;;  %v2158_v13 = vpop.f32.mrb[61].mxu1  ;;  %v8937_v49 = vpop.f32.mrb[173].mxu0  ;;  %v2508_v31 = vld [vmem:[#allocation2 + $0x100] sm:$0xff] }
 0x24d   : > { %10015 = vst [vmem:[#allocation22_spill] sm:$0xff] %v8937_v49  ;;  %2426 = vst.msk [vmem:[#allocation3 + $0x1e0] sm:$0xff] %vm2365_vm2, %v2158_v13  ;;  %v7727_v12 = vpop.f32.mrb[62].mxu1  ;;  %v8940_v5 = vpop.f32.mrb[174].mxu0 }
 0x24e   : > { %10016 = vst [vmem:[#allocation23_spill] sm:$0xff] %v8940_v5  ;;  %2429 = vst.msk [vmem:[#allocation3 + $0x1f8] sm:$0xff] %vm2365_vm2, %v7727_v12  ;;  %v2161_v11 = vpop.f32.mrb[63].mxu1  ;;  %v8943_v0 = vpop.f32.mrb[175].mxu0 }
 0x24f   : > { %10017 = vst [vmem:[#allocation24_spill] sm:$0xff] %v8943_v0  ;;  %2427 = vst.msk [vmem:[#allocation3 + $0x1e8] sm:$0xff] %vm2365_vm2, %v2161_v11 }
 0x250   : > { %7845 = vmatmul.mubr.msk.bf16.gmra.mrb[168].mxu1 %vm1551_vm1, %v2507_v25 }
 0x251   : > { %7848 = vmatprep.mubr.msk.bf16.mxu1 %vm1551_vm1, %v2508_v31  ;;  %v2509_v31 = vld [vmem:[#allocation2 + $0x108] sm:$0xff] }
 0x253   : > { %v7730_v53 = vpop.f32.mrb[64].mxu1  ;;  %v8948_v49 = vpop.f32.mrb[176].mxu0 }
 0x254   : > { %10018 = vst [vmem:[#allocation25_spill] sm:$0xff] %v8948_v49  ;;  %2432 = vst.msk [vmem:[#allocation3 + $0x210] sm:$0xff] %vm2365_vm2, %v7730_v53  ;;  %v2174_v13 = vpop.f32.mrb[65].mxu1  ;;  %v8951_v5 = vpop.f32.mrb[177].mxu0  ;;  %v2510_v49 = vld [vmem:[#allocation2 + $0x110] sm:$0xff] }
 0x255   : > { %10019 = vst [vmem:[#allocation26_spill] sm:$0xff] %v8951_v5  ;;  %2430 = vst.msk [vmem:[#allocation3 + $0x200] sm:$0xff] %vm2365_vm2, %v2174_v13  ;;  %v7731_v12 = vpop.f32.mrb[66].mxu1  ;;  %v8954_v0 = vpop.f32.mrb[178].mxu0 }
 0x256   : > { %10020 = vst [vmem:[#allocation27_spill] sm:$0xff] %v8954_v0  ;;  %2433 = vst.msk [vmem:[#allocation3 + $0x218] sm:$0xff] %vm2365_vm2, %v7731_v12  ;;  %v2177_v11 = vpop.f32.mrb[67].mxu1  ;;  %v8957_v25 = vpop.f32.mrb[179].mxu0 }
 0x257   : > { %10021 = vst [vmem:[#allocation28_spill] sm:$0xff] %v8957_v25  ;;  %2431 = vst.msk [vmem:[#allocation3 + $0x208] sm:$0xff] %vm2365_vm2, %v2177_v11 }
 0x258   : > { %7849 = vmatmul.mubr.msk.bf16.gmra.mrb[172].mxu1 %vm1551_vm1, %v2509_v31 }
 0x259   : > { %7852 = vmatprep.mubr.msk.bf16.mxu1 %vm1551_vm1, %v2510_v49  ;;  %v2511_v49 = vld [vmem:[#allocation2 + $0x118] sm:$0xff] }
 0x25b   : > { %v7734_v53 = vpop.f32.mrb[68].mxu1  ;;  %v8962_v5 = vpop.f32.mrb[180].mxu0 }
 0x25c   : > { %10022 = vst [vmem:[#allocation29_spill] sm:$0xff] %v8962_v5  ;;  %2436 = vst.msk [vmem:[#allocation3 + $0x230] sm:$0xff] %vm2365_vm2, %v7734_v53  ;;  %v2190_v13 = vpop.f32.mrb[69].mxu1  ;;  %v8965_v0 = vpop.f32.mrb[181].mxu0  ;;  %v2512_v5 = vld [vmem:[#allocation2 + $0x120] sm:$0xff] }
 0x25d   : > { %10023 = vst [vmem:[#allocation30_spill] sm:$0xff] %v8965_v0  ;;  %2434 = vst.msk [vmem:[#allocation3 + $0x220] sm:$0xff] %vm2365_vm2, %v2190_v13  ;;  %v7735_v12 = vpop.f32.mrb[70].mxu1  ;;  %v8968_v25 = vpop.f32.mrb[182].mxu0 }
 0x25e   : > { %10024 = vst [vmem:[#allocation31_spill] sm:$0xff] %v8968_v25  ;;  %2437 = vst.msk [vmem:[#allocation3 + $0x238] sm:$0xff] %vm2365_vm2, %v7735_v12  ;;  %v2193_v11 = vpop.f32.mrb[71].mxu1  ;;  %v8971_v31 = vpop.f32.mrb[183].mxu0 }
 0x25f   : > { %10025 = vst [vmem:[#allocation32_spill] sm:$0xff] %v8971_v31  ;;  %2435 = vst.msk [vmem:[#allocation3 + $0x228] sm:$0xff] %vm2365_vm2, %v2193_v11 }
 0x260   : > { %7853 = vmatmul.mubr.msk.bf16.gmra.mrb[176].mxu1 %vm1551_vm1, %v2511_v49 }
 0x261   : > { %7856 = vmatprep.mubr.msk.bf16.mxu1 %vm1551_vm1, %v2512_v5  ;;  %v2513_v5 = vld [vmem:[#allocation2 + $0x128] sm:$0xff] }
 0x263   : > { %v7738_v53 = vpop.f32.mrb[72].mxu1  ;;  %v8976_v0 = vpop.f32.mrb[184].mxu0 }
 0x264   : > { %2440 = vst.msk [vmem:[#allocation3 + $0x250] sm:$0xff] %vm2365_vm2, %v7738_v53  ;;  %v2206_v13 = vpop.f32.mrb[73].mxu1  ;;  %v8979_v25 = vpop.f32.mrb[185].mxu0 }
 0x265   : > { %10026 = vst [vmem:[#allocation33_spill] sm:$0xff] %v8979_v25  ;;  %2438 = vst.msk [vmem:[#allocation3 + $0x240] sm:$0xff] %vm2365_vm2, %v2206_v13  ;;  %v7739_v12 = vpop.f32.mrb[74].mxu1  ;;  %v8982_v31 = vpop.f32.mrb[186].mxu0 }
 0x266   : > { %10027 = vst [vmem:[#allocation34_spill] sm:$0xff] %v8982_v31  ;;  %2441 = vst.msk [vmem:[#allocation3 + $0x258] sm:$0xff] %vm2365_vm2, %v7739_v12  ;;  %v2209_v11 = vpop.f32.mrb[75].mxu1  ;;  %v8985_v49 = vpop.f32.mrb[187].mxu0 }
 0x267   : > { %10028 = vst [vmem:[#allocation35_spill] sm:$0xff] %v8985_v49  ;;  %2439 = vst.msk [vmem:[#allocation3 + $0x248] sm:$0xff] %vm2365_vm2, %v2209_v11 }
 0x268   : > { %7857 = vmatmul.mubr.msk.bf16.gmra.mrb[180].mxu1 %vm1551_vm1, %v2513_v5 }
 0x269   : > { %7860 = vmatprep.mubr.msk.bf16.mxu1 %vm1551_vm1, %v8564_v38 }
 0x26b   : > { %v7742_v53 = vpop.f32.mrb[76].mxu1  ;;  %v8991_v25 = vpop.f32.mrb[188].mxu0 }
 0x26c   : > { %2444 = vst.msk [vmem:[#allocation3 + $0x270] sm:$0xff] %vm2365_vm2, %v7742_v53  ;;  %v2222_v13 = vpop.f32.mrb[77].mxu1  ;;  %v8994_v31 = vpop.f32.mrb[189].mxu0 }
 0x26d   : > { %2442 = vst.msk [vmem:[#allocation3 + $0x260] sm:$0xff] %vm2365_vm2, %v2222_v13  ;;  %v7743_v12 = vpop.f32.mrb[78].mxu1  ;;  %v8997_v49 = vpop.f32.mrb[190].mxu0 }
 0x26e   : > { %10029 = vst [vmem:[#allocation36_spill] sm:$0xff] %v8997_v49  ;;  %2445 = vst.msk [vmem:[#allocation3 + $0x278] sm:$0xff] %vm2365_vm2, %v7743_v12  ;;  %v2225_v11 = vpop.f32.mrb[79].mxu1  ;;  %v9000_v5 = vpop.f32.mrb[191].mxu0 }
 0x26f   : > { %10030 = vst [vmem:[#allocation37_spill] sm:$0xff] %v9000_v5  ;;  %2443 = vst.msk [vmem:[#allocation3 + $0x268] sm:$0xff] %vm2365_vm2, %v2225_v11 }
 0x270   : > { %7861 = vmatmul.mubr.msk.bf16.gmra.mrb[184].mxu1 %vm1551_vm1, %v8572_v41 }
 0x271   : > { %7864 = vmatprep.mubr.msk.bf16.mxu1 %vm1551_vm1, %v8582_v55 }
 0x273   : > { %v7746_v38 = vpop.f32.mrb[80].mxu1  ;;  %v9007_v53 = vpop.f32.mrb[192].mxu0 }
 0x274   : > { %2448 = vst.msk [vmem:[#allocation3 + $0x290] sm:$0xff] %vm2365_vm2, %v7746_v38  ;;  %v2238_v13 = vpop.f32.mrb[81].mxu1  ;;  %v9010_v49 = vpop.f32.mrb[193].mxu0 }
 0x275   : > { %2446 = vst.msk [vmem:[#allocation3 + $0x280] sm:$0xff] %vm2365_vm2, %v2238_v13  ;;  %v7747_v12 = vpop.f32.mrb[82].mxu1  ;;  %v9013_v5 = vpop.f32.mrb[194].mxu0 }
 0x276   : > { %10031 = vst [vmem:[#allocation38_spill] sm:$0xff] %v9013_v5  ;;  %2449 = vst.msk [vmem:[#allocation3 + $0x298] sm:$0xff] %vm2365_vm2, %v7747_v12  ;;  %v2241_v11 = vpop.f32.mrb[83].mxu1  ;;  %v9016_v41 = vpop.f32.mrb[195].mxu0 }
 0x277   : > { %10032 = vst [vmem:[#allocation39_spill] sm:$0xff] %v9016_v41  ;;  %2447 = vst.msk [vmem:[#allocation3 + $0x288] sm:$0xff] %vm2365_vm2, %v2241_v11 }
 0x278   : > { %7865 = vmatmul.mubr.msk.bf16.gmra.mrb[188].mxu1 %vm1551_vm1, %v8590_v58 }
 0x279   : > { %7868 = vmatprep.mubr.msk.bf16.mxu1 %vm1551_vm1, %v8605_v8 }
 0x27b   : > { %v7750_v55 = vpop.f32.mrb[84].mxu1  ;;  %v9023_v38 = vpop.f32.mrb[196].mxu0 }
 0x27c   : > { %2452 = vst.msk [vmem:[#allocation3 + $0x2b0] sm:$0xff] %vm2365_vm2, %v7750_v55  ;;  %v2254_v13 = vpop.f32.mrb[85].mxu1  ;;  %v9026_v5 = vpop.f32.mrb[197].mxu0 }
 0x27d   : > { %2450 = vst.msk [vmem:[#allocation3 + $0x2a0] sm:$0xff] %vm2365_vm2, %v2254_v13  ;;  %v7751_v12 = vpop.f32.mrb[86].mxu1  ;;  %v9029_v41 = vpop.f32.mrb[198].mxu0 }
 0x27e   : > { %10033 = vst [vmem:[#allocation40_spill] sm:$0xff] %v9029_v41  ;;  %2453 = vst.msk [vmem:[#allocation3 + $0x2b8] sm:$0xff] %vm2365_vm2, %v7751_v12  ;;  %v2257_v11 = vpop.f32.mrb[87].mxu1  ;;  %v9032_v58 = vpop.f32.mrb[199].mxu0 }
 0x27f   : > { %10034 = vst [vmem:[#allocation41_spill] sm:$0xff] %v9032_v58  ;;  %2451 = vst.msk [vmem:[#allocation3 + $0x2a8] sm:$0xff] %vm2365_vm2, %v2257_v11 }
 0x280   : > { %7869 = vmatmul.mubr.msk.bf16.gmra.mrb[192].mxu1 %vm1551_vm1, %v8613_v10 }
 0x281   : > { %7872 = vmatprep.mubr.msk.bf16.mxu1 %vm1551_vm1, %v8623_v23 }
 0x283   : > { %v7754_v8 = vpop.f32.mrb[88].mxu1  ;;  %v9039_v55 = vpop.f32.mrb[200].mxu0 }
 0x284   : > { %2456 = vst.msk [vmem:[#allocation3 + $0x2d0] sm:$0xff] %vm2365_vm2, %v7754_v8  ;;  %v2270_v13 = vpop.f32.mrb[89].mxu1  ;;  %v9042_v41 = vpop.f32.mrb[201].mxu0 }
 0x285   : > { %2454 = vst.msk [vmem:[#allocation3 + $0x2c0] sm:$0xff] %vm2365_vm2, %v2270_v13  ;;  %v7755_v12 = vpop.f32.mrb[90].mxu1  ;;  %v9045_v58 = vpop.f32.mrb[202].mxu0 }
 0x286   : > { %10035 = vst [vmem:[#allocation42_spill] sm:$0xff] %v9045_v58  ;;  %2457 = vst.msk [vmem:[#allocation3 + $0x2d8] sm:$0xff] %vm2365_vm2, %v7755_v12  ;;  %v2273_v11 = vpop.f32.mrb[91].mxu1  ;;  %v9048_v10 = vpop.f32.mrb[203].mxu0 }
 0x287   : > { %10036 = vst [vmem:[#allocation43_spill] sm:$0xff] %v9048_v10  ;;  %2455 = vst.msk [vmem:[#allocation3 + $0x2c8] sm:$0xff] %vm2365_vm2, %v2273_v11 }
 0x288   : > { %7873 = vmatmul.mubr.msk.bf16.gmra.mrb[196].mxu1 %vm1551_vm1, %v8631_v26 }
 0x289   : > { %7876 = vmatprep.mubr.msk.bf16.mxu1 %vm1551_vm1, %v8641_v40 }
 0x28b   : > { %v7758_v23 = vpop.f32.mrb[92].mxu1  ;;  %v9055_v8 = vpop.f32.mrb[204].mxu0 }
 0x28c   : > { %2460 = vst.msk [vmem:[#allocation3 + $0x2f0] sm:$0xff] %vm2365_vm2, %v7758_v23  ;;  %v2286_v13 = vpop.f32.mrb[93].mxu1  ;;  %v9058_v58 = vpop.f32.mrb[205].mxu0 }
 0x28d   : > { %2458 = vst.msk [vmem:[#allocation3 + $0x2e0] sm:$0xff] %vm2365_vm2, %v2286_v13  ;;  %v7759_v12 = vpop.f32.mrb[94].mxu1  ;;  %v9061_v10 = vpop.f32.mrb[206].mxu0 }
 0x28e   : > { %10037 = vst [vmem:[#allocation44_spill] sm:$0xff] %v9061_v10  ;;  %2461 = vst.msk [vmem:[#allocation3 + $0x2f8] sm:$0xff] %vm2365_vm2, %v7759_v12  ;;  %v2289_v11 = vpop.f32.mrb[95].mxu1  ;;  %v9064_v26 = vpop.f32.mrb[207].mxu0 }
 0x28f   : > { %10038 = vst [vmem:[#allocation45_spill] sm:$0xff] %v9064_v26  ;;  %2459 = vst.msk [vmem:[#allocation3 + $0x2e8] sm:$0xff] %vm2365_vm2, %v2289_v11 }
 0x290   : > { %7877 = vmatmul.mubr.msk.bf16.gmra.mrb[200].mxu1 %vm1551_vm1, %v8649_v45 }
 0x291   : > { %7880 = vmatprep.mubr.msk.bf16.mxu1 %vm1551_vm1, %v8659_v60 }
 0x293   : > { %v7762_v40 = vpop.f32.mrb[96].mxu1  ;;  %v9071_v23 = vpop.f32.mrb[208].mxu0 }
 0x294   : > { %2464 = vst.msk [vmem:[#allocation3 + $0x310] sm:$0xff] %vm2365_vm2, %v7762_v40  ;;  %v2302_v13 = vpop.f32.mrb[97].mxu1  ;;  %v9074_v10 = vpop.f32.mrb[209].mxu0 }
 0x295   : > { %2462 = vst.msk [vmem:[#allocation3 + $0x300] sm:$0xff] %vm2365_vm2, %v2302_v13  ;;  %v7763_v12 = vpop.f32.mrb[98].mxu1  ;;  %v9077_v26 = vpop.f32.mrb[210].mxu0 }
 0x296   : > { %10039 = vst [vmem:[#allocation46_spill] sm:$0xff] %v9077_v26  ;;  %2465 = vst.msk [vmem:[#allocation3 + $0x318] sm:$0xff] %vm2365_vm2, %v7763_v12  ;;  %v2305_v11 = vpop.f32.mrb[99].mxu1  ;;  %v9080_v45 = vpop.f32.mrb[211].mxu0 }
 0x297   : > { %10040 = vst [vmem:[#allocation47_spill] sm:$0xff] %v9080_v45  ;;  %2463 = vst.msk [vmem:[#allocation3 + $0x308] sm:$0xff] %vm2365_vm2, %v2305_v11 }
 0x298   : > { %7881 = vmatmul.mubr.msk.bf16.gmra.mrb[204].mxu1 %vm1551_vm1, %v8667_v62 }
 0x299   : > { %7884 = vmatprep.mubr.msk.bf16.mxu1 %vm1551_vm1, %v8677_v14 }
 0x29b   : > { %v7766_v60 = vpop.f32.mrb[100].mxu1  ;;  %v9087_v40 = vpop.f32.mrb[212].mxu0 }
 0x29c   : > { %10041 = vst [vmem:[#allocation48_spill] sm:$0xff] %v9087_v40  ;;  %2468 = vst.msk [vmem:[#allocation3 + $0x330] sm:$0xff] %vm2365_vm2, %v7766_v60  ;;  %v2318_v13 = vpop.f32.mrb[101].mxu1  ;;  %v9090_v26 = vpop.f32.mrb[213].mxu0 }
 0x29d   : > { %10042 = vst [vmem:[#allocation49_spill] sm:$0xff] %v9090_v26  ;;  %2466 = vst.msk [vmem:[#allocation3 + $0x320] sm:$0xff] %vm2365_vm2, %v2318_v13  ;;  %v7767_v12 = vpop.f32.mrb[102].mxu1  ;;  %v9093_v45 = vpop.f32.mrb[214].mxu0  ;;  %v3233_v26 = vld [vmem:[#allocation3 + $0x8] sm:$0xff] }
 0x29e   : > { %10043 = vst [vmem:[#allocation50_spill] sm:$0xff] %v9093_v45  ;;  %2469 = vst.msk [vmem:[#allocation3 + $0x338] sm:$0xff] %vm2365_vm2, %v7767_v12  ;;  %v2321_v11 = vpop.f32.mrb[103].mxu1  ;;  %v9096_v62 = vpop.f32.mrb[215].mxu0 }
 0x29f   : > { %10044 = vst [vmem:[#allocation51_spill] sm:$0xff] %v9096_v62  ;;  %2467 = vst.msk [vmem:[#allocation3 + $0x328] sm:$0xff] %vm2365_vm2, %v2321_v11 }
 0x2a0   : > { %7885 = vmatmul.mubr.msk.bf16.gmra.mrb[208].mxu1 %vm1551_vm1, %v8685_v17 }
 0x2a1   : > { %7888 = vmatprep.mubr.msk.bf16.mxu1 %vm1551_vm1, %v8694_v30 }
 0x2a3   : > { %v7770_v14 = vpop.f32.mrb[104].mxu1  ;;  %v9103_v60 = vpop.f32.mrb[216].mxu0 }
 0x2a4   : > { %10045 = vst [vmem:[#allocation52_spill] sm:$0xff] %v9103_v60  ;;  %2472 = vst.msk [vmem:[#allocation3 + $0x350] sm:$0xff] %vm2365_vm2, %v7770_v14  ;;  %v2334_v13 = vpop.f32.mrb[105].mxu1  ;;  %v9106_v45 = vpop.f32.mrb[217].mxu0  ;;  %v3235_v60 = vld [vmem:[#allocation3 + $0x18] sm:$0xff] }
 0x2a5   : > { %10046 = vst [vmem:[#allocation53_spill] sm:$0xff] %v9106_v45  ;;  %2470 = vst.msk [vmem:[#allocation3 + $0x340] sm:$0xff] %vm2365_vm2, %v2334_v13  ;;  %v7771_v12 = vpop.f32.mrb[106].mxu1  ;;  %v9109_v62 = vpop.f32.mrb[218].mxu0 }
 0x2a6   : > { %10047 = vst [vmem:[#allocation54_spill] sm:$0xff] %v9109_v62  ;;  %2473 = vst.msk [vmem:[#allocation3 + $0x358] sm:$0xff] %vm2365_vm2, %v7771_v12  ;;  %v2337_v11 = vpop.f32.mrb[107].mxu1  ;;  %v9112_v17 = vpop.f32.mrb[219].mxu0 }
 0x2a7   : > { %10048 = vst [vmem:[#allocation55_spill] sm:$0xff] %v9112_v17  ;;  %2471 = vst.msk [vmem:[#allocation3 + $0x348] sm:$0xff] %vm2365_vm2, %v2337_v11 }
 0x2a8   : > { %7889 = vmatmul.mubr.msk.bf16.gmra.mrb[212].mxu1 %vm1551_vm1, %v8702_v33 }
 0x2a9   : > { %7892 = vmatprep.mubr.msk.bf16.mxu1 %vm1551_vm1, %v8714_v56 }
 0x2ab   : > { %v7774_v30 = vpop.f32.mrb[108].mxu1  ;;  %v9119_v14 = vpop.f32.mrb[220].mxu0 }
 0x2ac   : > { %10049 = vst [vmem:[#allocation56_spill] sm:$0xff] %v9119_v14  ;;  %2476 = vst.msk [vmem:[#allocation3 + $0x370] sm:$0xff] %vm2365_vm2, %v7774_v30  ;;  %v2350_v13 = vpop.f32.mrb[109].mxu1  ;;  %v9122_v62 = vpop.f32.mrb[221].mxu0  ;;  %v3234_v30 = vld [vmem:[#allocation3 + $0x10] sm:$0xff]  ;;  %v3232_v14 = vld [vmem:[#allocation3] sm:$0xff] }
 0x2ad   : > { %10050 = vst [vmem:[#allocation57_spill] sm:$0xff] %v9122_v62  ;;  %2474 = vst.msk [vmem:[#allocation3 + $0x360] sm:$0xff] %vm2365_vm2, %v2350_v13  ;;  %v7775_v12 = vpop.f32.mrb[110].mxu1  ;;  %v9125_v17 = vpop.f32.mrb[222].mxu0 }
 0x2ae   : > { %10051 = vst [vmem:[#allocation58_spill] sm:$0xff] %v9125_v17  ;;  %2477 = vst.msk [vmem:[#allocation3 + $0x378] sm:$0xff] %vm2365_vm2, %v7775_v12  ;;  %v2353_v11 = vpop.f32.mrb[111].mxu1  ;;  %v9128_v33 = vpop.f32.mrb[223].mxu0 }
 0x2af   : > { %10052 = vst [vmem:[#allocation59_spill] sm:$0xff] %v9128_v33  ;;  %2475 = vst.msk [vmem:[#allocation3 + $0x368] sm:$0xff] %vm2365_vm2, %v2353_v11 }
 0x2b0   : > { %7893 = vmatmul.mubr.msk.bf16.gmra.mrb[216].mxu1 %vm1551_vm1, %v8723_v61 }
 0x2b1   : > { %7896 = vmatprep.mubr.msk.bf16.mxu1 %vm1551_vm1, %v8880_v19  ;;  %v3238_v19 = vld [vmem:[#allocation3 + $0x30] sm:$0xff] }
 0x2b3   : > { %v7790_v56 = vpop.f32.mrb[112].mxu1 }
 0x2b4   : > { %v3346_v62 = vadd.f32 %v7790_v56, %v3234_v30  ;;  %v2785_v13 = vpop.f32.mrb[113].mxu1  ;;  %v3236_v30 = vld [vmem:[#allocation3 + $0x20] sm:$0xff] }
 0x2b5   : > { %v3344_v45 = vadd.f32 %v3232_v14, %v2785_v13  ;;  %v7791_v17 = vpop.f32.mrb[114].mxu1 }
 0x2b6   : > { %3458 = vst.msk [vmem:[#allocation3 + $0x10] sm:$0xff] %vm2365_vm2, %v3346_v62  ;;  %v3347_v12 = vadd.f32 %v7791_v17, %v3235_v60  ;;  %v2788_v33 = vpop.f32.mrb[115].mxu1  ;;  %v3239_v17 = vld [vmem:[#allocation3 + $0x38] sm:$0xff] }
 0x2b7   : > { %3456 = vst.msk [vmem:[#allocation3] sm:$0xff] %vm2365_vm2, %v3344_v45  ;;  %v3345_v11 = vadd.f32 %v3233_v26, %v2788_v33 }
 0x2b8   : > { %3459 = vst.msk [vmem:[#allocation3 + $0x18] sm:$0xff] %vm2365_vm2, %v3347_v12  ;;  %7897 = vmatmul.mubr.msk.bf16.gmra.mrb[220].mxu1 %vm1551_vm1, %v8885_v39  ;;  %v3237_v12 = vld [vmem:[#allocation3 + $0x28] sm:$0xff] }
 0x2b9   : > { %3457 = vst.msk [vmem:[#allocation3 + $0x8] sm:$0xff] %vm2365_vm2, %v3345_v11 }
 0x2bb   : > { %v7794_v61 = vpop.f32.mrb[116].mxu1 }
 0x2bc   : > { %v3350_v14 = vadd.f32 %v7794_v61, %v3238_v19  ;;  %v2801_v56 = vpop.f32.mrb[117].mxu1 }
 0x2bd   : > { %v4324_v13 = vld [vmem:[#allocation3 + $0x10] sm:$0xff]  ;;  %v3348_v62 = vadd.f32 %v3236_v30, %v2801_v56  ;;  %v7795_v60 = vpop.f32.mrb[118].mxu1 }
 0x2be   : > { %v4436_v40 = vadd.f32 %v8742_v21, %v4324_v13  ;;  %v4322_v45 = vld [vmem:[#allocation3] sm:$0xff]  ;;  %3462 = vst.msk [vmem:[#allocation3 + $0x30] sm:$0xff] %vm2365_vm2, %v3350_v14  ;;  %v3351_v26 = vadd.f32 %v7795_v60, %v3239_v17  ;;  %v2804_v33 = vpop.f32.mrb[119].mxu1  ;;  %v3242_v14 = vld [vmem:[#allocation3 + $0x50] sm:$0xff]  ;;  %v3243_v17 = vld [vmem:[#allocation3 + $0x58] sm:$0xff] }
 0x2bf   : > { %v4434_v39 = vadd.f32 %v4322_v45, %v8745_v24  ;;  %v4325_v11 = vld [vmem:[#allocation3 + $0x18] sm:$0xff]  ;;  %3460 = vst.msk [vmem:[#allocation3 + $0x20] sm:$0xff] %vm2365_vm2, %v3348_v62  ;;  %v3349_v61 = vadd.f32 %v3237_v12, %v2804_v33  ;;  %v3241_v12 = vld [vmem:[#allocation3 + $0x48] sm:$0xff] }
 0x2c0   : > { %4548 = vst.msk [vmem:[#allocation3 + $0x10] sm:$0xff] %vm2365_vm2, %v4436_v40  ;;  %v4437_v19 = vadd.f32 %v8748_v27, %v4325_v11  ;;  %v4323_v56 = vld [vmem:[#allocation3 + $0x8] sm:$0xff]  ;;  %3463 = vst.msk [vmem:[#allocation3 + $0x38] sm:$0xff] %vm2365_vm2, %v3351_v26  ;;  %v3240_v40 = vld [vmem:[#allocation3 + $0x40] sm:$0xff] }
 0x2c1   : > { %4546 = vst.msk [vmem:[#allocation3] sm:$0xff] %vm2365_vm2, %v4434_v39  ;;  %v4435_v21 = vadd.f32 %v4323_v56, %v8751_v29  ;;  %3461 = vst.msk [vmem:[#allocation3 + $0x28] sm:$0xff] %vm2365_vm2, %v3349_v61 }
 0x2c2   : > { %4549 = vst.msk [vmem:[#allocation3 + $0x18] sm:$0xff] %vm2365_vm2, %v4437_v19 }
 0x2c3   : > { %4547 = vst.msk [vmem:[#allocation3 + $0x8] sm:$0xff] %vm2365_vm2, %v4435_v21  ;;  %v7798_v24 = vpop.f32.mrb[120].mxu1  ;;  %v3246_v21 = vld [vmem:[#allocation3 + $0x70] sm:$0xff] }
 0x2c4   : > { %v3354_v30 = vadd.f32 %v7798_v24, %v3242_v14  ;;  %v2817_v13 = vpop.f32.mrb[121].mxu1 }
 0x2c5   : > { %v4328_v62 = vld [vmem:[#allocation3 + $0x30] sm:$0xff]  ;;  %v3352_v27 = vadd.f32 %v3240_v40, %v2817_v13  ;;  %v7799_v60 = vpop.f32.mrb[122].mxu1 }
 0x2c6   : > { %v4440_v45 = vadd.f32 %v8756_v35, %v4328_v62  ;;  %v4326_v26 = vld [vmem:[#allocation3 + $0x20] sm:$0xff]  ;;  %3466 = vst.msk [vmem:[#allocation3 + $0x50] sm:$0xff] %vm2365_vm2, %v3354_v30  ;;  %v3355_v29 = vadd.f32 %v7799_v60, %v3243_v17  ;;  %v2820_v33 = vpop.f32.mrb[123].mxu1  ;;  %v3247_v62 = vld [vmem:[#allocation3 + $0x78] sm:$0xff] }
 0x2c7   : > { %v4438_v39 = vadd.f32 %v4326_v26, %v8759_v37  ;;  %v4329_v11 = vld [vmem:[#allocation3 + $0x38] sm:$0xff]  ;;  %3464 = vst.msk [vmem:[#allocation3 + $0x40] sm:$0xff] %vm2365_vm2, %v3352_v27  ;;  %v3353_v61 = vadd.f32 %v3241_v12, %v2820_v33  ;;  %v3244_v30 = vld [vmem:[#allocation3 + $0x60] sm:$0xff] }
 0x2c8   : > { %4552 = vst.msk [vmem:[#allocation3 + $0x30] sm:$0xff] %vm2365_vm2, %v4440_v45  ;;  %v4441_v19 = vadd.f32 %v8762_v42, %v4329_v11  ;;  %v4327_v56 = vld [vmem:[#allocation3 + $0x28] sm:$0xff]  ;;  %3467 = vst.msk [vmem:[#allocation3 + $0x58] sm:$0xff] %vm2365_vm2, %v3355_v29 }
 0x2c9   : > { %4550 = vst.msk [vmem:[#allocation3 + $0x20] sm:$0xff] %vm2365_vm2, %v4438_v39  ;;  %v4439_v35 = vadd.f32 %v4327_v56, %v8765_v46  ;;  %3465 = vst.msk [vmem:[#allocation3 + $0x48] sm:$0xff] %vm2365_vm2, %v3353_v61  ;;  %v3245_v45 = vld [vmem:[#allocation3 + $0x68] sm:$0xff]  ;;  %v4660_v12 = vld [vmem:[#allocation3 + $0x10] ss:$2 sm:$0xff] }
 0x2ca   : > { %4553 = vst.msk [vmem:[#allocation3 + $0x38] sm:$0xff] %vm2365_vm2, %v4441_v19  ;;  %v4772_v39 = vld [vmem:[#allocation3 + $0x11] ss:$2 sm:$0xff]  ;;  %v4770_v19 = vld [vmem:[#allocation3 + $0x1] ss:$2 sm:$0xff] }
 0x2cb   : > { %4551 = vst.msk [vmem:[#allocation3 + $0x28] sm:$0xff] %vm2365_vm2, %v4439_v35  ;;  %v7802_v37 = vpop.f32.mrb[124].mxu1 }
 0x2cc   : > { %v3358_v24 = vadd.f32 %v7802_v37, %v3246_v21  ;;  %v2833_v14 = vpop.f32.mrb[125].mxu1 }
 0x2cd   : > { %v4332_v13 = vld [vmem:[#allocation3 + $0x50] sm:$0xff]  ;;  %v3356_v42 = vadd.f32 %v3244_v30, %v2833_v14  ;;  %v7803_v40 = vpop.f32.mrb[126].mxu1 }
 0x2ce   : > { %v4444_v27 = vadd.f32 %v8770_v50, %v4332_v13  ;;  %v4330_v60 = vld [vmem:[#allocation3 + $0x40] sm:$0xff]  ;;  %3470 = vst.msk [vmem:[#allocation3 + $0x70] sm:$0xff] %vm2365_vm2, %v3358_v24  ;;  %v3359_v46 = vadd.f32 %v7803_v40, %v3247_v62  ;;  %v2836_v17 = vpop.f32.mrb[127].mxu1  ;;  %v4882_v24 = vmax.f32 %v4660_v12, %v4772_v39  ;;  %v3250_v30 = vld [vmem:[#allocation3 + $0x90] sm:$0xff] }
 0x2cf   : > { %v4442_v26 = vadd.f32 %v4330_v60, %v8773_v52  ;;  %v4333_v29 = vld [vmem:[#allocation3 + $0x58] sm:$0xff]  ;;  %3468 = vst.msk [vmem:[#allocation3 + $0x60] sm:$0xff] %vm2365_vm2, %v3356_v42  ;;  %v3357_v33 = vadd.f32 %v3245_v45, %v2836_v17  ;;  %v4658_v50 = vld [vmem:[#allocation3] ss:$2 sm:$0xff] }
 0x2d0   : > { %4556 = vst.msk [vmem:[#allocation3 + $0x50] sm:$0xff] %vm2365_vm2, %v4444_v27  ;;  %v4445_v11 = vadd.f32 %v8776_v54, %v4333_v29  ;;  %v4331_v61 = vld [vmem:[#allocation3 + $0x48] sm:$0xff]  ;;  %3471 = vst.msk [vmem:[#allocation3 + $0x78] sm:$0xff] %vm2365_vm2, %v3359_v46  ;;  %v4881_v13 = vmax.f32 %v4658_v50, %v4770_v19  ;;  %v3248_v27 = vld [vmem:[#allocation3 + $0x80] sm:$0xff] }
 0x2d1   : > { %4554 = vst.msk [vmem:[#allocation3 + $0x40] sm:$0xff] %vm2365_vm2, %v4442_v26  ;;  %v4443_v56 = vadd.f32 %v4331_v61, %v8779_v59  ;;  %3469 = vst.msk [vmem:[#allocation3 + $0x68] sm:$0xff] %vm2365_vm2, %v3357_v33  ;;  %v4664_v52 = vld [vmem:[#allocation3 + $0x30] ss:$2 sm:$0xff]  ;;  %v4776_v35 = vld [vmem:[#allocation3 + $0x31] ss:$2 sm:$0xff] }
 0x2d2   : > { %4557 = vst.msk [vmem:[#allocation3 + $0x58] sm:$0xff] %vm2365_vm2, %v4445_v11  ;;  %v4662_v37 = vld [vmem:[#allocation3 + $0x20] ss:$2 sm:$0xff]  ;;  %v4774_v21 = vld [vmem:[#allocation3 + $0x21] ss:$2 sm:$0xff]  ;;  %v4884_v14 = vmax.f32 %v4664_v52, %v4776_v35  ;;  %v3251_v45 = vld [vmem:[#allocation3 + $0x98] sm:$0xff] }
 0x2d3   : > { %4555 = vst.msk [vmem:[#allocation3 + $0x48] sm:$0xff] %vm2365_vm2, %v4443_v56  ;;  %v7806_v54 = vpop.f32.mrb[128].mxu1  ;;  %v4883_v42 = vmax.f32 %v4662_v37, %v4774_v21  ;;  %v3249_v11 = vld [vmem:[#allocation3 + $0x88] sm:$0xff] }
 0x2d4   : > { %v3362_v40 = vadd.f32 %v7806_v54, %v3250_v30  ;;  %v2849_v62 = vpop.f32.mrb[129].mxu1  ;;  %v4938_v59 = vmax.f32 %v4882_v24, %v4884_v14  ;;  %v3252_v54 = vld [vmem:[#allocation3 + $0xa0] sm:$0xff] }
 0x2d5   : > { %v4336_v60 = vld [vmem:[#allocation3 + $0x70] sm:$0xff]  ;;  %v3360_v46 = vadd.f32 %v3248_v27, %v2849_v62  ;;  %v7807_v17 = vpop.f32.mrb[130].mxu1  ;;  %v9177_v26 = vmax.f32 %v4881_v13, %v4883_v42 }
 0x2d6   : > { %v4448_v29 = vadd.f32 %v8784_v1, %v4336_v60  ;;  %v4334_v33 = vld [vmem:[#allocation3 + $0x60] sm:$0xff]  ;;  %3474 = vst.msk [vmem:[#allocation3 + $0x90] sm:$0xff] %vm2365_vm2, %v3362_v40  ;;  %v3363_v12 = vadd.f32 %v7807_v17, %v3251_v45  ;;  %v2852_v39 = vpop.f32.mrb[131].mxu1  ;;  %v4995_v61 = vrot.slane %v4938_v59, 7  ;;  %v3253_v60 = vld [vmem:[#allocation3 + $0xa8] sm:$0xff] }
 0x2d7   : > { %v4446_v50 = vadd.f32 %v4334_v33, %v8787_v3  ;;  %v4337_v19 = vld [vmem:[#allocation3 + $0x78] sm:$0xff]  ;;  %3472 = vst.msk [vmem:[#allocation3 + $0x80] sm:$0xff] %vm2365_vm2, %v3360_v46  ;;  %v3361_v56 = vadd.f32 %v3249_v11, %v2852_v39  ;;  %v4994_v52 = vrot.slane %v9177_v26, 7 }
 0x2d8   : > { %4560 = vst.msk [vmem:[#allocation3 + $0x70] sm:$0xff] %vm2365_vm2, %v4448_v29  ;;  %v4449_v1 = vadd.f32 %v8790_v6, %v4337_v19  ;;  %v4335_v35 = vld [vmem:[#allocation3 + $0x68] sm:$0xff]  ;;  %3475 = vst.msk [vmem:[#allocation3 + $0x98] sm:$0xff] %vm2365_vm2, %v3363_v12  ;;  %v3254_v6 = vld [vmem:[#allocation3 + $0xb0] sm:$0xff] }
 0x2d9   : > { %4558 = vst.msk [vmem:[#allocation3 + $0x60] sm:$0xff] %vm2365_vm2, %v4446_v50  ;;  %v4447_v37 = vadd.f32 %v4335_v35, %v8793_v9  ;;  %3473 = vst.msk [vmem:[#allocation3 + $0x88] sm:$0xff] %vm2365_vm2, %v3361_v56  ;;  %v4996_v3 = vsel %vm4993_vm3, %v4994_v52, %v4995_v61  ;;  %v3255_v9 = vld [vmem:[#allocation3 + $0xb8] sm:$0xff]  ;;  %v3258_v35 = vld [vmem:[#allocation3 + $0xd0] sm:$0xff] }
 0x2da   : > { %4561 = vst.msk [vmem:[#allocation3 + $0x78] sm:$0xff] %vm2365_vm2, %v4449_v1  ;;  %5036 = vrot.lane.b32.xlu0 %v4996_v3, %s8126_s24  ;;  %v4668_v29 = vld [vmem:[#allocation3 + $0x50] ss:$2 sm:$0xff]  ;;  %v4780_v33 = vld [vmem:[#allocation3 + $0x51] ss:$2 sm:$0xff] }
 0x2db   : > { %4559 = vst.msk [vmem:[#allocation3 + $0x68] sm:$0xff] %vm2365_vm2, %v4447_v37  ;;  %v7810_v21 = vpop.f32.mrb[132].mxu1  ;;  %v4778_v11 = vld [vmem:[#allocation3 + $0x41] ss:$2 sm:$0xff]  ;;  %v4886_v52 = vmax.f32 %v4668_v29, %v4780_v33 }
 0x2dc   : > { %v3366_v24 = vadd.f32 %v7810_v21, %v3254_v6  ;;  %v2865_v14 = vpop.f32.mrb[133].mxu1 }
 0x2dd   : > { %v4340_v30 = vld [vmem:[#allocation3 + $0x90] sm:$0xff]  ;;  %v3364_v13 = vadd.f32 %v3252_v54, %v2865_v14  ;;  %v7811_v42 = vpop.f32.mrb[134].mxu1 }
 0x2de   : > { %v4452_v40 = vadd.f32 %v8798_v15, %v4340_v30  ;;  %v4338_v62 = vld [vmem:[#allocation3 + $0x80] sm:$0xff]  ;;  %3478 = vst.msk [vmem:[#allocation3 + $0xb0] sm:$0xff] %vm2365_vm2, %v3366_v24  ;;  %v3367_v27 = vadd.f32 %v7811_v42, %v3255_v9  ;;  %v2868_v59 = vpop.f32.mrb[135].mxu1 }
 0x2df   : > { %v4450_v46 = vadd.f32 %v4338_v62, %v8801_v18  ;;  %v4341_v17 = vld [vmem:[#allocation3 + $0x98] sm:$0xff]  ;;  %3476 = vst.msk [vmem:[#allocation3 + $0xa0] sm:$0xff] %vm2365_vm2, %v3364_v13  ;;  %v3365_v45 = vadd.f32 %v3253_v60, %v2868_v59  ;;  %v4666_v15 = vld [vmem:[#allocation3 + $0x40] ss:$2 sm:$0xff] }
 0x2e0   : > { %4564 = vst.msk [vmem:[#allocation3 + $0x90] sm:$0xff] %vm2365_vm2, %v4452_v40  ;;  %v4453_v12 = vadd.f32 %v8804_v4, %v4341_v17  ;;  %v4339_v39 = vld [vmem:[#allocation3 + $0x88] sm:$0xff]  ;;  %3479 = vst.msk [vmem:[#allocation3 + $0xb8] sm:$0xff] %vm2365_vm2, %v3367_v27  ;;  %v4885_v37 = vmax.f32 %v4666_v15, %v4778_v11  ;;  %v3256_v24 = vld [vmem:[#allocation3 + $0xc0] sm:$0xff] }
 0x2e1   : > { %4562 = vst.msk [vmem:[#allocation3 + $0x80] sm:$0xff] %vm2365_vm2, %v4450_v46  ;;  %v4451_v61 = vadd.f32 %v4339_v39, %v8807_v22  ;;  %3477 = vst.msk [vmem:[#allocation3 + $0xa8] sm:$0xff] %vm2365_vm2, %v3365_v45  ;;  %v4672_v18 = vld [vmem:[#allocation3 + $0x70] ss:$2 sm:$0xff]  ;;  %v4784_v50 = vld [vmem:[#allocation3 + $0x71] ss:$2 sm:$0xff] }
 0x2e2   : > { %4565 = vst.msk [vmem:[#allocation3 + $0x98] sm:$0xff] %vm2365_vm2, %v4453_v12  ;;  %v4670_v19 = vld [vmem:[#allocation3 + $0x60] ss:$2 sm:$0xff]  ;;  %v4782_v56 = vld [vmem:[#allocation3 + $0x61] ss:$2 sm:$0xff]  ;;  %v4888_v1 = vmax.f32 %v4672_v18, %v4784_v50  ;;  %v3259_v13 = vld [vmem:[#allocation3 + $0xd8] sm:$0xff] }
 0x2e3   : > { %4563 = vst.msk [vmem:[#allocation3 + $0x88] sm:$0xff] %vm2365_vm2, %v4451_v61  ;;  %v7814_v4 = vpop.f32.mrb[136].mxu1  ;;  %v4887_v3 = vmax.f32 %v4670_v19, %v4782_v56  ;;  %v3257_v59 = vld [vmem:[#allocation3 + $0xc8] sm:$0xff]  ;;  %v3262_v15 = vld [vmem:[#allocation3 + $0xf0] sm:$0xff]  ;;  %v3260_v61 = vld [vmem:[#allocation3 + $0xe0] sm:$0xff] }
 0x2e4   : > { %v3370_v21 = vadd.f32 %v7814_v4, %v3258_v35  ;;  %v2881_v6 = vpop.f32.mrb[137].mxu1  ;;  %v4940_v22 = vmax.f32 %v4886_v52, %v4888_v1  ;;  %v3263_v56 = vld [vmem:[#allocation3 + $0xf8] sm:$0xff]  ;;  %v3261_v35 = vld [vmem:[#allocation3 + $0xe8] sm:$0xff] }
 0x2e5   : > { %v4344_v14 = vld [vmem:[#allocation3 + $0xb0] sm:$0xff]  ;;  %v3368_v54 = vadd.f32 %v3256_v24, %v2881_v6  ;;  %v7815_v30 = vpop.f32.mrb[138].mxu1  ;;  %v9206_v42 = vmax.f32 %v4885_v37, %v4887_v3 }
 0x2e6   : > { %v4456_v9 = vadd.f32 %v8812_v32, %v4344_v14  ;;  %v4342_v40 = vld [vmem:[#allocation3 + $0xa0] sm:$0xff]  ;;  %3482 = vst.msk [vmem:[#allocation3 + $0xd0] sm:$0xff] %vm2365_vm2, %v3370_v21  ;;  %v3371_v62 = vadd.f32 %v7815_v30, %v3259_v13  ;;  %v2884_v27 = vpop.f32.mrb[139].mxu1  ;;  %v4998_v60 = vrot.slane %v4940_v22, 7 }
 0x2e7   : > { %v4454_v46 = vadd.f32 %v4342_v40, %v8815_v36  ;;  %v4345_v17 = vld [vmem:[#allocation3 + $0xb8] sm:$0xff]  ;;  %3480 = vst.msk [vmem:[#allocation3 + $0xc0] sm:$0xff] %vm2365_vm2, %v3368_v54  ;;  %v3369_v45 = vadd.f32 %v3257_v59, %v2884_v27  ;;  %v4997_v29 = vrot.slane %v9206_v42, 7  ;;  %v3266_v59 = vld [vmem:[#allocation3 + $0x110] sm:$0xff] }
 0x2e8   : > { %4568 = vst.msk [vmem:[#allocation3 + $0xb0] sm:$0xff] %vm2365_vm2, %v4456_v9  ;;  %v4457_v33 = vadd.f32 %v8818_v44, %v4345_v17  ;;  %v4343_v32 = vld [vmem:[#allocation3 + $0xa8] sm:$0xff]  ;;  %3483 = vst.msk [vmem:[#allocation3 + $0xd8] sm:$0xff] %vm2365_vm2, %v3371_v62 }
 0x2e9   : > { %4566 = vst.msk [vmem:[#allocation3 + $0xa0] sm:$0xff] %vm2365_vm2, %v4454_v46  ;;  %v4455_v12 = vadd.f32 %v4343_v32, %v8821_v48  ;;  %3481 = vst.msk [vmem:[#allocation3 + $0xc8] sm:$0xff] %vm2365_vm2, %v3369_v45  ;;  %v4999_v36 = vsel %vm4993_vm3, %v4997_v29, %v4998_v60  ;;  %v4676_v6 = vld [vmem:[#allocation3 + $0x90] ss:$2 sm:$0xff]  ;;  %v4788_v24 = vld [vmem:[#allocation3 + $0x91] ss:$2 sm:$0xff] }
 0x2ea   : > { %4569 = vst.msk [vmem:[#allocation3 + $0xb8] sm:$0xff] %vm2365_vm2, %v4457_v33  ;;  %5038 = vrot.lane.b32.xlu0 %v4999_v36, %s8126_s24  ;;  %v4786_v54 = vld [vmem:[#allocation3 + $0x81] ss:$2 sm:$0xff]  ;;  %v4890_v62 = vmax.f32 %v4676_v6, %v4788_v24  ;;  %v3267_v36 = vld [vmem:[#allocation3 + $0x118] sm:$0xff] }
 0x2eb   : > { %4567 = vst.msk [vmem:[#allocation3 + $0xa8] sm:$0xff] %vm2365_vm2, %v4455_v12  ;;  %v7818_v39 = vpop.f32.mrb[140].mxu1  ;;  %v3264_v29 = vld [vmem:[#allocation3 + $0x100] sm:$0xff] }
 0x2ec   : > { %v3374_v44 = vadd.f32 %v7818_v39, %v3262_v15  ;;  %v2897_v11 = vpop.f32.mrb[141].mxu1 }
 0x2ed   : > { %v4348_v18 = vld [vmem:[#allocation3 + $0xd0] sm:$0xff]  ;;  %v3372_v50 = vadd.f32 %v3260_v61, %v2897_v11  ;;  %v7819_v19 = vpop.f32.mrb[142].mxu1 }
 0x2ee   : > { %v4460_v48 = vadd.f32 %v8826_v57, %v4348_v18  ;;  %v4346_v52 = vld [vmem:[#allocation3 + $0xc0] sm:$0xff]  ;;  %3486 = vst.msk [vmem:[#allocation3 + $0xf0] sm:$0xff] %vm2365_vm2, %v3374_v44  ;;  %v3375_v1 = vadd.f32 %v7819_v19, %v3263_v56  ;;  %v2900_v4 = vpop.f32.mrb[143].mxu1  ;;  %v3265_v18 = vld [vmem:[#allocation3 + $0x108] sm:$0xff] }
 0x2ef   : > { %v4458_v37 = vadd.f32 %v4346_v52, %v8829_v63  ;;  %v4349_v3 = vld [vmem:[#allocation3 + $0xd8] sm:$0xff]  ;;  %3484 = vst.msk [vmem:[#allocation3 + $0xe0] sm:$0xff] %vm2365_vm2, %v3372_v50  ;;  %v3373_v21 = vadd.f32 %v3261_v35, %v2900_v4  ;;  %v4674_v57 = vld [vmem:[#allocation3 + $0x80] ss:$2 sm:$0xff] }
 0x2f0   : > { %4572 = vst.msk [vmem:[#allocation3 + $0xd0] sm:$0xff] %vm2365_vm2, %v4460_v48  ;;  %v4461_v22 = vadd.f32 %v8832_v2, %v4349_v3  ;;  %v4347_v14 = vld [vmem:[#allocation3 + $0xc8] sm:$0xff]  ;;  %3487 = vst.msk [vmem:[#allocation3 + $0xf8] sm:$0xff] %vm2365_vm2, %v3375_v1  ;;  %v4889_v60 = vmax.f32 %v4674_v57, %v4786_v54 }
 0x2f1   : > { %4570 = vst.msk [vmem:[#allocation3 + $0xc0] sm:$0xff] %vm2365_vm2, %v4458_v37  ;;  %v4459_v30 = vadd.f32 %v4347_v14, %v8835_v7  ;;  %3485 = vst.msk [vmem:[#allocation3 + $0xe8] sm:$0xff] %vm2365_vm2, %v3373_v21  ;;  %v4680_v63 = vld [vmem:[#allocation3 + $0xb0] ss:$2 sm:$0xff]  ;;  %v4792_v13 = vld [vmem:[#allocation3 + $0xb1] ss:$2 sm:$0xff] }
 0x2f2   : > { %4573 = vst.msk [vmem:[#allocation3 + $0xd8] sm:$0xff] %vm2365_vm2, %v4461_v22  ;;  %v4678_v9 = vld [vmem:[#allocation3 + $0xa0] ss:$2 sm:$0xff]  ;;  %v4790_v40 = vld [vmem:[#allocation3 + $0xa1] ss:$2 sm:$0xff]  ;;  %v4892_v27 = vmax.f32 %v4680_v63, %v4792_v13  ;;  %v3270_v37 = vld [vmem:[#allocation3 + $0x130] sm:$0xff] }
 0x2f3   : > { %4571 = vst.msk [vmem:[#allocation3 + $0xc8] sm:$0xff] %vm2365_vm2, %v4459_v30  ;;  %v7822_v2 = vpop.f32.mrb[144].mxu1  ;;  %v4891_v46 = vmax.f32 %v4678_v9, %v4790_v40  ;;  %v3268_v21 = vld [vmem:[#allocation3 + $0x120] sm:$0xff]  ;;  %v3271_v14 = vld [vmem:[#allocation3 + $0x138] sm:$0xff]  ;;  %v3269_v63 = vld [vmem:[#allocation3 + $0x128] sm:$0xff] }
 0x2f4   : > { %v3378_v17 = vadd.f32 %v7822_v2, %v3266_v59  ;;  %v2913_v45 = vpop.f32.mrb[145].mxu1  ;;  %v4942_v7 = vmax.f32 %v4890_v62, %v4892_v27  ;;  %v10053_v2 = vld [vmem:[#allocation4_spill] sm:$0xff] }
 0x2f5   : > { %v4352_v33 = vld [vmem:[#allocation3 + $0xf0] sm:$0xff]  ;;  %v3376_v32 = vadd.f32 %v3264_v29, %v2913_v45  ;;  %v7823_v12 = vpop.f32.mrb[146].mxu1  ;;  %v9235_v39 = vmax.f32 %v4889_v60, %v4891_v46 }
 0x2f6   : > { %v4464_v15 = vadd.f32 %v8840_v16, %v4352_v33  ;;  %v4350_v44 = vld [vmem:[#allocation3 + $0xe0] sm:$0xff]  ;;  %3490 = vst.msk [vmem:[#allocation3 + $0x110] sm:$0xff] %vm2365_vm2, %v3378_v17  ;;  %v3379_v11 = vadd.f32 %v7823_v12, %v3267_v36  ;;  %v2916_v61 = vpop.f32.mrb[147].mxu1  ;;  %v5001_v50 = vrot.slane %v4942_v7, 7  ;;  %v10054_v17 = vld [vmem:[#allocation5_spill] sm:$0xff] }
 0x2f7   : > { %v4462_v19 = vadd.f32 %v4350_v44, %v8843_v20  ;;  %v4353_v56 = vld [vmem:[#allocation3 + $0xf8] sm:$0xff]  ;;  %3488 = vst.msk [vmem:[#allocation3 + $0x100] sm:$0xff] %vm2365_vm2, %v3376_v32  ;;  %v3377_v48 = vadd.f32 %v3265_v18, %v2916_v61  ;;  %v5000_v52 = vrot.slane %v9235_v39, 7 }
 0x2f8   : > { %4576 = vst.msk [vmem:[#allocation3 + $0xf0] sm:$0xff] %vm2365_vm2, %v4464_v15  ;;  %v4465_v1 = vadd.f32 %v8846_v28, %v4353_v56  ;;  %v4351_v16 = vld [vmem:[#allocation3 + $0xe8] sm:$0xff]  ;;  %3491 = vst.msk [vmem:[#allocation3 + $0x118] sm:$0xff] %vm2365_vm2, %v3379_v11  ;;  %v3274_v15 = vld [vmem:[#allocation3 + $0x150] sm:$0xff] }
 0x2f9   : > { %4574 = vst.msk [vmem:[#allocation3 + $0xe0] sm:$0xff] %vm2365_vm2, %v4462_v19  ;;  %v4463_v4 = vadd.f32 %v4351_v16, %v8849_v34  ;;  %3489 = vst.msk [vmem:[#allocation3 + $0x108] sm:$0xff] %vm2365_vm2, %v3377_v48  ;;  %v5002_v20 = vsel %vm4993_vm3, %v5000_v52, %v5001_v50  ;;  %v4684_v62 = vld [vmem:[#allocation3 + $0xd0] ss:$2 sm:$0xff]  ;;  %v4796_v27 = vld [vmem:[#allocation3 + $0xd1] ss:$2 sm:$0xff] }
 0x2fa   : > { %4577 = vst.msk [vmem:[#allocation3 + $0xf8] sm:$0xff] %vm2365_vm2, %v4465_v1  ;;  %5040 = vrot.lane.b32.xlu1 %v5002_v20, %s8126_s24  ;;  %v4794_v46 = vld [vmem:[#allocation3 + $0xc1] ss:$2 sm:$0xff]  ;;  %v4894_v32 = vmax.f32 %v4684_v62, %v4796_v27  ;;  %v3275_v1 = vld [vmem:[#allocation3 + $0x158] sm:$0xff]  ;;  %v3278_v27 = vld [vmem:[#allocation3 + $0x170] sm:$0xff] }
 0x2fb   : > { %4575 = vst.msk [vmem:[#allocation3 + $0xe8] sm:$0xff] %vm2365_vm2, %v4463_v4  ;;  %v7826_v35 = vpop.f32.mrb[148].mxu1  ;;  %v3272_v50 = vld [vmem:[#allocation3 + $0x140] sm:$0xff]  ;;  %v10055_v4 = vld [vmem:[#allocation6_spill] sm:$0xff] }
 0x2fc   : > { %v3382_v28 = vadd.f32 %v7826_v35, %v3270_v37  ;;  %v2929_v3 = vpop.f32.mrb[149].mxu1 }
 0x2fd   : > { %v4356_v6 = vld [vmem:[#allocation3 + $0x110] sm:$0xff]  ;;  %v3380_v24 = vadd.f32 %v3268_v21, %v2929_v3  ;;  %v7827_v22 = vpop.f32.mrb[150].mxu1  ;;  %v3273_v3 = vld [vmem:[#allocation3 + $0x148] sm:$0xff] }
 0x2fe   : > { %v4468_v34 = vadd.f32 %v8854_v51, %v4356_v6  ;;  %v4354_v57 = vld [vmem:[#allocation3 + $0x100] sm:$0xff]  ;;  %3494 = vst.msk [vmem:[#allocation3 + $0x130] sm:$0xff] %vm2365_vm2, %v3382_v28  ;;  %v3383_v54 = vadd.f32 %v7827_v22, %v3271_v14  ;;  %v2932_v30 = vpop.f32.mrb[151].mxu1  ;;  %v10056_v6 = vld [vmem:[#allocation7_spill] sm:$0xff] }
 0x2ff   : > { %v4466_v13 = vadd.f32 %v4354_v57, %v8857_v43  ;;  %v4357_v9 = vld [vmem:[#allocation3 + $0x118] sm:$0xff]  ;;  %3492 = vst.msk [vmem:[#allocation3 + $0x120] sm:$0xff] %vm2365_vm2, %v3380_v24  ;;  %v3381_v40 = vadd.f32 %v3269_v63, %v2932_v30  ;;  %v4682_v51 = vld [vmem:[#allocation3 + $0xc0] ss:$2 sm:$0xff] }
 0x300   : > { %4580 = vst.msk [vmem:[#allocation3 + $0x110] sm:$0xff] %vm2365_vm2, %v4468_v34  ;;  %v4469_v59 = vadd.f32 %v10053_v2, %v4357_v9  ;;  %v4355_v60 = vld [vmem:[#allocation3 + $0x108] sm:$0xff]  ;;  %3495 = vst.msk [vmem:[#allocation3 + $0x138] sm:$0xff] %vm2365_vm2, %v3383_v54  ;;  %v4893_v44 = vmax.f32 %v4682_v51, %v4794_v46  ;;  %v10057_v57 = vld [vmem:[#allocation8_spill] sm:$0xff] }
 0x301   : > { %4578 = vst.msk [vmem:[#allocation3 + $0x100] sm:$0xff] %vm2365_vm2, %v4466_v13  ;;  %v4467_v45 = vadd.f32 %v4355_v60, %v10054_v17  ;;  %3493 = vst.msk [vmem:[#allocation3 + $0x128] sm:$0xff] %vm2365_vm2, %v3381_v40  ;;  %v4688_v43 = vld [vmem:[#allocation3 + $0xf0] ss:$2 sm:$0xff]  ;;  %v4800_v29 = vld [vmem:[#allocation3 + $0xf1] ss:$2 sm:$0xff] }
 0x302   : > { %4581 = vst.msk [vmem:[#allocation3 + $0x118] sm:$0xff] %vm2365_vm2, %v4469_v59  ;;  %v4686_v7 = vld [vmem:[#allocation3 + $0xe0] ss:$2 sm:$0xff]  ;;  %v4798_v33 = vld [vmem:[#allocation3 + $0xe1] ss:$2 sm:$0xff]  ;;  %v4896_v12 = vmax.f32 %v4688_v43, %v4800_v29  ;;  %v9280_v40 = vpop.f32.mrb[224].mxu0 }
 0x303   : > { %4579 = vst.msk [vmem:[#allocation3 + $0x108] sm:$0xff] %vm2365_vm2, %v4467_v45  ;;  %v7830_v36 = vpop.f32.mrb[152].mxu1  ;;  %v4895_v11 = vmax.f32 %v4686_v7, %v4798_v33  ;;  %v10058_v63 = vld [vmem:[#allocation9_spill] sm:$0xff]  ;;  %v9283_v2 = vpop.f32.mrb[225].mxu0  ;;  %v3276_v51 = vld [vmem:[#allocation3 + $0x160] sm:$0xff]  ;;  %v3279_v29 = vld [vmem:[#allocation3 + $0x178] sm:$0xff] }
 0x304   : > { %v3386_v61 = vadd.f32 %v7830_v36, %v3274_v15  ;;  %v2945_v18 = vpop.f32.mrb[153].mxu1  ;;  %v4944_v19 = vmax.f32 %v4894_v32, %v4896_v12  ;;  %v9285_v46 = vpop.f32.mrb[226].mxu0  ;;  %v10059_v33 = vld [vmem:[#allocation10_spill] sm:$0xff] }
 0x305   : > { %v4360_v56 = vld [vmem:[#allocation3 + $0x130] sm:$0xff]  ;;  %v3384_v48 = vadd.f32 %v3272_v50, %v2945_v18  ;;  %v7831_v52 = vpop.f32.mrb[154].mxu1  ;;  %v9264_v16 = vmax.f32 %v4893_v44, %v4895_v11  ;;  %v9287_v7 = vpop.f32.mrb[227].mxu0  ;;  %v3277_v44 = vld [vmem:[#allocation3 + $0x168] sm:$0xff]  ;;  %v10060_v11 = vld [vmem:[#allocation11_spill] sm:$0xff] }
 0x306   : > { %v4472_v20 = vadd.f32 %v10055_v4, %v4360_v56  ;;  %v4358_v35 = vld [vmem:[#allocation3 + $0x120] sm:$0xff]  ;;  %3498 = vst.msk [vmem:[#allocation3 + $0x150] sm:$0xff] %vm2365_vm2, %v3386_v61  ;;  %v3387_v37 = vadd.f32 %v7831_v52, %v3275_v1  ;;  %v2948_v28 = vpop.f32.mrb[155].mxu1  ;;  %v5004_v21 = vrot.slane %v4944_v19, 7 }
 0x307   : > { %v4470_v24 = vadd.f32 %v4358_v35, %v10056_v6  ;;  %v4361_v22 = vld [vmem:[#allocation3 + $0x138] sm:$0xff]  ;;  %3496 = vst.msk [vmem:[#allocation3 + $0x140] sm:$0xff] %vm2365_vm2, %v3384_v48  ;;  %v3385_v14 = vadd.f32 %v3273_v3, %v2948_v28  ;;  %v5003_v34 = vrot.slane %v9264_v16, 7 }
 0x308   : > { %4584 = vst.msk [vmem:[#allocation3 + $0x130] sm:$0xff] %vm2365_vm2, %v4472_v20  ;;  %v4473_v54 = vadd.f32 %v10057_v57, %v4361_v22  ;;  %v4359_v30 = vld [vmem:[#allocation3 + $0x128] sm:$0xff]  ;;  %3499 = vst.msk [vmem:[#allocation3 + $0x158] sm:$0xff] %vm2365_vm2, %v3387_v37  ;;  %v10061_v20 = vld [vmem:[#allocation12_spill] sm:$0xff] }
 0x309   : > { %4582 = vst.msk [vmem:[#allocation3 + $0x120] sm:$0xff] %vm2365_vm2, %v4470_v24  ;;  %v4471_v13 = vadd.f32 %v4359_v30, %v10058_v63  ;;  %3497 = vst.msk [vmem:[#allocation3 + $0x148] sm:$0xff] %vm2365_vm2, %v3385_v14  ;;  %v5005_v9 = vsel %vm4993_vm3, %v5003_v34, %v5004_v21  ;;  %v4692_v19 = vld [vmem:[#allocation3 + $0x110] ss:$2 sm:$0xff]  ;;  %v4804_v56 = vld [vmem:[#allocation3 + $0x111] ss:$2 sm:$0xff] }
 0x30a   : > { %4585 = vst.msk [vmem:[#allocation3 + $0x138] sm:$0xff] %vm2365_vm2, %v4473_v54  ;;  %5042 = vrot.lane.b32.xlu1 %v5005_v9, %s8126_s24  ;;  %v4690_v1 = vld [vmem:[#allocation3 + $0x100] ss:$2 sm:$0xff]  ;;  %v4802_v4 = vld [vmem:[#allocation3 + $0x101] ss:$2 sm:$0xff]  ;;  %v4898_v6 = vmax.f32 %v4692_v19, %v4804_v56  ;;  %v3282_v22 = vld [vmem:[#allocation3 + $0x190] sm:$0xff] }
 0x30b   : > { %4583 = vst.msk [vmem:[#allocation3 + $0x128] sm:$0xff] %vm2365_vm2, %v4471_v13  ;;  %v7834_v62 = vpop.f32.mrb[156].mxu1  ;;  %v4897_v14 = vmax.f32 %v4690_v1, %v4802_v4  ;;  %v3280_v30 = vld [vmem:[#allocation3 + $0x180] sm:$0xff] }
 0x30c   : > { %v3390_v59 = vadd.f32 %v7834_v62, %v3278_v27  ;;  %v2961_v60 = vpop.f32.mrb[157].mxu1  ;;  %v3283_v27 = vld [vmem:[#allocation3 + $0x198] sm:$0xff] }
 0x30d   : > { %v4364_v17 = vld [vmem:[#allocation3 + $0x150] sm:$0xff]  ;;  %v3388_v45 = vadd.f32 %v3276_v51, %v2961_v60  ;;  %v7835_v43 = vpop.f32.mrb[158].mxu1  ;;  %v9303_v60 = vpop.f32.mrb[228].mxu0  ;;  %v10062_v51 = vld [vmem:[#allocation13_spill] sm:$0xff] }
 0x30e   : > { %v4476_v32 = vadd.f32 %v10059_v33, %v4364_v17  ;;  %v4362_v12 = vld [vmem:[#allocation3 + $0x140] sm:$0xff]  ;;  %3502 = vst.msk [vmem:[#allocation3 + $0x170] sm:$0xff] %vm2365_vm2, %v3390_v59  ;;  %v3391_v36 = vadd.f32 %v7835_v43, %v3279_v29  ;;  %v2964_v15 = vpop.f32.mrb[159].mxu1  ;;  %v3281_v33 = vld [vmem:[#allocation3 + $0x188] sm:$0xff] }
 0x30f   : > { %v4474_v61 = vadd.f32 %v4362_v12, %v10060_v11  ;;  %v4365_v18 = vld [vmem:[#allocation3 + $0x158] sm:$0xff]  ;;  %3500 = vst.msk [vmem:[#allocation3 + $0x160] sm:$0xff] %vm2365_vm2, %v3388_v45  ;;  %v3389_v50 = vadd.f32 %v3277_v44, %v2964_v15  ;;  %v9307_v12 = vpop.f32.mrb[229].mxu0 }
 0x310   : > { %4588 = vst.msk [vmem:[#allocation3 + $0x150] sm:$0xff] %vm2365_vm2, %v4476_v32  ;;  %v4477_v48 = vadd.f32 %v8896_v47, %v4365_v18  ;;  %v4363_v52 = vld [vmem:[#allocation3 + $0x148] sm:$0xff]  ;;  %3503 = vst.msk [vmem:[#allocation3 + $0x178] sm:$0xff] %vm2365_vm2, %v3391_v36  ;;  %v10063_v36 = vld [vmem:[#allocation14_spill] sm:$0xff]  ;;  %v9312_v18 = vpop.f32.mrb[230].mxu0 }
 0x311   : > { %4586 = vst.msk [vmem:[#allocation3 + $0x140] sm:$0xff] %vm2365_vm2, %v4474_v61  ;;  %v4475_v35 = vadd.f32 %v4363_v52, %v10061_v20  ;;  %3501 = vst.msk [vmem:[#allocation3 + $0x168] sm:$0xff] %vm2365_vm2, %v3389_v50  ;;  %v4696_v37 = vld [vmem:[#allocation3 + $0x130] ss:$2 sm:$0xff]  ;;  %v4808_v28 = vld [vmem:[#allocation3 + $0x131] ss:$2 sm:$0xff] }
 0x312   : > { %4589 = vst.msk [vmem:[#allocation3 + $0x158] sm:$0xff] %vm2365_vm2, %v4477_v48  ;;  %v4694_v3 = vld [vmem:[#allocation3 + $0x120] ss:$2 sm:$0xff]  ;;  %v4806_v21 = vld [vmem:[#allocation3 + $0x121] ss:$2 sm:$0xff]  ;;  %v4900_v24 = vmax.f32 %v4696_v37, %v4808_v28  ;;  %v10064_v50 = vld [vmem:[#allocation15_spill] sm:$0xff] }
 0x313   : > { %4587 = vst.msk [vmem:[#allocation3 + $0x148] sm:$0xff] %vm2365_vm2, %v4475_v35  ;;  %v7838_v47 = vpop.f32.mrb[160].mxu1  ;;  %v4899_v34 = vmax.f32 %v4694_v3, %v4806_v21  ;;  %v9317_v48 = vpop.f32.mrb[231].mxu0  ;;  %v10065_v52 = vld [vmem:[#allocation16_spill] sm:$0xff]  ;;  %v3286_v35 = vld [vmem:[#allocation3 + $0x1b0] sm:$0xff] }
 0x314   : > { %v3394_v57 = vadd.f32 %v7838_v47, %v3282_v22  ;;  %v2977_v54 = vpop.f32.mrb[161].mxu1  ;;  %v4946_v63 = vmax.f32 %v4898_v6, %v4900_v24  ;;  %v3284_v3 = vld [vmem:[#allocation3 + $0x1a0] sm:$0xff]  ;;  %v3287_v47 = vld [vmem:[#allocation3 + $0x1b8] sm:$0xff]  ;;  %v10066_v22 = vld [vmem:[#allocation17_spill] sm:$0xff] }
 0x315   : > { %v4368_v13 = vld [vmem:[#allocation3 + $0x170] sm:$0xff]  ;;  %v3392_v9 = vadd.f32 %v3280_v30, %v2977_v54  ;;  %v7839_v62 = vpop.f32.mrb[162].mxu1  ;;  %v9301_v59 = vmax.f32 %v4897_v14, %v4899_v34  ;;  %v3285_v30 = vld [vmem:[#allocation3 + $0x1a8] sm:$0xff] }
 0x316   : > { %v4480_v17 = vadd.f32 %v10062_v51, %v4368_v13  ;;  %v4366_v45 = vld [vmem:[#allocation3 + $0x160] sm:$0xff]  ;;  %3506 = vst.msk [vmem:[#allocation3 + $0x190] sm:$0xff] %vm2365_vm2, %v3394_v57  ;;  %v3395_v43 = vadd.f32 %v7839_v62, %v3283_v27  ;;  %v2980_v29 = vpop.f32.mrb[163].mxu1  ;;  %v5007_v32 = vrot.slane %v4946_v63, 7  ;;  %v10067_v63 = vld [vmem:[#allocation18_spill] sm:$0xff] }
 0x317   : > { %v4478_v15 = vadd.f32 %v4366_v45, %v10063_v36  ;;  %v4369_v44 = vld [vmem:[#allocation3 + $0x178] sm:$0xff]  ;;  %3504 = vst.msk [vmem:[#allocation3 + $0x180] sm:$0xff] %vm2365_vm2, %v3392_v9  ;;  %v3393_v11 = vadd.f32 %v3281_v33, %v2980_v29  ;;  %v5006_v61 = vrot.slane %v9301_v59, 7 }
 0x318   : > { %4592 = vst.msk [vmem:[#allocation3 + $0x170] sm:$0xff] %vm2365_vm2, %v4480_v17  ;;  %v4481_v19 = vadd.f32 %v10064_v50, %v4369_v44  ;;  %v4367_v56 = vld [vmem:[#allocation3 + $0x168] sm:$0xff]  ;;  %3507 = vst.msk [vmem:[#allocation3 + $0x198] sm:$0xff] %vm2365_vm2, %v3395_v43  ;;  %v10068_v17 = vld [vmem:[#allocation19_spill] sm:$0xff] }
 0x319   : > { %4590 = vst.msk [vmem:[#allocation3 + $0x160] sm:$0xff] %vm2365_vm2, %v4478_v15  ;;  %v4479_v1 = vadd.f32 %v4367_v56, %v10065_v52  ;;  %3505 = vst.msk [vmem:[#allocation3 + $0x188] sm:$0xff] %vm2365_vm2, %v3393_v11  ;;  %v5008_v4 = vsel %vm4993_vm3, %v5006_v61, %v5007_v32  ;;  %v4700_v27 = vld [vmem:[#allocation3 + $0x150] ss:$2 sm:$0xff]  ;;  %v4812_v51 = vld [vmem:[#allocation3 + $0x151] ss:$2 sm:$0xff] }
 0x31a   : > { %4593 = vst.msk [vmem:[#allocation3 + $0x178] sm:$0xff] %vm2365_vm2, %v4481_v19  ;;  %5044 = vrot.lane.b32.xlu0 %v5008_v4, %s8126_s24  ;;  %v4698_v29 = vld [vmem:[#allocation3 + $0x140] ss:$2 sm:$0xff]  ;;  %v4810_v33 = vld [vmem:[#allocation3 + $0x141] ss:$2 sm:$0xff]  ;;  %v4902_v50 = vmax.f32 %v4700_v27, %v4812_v51  ;;  %v3290_v52 = vld [vmem:[#allocation3 + $0x1d0] sm:$0xff] }
 0x31b   : > { %4591 = vst.msk [vmem:[#allocation3 + $0x168] sm:$0xff] %vm2365_vm2, %v4479_v1  ;;  %v7842_v20 = vpop.f32.mrb[164].mxu1  ;;  %v10069_v32 = vld [vmem:[#allocation20_spill] sm:$0xff]  ;;  %v4901_v1 = vmax.f32 %v4698_v29, %v4810_v33 }
 0x31c   : > { %v3398_v37 = vadd.f32 %v7842_v20, %v3286_v35  ;;  %v2993_v28 = vpop.f32.mrb[165].mxu1  ;;  %v10073_v29 = vld [vmem:[#allocation24_spill] sm:$0xff] }
 0x31d   : > { %v4372_v21 = vld [vmem:[#allocation3 + $0x190] sm:$0xff]  ;;  %v3396_v6 = vadd.f32 %v3284_v3, %v2993_v28  ;;  %v7843_v24 = vpop.f32.mrb[166].mxu1 }
 0x31e   : > { %v4484_v14 = vadd.f32 %v10066_v22, %v4372_v21  ;;  %v4370_v34 = vld [vmem:[#allocation3 + $0x180] sm:$0xff]  ;;  %3510 = vst.msk [vmem:[#allocation3 + $0x1b0] sm:$0xff] %vm2365_vm2, %v3398_v37  ;;  %v3399_v57 = vadd.f32 %v7843_v24, %v3287_v47  ;;  %v2996_v54 = vpop.f32.mrb[167].mxu1  ;;  %v3291_v24 = vld [vmem:[#allocation3 + $0x1d8] sm:$0xff]  ;;  %v10070_v22 = vld [vmem:[#allocation21_spill] sm:$0xff] }
 0x31f   : > { %v4482_v13 = vadd.f32 %v4370_v34, %v10067_v63  ;;  %v4373_v9 = vld [vmem:[#allocation3 + $0x198] sm:$0xff]  ;;  %3508 = vst.msk [vmem:[#allocation3 + $0x1a0] sm:$0xff] %vm2365_vm2, %v3396_v6  ;;  %v3397_v62 = vadd.f32 %v3285_v30, %v2996_v54  ;;  %v3288_v37 = vld [vmem:[#allocation3 + $0x1c0] sm:$0xff]  ;;  %v3289_v30 = vld [vmem:[#allocation3 + $0x1c8] sm:$0xff] }
 0x320   : > { %4596 = vst.msk [vmem:[#allocation3 + $0x190] sm:$0xff] %vm2365_vm2, %v4484_v14  ;;  %v4485_v45 = vadd.f32 %v10068_v17, %v4373_v9  ;;  %v4371_v43 = vld [vmem:[#allocation3 + $0x188] sm:$0xff]  ;;  %3511 = vst.msk [vmem:[#allocation3 + $0x1b8] sm:$0xff] %vm2365_vm2, %v3399_v57  ;;  %v10072_v17 = vld [vmem:[#allocation23_spill] sm:$0xff] }
 0x321   : > { %4594 = vst.msk [vmem:[#allocation3 + $0x180] sm:$0xff] %vm2365_vm2, %v4482_v13  ;;  %v4483_v36 = vadd.f32 %v4371_v43, %v10069_v32  ;;  %3509 = vst.msk [vmem:[#allocation3 + $0x1a8] sm:$0xff] %vm2365_vm2, %v3397_v62  ;;  %v4704_v15 = vld [vmem:[#allocation3 + $0x170] ss:$2 sm:$0xff]  ;;  %v4816_v44 = vld [vmem:[#allocation3 + $0x171] ss:$2 sm:$0xff] }
 0x322   : > { %4597 = vst.msk [vmem:[#allocation3 + $0x198] sm:$0xff] %vm2365_vm2, %v4485_v45  ;;  %v4702_v11 = vld [vmem:[#allocation3 + $0x160] ss:$2 sm:$0xff]  ;;  %v4814_v61 = vld [vmem:[#allocation3 + $0x161] ss:$2 sm:$0xff]  ;;  %v4904_v19 = vmax.f32 %v4704_v15, %v4816_v44  ;;  %v10071_v13 = vld [vmem:[#allocation22_spill] sm:$0xff] }
 0x323   : > { %4595 = vst.msk [vmem:[#allocation3 + $0x188] sm:$0xff] %vm2365_vm2, %v4483_v36  ;;  %v7846_v56 = vpop.f32.mrb[168].mxu1  ;;  %v4903_v4 = vmax.f32 %v4702_v11, %v4814_v61  ;;  %v3294_v15 = vld [vmem:[#allocation3 + $0x1f0] sm:$0xff]  ;;  %v3292_v61 = vld [vmem:[#allocation3 + $0x1e0] sm:$0xff] }
 0x324   : > { %v3402_v20 = vadd.f32 %v7846_v56, %v3290_v52  ;;  %v3009_v35 = vpop.f32.mrb[169].mxu1  ;;  %v4948_v28 = vmax.f32 %v4902_v50, %v4904_v19  ;;  %v3295_v52 = vld [vmem:[#allocation3 + $0x1f8] sm:$0xff] }
 0x325   : > { %v4376_v3 = vld [vmem:[#allocation3 + $0x1b0] sm:$0xff]  ;;  %v3400_v21 = vadd.f32 %v3288_v37, %v3009_v35  ;;  %v7847_v6 = vpop.f32.mrb[170].mxu1  ;;  %v9338_v47 = vmax.f32 %v4901_v1, %v4903_v4  ;;  %v10074_v1 = vld [vmem:[#allocation25_spill] sm:$0xff] }
 0x326   : > { %v4488_v14 = vadd.f32 %v10070_v22, %v4376_v3  ;;  %v4374_v34 = vld [vmem:[#allocation3 + $0x1a0] sm:$0xff]  ;;  %3514 = vst.msk [vmem:[#allocation3 + $0x1d0] sm:$0xff] %vm2365_vm2, %v3402_v20  ;;  %v3403_v57 = vadd.f32 %v7847_v6, %v3291_v24  ;;  %v3012_v54 = vpop.f32.mrb[171].mxu1  ;;  %v5010_v63 = vrot.slane %v4948_v28, 7  ;;  %v3293_v28 = vld [vmem:[#allocation3 + $0x1e8] sm:$0xff]  ;;  %v10075_v3 = vld [vmem:[#allocation26_spill] sm:$0xff] }
 0x327   : > { %v4486_v9 = vadd.f32 %v4374_v34, %v10071_v13  ;;  %v4377_v62 = vld [vmem:[#allocation3 + $0x1b8] sm:$0xff]  ;;  %3512 = vst.msk [vmem:[#allocation3 + $0x1c0] sm:$0xff] %vm2365_vm2, %v3400_v21  ;;  %v3401_v27 = vadd.f32 %v3289_v30, %v3012_v54  ;;  %v5009_v51 = vrot.slane %v9338_v47, 7  ;;  %v10077_v13 = vld [vmem:[#allocation28_spill] sm:$0xff] }
 0x328   : > { %4600 = vst.msk [vmem:[#allocation3 + $0x1b0] sm:$0xff] %vm2365_vm2, %v4488_v14  ;;  %v4489_v45 = vadd.f32 %v10072_v17, %v4377_v62  ;;  %v4375_v43 = vld [vmem:[#allocation3 + $0x1a8] sm:$0xff]  ;;  %3515 = vst.msk [vmem:[#allocation3 + $0x1d8] sm:$0xff] %vm2365_vm2, %v3403_v57  ;;  %v10076_v34 = vld [vmem:[#allocation27_spill] sm:$0xff] }
 0x329   : > { %4598 = vst.msk [vmem:[#allocation3 + $0x1a0] sm:$0xff] %vm2365_vm2, %v4486_v9  ;;  %v4487_v33 = vadd.f32 %v4375_v43, %v10073_v29  ;;  %3513 = vst.msk [vmem:[#allocation3 + $0x1c8] sm:$0xff] %vm2365_vm2, %v3401_v27  ;;  %v5011_v32 = vsel %vm4993_vm3, %v5009_v51, %v5010_v63  ;;  %v4708_v22 = vld [vmem:[#allocation3 + $0x190] ss:$2 sm:$0xff]  ;;  %v4820_v14 = vld [vmem:[#allocation3 + $0x191] ss:$2 sm:$0xff] }
 0x32a   : > { %4601 = vst.msk [vmem:[#allocation3 + $0x1b8] sm:$0xff] %vm2365_vm2, %v4489_v45  ;;  %5046 = vrot.lane.b32.xlu1 %v5011_v32, %s8126_s24  ;;  %v4706_v30 = vld [vmem:[#allocation3 + $0x180] ss:$2 sm:$0xff]  ;;  %v4818_v63 = vld [vmem:[#allocation3 + $0x181] ss:$2 sm:$0xff]  ;;  %v4906_v45 = vmax.f32 %v4708_v22, %v4820_v14 }
 0x32b   : > { %4599 = vst.msk [vmem:[#allocation3 + $0x1a8] sm:$0xff] %vm2365_vm2, %v4487_v33  ;;  %v7850_v36 = vpop.f32.mrb[172].mxu1  ;;  %v3298_v33 = vld [vmem:[#allocation3 + $0x210] sm:$0xff]  ;;  %v4905_v32 = vmax.f32 %v4706_v30, %v4818_v63  ;;  %v10082_v63 = vld [vmem:[#allocation32_spill] sm:$0xff] }
 0x32c   : > { %v3406_v44 = vadd.f32 %v7850_v36, %v3294_v15  ;;  %v3025_v11 = vpop.f32.mrb[173].mxu1 }
 0x32d   : > { %v4380_v50 = vld [vmem:[#allocation3 + $0x1d0] sm:$0xff]  ;;  %v3404_v19 = vadd.f32 %v3292_v61, %v3025_v11  ;;  %v7851_v56 = vpop.f32.mrb[174].mxu1  ;;  %v3296_v11 = vld [vmem:[#allocation3 + $0x200] sm:$0xff] }
 0x32e   : > { %v4492_v4 = vadd.f32 %v10074_v1, %v4380_v50  ;;  %v4378_v20 = vld [vmem:[#allocation3 + $0x1c0] sm:$0xff]  ;;  %3518 = vst.msk [vmem:[#allocation3 + $0x1f0] sm:$0xff] %vm2365_vm2, %v3406_v44  ;;  %v3407_v35 = vadd.f32 %v7851_v56, %v3295_v52  ;;  %v3028_v37 = vpop.f32.mrb[175].mxu1  ;;  %v3299_v52 = vld [vmem:[#allocation3 + $0x218] sm:$0xff] }
 0x32f   : > { %v4490_v21 = vadd.f32 %v4378_v20, %v10075_v3  ;;  %v4381_v6 = vld [vmem:[#allocation3 + $0x1d8] sm:$0xff]  ;;  %3516 = vst.msk [vmem:[#allocation3 + $0x1e0] sm:$0xff] %vm2365_vm2, %v3404_v19  ;;  %v3405_v24 = vadd.f32 %v3293_v28, %v3028_v37  ;;  %v3297_v3 = vld [vmem:[#allocation3 + $0x208] sm:$0xff] }
 0x330   : > { %4604 = vst.msk [vmem:[#allocation3 + $0x1d0] sm:$0xff] %vm2365_vm2, %v4492_v4  ;;  %v4493_v57 = vadd.f32 %v10076_v34, %v4381_v6  ;;  %v4379_v54 = vld [vmem:[#allocation3 + $0x1c8] sm:$0xff]  ;;  %3519 = vst.msk [vmem:[#allocation3 + $0x1f8] sm:$0xff] %vm2365_vm2, %v3407_v35  ;;  %v10080_v6 = vld [vmem:[#allocation30_spill] sm:$0xff] }
 0x331   : > { %4602 = vst.msk [vmem:[#allocation3 + $0x1c0] sm:$0xff] %vm2365_vm2, %v4490_v21  ;;  %v4491_v9 = vadd.f32 %v4379_v54, %v10077_v13  ;;  %3517 = vst.msk [vmem:[#allocation3 + $0x1e8] sm:$0xff] %vm2365_vm2, %v3405_v24  ;;  %v4712_v62 = vld [vmem:[#allocation3 + $0x1b0] ss:$2 sm:$0xff]  ;;  %v4824_v27 = vld [vmem:[#allocation3 + $0x1b1] ss:$2 sm:$0xff] }
 0x332   : > { %4605 = vst.msk [vmem:[#allocation3 + $0x1d8] sm:$0xff] %vm2365_vm2, %v4493_v57  ;;  %v4710_v51 = vld [vmem:[#allocation3 + $0x1a0] ss:$2 sm:$0xff]  ;;  %v4822_v17 = vld [vmem:[#allocation3 + $0x1a1] ss:$2 sm:$0xff]  ;;  %v4908_v43 = vmax.f32 %v4712_v62, %v4824_v27  ;;  %v10081_v57 = vld [vmem:[#allocation31_spill] sm:$0xff] }
 0x333   : > { %4603 = vst.msk [vmem:[#allocation3 + $0x1c8] sm:$0xff] %vm2365_vm2, %v4491_v9  ;;  %v7854_v29 = vpop.f32.mrb[176].mxu1  ;;  %v4907_v36 = vmax.f32 %v4710_v51, %v4822_v17  ;;  %v10079_v4 = vld [vmem:[#allocation29_spill] sm:$0xff]  ;;  %v3302_v27 = vld [vmem:[#allocation3 + $0x230] sm:$0xff] }
 0x334   : > { %v3410_v15 = vadd.f32 %v7854_v29, %v3298_v33  ;;  %v3041_v44 = vpop.f32.mrb[177].mxu1  ;;  %v4950_v61 = vmax.f32 %v4906_v45, %v4908_v43  ;;  %v3300_v45 = vld [vmem:[#allocation3 + $0x220] sm:$0xff] }
 0x335   : > { %v4384_v50 = vld [vmem:[#allocation3 + $0x1f0] sm:$0xff]  ;;  %v3408_v19 = vadd.f32 %v3296_v11, %v3041_v44  ;;  %v7855_v56 = vpop.f32.mrb[178].mxu1  ;;  %v9367_v1 = vmax.f32 %v4905_v32, %v4907_v36  ;;  %v3303_v32 = vld [vmem:[#allocation3 + $0x238] sm:$0xff] }
 0x336   : > { %v4496_v20 = vadd.f32 %v10079_v4, %v4384_v50  ;;  %v4382_v35 = vld [vmem:[#allocation3 + $0x1e0] sm:$0xff]  ;;  %3522 = vst.msk [vmem:[#allocation3 + $0x210] sm:$0xff] %vm2365_vm2, %v3410_v15  ;;  %v3411_v37 = vadd.f32 %v7855_v56, %v3299_v52  ;;  %v3044_v28 = vpop.f32.mrb[179].mxu1  ;;  %v5013_v21 = vrot.slane %v4950_v61, 7  ;;  %v3301_v61 = vld [vmem:[#allocation3 + $0x228] sm:$0xff] }
 0x337   : > { %10078 = vst [vmem:[#allocation4_spill] sm:$0xff] %v9367_v1  ;;  %v4494_v24 = vadd.f32 %v4382_v35, %v10080_v6  ;;  %v4385_v22 = vld [vmem:[#allocation3 + $0x1f8] sm:$0xff]  ;;  %3520 = vst.msk [vmem:[#allocation3 + $0x200] sm:$0xff] %vm2365_vm2, %v3408_v19  ;;  %v3409_v14 = vadd.f32 %v3297_v3, %v3044_v28  ;;  %v5012_v34 = vrot.slane %v9367_v1, 7  ;;  %v10083_v50 = vld [vmem:[#allocation33_spill] sm:$0xff] }
 0x338   : > { %4608 = vst.msk [vmem:[#allocation3 + $0x1f0] sm:$0xff] %vm2365_vm2, %v4496_v20  ;;  %v4497_v54 = vadd.f32 %v10081_v57, %v4385_v22  ;;  %v4383_v30 = vld [vmem:[#allocation3 + $0x1e8] sm:$0xff]  ;;  %3523 = vst.msk [vmem:[#allocation3 + $0x218] sm:$0xff] %vm2365_vm2, %v3411_v37  ;;  %v10084_v35 = vld [vmem:[#allocation34_spill] sm:$0xff] }
 0x339   : > { %4606 = vst.msk [vmem:[#allocation3 + $0x1e0] sm:$0xff] %vm2365_vm2, %v4494_v24  ;;  %v4495_v13 = vadd.f32 %v4383_v30, %v10082_v63  ;;  %3521 = vst.msk [vmem:[#allocation3 + $0x208] sm:$0xff] %vm2365_vm2, %v3409_v14  ;;  %v5014_v9 = vsel %vm4993_vm3, %v5012_v34, %v5013_v21  ;;  %v4716_v4 = vld [vmem:[#allocation3 + $0x1d0] ss:$2 sm:$0xff]  ;;  %v4828_v20 = vld [vmem:[#allocation3 + $0x1d1] ss:$2 sm:$0xff] }
 0x33a   : > { %4609 = vst.msk [vmem:[#allocation3 + $0x1f8] sm:$0xff] %vm2365_vm2, %v4497_v54  ;;  %5048 = vrot.lane.b32.xlu0 %v5014_v9, %s8126_s24  ;;  %v4826_v3 = vld [vmem:[#allocation3 + $0x1c1] ss:$2 sm:$0xff]  ;;  %v10085_v21 = vld [vmem:[#allocation35_spill] sm:$0xff]  ;;  %v8127_v14 = vmov 1966171168   ;;  %v4910_v30 = vmax.f32 %v4716_v4, %v4828_v20 }
 0x33b   : > { %4607 = vst.msk [vmem:[#allocation3 + $0x1e8] sm:$0xff] %vm2365_vm2, %v4495_v13  ;;  %v7858_v62 = vpop.f32.mrb[180].mxu1  ;;  %v5108_v34 = vunpack.c.l.s4 %v8127_v14  ;;  %v5110_v13 = vlaneseq  ;;  %v3321_v1 = vld [vmem:[#allocation3 + $0x2c8] sm:$0xff] }
 0x33c   : > { %v3414_v51 = vadd.f32 %v7858_v62, %v3302_v27  ;;  %v3057_v17 = vpop.f32.mrb[181].mxu1  ;;  %v3306_v62 = vld [vmem:[#allocation3 + $0x250] sm:$0xff] }
 0x33d   : > { %v4388_v43 = vld [vmem:[#allocation3 + $0x210] sm:$0xff]  ;;  %v3412_v29 = vadd.f32 %v3300_v45, %v3057_v17  ;;  %v7859_v33 = vpop.f32.mrb[182].mxu1  ;;  %v5111_v20 = vshrl.u32 %v5110_v13, 7  ;;  %v3308_v13 = vld [vmem:[#allocation3 + $0x260] sm:$0xff] }
 0x33e   : > { %v4500_v36 = vadd.f32 %v8976_v0, %v4388_v43  ;;  %v4386_v15 = vld [vmem:[#allocation3 + $0x200] sm:$0xff]  ;;  %3526 = vst.msk [vmem:[#allocation3 + $0x230] sm:$0xff] %vm2365_vm2, %v3414_v51  ;;  %v3415_v44 = vadd.f32 %v7859_v33, %v3303_v32  ;;  %v3060_v11 = vpop.f32.mrb[183].mxu1 }
 0x33f   : > { %v4498_v19 = vadd.f32 %v4386_v15, %v10083_v50  ;;  %v4389_v56 = vld [vmem:[#allocation3 + $0x218] sm:$0xff]  ;;  %3524 = vst.msk [vmem:[#allocation3 + $0x220] sm:$0xff] %vm2365_vm2, %v3412_v29  ;;  %v3413_v52 = vadd.f32 %v3301_v61, %v3060_v11  ;;  %v4714_v0 = vld [vmem:[#allocation3 + $0x1c0] ss:$2 sm:$0xff]  ;;  %v5109_v11 = vunpack.c.0.s8 %v5108_v34  ;;  %v3310_v34 = vld [vmem:[#allocation3 + $0x270] sm:$0xff] }
 0x340   : > { %4612 = vst.msk [vmem:[#allocation3 + $0x210] sm:$0xff] %vm2365_vm2, %v4500_v36  ;;  %v4501_v37 = vadd.f32 %v10084_v35, %v4389_v56  ;;  %v4387_v28 = vld [vmem:[#allocation3 + $0x208] sm:$0xff]  ;;  %3527 = vst.msk [vmem:[#allocation3 + $0x238] sm:$0xff] %vm2365_vm2, %v3415_v44  ;;  %v4909_v27 = vmax.f32 %v4714_v0, %v4826_v3  ;;  %v3304_v43 = vld [vmem:[#allocation3 + $0x240] sm:$0xff] }
 0x341   : > { %4610 = vst.msk [vmem:[#allocation3 + $0x200] sm:$0xff] %vm2365_vm2, %v4498_v19  ;;  %v4499_v6 = vadd.f32 %v4387_v28, %v10085_v21  ;;  %3525 = vst.msk [vmem:[#allocation3 + $0x228] sm:$0xff] %vm2365_vm2, %v3413_v52  ;;  %v4720_v24 = vld [vmem:[#allocation3 + $0x1f0] ss:$2 sm:$0xff]  ;;  %v4832_v22 = vld [vmem:[#allocation3 + $0x1f1] ss:$2 sm:$0xff] }
 0x342   : > { %4613 = vst.msk [vmem:[#allocation3 + $0x218] sm:$0xff] %vm2365_vm2, %v4501_v37  ;;  %v4718_v57 = vld [vmem:[#allocation3 + $0x1e0] ss:$2 sm:$0xff]  ;;  %v4830_v54 = vld [vmem:[#allocation3 + $0x1e1] ss:$2 sm:$0xff]  ;;  %v4912_v63 = vmax.f32 %v4720_v24, %v4832_v22  ;;  %v3307_v15 = vld [vmem:[#allocation3 + $0x258] sm:$0xff]  ;;  %v9412_v22 = vsub.s32 %v5109_v11, %v5111_v20 }
 0x343   : > { %4611 = vst.msk [vmem:[#allocation3 + $0x208] sm:$0xff] %vm2365_vm2, %v4499_v6  ;;  %v7862_v9 = vpop.f32.mrb[184].mxu1  ;;  %v4911_v51 = vmax.f32 %v4718_v57, %v4830_v54  ;;  %v3305_v52 = vld [vmem:[#allocation3 + $0x248] sm:$0xff]  ;;  %v10087_v3 = vld [vmem:[#allocation36_spill] sm:$0xff] }
 0x344   : > { %v3418_v17 = vadd.f32 %v7862_v9, %v3306_v62  ;;  %v3073_v45 = vpop.f32.mrb[185].mxu1  ;;  %v4952_v29 = vmax.f32 %v4910_v30, %v4912_v63  ;;  %v10088_v6 = vld [vmem:[#allocation37_spill] sm:$0xff]  ;;  %v7213_v57 = vld [vmem:[%s9992_s4] ss:$0 sm:$0xff] }
 0x345   : > { %v4392_v33 = vld [vmem:[#allocation3 + $0x230] sm:$0xff]  ;;  %v3416_v32 = vadd.f32 %v3304_v43, %v3073_v45  ;;  %v7863_v36 = vpop.f32.mrb[186].mxu1  ;;  %v9396_v44 = vmax.f32 %v4909_v27, %v4911_v51 }
 0x346   : > { %v4504_v61 = vadd.f32 %v8991_v25, %v4392_v33  ;;  %v4390_v50 = vld [vmem:[#allocation3 + $0x220] sm:$0xff]  ;;  %3530 = vst.msk [vmem:[#allocation3 + $0x250] sm:$0xff] %vm2365_vm2, %v3418_v17  ;;  %v3419_v19 = vadd.f32 %v7863_v36, %v3307_v15  ;;  %v3076_v56 = vpop.f32.mrb[187].mxu1  ;;  %v5016_v4 = vrot.slane %v4952_v29, 7  ;;  %v3311_v17 = vld [vmem:[#allocation3 + $0x278] sm:$0xff]  ;;  %v5882_v29 = vcombine.high %v7213_v57, %v7213_v57  ;;  %v3309_v15 = vld [vmem:[#allocation3 + $0x268] sm:$0xff] }
 0x347   : > { %10086 = vst [vmem:[#allocation5_spill] sm:$0xff] %v9396_v44  ;;  %v4502_v35 = vadd.f32 %v4390_v50, %v8994_v31  ;;  %v4393_v37 = vld [vmem:[#allocation3 + $0x238] sm:$0xff]  ;;  %3528 = vst.msk [vmem:[#allocation3 + $0x240] sm:$0xff] %vm2365_vm2, %v3416_v32  ;;  %v3417_v28 = vadd.f32 %v3305_v52, %v3076_v56  ;;  %v5015_v0 = vrot.slane %v9396_v44, 7  ;;  %v5889_v33 = vrot.slane %v7213_v57, %v9412_v22  ;;  %v10089_v50 = vld [vmem:[#allocation38_spill] sm:$0xff] }
 0x348   : > { %4616 = vst.msk [vmem:[#allocation3 + $0x230] sm:$0xff] %vm2365_vm2, %v4504_v61  ;;  %v4505_v25 = vadd.f32 %v10087_v3, %v4393_v37  ;;  %v4391_v21 = vld [vmem:[#allocation3 + $0x228] sm:$0xff]  ;;  %3531 = vst.msk [vmem:[#allocation3 + $0x258] sm:$0xff] %vm2365_vm2, %v3419_v19 }
 0x349   : > { %4614 = vst.msk [vmem:[#allocation3 + $0x220] sm:$0xff] %vm2365_vm2, %v4502_v35  ;;  %v4503_v24 = vadd.f32 %v4391_v21, %v10088_v6  ;;  %3529 = vst.msk [vmem:[#allocation3 + $0x248] sm:$0xff] %vm2365_vm2, %v3417_v28  ;;  %v5017_v31 = vsel %vm4993_vm3, %v5015_v0, %v5016_v4  ;;  %v10090_v4 = vld [vmem:[#allocation39_spill] sm:$0xff]  ;;  %v5896_v28 = vrot.slane %v5882_v29, %v9412_v22 }
 0x34a   : > { %4617 = vst.msk [vmem:[#allocation3 + $0x238] sm:$0xff] %vm2365_vm2, %v4505_v25  ;;  %5050 = vrot.lane.b32.xlu1 %v5017_v31, %s8126_s24  ;;  %v4834_v37 = vld [vmem:[#allocation3 + $0x201] ss:$2 sm:$0xff]  ;;  %v5897_v0 = vcombine.high %v5889_v33, %v5889_v33  ;;  %v4836_v31 = vld [vmem:[#allocation3 + $0x211] ss:$2 sm:$0xff] }
 0x34b   : > { %4615 = vst.msk [vmem:[#allocation3 + $0x228] sm:$0xff] %vm2365_vm2, %v4503_v24  ;;  %v7866_v14 = vpop.f32.mrb[188].mxu1  ;;  %v4724_v24 = vld [vmem:[#allocation3 + $0x210] ss:$2 sm:$0xff]  ;;  %v5898_v29 = vcombine.high %v5896_v28, %v5896_v28 }
 0x34c   : > { %v3422_v54 = vadd.f32 %v7866_v14, %v3310_v34  ;;  %v5037_v30 = vpop.permute.xlu0 %5036  ;;  %v3089_v63 = vpop.f32.mrb[189].mxu1  ;;  %v9436_v34 = vrot.slane %v5889_v33, %v9412_v22 }
 0x34d   : > { %v4396_v9 = vld [vmem:[#allocation3 + $0x250] sm:$0xff]  ;;  %v5078_v62 = vsel %vm2365_vm2, %v9177_v26, %v5037_v30  ;;  %v3420_v27 = vadd.f32 %v3308_v13, %v3089_v63  ;;  %v7867_v51 = vpop.f32.mrb[190].mxu1  ;;  %v3312_v13 = vld [vmem:[#allocation3 + $0x280] sm:$0xff] }
 0x34e   : > { %v4508_v45 = vadd.f32 %v9007_v53, %v4396_v9  ;;  %v4394_v43 = vld [vmem:[#allocation3 + $0x240] sm:$0xff]  ;;  %3534 = vst.msk [vmem:[#allocation3 + $0x270] sm:$0xff] %vm2365_vm2, %v3422_v54  ;;  %v3423_v32 = vadd.f32 %v7867_v51, %v3311_v17  ;;  %v3092_v36 = vpop.f32.mrb[191].mxu1  ;;  %v5106_v56 = vcombine.high %v5078_v62, %v5078_v62  ;;  %v5113_v52 = vrot.slane %v5078_v62, %v9412_v22  ;;  %v3314_v30 = vld [vmem:[#allocation3 + $0x290] sm:$0xff] }
 0x34f   : > { %v4506_v11 = vadd.f32 %v4394_v43, %v9010_v49  ;;  %v4397_v61 = vld [vmem:[#allocation3 + $0x258] sm:$0xff]  ;;  %3532 = vst.msk [vmem:[#allocation3 + $0x260] sm:$0xff] %vm2365_vm2, %v3420_v27  ;;  %v3421_v26 = vadd.f32 %v3309_v15, %v3092_v36  ;;  %v4722_v49 = vld [vmem:[#allocation3 + $0x200] ss:$2 sm:$0xff] }
 0x350   : > { %4620 = vst.msk [vmem:[#allocation3 + $0x250] sm:$0xff] %vm2365_vm2, %v4508_v45  ;;  %v4509_v19 = vadd.f32 %v10089_v50, %v4397_v61  ;;  %v4395_v53 = vld [vmem:[#allocation3 + $0x248] sm:$0xff]  ;;  %3535 = vst.msk [vmem:[#allocation3 + $0x278] sm:$0xff] %vm2365_vm2, %v3423_v32  ;;  %v5120_v57 = vrot.slane %v5106_v56, %v9412_v22  ;;  %v5121_v54 = vcombine.high %v5113_v52, %v5113_v52  ;;  %v3315_v36 = vld [vmem:[#allocation3 + $0x298] sm:$0xff] }
 0x351   : > { %4618 = vst.msk [vmem:[#allocation3 + $0x240] sm:$0xff] %vm2365_vm2, %v4506_v11  ;;  %v4507_v20 = vadd.f32 %v4395_v53, %v10090_v4  ;;  %3533 = vst.msk [vmem:[#allocation3 + $0x268] sm:$0xff] %vm2365_vm2, %v3421_v26  ;;  %v4728_v35 = vld [vmem:[#allocation3 + $0x230] ss:$2 sm:$0xff]  ;;  %v4840_v21 = vld [vmem:[#allocation3 + $0x231] ss:$2 sm:$0xff]  ;;  %v4913_v17 = vmax.f32 %v4722_v49, %v4834_v37  ;;  %v9441_v32 = vrot.slane %v5897_v0, %v9412_v22 }
 0x352   : > { %4621 = vst.msk [vmem:[#allocation3 + $0x258] sm:$0xff] %vm2365_vm2, %v4509_v19  ;;  %v4726_v3 = vld [vmem:[#allocation3 + $0x220] ss:$2 sm:$0xff]  ;;  %v4838_v25 = vld [vmem:[#allocation3 + $0x221] ss:$2 sm:$0xff]  ;;  %v4916_v45 = vmax.f32 %v4728_v35, %v4840_v21  ;;  %v4914_v61 = vmax.f32 %v4724_v24, %v4836_v31  ;;  %v5122_v4 = vcombine.high %v5120_v57, %v5120_v57  ;;  %v9464_v21 = vrot.slane %v5898_v29, %v9412_v22 }
 0x353   : > { %4619 = vst.msk [vmem:[#allocation3 + $0x248] sm:$0xff] %vm2365_vm2, %v4507_v20  ;;  %v7870_v6 = vpop.f32.mrb[192].mxu1  ;;  %v4915_v14 = vmax.f32 %v4726_v3, %v4838_v25  ;;  %v3313_v11 = vld [vmem:[#allocation3 + $0x288] sm:$0xff]  ;;  %v9453_v20 = vrot.slane %v5121_v54, %v9412_v22  ;;  %v10092_v49 = vld [vmem:[#allocation40_spill] sm:$0xff]  ;;  %v9472_v24 = vcombine.high %v9441_v32, %v9441_v32  ;;  %v3318_v54 = vld [vmem:[#allocation3 + $0x2b0] sm:$0xff] }
 0x354   : > { %v3105_v63 = vpop.f32.mrb[193].mxu1  ;;  %v3426_v62 = vadd.f32 %v7870_v6, %v3314_v30  ;;  %v10093_v37 = vld [vmem:[#allocation41_spill] sm:$0xff]  ;;  %v4954_v3 = vmax.f32 %v4914_v61, %v4916_v45  ;;  %v9468_v6 = vcombine.high %v9436_v34, %v9436_v34 }
 0x355   : > { %v4400_v9 = vld [vmem:[#allocation3 + $0x270] sm:$0xff]  ;;  %v3424_v27 = vadd.f32 %v3312_v13, %v3105_v63  ;;  %v7871_v51 = vpop.f32.mrb[194].mxu1  ;;  %v9446_v56 = vmax.f32 %v4913_v17, %v4915_v14  ;;  %v5153_v30 = vcombine.high %v9453_v20, %v9453_v20 }
 0x356   : > { %v4512_v43 = vadd.f32 %v9023_v38, %v4400_v9  ;;  %v4398_v33 = vld [vmem:[#allocation3 + $0x260] sm:$0xff]  ;;  %v3108_v15 = vpop.f32.mrb[195].mxu1  ;;  %3538 = vst.msk [vmem:[#allocation3 + $0x290] sm:$0xff] %vm2365_vm2, %v3426_v62  ;;  %v3427_v19 = vadd.f32 %v7871_v51, %v3315_v36  ;;  %v9450_v38 = vrot.slane %v5896_v28, %v9412_v22  ;;  %v5129_v28 = vrot.slane %v5113_v52, %v9412_v22 }
 0x357   : > { %v4510_v26 = vadd.f32 %v4398_v33, %v9026_v5  ;;  %v4401_v50 = vld [vmem:[#allocation3 + $0x278] sm:$0xff]  ;;  %3536 = vst.msk [vmem:[#allocation3 + $0x280] sm:$0xff] %vm2365_vm2, %v3424_v27  ;;  %v3425_v53 = vadd.f32 %v3313_v11, %v3108_v15  ;;  %10091 = vst [vmem:[#allocation6_spill] sm:$0xff] %v9446_v56  ;;  %v5018_v25 = vrot.slane %v9446_v56, 7  ;;  %v5019_v31 = vrot.slane %v4954_v3, 7  ;;  %v3316_v27 = vld [vmem:[#allocation3 + $0x2a0] sm:$0xff] }
 0x358   : > { %4624 = vst.msk [vmem:[#allocation3 + $0x270] sm:$0xff] %vm2365_vm2, %v4512_v43  ;;  %v4513_v5 = vadd.f32 %v10092_v49, %v4401_v50  ;;  %v4399_v35 = vld [vmem:[#allocation3 + $0x268] sm:$0xff]  ;;  %3539 = vst.msk [vmem:[#allocation3 + $0x298] sm:$0xff] %vm2365_vm2, %v3427_v19  ;;  %v5150_v52 = vrot.slane %v5122_v4, %v9412_v22  ;;  %v9480_v13 = vcombine.high %v9450_v38, %v9450_v38  ;;  %v3319_v33 = vld [vmem:[#allocation3 + $0x2b8] sm:$0xff] }
 0x359   : > { %4622 = vst.msk [vmem:[#allocation3 + $0x260] sm:$0xff] %vm2365_vm2, %v4510_v26  ;;  %v4511_v0 = vadd.f32 %v4399_v35, %v10093_v37  ;;  %3537 = vst.msk [vmem:[#allocation3 + $0x288] sm:$0xff] %vm2365_vm2, %v3425_v53  ;;  %v5136_v51 = vrot.slane %v5120_v57, %v9412_v22  ;;  %v5020_v17 = vsel %vm4993_vm3, %v5018_v25, %v5019_v31  ;;  %v3317_v19 = vld [vmem:[#allocation3 + $0x2a8] sm:$0xff]  ;;  %v10094_v25 = vld [vmem:[#allocation42_spill] sm:$0xff] }
 0x35a   : > { %4625 = vst.msk [vmem:[#allocation3 + $0x278] sm:$0xff] %vm2365_vm2, %v4513_v5  ;;  %v5151_v36 = vcombine.high %v5129_v28, %v5129_v28  ;;  %5052 = vrot.lane.b32.xlu0 %v5020_v17, %s8126_s24  ;;  %v9493_v4 = vcombine.high %v9464_v21, %v9464_v21  ;;  %v9497_v5 = vadd.f32 %v9472_v24, %v5153_v30  ;;  %v3323_v56 = vld [vmem:[#allocation3 + $0x2d8] sm:$0xff] }
 0x35b   : > { %4623 = vst.msk [vmem:[#allocation3 + $0x268] sm:$0xff] %vm2365_vm2, %v4511_v0  ;;  %v7874_v14 = vpop.f32.mrb[196].mxu1  ;;  %v9500_v35 = vadd.f32 %v9464_v21, %v5150_v52 }
 0x35c   : > { %v3430_v63 = vadd.f32 %v7874_v14, %v3318_v54  ;;  %v5039_v9 = vpop.permute.xlu0 %5038  ;;  %v3121_v62 = vpop.f32.mrb[197].mxu1  ;;  %v10095_v14 = vld [vmem:[#allocation43_spill] sm:$0xff]  ;;  %v5941_v52 = vadd.f32 %v9468_v6, %v5151_v36 }
 0x35d   : > { %v5079_v45 = vsel %vm2365_vm2, %v9206_v42, %v5039_v9  ;;  %v3428_v43 = vadd.f32 %v3316_v27, %v3121_v62  ;;  %v7875_v29 = vpop.f32.mrb[198].mxu1  ;;  %v4404_v15 = vld [vmem:[#allocation3 + $0x290] sm:$0xff]  ;;  %v9515_v27 = vadd.f32 %v9436_v34, %v5129_v28 }
 0x35e   : > { %v4402_v11 = vld [vmem:[#allocation3 + $0x280] sm:$0xff]  ;;  %3542 = vst.msk [vmem:[#allocation3 + $0x2b0] sm:$0xff] %vm2365_vm2, %v3430_v63  ;;  %v5154_v61 = vcombine.high %v5079_v45, %v5079_v45  ;;  %v5161_v26 = vrot.slane %v5079_v45, %v9412_v22  ;;  %v3431_v50 = vadd.f32 %v7875_v29, %v3319_v33  ;;  %v3124_v57 = vpop.f32.mrb[199].mxu1  ;;  %v4516_v53 = vadd.f32 %v9039_v55, %v4404_v15  ;;  %v3322_v15 = vld [vmem:[#allocation3 + $0x2d0] sm:$0xff] }
 0x35f   : > { %v4514_v42 = vadd.f32 %v4402_v11, %v9042_v41  ;;  %3540 = vst.msk [vmem:[#allocation3 + $0x2a0] sm:$0xff] %vm2365_vm2, %v3428_v43  ;;  %v3429_v49 = vadd.f32 %v3317_v19, %v3124_v57  ;;  %v4405_v37 = vld [vmem:[#allocation3 + $0x298] sm:$0xff]  ;;  %v5152_v41 = vcombine.high %v5136_v51, %v5136_v51  ;;  %v9512_v63 = vadd.f32 %v9450_v38, %v5136_v51 }
 0x360   : > { %v4403_v0 = vld [vmem:[#allocation3 + $0x288] sm:$0xff]  ;;  %v5168_v3 = vrot.slane %v5154_v61, %v9412_v22  ;;  %v5169_v55 = vcombine.high %v5161_v26, %v5161_v26  ;;  %3543 = vst.msk [vmem:[#allocation3 + $0x2b8] sm:$0xff] %vm2365_vm2, %v3431_v50  ;;  %4628 = vst.msk [vmem:[#allocation3 + $0x290] sm:$0xff] %vm2365_vm2, %v4516_v53  ;;  %v4517_v31 = vadd.f32 %v10094_v25, %v4405_v37  ;;  %v4732_v61 = vld [vmem:[#allocation3 + $0x250] ss:$2 sm:$0xff] }
 0x361   : > { %4626 = vst.msk [vmem:[#allocation3 + $0x280] sm:$0xff] %vm2365_vm2, %v4514_v42  ;;  %v4515_v54 = vadd.f32 %v4403_v0, %v10095_v14  ;;  %v5177_v30 = vrot.slane %v5161_v26, %v9412_v22  ;;  %3541 = vst.msk [vmem:[#allocation3 + $0x2a8] sm:$0xff] %vm2365_vm2, %v3429_v49  ;;  %v4736_v9 = vld [vmem:[#allocation3 + $0x270] ss:$2 sm:$0xff]  ;;  %v4848_v62 = vld [vmem:[#allocation3 + $0x271] ss:$2 sm:$0xff]  ;;  %v9522_v33 = vadd.f32 %v9441_v32, %v9453_v20 }
 0x362   : > { %4629 = vst.msk [vmem:[#allocation3 + $0x298] sm:$0xff] %vm2365_vm2, %v4517_v31  ;;  %v5191_v17 = vrot.slane %v5169_v55, %v9412_v22  ;;  %v4734_v43 = vld [vmem:[#allocation3 + $0x260] ss:$2 sm:$0xff]  ;;  %v4846_v29 = vld [vmem:[#allocation3 + $0x261] ss:$2 sm:$0xff]  ;;  %v6136_v51 = vcombine.low %v5941_v52, %v9497_v5  ;;  %v5170_v28 = vcombine.high %v5168_v3, %v5168_v3  ;;  %v5945_v57 = vadd.f32 %v9480_v13, %v5152_v41 }
 0x363   : > { %4627 = vst.msk [vmem:[#allocation3 + $0x288] sm:$0xff] %vm2365_vm2, %v4515_v54  ;;  %v7878_v45 = vpop.f32.mrb[200].mxu1  ;;  %v4844_v26 = vld [vmem:[#allocation3 + $0x251] ss:$2 sm:$0xff]  ;;  %v5184_v19 = vrot.slane %v5168_v3, %v9412_v22  ;;  %v5946_v53 = vadd.f32 %v9493_v4, %v5177_v30  ;;  %v4730_v49 = vld [vmem:[#allocation3 + $0x240] ss:$2 sm:$0xff]  ;;  %v5199_v0 = vcombine.high %v5177_v30, %v5177_v30  ;;  %v4919_v14 = vmax.f32 %v4734_v43, %v4846_v29 }
 0x364   : > { %v3137_v11 = vpop.f32.mrb[201].mxu1  ;;  %v3434_v42 = vadd.f32 %v7878_v45, %v3322_v15  ;;  %v4842_v37 = vld [vmem:[#allocation3 + $0x241] ss:$2 sm:$0xff]  ;;  %v4920_v54 = vmax.f32 %v4736_v9, %v4848_v62  ;;  %v5201_v52 = vcombine.high %v5191_v17, %v5191_v17  ;;  %v4918_v45 = vmax.f32 %v4732_v61, %v4844_v26 }
 0x365   : > { %v4408_v50 = vld [vmem:[#allocation3 + $0x2b0] sm:$0xff]  ;;  %v7879_v20 = vpop.f32.mrb[202].mxu1  ;;  %v3320_v25 = vld [vmem:[#allocation3 + $0x2c0] sm:$0xff]  ;;  %v5198_v15 = vrot.slane %v5170_v28, %v9412_v22  ;;  %v4917_v43 = vmax.f32 %v4730_v49, %v4842_v37  ;;  %v5200_v9 = vcombine.high %v5184_v19, %v5184_v19  ;;  %v6138_v62 = vcombine.low %v5945_v57, %v5946_v53 }
 0x366   : > { %v4520_v5 = vadd.f32 %v9055_v8, %v4408_v50  ;;  %v4406_v55 = vld [vmem:[#allocation3 + $0x2a0] sm:$0xff]  ;;  %v3140_v31 = vpop.f32.mrb[203].mxu1  ;;  %3546 = vst.msk [vmem:[#allocation3 + $0x2d0] sm:$0xff] %vm2365_vm2, %v3434_v42  ;;  %v3432_v3 = vadd.f32 %v3320_v25, %v3137_v11  ;;  %v3435_v44 = vadd.f32 %v7879_v20, %v3323_v56  ;;  %v5947_v61 = vadd.f32 %v9436_v34, %v5191_v17  ;;  %v3326_v42 = vld [vmem:[#allocation3 + $0x2f0] sm:$0xff] }
 0x367   : > { %v4518_v36 = vadd.f32 %v4406_v55, %v9058_v58  ;;  %v4409_v41 = vld [vmem:[#allocation3 + $0x2b8] sm:$0xff]  ;;  %v10096_v8 = vld [vmem:[#allocation44_spill] sm:$0xff]  ;;  %v10097_v58 = vld [vmem:[#allocation45_spill] sm:$0xff]  ;;  %v3433_v11 = vadd.f32 %v3321_v1, %v3140_v31  ;;  %v5948_v26 = vadd.f32 %v9441_v32, %v5199_v0  ;;  %v9543_v56 = vmax.f32 %v4917_v43, %v4919_v14 }
 0x368   : > { %4632 = vst.msk [vmem:[#allocation3 + $0x2b0] sm:$0xff] %vm2365_vm2, %v4520_v5  ;;  %v4521_v30 = vadd.f32 %v10096_v8, %v4409_v41  ;;  %v4407_v50 = vld [vmem:[#allocation3 + $0x2a8] sm:$0xff]  ;;  %3544 = vst.msk [vmem:[#allocation3 + $0x2c0] sm:$0xff] %vm2365_vm2, %v3432_v3  ;;  %v4956_v28 = vmax.f32 %v4918_v45, %v4920_v54  ;;  %v6135_v57 = vcombine.low %v9515_v27, %v9522_v33  ;;  %v3324_v37 = vld [vmem:[#allocation3 + $0x2e0] sm:$0xff] }
 0x369   : > { %4630 = vst.msk [vmem:[#allocation3 + $0x2a0] sm:$0xff] %vm2365_vm2, %v4518_v36  ;;  %v4519_v29 = vadd.f32 %v4407_v50, %v10097_v58  ;;  %3547 = vst.msk [vmem:[#allocation3 + $0x2d8] sm:$0xff] %vm2365_vm2, %v3435_v44  ;;  %v9548_v36 = vrot.slane %v6136_v51, %v9412_v22  ;;  %v5949_v53 = vadd.f32 %v9468_v6, %v5201_v52  ;;  %v5021_v20 = vrot.slane %v9543_v56, 7  ;;  %v3327_v45 = vld [vmem:[#allocation3 + $0x2f8] sm:$0xff] }
 0x36a   : > { %4633 = vst.msk [vmem:[#allocation3 + $0x2b8] sm:$0xff] %vm2365_vm2, %v4521_v30  ;;  %v5950_v1 = vadd.f32 %v9472_v24, %v5184_v19  ;;  %3545 = vst.msk [vmem:[#allocation3 + $0x2c8] sm:$0xff] %vm2365_vm2, %v3433_v11  ;;  %v9555_v44 = vadd.f32 %v9450_v38, %v5198_v15  ;;  %v5022_v49 = vrot.slane %v4956_v28, 7  ;;  %v5952_v5 = vadd.f32 %v9464_v21, %v5200_v9  ;;  %v10099_v28 = vld [vmem:[#allocation46_spill] sm:$0xff] }
 0x36b   : > { %4631 = vst.msk [vmem:[#allocation3 + $0x2a8] sm:$0xff] %vm2365_vm2, %v4519_v29  ;;  %v7882_v17 = vpop.f32.mrb[204].mxu1  ;;  %v6166_v19 = vrot.slane %v6138_v62, %v9412_v22  ;;  %v10098_v31 = vcombine.low %v9512_v63, %v9500_v35  ;;  %v6184_v54 = vcombine.low %v5947_v61, %v5948_v26  ;;  %v6145_v62 = vrot.slane %v6135_v57, %v9412_v22  ;;  %v4738_v61 = vld [vmem:[#allocation3 + $0x280] ss:$2 sm:$0xff]  ;;  %v4740_v26 = vld [vmem:[#allocation3 + $0x290] ss:$2 sm:$0xff] }
 0x36c   : > { %v3438_v27 = vadd.f32 %v7882_v17, %v3326_v42  ;;  %v5041_v33 = vpop.permute.xlu1 %5040  ;;  %v3153_v51 = vpop.f32.mrb[205].mxu1  ;;  %v5023_v41 = vsel %vm4993_vm3, %v5021_v20, %v5022_v49  ;;  %v6185_v8 = vcombine.low %v5949_v53, %v5950_v1  ;;  %v6186_v29 = vcombine.low %v9555_v44, %v5952_v5  ;;  %v10100_v49 = vld [vmem:[#allocation47_spill] sm:$0xff] }
 0x36d   : > { %v9562_v0 = vsel %vm2365_vm2, %v9235_v39, %v5041_v33  ;;  %v3436_v55 = vadd.f32 %v3324_v37, %v3153_v51  ;;  %v7883_v25 = vpop.f32.mrb[206].mxu1  ;;  %v6159_v14 = vrot.slane %v10098_v31, %v9412_v22  ;;  %v4412_v52 = vld [vmem:[#allocation3 + $0x2d0] sm:$0xff]  ;;  %v3325_v39 = vld [vmem:[#allocation3 + $0x2e8] sm:$0xff]  ;;  %5054 = vrot.lane.b32.xlu1 %v5023_v41, %s8126_s24  ;;  %v6167_v44 = vcombine.low %v6145_v62, %v9548_v36  ;;  %v3328_v31 = vld [vmem:[#allocation3 + $0x300] sm:$0xff] }
 0x36e   : > { %3550 = vst.msk [vmem:[#allocation3 + $0x2f0] sm:$0xff] %vm2365_vm2, %v3438_v27  ;;  %v5209_v3 = vrot.slane %v9562_v0, %v9412_v22  ;;  %v3156_v15 = vpop.f32.mrb[207].mxu1  ;;  %v4524_v30 = vadd.f32 %v9071_v23, %v4412_v52  ;;  %v3439_v35 = vadd.f32 %v7883_v25, %v3327_v45  ;;  %v6194_v20 = vrot.slane %v6184_v54, %v9412_v22  ;;  %v3330_v51 = vld [vmem:[#allocation3 + $0x310] sm:$0xff]  ;;  %v4850_v37 = vld [vmem:[#allocation3 + $0x281] ss:$2 sm:$0xff] }
 0x36f   : > { %3548 = vst.msk [vmem:[#allocation3 + $0x2e0] sm:$0xff] %vm2365_vm2, %v3436_v55  ;;  %v3437_v63 = vadd.f32 %v3325_v39, %v3156_v15  ;;  %v4410_v50 = vld [vmem:[#allocation3 + $0x2c0] sm:$0xff]  ;;  %v6168_v58 = vcombine.low %v6159_v14, %v6166_v19  ;;  %v4852_v5 = vld [vmem:[#allocation3 + $0x291] ss:$2 sm:$0xff]  ;;  %v5202_v19 = vcombine.high %v9562_v0, %v9562_v0  ;;  %v6208_v45 = vrot.slane %v6186_v29, %v9412_v22  ;;  %v3329_v62 = vld [vmem:[#allocation3 + $0x308] sm:$0xff] }
 0x370   : > { %v5217_v43 = vcombine.high %v5209_v3, %v5209_v3  ;;  %v9576_v9 = vrot.slane %v5209_v3, %v9412_v22  ;;  %4636 = vst.msk [vmem:[#allocation3 + $0x2d0] sm:$0xff] %vm2365_vm2, %v4524_v30  ;;  %v4522_v23 = vadd.f32 %v4410_v50, %v9074_v10  ;;  %v4413_v11 = vld [vmem:[#allocation3 + $0x2d8] sm:$0xff]  ;;  %3551 = vst.msk [vmem:[#allocation3 + $0x2f8] sm:$0xff] %vm2365_vm2, %v3439_v35 }
 0x371   : > { %3549 = vst.msk [vmem:[#allocation3 + $0x2e8] sm:$0xff] %vm2365_vm2, %v3437_v63  ;;  %v4525_v53 = vadd.f32 %v10099_v28, %v4413_v11  ;;  %v4411_v1 = vld [vmem:[#allocation3 + $0x2c8] sm:$0xff]  ;;  %v6201_v10 = vrot.slane %v6185_v8, %v9412_v22  ;;  %v4744_v14 = vld [vmem:[#allocation3 + $0x2b0] ss:$2 sm:$0xff]  ;;  %v4856_v54 = vld [vmem:[#allocation3 + $0x2b1] ss:$2 sm:$0xff]  ;;  %v9601_v41 = vrot.slane %v6168_v58, %v9412_v22  ;;  %v4922_v11 = vmax.f32 %v4740_v26, %v4852_v5 }
 0x372   : > { %v9586_v17 = vrot.slane %v5217_v43, %v9412_v22  ;;  %v4742_v57 = vld [vmem:[#allocation3 + $0x2a0] ss:$2 sm:$0xff]  ;;  %v4854_v42 = vld [vmem:[#allocation3 + $0x2a1] ss:$2 sm:$0xff]  ;;  %4634 = vst.msk [vmem:[#allocation3 + $0x2c0] sm:$0xff] %vm2365_vm2, %v4522_v23  ;;  %v4523_v27 = vadd.f32 %v4411_v1, %v10100_v49  ;;  %v5953_v36 = vadd.f32 %v9480_v13, %v9576_v9  ;;  %v3331_v50 = vld [vmem:[#allocation3 + $0x318] sm:$0xff]  ;;  %v4921_v23 = vmax.f32 %v4738_v61, %v4850_v37 }
 0x373   : > { %v7886_v33 = vpop.f32.mrb[208].mxu1  ;;  %4637 = vst.msk [vmem:[#allocation3 + $0x2d8] sm:$0xff] %vm2365_vm2, %v4525_v53  ;;  %v4923_v52 = vmax.f32 %v4742_v57, %v4854_v42  ;;  %v10101_v8 = vld [vmem:[#allocation48_spill] sm:$0xff]  ;;  %v10102_v28 = vld [vmem:[#allocation49_spill] sm:$0xff]  ;;  %v4924_v1 = vmax.f32 %v4744_v14, %v4856_v54  ;;  %v6216_v57 = vcombine.low %v6194_v20, %v6201_v10  ;;  %v5216_v42 = vrot.slane %v5202_v19, %v9412_v22  ;;  %v10104_v5 = vld [vmem:[#allocation51_spill] sm:$0xff] }
 0x374   : > { %v5954_v55 = vadd.f32 %v9493_v4, %v9586_v17  ;;  %v3169_v25 = vpop.f32.mrb[209].mxu1  ;;  %4635 = vst.msk [vmem:[#allocation3 + $0x2c8] sm:$0xff] %vm2365_vm2, %v4523_v27  ;;  %v3442_v0 = vadd.f32 %v7886_v33, %v3330_v51  ;;  %v6175_v33 = vrot.slane %v6167_v44, %v9412_v22  ;;  %v10103_v51 = vld [vmem:[#allocation50_spill] sm:$0xff] }
 0x375   : > { %v4416_v3 = vld [vmem:[#allocation3 + $0x2f0] sm:$0xff]  ;;  %v3440_v15 = vadd.f32 %v3328_v31, %v3169_v25  ;;  %v7887_v39 = vpop.f32.mrb[210].mxu1  ;;  %v9612_v26 = vmax.f32 %v4921_v23, %v4923_v52  ;;  %v4958_v20 = vmax.f32 %v4922_v11, %v4924_v1  ;;  %v6224_v14 = vrot.slane %v6216_v57, %v9412_v22 }
 0x376   : > { %v4528_v30 = vadd.f32 %v10101_v8, %v4416_v3  ;;  %v6187_v35 = vcombine.low %v5953_v36, %v5954_v55  ;;  %v4414_v63 = vld [vmem:[#allocation3 + $0x2e0] sm:$0xff]  ;;  %v3172_v43 = vpop.f32.mrb[211].mxu1  ;;  %3554 = vst.msk [vmem:[#allocation3 + $0x310] sm:$0xff] %vm2365_vm2, %v3442_v0  ;;  %v3443_v53 = vadd.f32 %v7887_v39, %v3331_v50  ;;  %v6183_v55 = vcombine.low %v6175_v33, %v9601_v41  ;;  %v3334_v31 = vld [vmem:[#allocation3 + $0x330] sm:$0xff] }
 0x377   : > { %v4526_v58 = vadd.f32 %v4414_v63, %v10102_v28  ;;  %3552 = vst.msk [vmem:[#allocation3 + $0x300] sm:$0xff] %vm2365_vm2, %v3440_v15  ;;  %v3441_v29 = vadd.f32 %v3329_v62, %v3172_v43  ;;  %v4417_v27 = vld [vmem:[#allocation3 + $0x2f8] sm:$0xff]  ;;  %v5024_v19 = vrot.slane %v9612_v26, 7  ;;  %v5025_v44 = vrot.slane %v4958_v20, 7  ;;  %v3332_v15 = vld [vmem:[#allocation3 + $0x320] sm:$0xff] }
 0x378   : > { %4640 = vst.msk [vmem:[#allocation3 + $0x2f0] sm:$0xff] %vm2365_vm2, %v4528_v30  ;;  %v6215_v49 = vrot.slane %v6187_v35, %v9412_v22  ;;  %v4415_v61 = vld [vmem:[#allocation3 + $0x2e8] sm:$0xff]  ;;  %v4529_v37 = vadd.f32 %v10103_v51, %v4417_v27  ;;  %3555 = vst.msk [vmem:[#allocation3 + $0x318] sm:$0xff] %vm2365_vm2, %v3443_v53  ;;  %v5218_v54 = vcombine.high %v5216_v42, %v5216_v42  ;;  %v3335_v63 = vld [vmem:[#allocation3 + $0x338] sm:$0xff] }
 0x379   : > { %4638 = vst.msk [vmem:[#allocation3 + $0x2e0] sm:$0xff] %vm2365_vm2, %v4526_v58  ;;  %v4527_v36 = vadd.f32 %v4415_v61, %v10104_v5  ;;  %3553 = vst.msk [vmem:[#allocation3 + $0x308] sm:$0xff] %vm2365_vm2, %v3441_v29  ;;  %v5249_v41 = vcombine.high %v9586_v17, %v9586_v17  ;;  %v5026_v39 = vsel %vm4993_vm3, %v5024_v19, %v5025_v44  ;;  %v3333_v58 = vld [vmem:[#allocation3 + $0x328] sm:$0xff] }
 0x37a   : > { %v6217_v10 = vcombine.low %v6208_v45, %v6215_v49  ;;  %4641 = vst.msk [vmem:[#allocation3 + $0x2f8] sm:$0xff] %vm2365_vm2, %v4529_v37  ;;  %v5247_v50 = vcombine.high %v9576_v9, %v9576_v9  ;;  %5056 = vrot.lane.b32.xlu0 %v5026_v39, %s8126_s24  ;;  %v10106_v53 = vld [vmem:[#allocation53_spill] sm:$0xff]  ;;  %v9648_v49 = vrot.slane %v5216_v42, %v9412_v22 }
 0x37b   : > { %4639 = vst.msk [vmem:[#allocation3 + $0x2e8] sm:$0xff] %vm2365_vm2, %v4527_v36  ;;  %v7890_v25 = vpop.f32.mrb[212].mxu1  ;;  %v5246_v37 = vrot.slane %v5218_v54, %v9412_v22  ;;  %v9652_v5 = vadd.f32 %v9441_v32, %v5249_v41  ;;  %v10107_v36 = vld [vmem:[#allocation54_spill] sm:$0xff] }
 0x37c   : > { %v6231_v52 = vrot.slane %v6217_v10, %v9412_v22  ;;  %v3446_v3 = vadd.f32 %v7890_v25, %v3334_v31  ;;  %v5043_v0 = vpop.permute.xlu1 %5042  ;;  %v3185_v45 = vpop.f32.mrb[213].mxu1  ;;  %v10108_v10 = vld [vmem:[#allocation55_spill] sm:$0xff]  ;;  %v3338_v31 = vld [vmem:[#allocation3 + $0x350] sm:$0xff]  ;;  %v9673_v39 = vadd.f32 %v9468_v6, %v9648_v49 }
 0x37d   : > { %v5081_v8 = vsel %vm2365_vm2, %v9264_v16, %v5043_v0  ;;  %v3444_v30 = vadd.f32 %v3332_v15, %v3185_v45  ;;  %v7891_v35 = vpop.f32.mrb[214].mxu1  ;;  %v4420_v62 = vld [vmem:[#allocation3 + $0x310] sm:$0xff]  ;;  %v10105_v16 = vld [vmem:[#allocation52_spill] sm:$0xff] }
 0x37e   : > { %v6232_v43 = vcombine.low %v6224_v14, %v6231_v52  ;;  %v4418_v23 = vld [vmem:[#allocation3 + $0x300] sm:$0xff]  ;;  %3558 = vst.msk [vmem:[#allocation3 + $0x330] sm:$0xff] %vm2365_vm2, %v3446_v3  ;;  %v5250_v17 = vcombine.high %v5081_v8, %v5081_v8  ;;  %v5257_v11 = vrot.slane %v5081_v8, %v9412_v22  ;;  %v3188_v28 = vpop.f32.mrb[215].mxu1  ;;  %v4532_v9 = vadd.f32 %v10105_v16, %v4420_v62  ;;  %v4748_v15 = vld [vmem:[#allocation3 + $0x2d0] ss:$2 sm:$0xff] }
 0x37f   : > { %v4530_v29 = vadd.f32 %v4418_v23, %v10106_v53  ;;  %3556 = vst.msk [vmem:[#allocation3 + $0x320] sm:$0xff] %vm2365_vm2, %v3444_v30  ;;  %v3447_v1 = vadd.f32 %v7891_v35, %v3335_v63  ;;  %v3445_v57 = vadd.f32 %v3333_v58, %v3188_v28  ;;  %v4421_v61 = vld [vmem:[#allocation3 + $0x318] sm:$0xff]  ;;  %v5248_v52 = vcombine.high %v9648_v49, %v9648_v49  ;;  %v3336_v45 = vld [vmem:[#allocation3 + $0x340] sm:$0xff] }
 0x380   : > { %v7245_v27 = vpack.c.bf16 %v6232_v43, %v6183_v55  ;;  %v4419_v33 = vld [vmem:[#allocation3 + $0x308] sm:$0xff]  ;;  %v5265_v51 = vcombine.high %v5257_v11, %v5257_v11  ;;  %4644 = vst.msk [vmem:[#allocation3 + $0x310] sm:$0xff] %vm2365_vm2, %v4532_v9  ;;  %v4533_v20 = vadd.f32 %v10107_v36, %v4421_v61  ;;  %v5264_v42 = vrot.slane %v5250_v17, %v9412_v22  ;;  %v4860_v41 = vld [vmem:[#allocation3 + $0x2d1] ss:$2 sm:$0xff]  ;;  %v10109_v23 = vld [vmem:[#allocation56_spill] sm:$0xff] }
 0x381   : > { %4642 = vst.msk [vmem:[#allocation3 + $0x300] sm:$0xff] %vm2365_vm2, %v4530_v29  ;;  %v4531_v19 = vadd.f32 %v4419_v33, %v10108_v10  ;;  %3559 = vst.msk [vmem:[#allocation3 + $0x338] sm:$0xff] %vm2365_vm2, %v3447_v1  ;;  %v9663_v55 = vadd.f32 %v9436_v34, %v5247_v50  ;;  %v5273_v44 = vrot.slane %v5257_v11, %v9412_v22  ;;  %v4746_v43 = vld [vmem:[#allocation3 + $0x2c0] ss:$2 sm:$0xff]  ;;  %v4858_v62 = vld [vmem:[#allocation3 + $0x2c1] ss:$2 sm:$0xff] }
 0x382   : > { %3557 = vst.msk [vmem:[#allocation3 + $0x328] sm:$0xff] %vm2365_vm2, %v3445_v57  ;;  %7246 = vst [vmem:[%s9642_s6] sm:$0xff] %v7245_v27   ;;  %v4750_v14 = vld [vmem:[#allocation3 + $0x2e0] ss:$2 sm:$0xff]  ;;  %v4862_v54 = vld [vmem:[#allocation3 + $0x2e1] ss:$2 sm:$0xff]  ;;  %v5287_v3 = vrot.slane %v5265_v51, %v9412_v22  ;;  %v9676_v8 = vadd.f32 %v9472_v24, %v5246_v37  ;;  %v5266_v11 = vcombine.high %v5264_v42, %v5264_v42 }
 0x383   : > { %4645 = vst.msk [vmem:[#allocation3 + $0x318] sm:$0xff] %vm2365_vm2, %v4533_v20  ;;  %4643 = vst.msk [vmem:[#allocation3 + $0x308] sm:$0xff] %vm2365_vm2, %v4531_v19  ;;  %v7894_v25 = vpop.f32.mrb[216].mxu1  ;;  %v6233_v30 = vcombine.low %v9663_v55, %v9652_v5  ;;  %v5280_v28 = vrot.slane %v5264_v42, %v9412_v22  ;;  %v4752_v9 = vld [vmem:[#allocation3 + $0x2f0] ss:$2 sm:$0xff]  ;;  %v4927_v29 = vmax.f32 %v4750_v14, %v4862_v54  ;;  %v10110_v57 = vld [vmem:[#allocation57_spill] sm:$0xff] }
 0x384   : > { %v3201_v0 = vpop.f32.mrb[217].mxu1  ;;  %v3450_v63 = vadd.f32 %v7894_v25, %v3338_v31  ;;  %v4864_v53 = vld [vmem:[#allocation3 + $0x2f1] ss:$2 sm:$0xff]  ;;  %v5295_v1 = vcombine.high %v5273_v44, %v5273_v44  ;;  %v3337_v33 = vld [vmem:[#allocation3 + $0x348] sm:$0xff]  ;;  %v4926_v51 = vmax.f32 %v4748_v15, %v4860_v41  ;;  %v5297_v37 = vcombine.high %v5287_v3, %v5287_v3 }
 0x385   : > { %v4424_v35 = vld [vmem:[#allocation3 + $0x330] sm:$0xff]  ;;  %v7895_v50 = vpop.f32.mrb[218].mxu1  ;;  %v3448_v27 = vadd.f32 %v3336_v45, %v3201_v0  ;;  %v3339_v61 = vld [vmem:[#allocation3 + $0x358] sm:$0xff]  ;;  %v4925_v42 = vmax.f32 %v4746_v43, %v4858_v62  ;;  %v9686_v25 = vadd.f32 %v9464_v21, %v5273_v44  ;;  %v4928_v45 = vmax.f32 %v4752_v9, %v4864_v53 }
 0x386   : > { %v4536_v17 = vadd.f32 %v10109_v23, %v4424_v35  ;;  %v4422_v58 = vld [vmem:[#allocation3 + $0x320] sm:$0xff]  ;;  %v3204_v16 = vpop.f32.mrb[219].mxu1  ;;  %3562 = vst.msk [vmem:[#allocation3 + $0x350] sm:$0xff] %vm2365_vm2, %v3450_v63  ;;  %v3451_v10 = vadd.f32 %v7895_v50, %v3339_v61  ;;  %v10111_v31 = vld [vmem:[#allocation58_spill] sm:$0xff]  ;;  %v10112_v54 = vld [vmem:[#allocation59_spill] sm:$0xff]  ;;  %v6234_v15 = vcombine.low %v9673_v39, %v9676_v8  ;;  %v5294_v41 = vrot.slane %v5266_v11, %v9412_v22 }
 0x387   : > { %v4534_v49 = vadd.f32 %v4422_v58, %v10110_v57  ;;  %v3449_v19 = vadd.f32 %v3337_v33, %v3204_v16  ;;  %3560 = vst.msk [vmem:[#allocation3 + $0x340] sm:$0xff] %vm2365_vm2, %v3448_v27  ;;  %v5296_v35 = vcombine.high %v5280_v28, %v5280_v28  ;;  %v9697_v44 = vmax.f32 %v4925_v42, %v4927_v29  ;;  %v3342_v62 = vld [vmem:[#allocation3 + $0x370] sm:$0xff]  ;;  %v3340_v16 = vld [vmem:[#allocation3 + $0x360] sm:$0xff] }
 0x388   : > { %4648 = vst.msk [vmem:[#allocation3 + $0x330] sm:$0xff] %vm2365_vm2, %v4536_v17  ;;  %v4425_v36 = vld [vmem:[#allocation3 + $0x338] sm:$0xff]  ;;  %3563 = vst.msk [vmem:[#allocation3 + $0x358] sm:$0xff] %vm2365_vm2, %v3451_v10  ;;  %v5959_v63 = vadd.f32 %v9450_v38, %v5248_v52  ;;  %v9701_v50 = vadd.f32 %v9480_v13, %v5287_v3  ;;  %v9704_v43 = vadd.f32 %v9493_v4, %v5295_v1 }
 0x389   : > { %v4423_v20 = vld [vmem:[#allocation3 + $0x328] sm:$0xff]  ;;  %4646 = vst.msk [vmem:[#allocation3 + $0x320] sm:$0xff] %vm2365_vm2, %v4534_v49  ;;  %v4537_v14 = vadd.f32 %v10111_v31, %v4425_v36  ;;  %3561 = vst.msk [vmem:[#allocation3 + $0x348] sm:$0xff] %vm2365_vm2, %v3449_v19  ;;  %v4960_v39 = vmax.f32 %v4926_v51, %v4928_v45  ;;  %v5963_v23 = vadd.f32 %v9436_v34, %v5297_v37  ;;  %v5027_v11 = vrot.slane %v9697_v44, 7  ;;  %v3343_v49 = vld [vmem:[#allocation3 + $0x378] sm:$0xff] }
 0x38a   : > { %v4535_v0 = vadd.f32 %v4423_v20, %v10112_v54  ;;  %v5964_v17 = vadd.f32 %v9441_v32, %v5280_v28  ;;  %v6235_v9 = vcombine.low %v5959_v63, %v9686_v25  ;;  %v5965_v27 = vadd.f32 %v9468_v6, %v5294_v41  ;;  %v3341_v36 = vld [vmem:[#allocation3 + $0x368] sm:$0xff] }
 0x38b   : > { %4649 = vst.msk [vmem:[#allocation3 + $0x338] sm:$0xff] %vm2365_vm2, %v4537_v14  ;;  %v7898_v8 = vpop.f32.mrb[220].mxu1  ;;  %v5028_v53 = vrot.slane %v4960_v39, 7  ;;  %v5966_v28 = vadd.f32 %v9472_v24, %v5296_v35  ;;  %v4754_v19 = vld [vmem:[#allocation3 + $0x300] ss:$2 sm:$0xff]  ;;  %v6236_v42 = vcombine.low %v9701_v50, %v9704_v43  ;;  %v9733_v45 = vrot.slane %v6233_v30, %v9412_v22 }
 0x38c   : > { %4647 = vst.msk [vmem:[#allocation3 + $0x328] sm:$0xff] %vm2365_vm2, %v4535_v0  ;;  %v3454_v52 = vadd.f32 %v7898_v8, %v3342_v62  ;;  %v5045_v58 = vpop.permute.xlu0 %5044  ;;  %v3217_v3 = vpop.f32.mrb[221].mxu1  ;;  %v6282_v25 = vcombine.low %v5963_v23, %v5964_v17  ;;  %v4756_v0 = vld [vmem:[#allocation3 + $0x310] ss:$2 sm:$0xff]  ;;  %v9736_v41 = vrot.slane %v6234_v15, %v9412_v22  ;;  %v4868_v43 = vld [vmem:[#allocation3 + $0x311] ss:$2 sm:$0xff]  ;;  %v6257_v39 = vrot.slane %v6235_v9, %v9412_v22 }
 0x38d   : > { %v9714_v29 = vsel %vm2365_vm2, %v9301_v59, %v5045_v58  ;;  %v3452_v1 = vadd.f32 %v3340_v16, %v3217_v3  ;;  %v7899_v57 = vpop.f32.mrb[222].mxu1  ;;  %v4428_v61 = vld [vmem:[#allocation3 + $0x350] sm:$0xff]  ;;  %v5029_v59 = vsel %vm4993_vm3, %v5027_v11, %v5028_v53  ;;  %v6283_v8 = vcombine.low %v5965_v27, %v5966_v28 }
 0x38e   : > { %3566 = vst.msk [vmem:[#allocation3 + $0x370] sm:$0xff] %vm2365_vm2, %v3454_v52  ;;  %v5305_v33 = vrot.slane %v9714_v29, %v9412_v22  ;;  %v3455_v51 = vadd.f32 %v7899_v57, %v3343_v49  ;;  %v3220_v37 = vpop.f32.mrb[223].mxu1  ;;  %v4540_v20 = vadd.f32 %v9280_v40, %v4428_v61  ;;  %v4426_v31 = vld [vmem:[#allocation3 + $0x340] sm:$0xff]  ;;  %5058 = vrot.lane.b32.xlu1 %v5029_v59, %s8126_s24 }
 0x38f   : > { %3564 = vst.msk [vmem:[#allocation3 + $0x360] sm:$0xff] %vm2365_vm2, %v3452_v1  ;;  %v3453_v10 = vadd.f32 %v3341_v36, %v3220_v37  ;;  %v4866_v40 = vld [vmem:[#allocation3 + $0x301] ss:$2 sm:$0xff]  ;;  %v4538_v35 = vadd.f32 %v4426_v31, %v9283_v2  ;;  %v4429_v63 = vld [vmem:[#allocation3 + $0x358] sm:$0xff]  ;;  %v6264_v58 = vrot.slane %v6236_v42, %v9412_v22  ;;  %v6292_v3 = vrot.slane %v6282_v25, %v9412_v22 }
 0x390   : > { %v5313_v14 = vcombine.high %v5305_v33, %v5305_v33  ;;  %v5321_v54 = vrot.slane %v5305_v33, %v9412_v22  ;;  %3567 = vst.msk [vmem:[#allocation3 + $0x378] sm:$0xff] %vm2365_vm2, %v3455_v51  ;;  %4652 = vst.msk [vmem:[#allocation3 + $0x350] sm:$0xff] %vm2365_vm2, %v4540_v20  ;;  %v4427_v50 = vld [vmem:[#allocation3 + $0x348] sm:$0xff]  ;;  %v4541_v62 = vadd.f32 %v9285_v46, %v4429_v63 }
 0x391   : > { %3565 = vst.msk [vmem:[#allocation3 + $0x368] sm:$0xff] %vm2365_vm2, %v3453_v10  ;;  %v4539_v5 = vadd.f32 %v4427_v50, %v9287_v7  ;;  %4650 = vst.msk [vmem:[#allocation3 + $0x340] sm:$0xff] %vm2365_vm2, %v4538_v35  ;;  %v4929_v11 = vmax.f32 %v4754_v19, %v4866_v40  ;;  %v4930_v46 = vmax.f32 %v4756_v0, %v4868_v43 }
 0x392   : > { %v4760_v30 = vld [vmem:[#allocation3 + $0x330] ss:$2 sm:$0xff]  ;;  %v5335_v23 = vrot.slane %v5313_v14, %v9412_v22  ;;  %v5343_v2 = vcombine.high %v5321_v54, %v5321_v54  ;;  %v4872_v17 = vld [vmem:[#allocation3 + $0x331] ss:$2 sm:$0xff]  ;;  %4653 = vst.msk [vmem:[#allocation3 + $0x358] sm:$0xff] %vm2365_vm2, %v4541_v62  ;;  %v5967_v9 = vadd.f32 %v9450_v38, %v5321_v54  ;;  %v6299_v49 = vrot.slane %v6283_v8, %v9412_v22 }
 0x393   : > { %v4758_v55 = vld [vmem:[#allocation3 + $0x320] ss:$2 sm:$0xff]  ;;  %v4870_v15 = vld [vmem:[#allocation3 + $0x321] ss:$2 sm:$0xff]  ;;  %4651 = vst.msk [vmem:[#allocation3 + $0x348] sm:$0xff] %vm2365_vm2, %v4539_v5  ;;  %v4932_v7 = vmax.f32 %v4760_v30, %v4872_v17  ;;  %v6266_v25 = vcombine.low %v6257_v39, %v6264_v58  ;;  %v5298_v50 = vcombine.high %v9714_v29, %v9714_v29 }
 0x394   : > { %v4931_v52 = vmax.f32 %v4758_v55, %v4870_v15  ;;  %v5345_v16 = vcombine.high %v5335_v23, %v5335_v23  ;;  %v5968_v53 = vadd.f32 %v9464_v21, %v5335_v23  ;;  %v5969_v27 = vadd.f32 %v9480_v13, %v5343_v2 }
 0x395   : > { %v4432_v1 = vld [vmem:[#allocation3 + $0x370] sm:$0xff]  ;;  %v4962_v33 = vmax.f32 %v4930_v46, %v4932_v7  ;;  %v6314_v54 = vcombine.low %v6292_v3, %v6299_v49  ;;  %v6280_v35 = vrot.slane %v6266_v25, %v9412_v22  ;;  %v5312_v29 = vrot.slane %v5298_v50, %v9412_v22 }
 0x396   : > { %v9752_v57 = vmax.f32 %v4929_v11, %v4931_v52  ;;  %v4544_v28 = vadd.f32 %v9303_v60, %v4432_v1  ;;  %v4430_v61 = vld [vmem:[#allocation3 + $0x360] sm:$0xff]  ;;  %v5970_v51 = vadd.f32 %v9493_v4, %v5345_v16  ;;  %v6284_v37 = vcombine.low %v5967_v9, %v5968_v53 }
 0x397   : > { %v4542_v36 = vadd.f32 %v4430_v61, %v9307_v12  ;;  %v4433_v20 = vld [vmem:[#allocation3 + $0x378] sm:$0xff]  ;;  %v5031_v42 = vrot.slane %v4962_v33, 7  ;;  %v6265_v12 = vcombine.low %v9733_v45, %v9736_v41  ;;  %v6322_v39 = vrot.slane %v6314_v54, %v9412_v22 }
 0x398   : > { %v5030_v59 = vrot.slane %v9752_v57, 7  ;;  %4656 = vst.msk [vmem:[#allocation3 + $0x370] sm:$0xff] %vm2365_vm2, %v4544_v28  ;;  %v4545_v10 = vadd.f32 %v9312_v18, %v4433_v20  ;;  %v4431_v19 = vld [vmem:[#allocation3 + $0x368] sm:$0xff]  ;;  %v6285_v31 = vcombine.low %v5969_v27, %v5970_v51  ;;  %v6306_v0 = vrot.slane %v6284_v37, %v9412_v22 }
 0x399   : > { %4654 = vst.msk [vmem:[#allocation3 + $0x360] sm:$0xff] %vm2365_vm2, %v4542_v36  ;;  %v4543_v60 = vadd.f32 %v4431_v19, %v9317_v48  ;;  %v6273_v43 = vrot.slane %v6265_v12, %v9412_v22  ;;  %v4764_v30 = vld [vmem:[#allocation3 + $0x350] ss:$2 sm:$0xff]  ;;  %v4876_v2 = vld [vmem:[#allocation3 + $0x351] ss:$2 sm:$0xff]  ;;  %v5314_v27 = vcombine.high %v5312_v29, %v5312_v29  ;;  %v5328_v28 = vrot.slane %v5312_v29, %v9412_v22 }
 0x39a   : > { %4657 = vst.msk [vmem:[#allocation3 + $0x378] sm:$0xff] %vm2365_vm2, %v4545_v10  ;;  %v5032_v14 = vsel %vm4993_vm3, %v5030_v59, %v5031_v42  ;;  %v6313_v18 = vrot.slane %v6285_v31, %v9412_v22  ;;  %v4762_v62 = vld [vmem:[#allocation3 + $0x340] ss:$2 sm:$0xff]  ;;  %v4874_v5 = vld [vmem:[#allocation3 + $0x341] ss:$2 sm:$0xff]  ;;  %v4934_v53 = vmax.f32 %v4764_v30, %v4876_v2 }
 0x39b   : > { %4655 = vst.msk [vmem:[#allocation3 + $0x368] sm:$0xff] %vm2365_vm2, %v4543_v60  ;;  %5060 = vrot.lane.b32.xlu0 %v5032_v14, %s8126_s24  ;;  %v6281_v15 = vcombine.low %v6273_v43, %v6280_v35  ;;  %v4933_v3 = vmax.f32 %v4762_v62, %v4874_v5  ;;  %v5342_v10 = vrot.slane %v5314_v27, %v9412_v22 }
 0x39c   : > { %v5047_v40 = vpop.permute.xlu1 %5046  ;;  %v6315_v48 = vcombine.low %v6306_v0, %v6313_v18  ;;  %v5344_v42 = vcombine.high %v5328_v28, %v5328_v28 }
 0x39d   : > { %v5083_v63 = vsel %vm2365_vm2, %v9338_v47, %v5047_v40  ;;  %v10113_v40 = vld [vmem:[#allocation4_spill] sm:$0xff] }
 0x39e   : > { %v5346_v45 = vcombine.high %v5083_v63, %v5083_v63  ;;  %v5353_v41 = vrot.slane %v5083_v63, %v9412_v22  ;;  %v6329_v8 = vrot.slane %v6315_v48, %v9412_v22  ;;  %v5972_v48 = vadd.f32 %v9441_v32, %v5342_v10 }
 0x3a0   : > { %v5361_v55 = vcombine.high %v5353_v41, %v5353_v41  ;;  %v6330_v23 = vcombine.low %v6322_v39, %v6329_v8  ;;  %v5360_v11 = vrot.slane %v5346_v45, %v9412_v22  ;;  %v5369_v1 = vrot.slane %v5353_v41, %v9412_v22 }
 0x3a1   : > { %v4768_v47 = vld [vmem:[#allocation3 + $0x370] ss:$2 sm:$0xff]  ;;  %v4880_v17 = vld [vmem:[#allocation3 + $0x371] ss:$2 sm:$0xff]  ;;  %v5973_v45 = vadd.f32 %v9468_v6, %v5344_v42 }
 0x3a2   : > { %v4766_v52 = vld [vmem:[#allocation3 + $0x360] ss:$2 sm:$0xff]  ;;  %v4878_v58 = vld [vmem:[#allocation3 + $0x361] ss:$2 sm:$0xff]  ;;  %v7250_v46 = vpack.c.bf16 %v6330_v23, %v6281_v15  ;;  %v5383_v7 = vrot.slane %v5361_v55, %v9412_v22  ;;  %v4936_v9 = vmax.f32 %v4768_v47, %v4880_v17  ;;  %v5362_v33 = vcombine.high %v5360_v11, %v5360_v11 }
 0x3a3   : > { %v4935_v16 = vmax.f32 %v4766_v52, %v4878_v58  ;;  %v5376_v51 = vrot.slane %v5360_v11, %v9412_v22  ;;  %v5391_v59 = vcombine.high %v5369_v1, %v5369_v1  ;;  %v5974_v14 = vadd.f32 %v9472_v24, %v5369_v1 }
 0x3a4   : > { %7272 = vst [vmem:[%s9642_s6 + $0x8] sm:$0xff] %v7250_v46   ;;  %v4964_v61 = vmax.f32 %v4934_v53, %v4936_v9  ;;  %v5393_v37 = vcombine.high %v5383_v7, %v5383_v7  ;;  %v5390_v25 = vrot.slane %v5362_v33, %v9412_v22  ;;  %v5975_v54 = vadd.f32 %v9450_v38, %v5383_v7 }
 0x3a5   : > { %v9786_v49 = vmax.f32 %v4933_v3, %v4935_v16  ;;  %v5392_v31 = vcombine.high %v5376_v51, %v5376_v51  ;;  %v5976_v0 = vadd.f32 %v9464_v21, %v5391_v59  ;;  %v5978_v18 = vadd.f32 %v9493_v4, %v5376_v51 }
 0x3a6   : > { %v5034_v20 = vrot.slane %v4964_v61, 7  ;;  %v5977_v60 = vadd.f32 %v9480_v13, %v5393_v37  ;;  %v5979_v41 = vadd.f32 %v9436_v34, %v5390_v25  ;;  %v5971_v55 = vadd.f32 %v9436_v34, %v5328_v28 }
 0x3a7   : > { %v5033_v36 = vrot.slane %v9786_v49, 7  ;;  %v5980_v43 = vadd.f32 %v9441_v32, %v5392_v31  ;;  %v6332_v30 = vcombine.low %v5973_v45, %v5974_v14  ;;  %v6333_v15 = vcombine.low %v5975_v54, %v5976_v0 }
 0x3a8   : > { %v6334_v39 = vcombine.low %v5977_v60, %v5978_v18  ;;  %v6331_v29 = vcombine.low %v5971_v55, %v5972_v48  ;;  %v10114_v48 = vld [vmem:[#allocation5_spill] sm:$0xff] }
 0x3a9   : > { %v5035_v19 = vsel %vm4993_vm3, %v5033_v36, %v5034_v20  ;;  %v6380_v52 = vcombine.low %v5979_v41, %v5980_v43  ;;  %v6348_v16 = vrot.slane %v6332_v30, %v9412_v22  ;;  %v6355_v9 = vrot.slane %v6333_v15, %v9412_v22 }
 0x3aa   : > { %5062 = vrot.lane.b32.xlu1 %v5035_v19, %s8126_s24  ;;  %v6362_v11 = vrot.slane %v6334_v39, %v9412_v22  ;;  %v6341_v33 = vrot.slane %v6331_v29, %v9412_v22  ;;  %v10115_v39 = vld [vmem:[#allocation6_spill] sm:$0xff] }
 0x3ab   : > { %v6390_v51 = vrot.slane %v6380_v52, %v9412_v22 }
 0x3ac   : > { %v5049_v12 = vpop.permute.xlu0 %5048  ;;  %v6364_v37 = vcombine.low %v6355_v9, %v6362_v11  ;;  %v6363_v10 = vcombine.low %v6341_v33, %v6348_v16 }
 0x3ad   : > { %v5084_v35 = vsel %vm2365_vm2, %v10113_v40, %v5049_v12 }
 0x3ae   : > { %v5394_v63 = vcombine.high %v5084_v35, %v5084_v35  ;;  %v5401_v50 = vrot.slane %v5084_v35, %v9412_v22  ;;  %v6378_v31 = vrot.slane %v6364_v37, %v9412_v22  ;;  %v6371_v14 = vrot.slane %v6363_v10, %v9412_v22 }
 0x3b0   : > { %v5408_v8 = vrot.slane %v5394_v63, %v9412_v22  ;;  %v5409_v62 = vcombine.high %v5401_v50, %v5401_v50  ;;  %v5417_v5 = vrot.slane %v5401_v50, %v9412_v22  ;;  %v6379_v0 = vcombine.low %v6371_v14, %v6378_v31 }
 0x3b2   : > { %v5410_v23 = vcombine.high %v5408_v8, %v5408_v8  ;;  %v9811_v47 = vrot.slane %v5408_v8, %v9412_v22  ;;  %v5431_v2 = vrot.slane %v5409_v62, %v9412_v22  ;;  %v5439_v17 = vcombine.high %v5417_v5, %v5417_v5 }
 0x3b3   : > { %v5981_v46 = vadd.f32 %v9468_v6, %v5417_v5 }
 0x3b4   : > { %v5438_v58 = vrot.slane %v5410_v23, %v9412_v22  ;;  %v5441_v3 = vcombine.high %v5431_v2, %v5431_v2  ;;  %v5982_v7 = vadd.f32 %v9472_v24, %v5431_v2  ;;  %v5983_v53 = vadd.f32 %v9450_v38, %v5439_v17 }
 0x3b5   : > { %v5985_v27 = vadd.f32 %v9480_v13, %v9811_v47 }
 0x3b6   : > { %v5984_v1 = vadd.f32 %v9464_v21, %v5441_v3  ;;  %v5986_v28 = vadd.f32 %v9493_v4, %v5438_v58  ;;  %v6381_v61 = vcombine.low %v5981_v46, %v5982_v7 }
 0x3b8   : > { %v6382_v36 = vcombine.low %v5983_v53, %v5984_v1  ;;  %v6383_v20 = vcombine.low %v5985_v27, %v5986_v28  ;;  %v6397_v59 = vrot.slane %v6381_v61, %v9412_v22  ;;  %v5440_v61 = vcombine.high %v9811_v47, %v9811_v47 }
 0x3ba   : > { %v6404_v19 = vrot.slane %v6382_v36, %v9412_v22  ;;  %v6411_v42 = vrot.slane %v6383_v20, %v9412_v22  ;;  %v6412_v25 = vcombine.low %v6390_v51, %v6397_v59  ;;  %v5987_v14 = vadd.f32 %v9436_v34, %v5440_v61 }
 0x3bc   : > { %v6413_v60 = vcombine.low %v6404_v19, %v6411_v42  ;;  %v6420_v12 = vrot.slane %v6412_v25, %v9412_v22  ;;  %v5051_v35 = vpop.permute.xlu1 %5050 }
 0x3bd   : > { %v5085_v63 = vsel %vm2365_vm2, %v10114_v48, %v5051_v35 }
 0x3be   : > { %v6427_v54 = vrot.slane %v6413_v60, %v9412_v22  ;;  %v5449_v50 = vrot.slane %v5085_v63, %v9412_v22  ;;  %v5442_v45 = vcombine.high %v5085_v63, %v5085_v63 }
 0x3c0   : > { %v6428_v18 = vcombine.low %v6420_v12, %v6427_v54  ;;  %v5457_v43 = vcombine.high %v5449_v50, %v5449_v50  ;;  %v5456_v62 = vrot.slane %v5442_v45, %v9412_v22  ;;  %v5465_v17 = vrot.slane %v5449_v50, %v9412_v22 }
 0x3c2   : > { %v7255_v40 = vpack.c.bf16 %v6428_v18, %v6379_v0  ;;  %v5479_v15 = vrot.slane %v5457_v43, %v9412_v22  ;;  %v5458_v23 = vcombine.high %v5456_v62, %v5456_v62  ;;  %v5472_v2 = vrot.slane %v5456_v62, %v9412_v22 }
 0x3c3   : > { %v5487_v7 = vcombine.high %v5465_v17, %v5465_v17  ;;  %v5988_v10 = vadd.f32 %v9441_v32, %v5465_v17 }
 0x3c4   : > { %7273 = vst [vmem:[%s9642_s6 + $0x10] sm:$0xff] %v7255_v40   ;;  %v5489_v52 = vcombine.high %v5479_v15, %v5479_v15  ;;  %v5486_v58 = vrot.slane %v5458_v23, %v9412_v22  ;;  %v5488_v3 = vcombine.high %v5472_v2, %v5472_v2  ;;  %v5989_v33 = vadd.f32 %v9468_v6, %v5479_v15 }
 0x3c5   : > { %v5990_v51 = vadd.f32 %v9472_v24, %v5487_v7  ;;  %v5992_v37 = vadd.f32 %v9464_v21, %v5472_v2  ;;  %v6429_v48 = vcombine.low %v5987_v14, %v5988_v10 }
 0x3c6   : > { %v5991_v53 = vadd.f32 %v9450_v38, %v5489_v52  ;;  %v5993_v1 = vadd.f32 %v9480_v13, %v5486_v58  ;;  %v5994_v27 = vadd.f32 %v9493_v4, %v5488_v3 }
 0x3c7   : > { %v6430_v12 = vcombine.low %v5989_v33, %v5990_v51 }
 0x3c8   : > { %v6431_v19 = vcombine.low %v5991_v53, %v5992_v37  ;;  %v6432_v25 = vcombine.low %v5993_v1, %v5994_v27 }
 0x3c9   : > { %v6446_v43 = vrot.slane %v6430_v12, %v9412_v22 }
 0x3ca   : > { %v6453_v50 = vrot.slane %v6431_v19, %v9412_v22  ;;  %v6460_v45 = vrot.slane %v6432_v25, %v9412_v22 }
 0x3cc   : > { %v5053_v41 = vpop.permute.xlu0 %5052 }
 0x3cd   : > { %v5086_v8 = vsel %vm2365_vm2, %v10115_v39, %v5053_v41 }
 0x3ce   : > { %v5497_v5 = vrot.slane %v5086_v8, %v9412_v22  ;;  %v5490_v55 = vcombine.high %v5086_v8, %v5086_v8 }
 0x3d0   : > { %v5505_v30 = vcombine.high %v5497_v5, %v5497_v5  ;;  %v5504_v29 = vrot.slane %v5490_v55, %v9412_v22  ;;  %v5513_v46 = vrot.slane %v5497_v5, %v9412_v22  ;;  %v6439_v55 = vrot.slane %v6429_v48, %v9412_v22 }
 0x3d2   : > { %v5527_v11 = vrot.slane %v5505_v30, %v9412_v22  ;;  %v5506_v16 = vcombine.high %v5504_v29, %v5504_v29  ;;  %v5535_v28 = vcombine.high %v5513_v46, %v5513_v46  ;;  %v5520_v36 = vrot.slane %v5504_v29, %v9412_v22 }
 0x3d3   : > { %v5995_v18 = vadd.f32 %v9436_v34, %v5513_v46  ;;  %v6462_v30 = vcombine.low %v6453_v50, %v6460_v45  ;;  %v6461_v2 = vcombine.low %v6439_v55, %v6446_v43 }
 0x3d4   : > { %v5537_v9 = vcombine.high %v5527_v11, %v5527_v11  ;;  %v5534_v20 = vrot.slane %v5506_v16, %v9412_v22  ;;  %v5996_v31 = vadd.f32 %v9441_v32, %v5527_v11  ;;  %v5997_v47 = vadd.f32 %v9468_v6, %v5535_v28 }
 0x3d5   : > { %v5536_v0 = vcombine.high %v5520_v36, %v5520_v36  ;;  %v6476_v52 = vrot.slane %v6462_v30, %v9412_v22  ;;  %v6469_v3 = vrot.slane %v6461_v2, %v9412_v22 }
 0x3d6   : > { %v5998_v59 = vadd.f32 %v9472_v24, %v5537_v9  ;;  %v6000_v40 = vadd.f32 %v9464_v21, %v5534_v20  ;;  %v6478_v41 = vcombine.low %v5995_v18, %v5996_v31 }
 0x3d7   : > { %v6001_v62 = vadd.f32 %v9480_v13, %v5536_v0  ;;  %v6477_v53 = vcombine.low %v6469_v3, %v6476_v52 }
 0x3d8   : > { %v6479_v35 = vcombine.low %v5997_v47, %v5998_v59  ;;  %v6488_v15 = vrot.slane %v6478_v41, %v9412_v22 }
 0x3da   : > { %v6495_v8 = vrot.slane %v6479_v35, %v9412_v22 }
 0x3dc   : > { %v6510_v29 = vcombine.low %v6488_v15, %v6495_v8 }
 0x3de   : > { %v6518_v46 = vrot.slane %v6510_v29, %v9412_v22 }
 0x3df   : > { %v5055_v42 = vpop.permute.xlu1 %5054 }
 0x3e0   : > { %v5087_v60 = vsel %vm2365_vm2, %v9543_v56, %v5055_v42  ;;  %v5999_v56 = vadd.f32 %v9450_v38, %v5520_v36 }
 0x3e1   : > { %v5545_v54 = vrot.slane %v5087_v60, %v9412_v22  ;;  %v5538_v1 = vcombine.high %v5087_v60, %v5087_v60 }
 0x3e2   : > { %v6480_v39 = vcombine.low %v5999_v56, %v6000_v40 }
 0x3e3   : > { %v5561_v63 = vrot.slane %v5545_v54, %v9412_v22  ;;  %v5552_v51 = vrot.slane %v5538_v1, %v9412_v22  ;;  %v5553_v37 = vcombine.high %v5545_v54, %v5545_v54 }
 0x3e4   : > { %v6502_v17 = vrot.slane %v6480_v39, %v9412_v22 }
 0x3e5   : > { %v6002_v5 = vadd.f32 %v9493_v4, %v5561_v63  ;;  %v5554_v59 = vcombine.high %v5552_v51, %v5552_v51  ;;  %v5568_v10 = vrot.slane %v5552_v51, %v9412_v22  ;;  %v5575_v19 = vrot.slane %v5553_v37, %v9412_v22 }
 0x3e6   : > { %v5583_v54 = vcombine.high %v5561_v63, %v5561_v63 }
 0x3e7   : > { %v6481_v23 = vcombine.low %v6001_v62, %v6002_v5  ;;  %v5582_v31 = vrot.slane %v5554_v59, %v9412_v22  ;;  %v5584_v47 = vcombine.high %v5568_v10, %v5568_v10  ;;  %v5585_v60 = vcombine.high %v5575_v19, %v5575_v19 }
 0x3e8   : > { %v6003_v39 = vadd.f32 %v9436_v34, %v5575_v19  ;;  %v6004_v8 = vadd.f32 %v9441_v32, %v5583_v54  ;;  %v6006_v62 = vadd.f32 %v9472_v24, %v5568_v10 }
 0x3e9   : > { %v6509_v11 = vrot.slane %v6481_v23, %v9412_v22  ;;  %v6005_v35 = vadd.f32 %v9468_v6, %v5585_v60  ;;  %v6007_v48 = vadd.f32 %v9450_v38, %v5582_v31  ;;  %v6008_v50 = vadd.f32 %v9464_v21, %v5584_v47 }
 0x3eb   : > { %v6511_v58 = vcombine.low %v6502_v17, %v6509_v11  ;;  %v6528_v2 = vcombine.low %v6005_v35, %v6006_v62  ;;  %v6529_v17 = vcombine.low %v6007_v48, %v6008_v50 }
 0x3ec   : > { %v5057_v16 = vpop.permute.xlu0 %5056 }
 0x3ed   : > { %v6525_v7 = vrot.slane %v6511_v58, %v9412_v22  ;;  %v5088_v9 = vsel %vm2365_vm2, %v9612_v26, %v5057_v16  ;;  %v6527_v58 = vcombine.low %v6003_v39, %v6004_v8  ;;  %v6551_v1 = vrot.slane %v6529_v17, %v9412_v22 }
 0x3ee   : > { %v5586_v28 = vcombine.high %v5088_v9, %v5088_v9  ;;  %v5593_v61 = vrot.slane %v5088_v9, %v9412_v22 }
 0x3ef   : > { %v6526_v27 = vcombine.low %v6518_v46, %v6525_v7  ;;  %v6537_v37 = vrot.slane %v6527_v58, %v9412_v22 }
 0x3f0   : > { %v5600_v36 = vrot.slane %v5586_v28, %v9412_v22  ;;  %v5601_v20 = vcombine.high %v5593_v61, %v5593_v61  ;;  %v5609_v25 = vrot.slane %v5593_v61, %v9412_v22 }
 0x3f1   : > { %v7260_v33 = vpack.c.bf16 %v6526_v27, %v6477_v53  ;;  %v6544_v53 = vrot.slane %v6528_v2, %v9412_v22 }
 0x3f2   : > { %v5602_v26 = vcombine.high %v5600_v36, %v5600_v36  ;;  %v5623_v42 = vrot.slane %v5601_v20, %v9412_v22  ;;  %v5616_v0 = vrot.slane %v5600_v36, %v9412_v22  ;;  %v5631_v18 = vcombine.high %v5609_v25, %v5609_v25 }
 0x3f3   : > { %7274 = vst [vmem:[%s9642_s6 + $0x18] sm:$0xff] %v7260_v33   ;;  %v6009_v56 = vadd.f32 %v9480_v13, %v5609_v25  ;;  %v6559_v19 = vcombine.low %v6537_v37, %v6544_v53 }
 0x3f4   : > { %v5630_v14 = vrot.slane %v5602_v26, %v9412_v22  ;;  %v5633_v12 = vcombine.high %v5623_v42, %v5623_v42  ;;  %v6010_v40 = vadd.f32 %v9493_v4, %v5623_v42  ;;  %v5632_v55 = vcombine.high %v5616_v0, %v5616_v0 }
 0x3f5   : > { %v6011_v30 = vadd.f32 %v9436_v34, %v5631_v18  ;;  %v6013_v15 = vadd.f32 %v9468_v6, %v5616_v0  ;;  %v6567_v18 = vrot.slane %v6559_v19, %v9412_v22 }
 0x3f6   : > { %v6012_v41 = vadd.f32 %v9441_v32, %v5633_v12  ;;  %v6014_v43 = vadd.f32 %v9472_v24, %v5630_v14  ;;  %v6530_v23 = vcombine.low %v6009_v56, %v6010_v40  ;;  %v6015_v16 = vadd.f32 %v9450_v38, %v5632_v55 }
 0x3f8   : > { %v6577_v52 = vcombine.low %v6013_v15, %v6014_v43  ;;  %v6558_v7 = vrot.slane %v6530_v23, %v9412_v22 }
 0x3fa   : > { %v6593_v61 = vrot.slane %v6577_v52, %v9412_v22  ;;  %v6560_v36 = vcombine.low %v6551_v1, %v6558_v7 }
 0x3fc   : > { %v6574_v14 = vrot.slane %v6560_v36, %v9412_v22 }
 0x3fe   : > { %v6575_v50 = vcombine.low %v6567_v18, %v6574_v14 }
 0x400   : > { %v5059_v45 = vpop.permute.xlu1 %5058 }
 0x401   : > { %v5089_v63 = vsel %vm2365_vm2, %v9697_v44, %v5059_v45  ;;  %v6576_v44 = vcombine.low %v6011_v30, %v6012_v41 }
 0x402   : > { %v5641_v5 = vrot.slane %v5089_v63, %v9412_v22  ;;  %v5634_v20 = vcombine.high %v5089_v63, %v5089_v63 }
 0x403   : > { %v6586_v28 = vrot.slane %v6576_v44, %v9412_v22 }
 0x404   : > { %v5649_v29 = vcombine.high %v5641_v5, %v5641_v5  ;;  %v5657_v11 = vrot.slane %v5641_v5, %v9412_v22  ;;  %v5648_v12 = vrot.slane %v5634_v20, %v9412_v22 }
 0x405   : > { %v6608_v42 = vcombine.low %v6586_v28, %v6593_v61 }
 0x406   : > { %v5671_v3 = vrot.slane %v5649_v29, %v9412_v22  ;;  %v5679_v46 = vcombine.high %v5657_v11, %v5657_v11  ;;  %v6016_v9 = vadd.f32 %v9464_v21, %v5657_v11  ;;  %v5650_v45 = vcombine.high %v5648_v12, %v5648_v12 }
 0x407   : > { %v6616_v40 = vrot.slane %v6608_v42, %v9412_v22  ;;  %v5664_v56 = vrot.slane %v5648_v12, %v9412_v22 }
 0x408   : > { %v6017_v27 = vadd.f32 %v9480_v13, %v5671_v3  ;;  %v6018_v33 = vadd.f32 %v9493_v4, %v5679_v46  ;;  %v6578_v51 = vcombine.low %v6015_v16, %v6016_v9  ;;  %v5681_v43 = vcombine.high %v5671_v3, %v5671_v3 }
 0x409   : > { %v5678_v5 = vrot.slane %v5650_v45, %v9412_v22  ;;  %v5680_v55 = vcombine.high %v5664_v56, %v5664_v56  ;;  %v6020_v23 = vadd.f32 %v9441_v32, %v5664_v56 }
 0x40a   : > { %v6579_v59 = vcombine.low %v6017_v27, %v6018_v33  ;;  %v6600_v25 = vrot.slane %v6578_v51, %v9412_v22  ;;  %v6019_v30 = vadd.f32 %v9436_v34, %v5681_v43 }
 0x40b   : > { %v6021_v11 = vadd.f32 %v9468_v6, %v5678_v5  ;;  %v6022_v44 = vadd.f32 %v9472_v24, %v5680_v55 }
 0x40c   : > { %v6607_v31 = vrot.slane %v6579_v59, %v9412_v22  ;;  %v6625_v58 = vcombine.low %v6019_v30, %v6020_v23 }
 0x40d   : > { %v5061_v10 = vpop.permute.xlu0 %5060  ;;  %v6626_v37 = vcombine.low %v6021_v11, %v6022_v44 }
 0x40e   : > { %v5090_v26 = vsel %vm2365_vm2, %v9752_v57, %v5061_v10  ;;  %v6609_v54 = vcombine.low %v6600_v25, %v6607_v31  ;;  %v6635_v36 = vrot.slane %v6625_v58, %v9412_v22 }
 0x40f   : > { %v5689_v47 = vrot.slane %v5090_v26, %v9412_v22  ;;  %v5682_v60 = vcombine.high %v5090_v26, %v5090_v26 }
 0x410   : > { %v6623_v57 = vrot.slane %v6609_v54, %v9412_v22 }
 0x411   : > { %v5697_v0 = vcombine.high %v5689_v47, %v5689_v47  ;;  %v5696_v35 = vrot.slane %v5682_v60, %v9412_v22  ;;  %v5705_v63 = vrot.slane %v5689_v47, %v9412_v22 }
 0x412   : > { %v6624_v41 = vcombine.low %v6616_v40, %v6623_v57 }
 0x413   : > { %v5719_v48 = vrot.slane %v5697_v0, %v9412_v22  ;;  %v5698_v8 = vcombine.high %v5696_v35, %v5696_v35  ;;  %v5727_v15 = vcombine.high %v5705_v63, %v5705_v63  ;;  %v5712_v2 = vrot.slane %v5696_v35, %v9412_v22 }
 0x414   : > { %v7265_v39 = vpack.c.bf16 %v6624_v41, %v6575_v50  ;;  %v6023_v1 = vadd.f32 %v9450_v38, %v5705_v63  ;;  %v6642_v0 = vrot.slane %v6626_v37, %v9412_v22 }
 0x415   : > { %v5729_v62 = vcombine.high %v5719_v48, %v5719_v48  ;;  %v5726_v17 = vrot.slane %v5698_v8, %v9412_v22  ;;  %v6024_v3 = vadd.f32 %v9464_v21, %v5719_v48  ;;  %v6025_v46 = vadd.f32 %v9480_v13, %v5727_v15 }
 0x416   : > { %7275 = vst [vmem:[%s9642_s6 + $0x20] sm:$0xff] %v7265_v39   ;;  %v5728_v53 = vcombine.high %v5712_v2, %v5712_v2  ;;  %v6027_v20 = vadd.f32 %v9436_v34, %v5712_v2  ;;  %v6657_v63 = vcombine.low %v6635_v36, %v6642_v0 }
 0x417   : > { %v6026_v29 = vadd.f32 %v9493_v4, %v5729_v62  ;;  %v6028_v27 = vadd.f32 %v9441_v32, %v5726_v17 }
 0x418   : > { %v6029_v31 = vadd.f32 %v9468_v6, %v5728_v53  ;;  %v6665_v62 = vrot.slane %v6657_v63, %v9412_v22 }
 0x419   : > { %v6628_v28 = vcombine.low %v6025_v46, %v6026_v29  ;;  %v6674_v25 = vcombine.low %v6027_v20, %v6028_v27 }
 0x41b   : > { %v6656_v42 = vrot.slane %v6628_v28, %v9412_v22 }
 0x41c   : > { %v5063_v52 = vpop.permute.xlu1 %5062 }
 0x41d   : > { %v5091_v7 = vsel %vm2365_vm2, %v9786_v49, %v5063_v52  ;;  %v6627_v49 = vcombine.low %v6023_v1, %v6024_v3 }
 0x41e   : > { %v5730_v16 = vcombine.high %v5091_v7, %v5091_v7  ;;  %v5737_v9 = vrot.slane %v5091_v7, %v9412_v22 }
 0x41f   : > { %v6649_v18 = vrot.slane %v6627_v49, %v9412_v22 }
 0x420   : > { %v5744_v61 = vrot.slane %v5730_v16, %v9412_v22  ;;  %v5745_v33 = vcombine.high %v5737_v9, %v5737_v9  ;;  %v5753_v51 = vrot.slane %v5737_v9, %v9412_v22 }
 0x421   : > { %v6658_v56 = vcombine.low %v6649_v18, %v6656_v42 }
 0x422   : > { %v5746_v59 = vcombine.high %v5744_v61, %v5744_v61  ;;  %v5760_v10 = vrot.slane %v5744_v61, %v9412_v22  ;;  %v5767_v19 = vrot.slane %v5745_v33, %v9412_v22  ;;  %v5775_v26 = vcombine.high %v5753_v51, %v5753_v51 }
 0x423   : > { %v6030_v47 = vadd.f32 %v9472_v24, %v5753_v51 }
 0x424   : > { %v5774_v60 = vrot.slane %v5746_v59, %v9412_v22  ;;  %v5776_v14 = vcombine.high %v5760_v10, %v5760_v10  ;;  %v5777_v12 = vcombine.high %v5767_v19, %v5767_v19  ;;  %v6031_v54 = vadd.f32 %v9450_v38, %v5767_v19 }
 0x425   : > { %v6032_v40 = vadd.f32 %v9464_v21, %v5775_v26  ;;  %v6675_v57 = vcombine.low %v6029_v31, %v6030_v47  ;;  %v6034_v48 = vadd.f32 %v9493_v4, %v5760_v10  ;;  %v6684_v38 = vrot.slane %v6674_v25, %v9412_v22 }
 0x426   : > { %v6033_v35 = vadd.f32 %v9480_v13, %v5777_v12  ;;  %v6035_v6 = vadd.f32 %v9436_v34, %v5774_v60  ;;  %v6036_v24 = vadd.f32 %v9441_v32, %v5776_v14  ;;  %v6672_v32 = vrot.slane %v6658_v56, %v9412_v22 }
 0x427   : > { %v6676_v50 = vcombine.low %v6031_v54, %v6032_v40  ;;  %v6691_v45 = vrot.slane %v6675_v57, %v9412_v22 }
 0x428   : > { %v6677_v41 = vcombine.low %v6033_v35, %v6034_v48  ;;  %v6723_v43 = vcombine.low %v6035_v6, %v6036_v24  ;;  %v6673_v15 = vcombine.low %v6665_v62, %v6672_v32 }
 0x429   : > { %v6698_v21 = vrot.slane %v6676_v50, %v9412_v22  ;;  %v6706_v4 = vcombine.low %v6684_v38, %v6691_v45 }
 0x42a   : > { %v6705_v13 = vrot.slane %v6677_v41, %v9412_v22  ;;  %v6730_v34 = vrot.slane %v6723_v43, %v9412_v22 }
 0x42b   : > { %v6714_v5 = vrot.slane %v6706_v4, %v9412_v22 }
 0x42c   : > { %v6707_v39 = vcombine.low %v6698_v21, %v6705_v13  ;;  %v6737_v8 = vrot.slane %v6730_v34, %v9412_v22 }
 0x42e   : > { %v6721_v55 = vrot.slane %v6707_v39, %v9412_v22  ;;  %v7241_v30 = vpack.c.bf16 %v6737_v8, %v6737_v8 }
 0x430   : > { %v6722_v23 = vcombine.low %v6714_v5, %v6721_v55  ;;  %6816 = vst [vmem:[%s9642_s6 + $0x30] sm:$0x1] %v7241_v30 }
 0x432   : > { %v7270_v2 = vpack.c.bf16 %v6722_v23, %v6673_v15 }
 0x434   : > { %7276 = vst [vmem:[%s9642_s6 + $0x28] sm:$0xff] %v7270_v2  }
 0x435 PF: > { %s15_s18 = sadd.s32 1, %s8124_s18  }
 0x436   : > { %p12_p4 = scmp.ge.s32.totalorder %s15_s18, 4  }
 0x438   :  { %14 = sbr.rel (!%p12_p4) target bundleno = 1 (0x1), region = 183 }

// kernel: lenet_forward.3
= control target key start
LH: loop header
LB: loop body
LE: loop exit
PB: predicated region body
PF: predicated region fallthrough
CT: control target
= control target key end

     0   :  { %v1627_v27 = vlaneseq  ;;  %v11873_v35 = vmov 1966171168   ;;  %s14527_s0 = inlined_call_operand.vmem [shape: bf16[2,12544], index: 0, kind: input, shape index: {}]   ;;  %s14528_s1 = inlined_call_operand.vmem [shape: bf16[12544,128], index: 1, kind: input, shape index: {}]   ;;  %s14529_s2 = inlined_call_operand.vmem [shape: f32[1,128], index: 2, kind: input, shape index: {}]   ;;  %s14530_s3 = inlined_call_operand.vmem [shape: bf16[128,10], index: 3, kind: input, shape index: {}]   ;;  %s14531_s4 = inlined_call_operand.vmem [shape: f32[1,10], index: 4, kind: input, shape index: {}]   ;;  %s14532_s5 = inlined_call_operand.hbm [shape: f32[2,10], index: 5, kind: output, shape index: {}]  }
   0x1   :  { %v11041_v0 = vld [vmem:[%s14528_s1 + $0x40] sm:$0xff]   ;;  %v11045_v4 = vld [vmem:[%s14528_s1 + $0x48] sm:$0xff]   ;;  %v11049_v8 = vld [vmem:[%s14528_s1 + $0x50] sm:$0xff]   ;;  %v1625_v36 = vunpack.c.l.s4 %v11873_v35 }
   0x2   :  { %v11042_v1 = vld [vmem:[%s14528_s1] sm:$0xff]   ;;  %9930 = vmatprep.subr.bf16.mxu0 %v11041_v0  ;;  %v11046_v5 = vld [vmem:[%s14528_s1 + $0x8] sm:$0xff]   ;;  %v11050_v9 = vld [vmem:[%s14528_s1 + $0x10] sm:$0xff]   ;;  %v1628_v32 = vshrl.u32 %v1627_v27, 7 }
   0x3   :  { %v11043_v2 = vld [vmem:[%s14528_s1 + $0xc0] sm:$0xff]   ;;  %9931 = vmatpush3.bf16.msra.mxu0 %v11042_v1  ;;  %v11047_v6 = vld [vmem:[%s14528_s1 + $0xc8] sm:$0xff]   ;;  %v11051_v10 = vld [vmem:[%s14528_s1 + $0xd0] sm:$0xff]   ;;  %v1626_v39 = vunpack.c.0.s8 %v1625_v36 }
   0x4   :  { %v11044_v3 = vld [vmem:[%s14528_s1 + $0x80] sm:$0xff]   ;;  %9952 = vmatprep.subr.bf16.mxu1 %v11043_v2  ;;  %9932 = vmatprep.subr.bf16.mxu0 %v11045_v4  ;;  %v11048_v7 = vld [vmem:[%s14528_s1 + $0x88] sm:$0xff]   ;;  %v11052_v11 = vld [vmem:[%s14528_s1 + $0x90] sm:$0xff]  }
   0x5   :  { %9953 = vmatpush3.bf16.msra.mxu1 %v11044_v3  ;;  %v11053_v12 = vld [vmem:[%s14528_s1 + $0x58] sm:$0xff]   ;;  %v11057_v16 = vld [vmem:[%s14528_s1 + $0x60] sm:$0xff]   ;;  %v11061_v20 = vld [vmem:[%s14528_s1 + $0x68] sm:$0xff]   ;;  %v12012_v41 = vsub.s32 %v1626_v39, %v1628_v32 }
   0x6   :  { %9954 = vmatprep.subr.bf16.mxu1 %v11047_v6  ;;  %v11054_v13 = vld [vmem:[%s14528_s1 + $0x18] sm:$0xff]   ;;  %v11058_v17 = vld [vmem:[%s14528_s1 + $0x20] sm:$0xff]   ;;  %v11062_v21 = vld [vmem:[%s14528_s1 + $0x28] sm:$0xff]  }
   0x7   :  { %9933 = vmatpush3.bf16.msra.mxu0 %v11046_v5  ;;  %v11055_v14 = vld [vmem:[%s14528_s1 + $0xd8] sm:$0xff]   ;;  %v11059_v18 = vld [vmem:[%s14528_s1 + $0xe0] sm:$0xff]   ;;  %v11063_v22 = vld [vmem:[%s14528_s1 + $0xe8] sm:$0xff]  }
   0x8   :  { %9934 = vmatprep.subr.bf16.mxu0 %v11049_v8  ;;  %v11056_v15 = vld [vmem:[%s14528_s1 + $0x98] sm:$0xff]   ;;  %v11060_v19 = vld [vmem:[%s14528_s1 + $0xa0] sm:$0xff]   ;;  %v11064_v23 = vld [vmem:[%s14528_s1 + $0xa8] sm:$0xff]  }
   0x9   :  { %9955 = vmatpush3.bf16.msra.mxu1 %v11048_v7  ;;  %v11065_v24 = vld [vmem:[%s14528_s1 + $0x70] sm:$0xff]   ;;  %v11069_v29 = vld [vmem:[%s14528_s1 + $0x78] sm:$0xff]   ;;  %v22_v33 = vld [vmem:[%s14527_s0] sm:$0xff] }
   0xa   :  { %9956 = vmatprep.subr.bf16.mxu1 %v11051_v10  ;;  %v11066_v25 = vld [vmem:[%s14528_s1 + $0x30] sm:$0xff]   ;;  %v11070_v30 = vld [vmem:[%s14528_s1 + $0x38] sm:$0xff]   ;;  %v11074_v37 = vld [vmem:[%s14528_s1 + $0x140] sm:$0xff]   ;;  %v1623_v38 = vcombine.high %v22_v33, %v22_v33  ;;  %v1630_v42 = vrot.slane %v22_v33, %v12012_v41 }
   0xb   :  { %9935 = vmatpush3.bf16.msra.mxu0 %v11050_v9  ;;  %v11067_v26 = vld [vmem:[%s14528_s1 + $0xf0] sm:$0xff]   ;;  %v11071_v31 = vld [vmem:[%s14528_s1 + $0xf8] sm:$0xff]   ;;  %v11076_v40 = vld [vmem:[%s14528_s1 + $0x1c0] sm:$0xff]  }
   0xc   :  { %9936 = vmatprep.subr.bf16.mxu0 %v11053_v12  ;;  %v11068_v28 = vld [vmem:[%s14528_s1 + $0xb0] sm:$0xff]   ;;  %v11073_v34 = vld [vmem:[%s14528_s1 + $0xb8] sm:$0xff]   ;;  %v12016_v43 = vrot.slane %v1623_v38, %v12012_v41  ;;  %v1638_v44 = vcombine.high %v1630_v42, %v1630_v42  ;;  %v1646_v45 = vrot.slane %v1630_v42, %v12012_v41  ;;  %v11075_v47 = vld [vmem:[%s14528_s1 + $0x100] sm:$0xff]  }
   0xd   :  { %9957 = vmatpush3.bf16.msra.mxu1 %v11052_v11  ;;  %v11077_v49 = vld [vmem:[%s14528_s1 + $0x180] sm:$0xff]   ;;  %v11078_v52 = vld [vmem:[%s14528_s1 + $0x148] sm:$0xff]   ;;  %v11082_v58 = vld [vmem:[%s14528_s1 + $0x150] sm:$0xff]  }
   0xe   :  { %9958 = vmatprep.subr.bf16.mxu1 %v11055_v14  ;;  %v1639_v46 = vcombine.high %v12016_v43, %v12016_v43  ;;  %v1660_v48 = vrot.slane %v1638_v44, %v12012_v41  ;;  %v1668_v51 = vcombine.high %v1646_v45, %v1646_v45  ;;  %v11079_v54 = vld [vmem:[%s14528_s1 + $0x108] sm:$0xff]   ;;  %v11083_v59 = vld [vmem:[%s14528_s1 + $0x110] sm:$0xff]   ;;  %v11086_v62 = vld [vmem:[%s14528_s1 + $0x158] sm:$0xff]  }
   0xf   :  { %9937 = vmatpush3.bf16.msra.mxu0 %v11054_v13  ;;  %v11080_v55 = vld [vmem:[%s14528_s1 + $0x1c8] sm:$0xff]   ;;  %v11084_v60 = vld [vmem:[%s14528_s1 + $0x1d0] sm:$0xff]   ;;  %v11087_v63 = vld [vmem:[%s14528_s1 + $0x118] sm:$0xff]  }
  0x10   :  { %9938 = vmatprep.subr.bf16.mxu0 %v11057_v16  ;;  %v1667_v50 = vrot.slane %v1639_v46, %v12012_v41  ;;  %7067 = vmatprep.mubr.bf16.mxu0 %v1660_v48  ;;  %v1670_v53 = vcombine.high %v1660_v48, %v1660_v48  ;;  %v11081_v57 = vld [vmem:[%s14528_s1 + $0x188] sm:$0xff]   ;;  %v11085_v61 = vld [vmem:[%s14528_s1 + $0x190] sm:$0xff]   ;;  %v11088_v0 = vld [vmem:[%s14528_s1 + $0x1d8] sm:$0xff]  }
  0x11   :  { %9959 = vmatpush3.bf16.msra.mxu1 %v11056_v15  ;;  %v11089_v1 = vld [vmem:[%s14528_s1 + $0x198] sm:$0xff]   ;;  %v11090_v2 = vld [vmem:[%s14528_s1 + $0x160] sm:$0xff]   ;;  %v11094_v6 = vld [vmem:[%s14528_s1 + $0x168] sm:$0xff]  }
  0x12   :  { %9960 = vmatprep.subr.bf16.mxu1 %v11059_v18  ;;  %v1671_v56 = vcombine.high %v1667_v50, %v1667_v50  ;;  %7107 = vmatprep.mubr.bf16.mxu1 %v1670_v53  ;;  %v11091_v3 = vld [vmem:[%s14528_s1 + $0x120] sm:$0xff]   ;;  %v11095_v7 = vld [vmem:[%s14528_s1 + $0x128] sm:$0xff]   ;;  %v11098_v10 = vld [vmem:[%s14528_s1 + $0x170] sm:$0xff]   ;;  %v1653_v18 = vrot.slane %v12016_v43, %v12012_v41 }
  0x13   :  { %9939 = vmatpush3.bf16.msra.mxu0 %v11058_v17  ;;  %v11092_v4 = vld [vmem:[%s14528_s1 + $0x1e0] sm:$0xff]   ;;  %v11096_v8 = vld [vmem:[%s14528_s1 + $0x1e8] sm:$0xff]   ;;  %v11099_v11 = vld [vmem:[%s14528_s1 + $0x130] sm:$0xff]  }
  0x14   :  { %9940 = vmatprep.subr.bf16.mxu0 %v11061_v20  ;;  %v11093_v5 = vld [vmem:[%s14528_s1 + $0x1a0] sm:$0xff]   ;;  %v11097_v9 = vld [vmem:[%s14528_s1 + $0x1a8] sm:$0xff]   ;;  %v11100_v12 = vld [vmem:[%s14528_s1 + $0x1f0] sm:$0xff]  }
  0x15   :  { %9961 = vmatpush3.bf16.msra.mxu1 %v11060_v19  ;;  %v11101_v13 = vld [vmem:[%s14528_s1 + $0x1b0] sm:$0xff]   ;;  %v11102_v14 = vld [vmem:[%s14528_s1 + $0x178] sm:$0xff]   ;;  %v11106_v19 = vld [vmem:[%s14528_s1 + $0x240] sm:$0xff]  }
  0x16   :  { %9962 = vmatprep.subr.bf16.mxu1 %v11063_v22  ;;  %v11103_v15 = vld [vmem:[%s14528_s1 + $0x138] sm:$0xff]   ;;  %v11107_v20 = vld [vmem:[%s14528_s1 + $0x200] sm:$0xff]   ;;  %v11113_v27 = vld [vmem:[%s14528_s1 + $0x288] sm:$0xff]  }
  0x17   :  { %9941 = vmatpush3.bf16.msra.mxu0 %v11062_v21  ;;  %v11104_v16 = vld [vmem:[%s14528_s1 + $0x1f8] sm:$0xff]   ;;  %v11108_v21 = vld [vmem:[%s14528_s1 + $0x2c0] sm:$0xff]   ;;  %v11127_v42 = vld [vmem:[%s14528_s1 + $0x228] sm:$0xff]  }
  0x18   :  { %9942 = vmatprep.subr.bf16.mxu0 %v11065_v24  ;;  %v11105_v17 = vld [vmem:[%s14528_s1 + $0x1b8] sm:$0xff]   ;;  %v11109_v22 = vld [vmem:[%s14528_s1 + $0x280] sm:$0xff]   ;;  %v11110_v24 = vld [vmem:[%s14528_s1 + $0x248] sm:$0xff]  }
  0x19   :  { %9963 = vmatpush3.bf16.msra.mxu1 %v11064_v23  ;;  %v1669_v23 = vcombine.high %v1653_v18, %v1653_v18  ;;  %v11118_v32 = vld [vmem:[%s14528_s1 + $0x258] sm:$0xff]   ;;  %v11122_v36 = vld [vmem:[%s14528_s1 + $0x260] sm:$0xff]   ;;  %v11128_v43 = vld [vmem:[%s14528_s1 + $0x2e8] sm:$0xff]  }
  0x1a   :  { %9964 = vmatprep.subr.bf16.mxu1 %v11067_v26  ;;  %v11112_v26 = vld [vmem:[%s14528_s1 + $0x2c8] sm:$0xff]   ;;  %v11119_v33 = vld [vmem:[%s14528_s1 + $0x218] sm:$0xff]   ;;  %v11124_v38 = vld [vmem:[%s14528_s1 + $0x2e0] sm:$0xff]  }
  0x1b   :  { %9943 = vmatpush3.bf16.msra.mxu0 %v11066_v25  ;;  %v11111_v25 = vld [vmem:[%s14528_s1 + $0x208] sm:$0xff]   ;;  %v11121_v35 = vld [vmem:[%s14528_s1 + $0x298] sm:$0xff]   ;;  %v11125_v39 = vld [vmem:[%s14528_s1 + $0x2a0] sm:$0xff]  }
  0x1c   :  { %9944 = vmatprep.subr.bf16.mxu0 %v11069_v29  ;;  %v11115_v29 = vld [vmem:[%s14528_s1 + $0x210] sm:$0xff]   ;;  %v11129_v44 = vld [vmem:[%s14528_s1 + $0x2a8] sm:$0xff]  }
  0x1d   :  { %9965 = vmatpush3.bf16.msra.mxu1 %v11068_v28  ;;  %v11114_v28 = vld [vmem:[%s14528_s1 + $0x250] sm:$0xff]   ;;  %v23_v46 = vld [vmem:[%s14527_s0 + $0x8] sm:$0xff] }
  0x1e   :  { %9966 = vmatprep.subr.bf16.mxu1 %v11071_v31  ;;  %v11117_v31 = vld [vmem:[%s14528_s1 + $0x290] sm:$0xff]   ;;  %v1679_v48 = vrot.slane %v23_v46, %v12012_v41 }
  0x1f   :  { %9945 = vmatpush3.bf16.msra.mxu0 %v11070_v30  ;;  %v11116_v30 = vld [vmem:[%s14528_s1 + $0x2d0] sm:$0xff]  }
  0x20   :  { %9974 = vmatprep.subr.bf16.mxu0 %v11074_v37  ;;  %v11123_v37 = vld [vmem:[%s14528_s1 + $0x220] sm:$0xff]  }
  0x21   :  { %9967 = vmatpush3.bf16.msra.mxu1 %v11073_v34  ;;  %v11120_v34 = vld [vmem:[%s14528_s1 + $0x2d8] sm:$0xff]  }
  0x22   :  { %9996 = vmatprep.subr.bf16.mxu1 %v11076_v40  ;;  %7068 = vmatmul.mubr.bf16.vlgmr.msra.gmra.mrb[0].mxu0 %v1646_v45  ;;  %v11126_v40 = vld [vmem:[%s14528_s1 + $0x268] sm:$0xff]   ;;  %v11130_v45 = vld [vmem:[%s14528_s1 + $0x270] sm:$0xff]  }
  0x23   :  { %9975 = vmatpush3.bf16.msra.mxu0 %v11075_v47  ;;  %7147 = vmatprep.mubr.bf16.mxu0 %v1667_v50  ;;  %v11131_v47 = vld [vmem:[%s14528_s1 + $0x230] sm:$0xff]  }
  0x24   :  { %7108 = vmatmul.mubr.bf16.vlgmr.msra.gmra.mrb[0].mxu1 %v1668_v51  ;;  %9976 = vmatprep.subr.bf16.mxu0 %v11078_v52  ;;  %v11132_v50 = vld [vmem:[%s14528_s1 + $0x2f0] sm:$0xff]   ;;  %v1687_v52 = vcombine.high %v1679_v48, %v1679_v48 }
  0x25   :  { %9997 = vmatpush3.bf16.msra.mxu1 %v11077_v49  ;;  %7187 = vmatprep.mubr.bf16.mxu1 %v1671_v56  ;;  %v1672_v49 = vcombine.high %v23_v46, %v23_v46  ;;  %v11133_v51 = vld [vmem:[%s14528_s1 + $0x2b0] sm:$0xff]  }
  0x26   :  { %9998 = vmatprep.subr.bf16.mxu1 %v11080_v55  ;;  %v11135_v55 = vld [vmem:[%s14528_s1 + $0x238] sm:$0xff]   ;;  %v1709_v56 = vrot.slane %v1687_v52, %v12012_v41  ;;  %v11181_v46 = vld [vmem:[%s14528_s1 + $0x4d0] sm:$0xff]   ;;  %v11187_v52 = vld [vmem:[%s14528_s1 + $0x460] sm:$0xff]  }
  0x27   :  { %9977 = vmatpush3.bf16.msra.mxu0 %v11079_v54  ;;  %v12204_v53 = vrot.slane %v1672_v49, %v12012_v41  ;;  %v11134_v54 = vld [vmem:[%s14528_s1 + $0x278] sm:$0xff]  }
  0x28   :  { %9978 = vmatprep.subr.bf16.mxu0 %v11082_v58  ;;  %v11136_v58 = vld [vmem:[%s14528_s1 + $0x2f8] sm:$0xff]  }
  0x29   :  { %9999 = vmatpush3.bf16.msra.mxu1 %v11081_v57  ;;  %v1688_v57 = vcombine.high %v12204_v53, %v12204_v53  ;;  %v11184_v49 = vld [vmem:[%s14528_s1 + $0x418] sm:$0xff]  }
  0x2a   :  { %10000 = vmatprep.subr.bf16.mxu1 %v11084_v60  ;;  %v1719_v60 = vcombine.high %v1709_v56, %v1709_v56 }
  0x2b   :  { %9979 = vmatpush3.bf16.msra.mxu0 %v11083_v59  ;;  %v11137_v59 = vld [vmem:[%s14528_s1 + $0x2b8] sm:$0xff]  }
  0x2c   :  { %9980 = vmatprep.subr.bf16.mxu0 %v11086_v62  ;;  %v11138_v62 = vld [vmem:[%s14528_s1 + $0x340] sm:$0xff]  }
  0x2d   :  { %10001 = vmatpush3.bf16.msra.mxu1 %v11085_v61  ;;  %v1695_v61 = vrot.slane %v1679_v48, %v12012_v41  ;;  %v11183_v48 = vld [vmem:[%s14528_s1 + $0x458] sm:$0xff]  }
  0x2e   :  { %10002 = vmatprep.subr.bf16.mxu1 %v11088_v0  ;;  %v1716_v0 = vrot.slane %v1688_v57, %v12012_v41  ;;  %v11192_v57 = vld [vmem:[%s14528_s1 + $0x428] sm:$0xff]  }
  0x2f   :  { %9981 = vmatpush3.bf16.msra.mxu0 %v11087_v63  ;;  %v11139_v63 = vld [vmem:[%s14528_s1 + $0x300] sm:$0xff]  }
  0x30   :  { %9982 = vmatprep.subr.bf16.mxu0 %v11090_v2  ;;  %v11141_v2 = vld [vmem:[%s14528_s1 + $0x380] sm:$0xff]  }
  0x31   :  { %10003 = vmatpush3.bf16.msra.mxu1 %v11089_v1  ;;  %v11140_v1 = vld [vmem:[%s14528_s1 + $0x3c0] sm:$0xff]  }
  0x32   :  { %10004 = vmatprep.subr.bf16.mxu1 %v11092_v4  ;;  %v11142_v4 = vld [vmem:[%s14528_s1 + $0x348] sm:$0xff]  }
  0x33   :  { %9983 = vmatpush3.bf16.msra.mxu0 %v11091_v3  ;;  %v1717_v3 = vcombine.high %v1695_v61, %v1695_v61 }
  0x34   :  { %9984 = vmatprep.subr.bf16.mxu0 %v11094_v6  ;;  %v1720_v6 = vcombine.high %v1716_v0, %v1716_v0 }
  0x35   :  { %10005 = vmatpush3.bf16.msra.mxu1 %v11093_v5  ;;  %v11143_v5 = vld [vmem:[%s14528_s1 + $0x308] sm:$0xff]  }
  0x36   :  { %10006 = vmatprep.subr.bf16.mxu1 %v11096_v8  ;;  %v11145_v8 = vld [vmem:[%s14528_s1 + $0x388] sm:$0xff]  }
  0x37   :  { %9985 = vmatpush3.bf16.msra.mxu0 %v11095_v7  ;;  %v11144_v7 = vld [vmem:[%s14528_s1 + $0x3c8] sm:$0xff]  }
  0x38   :  { %9986 = vmatprep.subr.bf16.mxu0 %v11098_v10  ;;  %v11147_v10 = vld [vmem:[%s14528_s1 + $0x310] sm:$0xff]  }
  0x39   :  { %10007 = vmatpush3.bf16.msra.mxu1 %v11097_v9  ;;  %v11146_v9 = vld [vmem:[%s14528_s1 + $0x350] sm:$0xff]  }
  0x3a   :  { %10008 = vmatprep.subr.bf16.mxu1 %v11100_v12  ;;  %v11149_v12 = vld [vmem:[%s14528_s1 + $0x390] sm:$0xff]  }
  0x3b   :  { %9987 = vmatpush3.bf16.msra.mxu0 %v11099_v11  ;;  %v11148_v11 = vld [vmem:[%s14528_s1 + $0x3d0] sm:$0xff]  }
  0x3c   :  { %9988 = vmatprep.subr.bf16.mxu0 %v11102_v14  ;;  %v11151_v14 = vld [vmem:[%s14528_s1 + $0x318] sm:$0xff]  }
  0x3d   :  { %10009 = vmatpush3.bf16.msra.mxu1 %v11101_v13  ;;  %v11150_v13 = vld [vmem:[%s14528_s1 + $0x358] sm:$0xff]  }
  0x3e   :  { %10010 = vmatprep.subr.bf16.mxu1 %v11104_v16  ;;  %v11153_v16 = vld [vmem:[%s14528_s1 + $0x398] sm:$0xff]  }
  0x3f   :  { %9989 = vmatpush3.bf16.msra.mxu0 %v11103_v15  ;;  %v11152_v15 = vld [vmem:[%s14528_s1 + $0x3d8] sm:$0xff]  }
  0x40   :  { %10018 = vmatprep.subr.bf16.mxu0 %v11106_v19  ;;  %v11156_v19 = vld [vmem:[%s14528_s1 + $0x3e0] sm:$0xff]  }
  0x41   :  { %10011 = vmatpush3.bf16.msra.mxu1 %v11105_v17  ;;  %v11154_v17 = vld [vmem:[%s14528_s1 + $0x360] sm:$0xff]  }
  0x42   :  { %7148 = vmatmul.mubr.bf16.vlgmr.msra.gmra.mrb[4].mxu0 %v1653_v18  ;;  %10040 = vmatprep.subr.bf16.mxu1 %v11108_v21  ;;  %v11155_v18 = vld [vmem:[%s14528_s1 + $0x320] sm:$0xff]   ;;  %v11158_v21 = vld [vmem:[%s14528_s1 + $0x368] sm:$0xff]  }
  0x43   :  { %10019 = vmatpush3.bf16.msra.mxu0 %v11107_v20  ;;  %7227 = vmatprep.mubr.bf16.mxu0 %v1709_v56  ;;  %v11157_v20 = vld [vmem:[%s14528_s1 + $0x3a0] sm:$0xff]   ;;  %v11191_v56 = vld [vmem:[%s14528_s1 + $0x468] sm:$0xff]  }
  0x44   :  { %7188 = vmatmul.mubr.bf16.vlgmr.msra.gmra.mrb[4].mxu1 %v1669_v23  ;;  %10020 = vmatprep.subr.bf16.mxu0 %v11110_v24  ;;  %v11160_v23 = vld [vmem:[%s14528_s1 + $0x3e8] sm:$0xff]  }
  0x45   :  { %10041 = vmatpush3.bf16.msra.mxu1 %v11109_v22  ;;  %7267 = vmatprep.mubr.bf16.mxu1 %v1719_v60  ;;  %v11159_v22 = vld [vmem:[%s14528_s1 + $0x328] sm:$0xff]   ;;  %v11195_v60 = vld [vmem:[%s14528_s1 + $0x470] sm:$0xff]  }
  0x46   :  { %10042 = vmatprep.subr.bf16.mxu1 %v11112_v26  ;;  %v11161_v24 = vld [vmem:[%s14528_s1 + $0x3a8] sm:$0xff]   ;;  %v11163_v26 = vld [vmem:[%s14528_s1 + $0x330] sm:$0xff]  }
  0x47   :  { %10021 = vmatpush3.bf16.msra.mxu0 %v11111_v25  ;;  %v11162_v25 = vld [vmem:[%s14528_s1 + $0x370] sm:$0xff]  }
  0x48   :  { %10022 = vmatprep.subr.bf16.mxu0 %v11114_v28  ;;  %v11165_v28 = vld [vmem:[%s14528_s1 + $0x3b0] sm:$0xff]  }
  0x49   :  { %10043 = vmatpush3.bf16.msra.mxu1 %v11113_v27  ;;  %v11164_v27 = vld [vmem:[%s14528_s1 + $0x3f0] sm:$0xff]  }
  0x4a   :  { %10044 = vmatprep.subr.bf16.mxu1 %v11116_v30  ;;  %v11167_v30 = vld [vmem:[%s14528_s1 + $0x338] sm:$0xff]  }
  0x4b   :  { %10023 = vmatpush3.bf16.msra.mxu0 %v11115_v29  ;;  %v11166_v29 = vld [vmem:[%s14528_s1 + $0x378] sm:$0xff]  }
  0x4c   :  { %10024 = vmatprep.subr.bf16.mxu0 %v11118_v32  ;;  %v11170_v32 = vld [vmem:[%s14528_s1 + $0x3b8] sm:$0xff]  }
  0x4d   :  { %10045 = vmatpush3.bf16.msra.mxu1 %v11117_v31  ;;  %v11168_v31 = vld [vmem:[%s14528_s1 + $0x3f8] sm:$0xff]  }
  0x4e   :  { %10046 = vmatprep.subr.bf16.mxu1 %v11120_v34  ;;  %v11171_v34 = vld [vmem:[%s14528_s1 + $0x440] sm:$0xff]  }
  0x4f   :  { %10025 = vmatpush3.bf16.msra.mxu0 %v11119_v33  ;;  %v1702_v33 = vrot.slane %v12204_v53, %v12012_v41  ;;  %v11188_v53 = vld [vmem:[%s14528_s1 + $0x420] sm:$0xff]  }
  0x50   :  { %10026 = vmatprep.subr.bf16.mxu0 %v11122_v36  ;;  %v11173_v36 = vld [vmem:[%s14528_s1 + $0x4c0] sm:$0xff]  }
  0x51   :  { %10047 = vmatpush3.bf16.msra.mxu1 %v11121_v35  ;;  %v11172_v35 = vld [vmem:[%s14528_s1 + $0x400] sm:$0xff]  }
  0x52   :  { %10048 = vmatprep.subr.bf16.mxu1 %v11124_v38  ;;  %v1718_v38 = vcombine.high %v1702_v33, %v1702_v33 }
  0x53   :  { %10027 = vmatpush3.bf16.msra.mxu0 %v11123_v37  ;;  %v11174_v37 = vld [vmem:[%s14528_s1 + $0x480] sm:$0xff]  }
  0x54   :  { %10028 = vmatprep.subr.bf16.mxu0 %v11126_v40  ;;  %v11176_v40 = vld [vmem:[%s14528_s1 + $0x408] sm:$0xff]  }
  0x55   :  { %10049 = vmatpush3.bf16.msra.mxu1 %v11125_v39  ;;  %v11175_v39 = vld [vmem:[%s14528_s1 + $0x448] sm:$0xff]  }
  0x56   :  { %10050 = vmatprep.subr.bf16.mxu1 %v11128_v43  ;;  %v11178_v43 = vld [vmem:[%s14528_s1 + $0x488] sm:$0xff]  }
  0x57   :  { %10029 = vmatpush3.bf16.msra.mxu0 %v11127_v42  ;;  %v11177_v42 = vld [vmem:[%s14528_s1 + $0x4c8] sm:$0xff]  }
  0x58   :  { %10030 = vmatprep.subr.bf16.mxu0 %v11130_v45  ;;  %v11180_v45 = vld [vmem:[%s14528_s1 + $0x410] sm:$0xff]  }
  0x59   :  { %10051 = vmatpush3.bf16.msra.mxu1 %v11129_v44  ;;  %v11179_v44 = vld [vmem:[%s14528_s1 + $0x450] sm:$0xff]  }
  0x5a   :  { %10052 = vmatprep.subr.bf16.mxu1 %v11132_v50  ;;  %v11185_v50 = vld [vmem:[%s14528_s1 + $0x4d8] sm:$0xff]  }
  0x5b   :  { %10031 = vmatpush3.bf16.msra.mxu0 %v11131_v47  ;;  %v11182_v47 = vld [vmem:[%s14528_s1 + $0x490] sm:$0xff]  }
  0x5c   :  { %10032 = vmatprep.subr.bf16.mxu0 %v11134_v54  ;;  %v11189_v54 = vld [vmem:[%s14528_s1 + $0x4e0] sm:$0xff]  }
  0x5d   :  { %10053 = vmatpush3.bf16.msra.mxu1 %v11133_v51  ;;  %v11186_v51 = vld [vmem:[%s14528_s1 + $0x498] sm:$0xff]  }
  0x5e   :  { %10054 = vmatprep.subr.bf16.mxu1 %v11136_v58  ;;  %v11193_v58 = vld [vmem:[%s14528_s1 + $0x4e8] sm:$0xff]  }
  0x5f   :  { %10033 = vmatpush3.bf16.msra.mxu0 %v11135_v55  ;;  %v11190_v55 = vld [vmem:[%s14528_s1 + $0x4a0] sm:$0xff]  }
  0x60   :  { %10062 = vmatprep.subr.bf16.mxu0 %v11138_v62  ;;  %v11196_v62 = vld [vmem:[%s14528_s1 + $0x430] sm:$0xff]  }
  0x61   :  { %10055 = vmatpush3.bf16.msra.mxu1 %v11137_v59  ;;  %v11194_v59 = vld [vmem:[%s14528_s1 + $0x4a8] sm:$0xff]  }
  0x62   :  { %7228 = vmatmul.mubr.bf16.vlgmr.msra.gmra.mrb[8].mxu0 %v1695_v61  ;;  %10084 = vmatprep.subr.bf16.mxu1 %v11140_v1  ;;  %v24_v61 = vld [vmem:[%s14527_s0 + $0x10] sm:$0xff] }
  0x63   :  { %10063 = vmatpush3.bf16.msra.mxu0 %v11139_v63  ;;  %7307 = vmatprep.mubr.bf16.mxu0 %v1716_v0  ;;  %v1728_v63 = vrot.slane %v24_v61, %v12012_v41  ;;  %v1721_v0 = vcombine.high %v24_v61, %v24_v61  ;;  %v11197_v1 = vld [vmem:[%s14528_s1 + $0x4f0] sm:$0xff]  }
  0x64   :  { %7268 = vmatmul.mubr.bf16.vlgmr.msra.gmra.mrb[8].mxu1 %v1717_v3  ;;  %10064 = vmatprep.subr.bf16.mxu0 %v11142_v4  ;;  %v11246_v61 = vld [vmem:[%s14528_s1 + $0x6d0] sm:$0xff]  }
  0x65   :  { %10085 = vmatpush3.bf16.msra.mxu1 %v11141_v2  ;;  %7347 = vmatprep.mubr.bf16.mxu1 %v1720_v6  ;;  %v11198_v2 = vld [vmem:[%s14528_s1 + $0x4b0] sm:$0xff]   ;;  %v1736_v3 = vcombine.high %v1728_v63, %v1728_v63  ;;  %v12410_v4 = vrot.slane %v1721_v0, %v12012_v41  ;;  %v11200_v6 = vld [vmem:[%s14528_s1 + $0x438] sm:$0xff]  }
  0x66   :  { %10086 = vmatprep.subr.bf16.mxu1 %v11144_v7  ;;  %v11249_v0 = vld [vmem:[%s14528_s1 + $0x618] sm:$0xff]  }
  0x67   :  { %10065 = vmatpush3.bf16.msra.mxu0 %v11143_v5  ;;  %v11199_v5 = vld [vmem:[%s14528_s1 + $0x478] sm:$0xff]   ;;  %v1758_v7 = vrot.slane %v1736_v3, %v12012_v41  ;;  %v11252_v3 = vld [vmem:[%s14528_s1 + $0x660] sm:$0xff]  }
  0x68   :  { %10066 = vmatprep.subr.bf16.mxu0 %v11146_v9  ;;  %v11201_v9 = vld [vmem:[%s14528_s1 + $0x4f8] sm:$0xff]  }
  0x69   :  { %10087 = vmatpush3.bf16.msra.mxu1 %v11145_v8  ;;  %v1737_v8 = vcombine.high %v12410_v4, %v12410_v4 }
  0x6a   :  { %10088 = vmatprep.subr.bf16.mxu1 %v11148_v11  ;;  %v1768_v11 = vcombine.high %v1758_v7, %v1758_v7 }
  0x6b   :  { %10067 = vmatpush3.bf16.msra.mxu0 %v11147_v10  ;;  %v11202_v10 = vld [vmem:[%s14528_s1 + $0x4b8] sm:$0xff]  }
  0x6c   :  { %10068 = vmatprep.subr.bf16.mxu0 %v11150_v13  ;;  %v11203_v13 = vld [vmem:[%s14528_s1 + $0x540] sm:$0xff]  }
  0x6d   :  { %10089 = vmatpush3.bf16.msra.mxu1 %v11149_v12  ;;  %v1744_v12 = vrot.slane %v1728_v63, %v12012_v41  ;;  %v11248_v63 = vld [vmem:[%s14528_s1 + $0x658] sm:$0xff]  }
  0x6e   :  { %10090 = vmatprep.subr.bf16.mxu1 %v11152_v15  ;;  %v1765_v15 = vrot.slane %v1737_v8, %v12012_v41  ;;  %v11257_v8 = vld [vmem:[%s14528_s1 + $0x628] sm:$0xff]  }
  0x6f   :  { %10069 = vmatpush3.bf16.msra.mxu0 %v11151_v14  ;;  %v11204_v14 = vld [vmem:[%s14528_s1 + $0x500] sm:$0xff]  }
  0x70   :  { %10070 = vmatprep.subr.bf16.mxu0 %v11154_v17  ;;  %v11206_v17 = vld [vmem:[%s14528_s1 + $0x580] sm:$0xff]  }
  0x71   :  { %10091 = vmatpush3.bf16.msra.mxu1 %v11153_v16  ;;  %v11205_v16 = vld [vmem:[%s14528_s1 + $0x5c0] sm:$0xff]  }
  0x72   :  { %10092 = vmatprep.subr.bf16.mxu1 %v11156_v19  ;;  %v11207_v19 = vld [vmem:[%s14528_s1 + $0x548] sm:$0xff]  }
  0x73   :  { %10071 = vmatpush3.bf16.msra.mxu0 %v11155_v18  ;;  %v1766_v18 = vcombine.high %v1744_v12, %v1744_v12 }
  0x74   :  { %10072 = vmatprep.subr.bf16.mxu0 %v11158_v21  ;;  %v1769_v21 = vcombine.high %v1765_v15, %v1765_v15 }
  0x75   :  { %10093 = vmatpush3.bf16.msra.mxu1 %v11157_v20  ;;  %v11208_v20 = vld [vmem:[%s14528_s1 + $0x508] sm:$0xff]  }
  0x76   :  { %10094 = vmatprep.subr.bf16.mxu1 %v11160_v23  ;;  %v11210_v23 = vld [vmem:[%s14528_s1 + $0x588] sm:$0xff]  }
  0x77   :  { %10073 = vmatpush3.bf16.msra.mxu0 %v11159_v22  ;;  %v11209_v22 = vld [vmem:[%s14528_s1 + $0x5c8] sm:$0xff]  }
  0x78   :  { %10074 = vmatprep.subr.bf16.mxu0 %v11162_v25  ;;  %v11212_v25 = vld [vmem:[%s14528_s1 + $0x510] sm:$0xff]  }
  0x79   :  { %10095 = vmatpush3.bf16.msra.mxu1 %v11161_v24  ;;  %v11211_v24 = vld [vmem:[%s14528_s1 + $0x550] sm:$0xff]  }
  0x7a   :  { %10096 = vmatprep.subr.bf16.mxu1 %v11164_v27  ;;  %v11214_v27 = vld [vmem:[%s14528_s1 + $0x590] sm:$0xff]  }
  0x7b   :  { %10075 = vmatpush3.bf16.msra.mxu0 %v11163_v26  ;;  %v11213_v26 = vld [vmem:[%s14528_s1 + $0x5d0] sm:$0xff]  }
  0x7c   :  { %10076 = vmatprep.subr.bf16.mxu0 %v11166_v29  ;;  %v11216_v29 = vld [vmem:[%s14528_s1 + $0x518] sm:$0xff]  }
  0x7d   :  { %10097 = vmatpush3.bf16.msra.mxu1 %v11165_v28  ;;  %v11215_v28 = vld [vmem:[%s14528_s1 + $0x558] sm:$0xff]  }
  0x7e   :  { %10098 = vmatprep.subr.bf16.mxu1 %v11168_v31  ;;  %v11218_v31 = vld [vmem:[%s14528_s1 + $0x598] sm:$0xff]  }
  0x7f   :  { %10077 = vmatpush3.bf16.msra.mxu0 %v11167_v30  ;;  %v11217_v30 = vld [vmem:[%s14528_s1 + $0x5d8] sm:$0xff]  }
  0x80   :  { %10106 = vmatprep.subr.bf16.mxu0 %v11171_v34  ;;  %v11221_v34 = vld [vmem:[%s14528_s1 + $0x5e0] sm:$0xff]  }
  0x81   :  { %10099 = vmatpush3.bf16.msra.mxu1 %v11170_v32  ;;  %v11219_v32 = vld [vmem:[%s14528_s1 + $0x560] sm:$0xff]  }
  0x82   :  { %7308 = vmatmul.mubr.bf16.vlgmr.msra.gmra.mrb[12].mxu0 %v1702_v33  ;;  %10128 = vmatprep.subr.bf16.mxu1 %v11173_v36  ;;  %v11220_v33 = vld [vmem:[%s14528_s1 + $0x520] sm:$0xff]   ;;  %v11223_v36 = vld [vmem:[%s14528_s1 + $0x568] sm:$0xff]  }
  0x83   :  { %10107 = vmatpush3.bf16.msra.mxu0 %v11172_v35  ;;  %7387 = vmatprep.mubr.bf16.mxu0 %v1758_v7  ;;  %v11222_v35 = vld [vmem:[%s14528_s1 + $0x5a0] sm:$0xff]   ;;  %v11256_v7 = vld [vmem:[%s14528_s1 + $0x668] sm:$0xff]  }
  0x84   :  { %7348 = vmatmul.mubr.bf16.vlgmr.msra.gmra.mrb[12].mxu1 %v1718_v38  ;;  %10108 = vmatprep.subr.bf16.mxu0 %v11175_v39  ;;  %v11225_v38 = vld [vmem:[%s14528_s1 + $0x5e8] sm:$0xff]  }
  0x85   :  { %10129 = vmatpush3.bf16.msra.mxu1 %v11174_v37  ;;  %7427 = vmatprep.mubr.bf16.mxu1 %v1768_v11  ;;  %v11224_v37 = vld [vmem:[%s14528_s1 + $0x528] sm:$0xff]   ;;  %v11260_v11 = vld [vmem:[%s14528_s1 + $0x670] sm:$0xff]  }
  0x86   :  { %10130 = vmatprep.subr.bf16.mxu1 %v11177_v42  ;;  %v11226_v39 = vld [vmem:[%s14528_s1 + $0x5a8] sm:$0xff]   ;;  %v11228_v42 = vld [vmem:[%s14528_s1 + $0x530] sm:$0xff]  }
  0x87   :  { %10109 = vmatpush3.bf16.msra.mxu0 %v11176_v40  ;;  %v11227_v40 = vld [vmem:[%s14528_s1 + $0x570] sm:$0xff]  }
  0x88   :  { %10110 = vmatprep.subr.bf16.mxu0 %v11179_v44  ;;  %v11230_v44 = vld [vmem:[%s14528_s1 + $0x5b0] sm:$0xff]  }
  0x89   :  { %10131 = vmatpush3.bf16.msra.mxu1 %v11178_v43  ;;  %v11229_v43 = vld [vmem:[%s14528_s1 + $0x5f0] sm:$0xff]  }
  0x8a   :  { %10132 = vmatprep.subr.bf16.mxu1 %v11181_v46  ;;  %v11232_v46 = vld [vmem:[%s14528_s1 + $0x538] sm:$0xff]  }
  0x8b   :  { %10111 = vmatpush3.bf16.msra.mxu0 %v11180_v45  ;;  %v11231_v45 = vld [vmem:[%s14528_s1 + $0x578] sm:$0xff]  }
  0x8c   :  { %10112 = vmatprep.subr.bf16.mxu0 %v11183_v48  ;;  %v11235_v48 = vld [vmem:[%s14528_s1 + $0x5b8] sm:$0xff]  }
  0x8d   :  { %10133 = vmatpush3.bf16.msra.mxu1 %v11182_v47  ;;  %v11233_v47 = vld [vmem:[%s14528_s1 + $0x5f8] sm:$0xff]  }
  0x8e   :  { %10134 = vmatprep.subr.bf16.mxu1 %v11185_v50  ;;  %v11236_v50 = vld [vmem:[%s14528_s1 + $0x640] sm:$0xff]  }
  0x8f   :  { %10113 = vmatpush3.bf16.msra.mxu0 %v11184_v49  ;;  %v1751_v49 = vrot.slane %v12410_v4, %v12012_v41  ;;  %v11253_v4 = vld [vmem:[%s14528_s1 + $0x620] sm:$0xff]  }
  0x90   :  { %10114 = vmatprep.subr.bf16.mxu0 %v11187_v52  ;;  %v11238_v52 = vld [vmem:[%s14528_s1 + $0x6c0] sm:$0xff]  }
  0x91   :  { %10135 = vmatpush3.bf16.msra.mxu1 %v11186_v51  ;;  %v11237_v51 = vld [vmem:[%s14528_s1 + $0x600] sm:$0xff]  }
  0x92   :  { %10136 = vmatprep.subr.bf16.mxu1 %v11189_v54  ;;  %v1767_v54 = vcombine.high %v1751_v49, %v1751_v49 }
  0x93   :  { %10115 = vmatpush3.bf16.msra.mxu0 %v11188_v53  ;;  %v11239_v53 = vld [vmem:[%s14528_s1 + $0x680] sm:$0xff]  }
  0x94   :  { %10116 = vmatprep.subr.bf16.mxu0 %v11191_v56  ;;  %v11241_v56 = vld [vmem:[%s14528_s1 + $0x608] sm:$0xff]  }
  0x95   :  { %10137 = vmatpush3.bf16.msra.mxu1 %v11190_v55  ;;  %v11240_v55 = vld [vmem:[%s14528_s1 + $0x648] sm:$0xff]  }
  0x96   :  { %10138 = vmatprep.subr.bf16.mxu1 %v11193_v58  ;;  %v11243_v58 = vld [vmem:[%s14528_s1 + $0x688] sm:$0xff]  }
  0x97   :  { %10117 = vmatpush3.bf16.msra.mxu0 %v11192_v57  ;;  %v11242_v57 = vld [vmem:[%s14528_s1 + $0x6c8] sm:$0xff]  }
  0x98   :  { %10118 = vmatprep.subr.bf16.mxu0 %v11195_v60  ;;  %v11245_v60 = vld [vmem:[%s14528_s1 + $0x610] sm:$0xff]  }
  0x99   :  { %10139 = vmatpush3.bf16.msra.mxu1 %v11194_v59  ;;  %v11244_v59 = vld [vmem:[%s14528_s1 + $0x650] sm:$0xff]  }
  0x9a   :  { %10140 = vmatprep.subr.bf16.mxu1 %v11197_v1  ;;  %v11250_v1 = vld [vmem:[%s14528_s1 + $0x6d8] sm:$0xff]  }
  0x9b   :  { %10119 = vmatpush3.bf16.msra.mxu0 %v11196_v62  ;;  %v11247_v62 = vld [vmem:[%s14528_s1 + $0x690] sm:$0xff]  }
  0x9c   :  { %10120 = vmatprep.subr.bf16.mxu0 %v11199_v5  ;;  %v11254_v5 = vld [vmem:[%s14528_s1 + $0x6e0] sm:$0xff]  }
  0x9d   :  { %10141 = vmatpush3.bf16.msra.mxu1 %v11198_v2  ;;  %v11251_v2 = vld [vmem:[%s14528_s1 + $0x698] sm:$0xff]  }
  0x9e   :  { %10142 = vmatprep.subr.bf16.mxu1 %v11201_v9  ;;  %v11258_v9 = vld [vmem:[%s14528_s1 + $0x6e8] sm:$0xff]  }
  0x9f   :  { %10121 = vmatpush3.bf16.msra.mxu0 %v11200_v6  ;;  %v11255_v6 = vld [vmem:[%s14528_s1 + $0x6a0] sm:$0xff]  }
  0xa0   :  { %10150 = vmatprep.subr.bf16.mxu0 %v11203_v13  ;;  %v11262_v13 = vld [vmem:[%s14528_s1 + $0x6f0] sm:$0xff]  }
  0xa1   :  { %10143 = vmatpush3.bf16.msra.mxu1 %v11202_v10  ;;  %v11259_v10 = vld [vmem:[%s14528_s1 + $0x6a8] sm:$0xff]  }
  0xa2   :  { %7388 = vmatmul.mubr.bf16.vlgmr.msra.gmra.mrb[16].mxu0 %v1744_v12  ;;  %10172 = vmatprep.subr.bf16.mxu1 %v11205_v16  ;;  %v25_v12 = vld [vmem:[%s14527_s0 + $0x18] sm:$0xff]  ;;  %v11261_v16 = vld [vmem:[%s14528_s1 + $0x630] sm:$0xff]  }
  0xa3   :  { %10151 = vmatpush3.bf16.msra.mxu0 %v11204_v14  ;;  %7467 = vmatprep.mubr.bf16.mxu0 %v1765_v15  ;;  %v1777_v14 = vrot.slane %v25_v12, %v12012_v41  ;;  %v1770_v15 = vcombine.high %v25_v12, %v25_v12  ;;  %v11300_v12 = vld [vmem:[%s14528_s1 + $0x7b8] sm:$0xff]  }
  0xa4   :  { %7428 = vmatmul.mubr.bf16.vlgmr.msra.gmra.mrb[16].mxu1 %v1766_v18  ;;  %10152 = vmatprep.subr.bf16.mxu0 %v11207_v19 }
  0xa5   :  { %10173 = vmatpush3.bf16.msra.mxu1 %v11206_v17  ;;  %7507 = vmatprep.mubr.bf16.mxu1 %v1769_v21  ;;  %v11264_v17 = vld [vmem:[%s14528_s1 + $0x678] sm:$0xff]   ;;  %v1785_v18 = vcombine.high %v1777_v14, %v1777_v14  ;;  %v12616_v19 = vrot.slane %v1770_v15, %v12012_v41  ;;  %v11302_v15 = vld [vmem:[%s14528_s1 + $0x800] sm:$0xff]  }
  0xa6   :  { %10174 = vmatprep.subr.bf16.mxu1 %v11209_v22  ;;  %v11266_v21 = vld [vmem:[%s14528_s1 + $0x6f8] sm:$0xff]  }
  0xa7   :  { %10153 = vmatpush3.bf16.msra.mxu0 %v11208_v20  ;;  %v11263_v20 = vld [vmem:[%s14528_s1 + $0x6b0] sm:$0xff]   ;;  %v1807_v22 = vrot.slane %v1785_v18, %v12012_v41 }
  0xa8   :  { %10154 = vmatprep.subr.bf16.mxu0 %v11211_v24  ;;  %v11265_v24 = vld [vmem:[%s14528_s1 + $0x638] sm:$0xff]  }
  0xa9   :  { %10175 = vmatpush3.bf16.msra.mxu1 %v11210_v23  ;;  %v1786_v23 = vcombine.high %v12616_v19, %v12616_v19 }
  0xaa   :  { %10176 = vmatprep.subr.bf16.mxu1 %v11213_v26  ;;  %v11268_v26 = vld [vmem:[%s14528_s1 + $0x740] sm:$0xff]  }
  0xab   :  { %10155 = vmatpush3.bf16.msra.mxu0 %v11212_v25  ;;  %v1793_v25 = vrot.slane %v1777_v14, %v12012_v41  ;;  %v11301_v14 = vld [vmem:[%s14528_s1 + $0x840] sm:$0xff]  }
  0xac   :  { %10156 = vmatprep.subr.bf16.mxu0 %v11215_v28  ;;  %v11267_v28 = vld [vmem:[%s14528_s1 + $0x6b8] sm:$0xff]  }
  0xad   :  { %10177 = vmatpush3.bf16.msra.mxu1 %v11214_v27  ;;  %v1817_v27 = vcombine.high %v1807_v22, %v1807_v22 }
  0xae   :  { %10178 = vmatprep.subr.bf16.mxu1 %v11217_v30  ;;  %v11270_v30 = vld [vmem:[%s14528_s1 + $0x7c0] sm:$0xff]  }
  0xaf   :  { %10157 = vmatpush3.bf16.msra.mxu0 %v11216_v29  ;;  %v1814_v29 = vrot.slane %v1786_v23, %v12012_v41  ;;  %v11309_v23 = vld [vmem:[%s14528_s1 + $0x850] sm:$0xff]  }
  0xb0   :  { %10158 = vmatprep.subr.bf16.mxu0 %v11219_v32  ;;  %v1815_v32 = vcombine.high %v1793_v25, %v1793_v25 }
  0xb1   :  { %10179 = vmatpush3.bf16.msra.mxu1 %v11218_v31  ;;  %v11269_v31 = vld [vmem:[%s14528_s1 + $0x700] sm:$0xff]  }
  0xb2   :  { %10180 = vmatprep.subr.bf16.mxu1 %v11221_v34  ;;  %v11271_v34 = vld [vmem:[%s14528_s1 + $0x780] sm:$0xff]  }
  0xb3   :  { %10159 = vmatpush3.bf16.msra.mxu0 %v11220_v33  ;;  %v11272_v33 = vld [vmem:[%s14528_s1 + $0x748] sm:$0xff]  }
  0xb4   :  { %10160 = vmatprep.subr.bf16.mxu0 %v11223_v36  ;;  %v11274_v36 = vld [vmem:[%s14528_s1 + $0x7c8] sm:$0xff]  }
  0xb5   :  { %10181 = vmatpush3.bf16.msra.mxu1 %v11222_v35  ;;  %v1818_v35 = vcombine.high %v1814_v29, %v1814_v29 }
  0xb6   :  { %10182 = vmatprep.subr.bf16.mxu1 %v11225_v38  ;;  %v11276_v38 = vld [vmem:[%s14528_s1 + $0x750] sm:$0xff]  }
  0xb7   :  { %10161 = vmatpush3.bf16.msra.mxu0 %v11224_v37  ;;  %v11273_v37 = vld [vmem:[%s14528_s1 + $0x708] sm:$0xff]  }
  0xb8   :  { %10162 = vmatprep.subr.bf16.mxu0 %v11227_v40  ;;  %v11278_v40 = vld [vmem:[%s14528_s1 + $0x7d0] sm:$0xff]  }
  0xb9   :  { %10183 = vmatpush3.bf16.msra.mxu1 %v11226_v39  ;;  %v11275_v39 = vld [vmem:[%s14528_s1 + $0x788] sm:$0xff]  }
  0xba   :  { %10184 = vmatprep.subr.bf16.mxu1 %v11229_v43  ;;  %v11280_v43 = vld [vmem:[%s14528_s1 + $0x758] sm:$0xff]  }
  0xbb   :  { %10163 = vmatpush3.bf16.msra.mxu0 %v11228_v42  ;;  %v11277_v42 = vld [vmem:[%s14528_s1 + $0x710] sm:$0xff]  }
  0xbc   :  { %10164 = vmatprep.subr.bf16.mxu0 %v11231_v45  ;;  %v11281_v45 = vld [vmem:[%s14528_s1 + $0x718] sm:$0xff]  }
  0xbd   :  { %10185 = vmatpush3.bf16.msra.mxu1 %v11230_v44  ;;  %v11279_v44 = vld [vmem:[%s14528_s1 + $0x790] sm:$0xff]  }
  0xbe   :  { %10186 = vmatprep.subr.bf16.mxu1 %v11233_v47  ;;  %v11283_v47 = vld [vmem:[%s14528_s1 + $0x798] sm:$0xff]  }
  0xbf   :  { %10165 = vmatpush3.bf16.msra.mxu0 %v11232_v46  ;;  %v11282_v46 = vld [vmem:[%s14528_s1 + $0x7d8] sm:$0xff]  }
  0xc0   :  { %10194 = vmatprep.subr.bf16.mxu0 %v11236_v50  ;;  %v11286_v50 = vld [vmem:[%s14528_s1 + $0x7e0] sm:$0xff]  }
  0xc1   :  { %10187 = vmatpush3.bf16.msra.mxu1 %v11235_v48  ;;  %v11284_v48 = vld [vmem:[%s14528_s1 + $0x760] sm:$0xff]  }
  0xc2   :  { %7468 = vmatmul.mubr.bf16.vlgmr.msra.gmra.mrb[20].mxu0 %v1751_v49  ;;  %10216 = vmatprep.subr.bf16.mxu1 %v11238_v52  ;;  %v11285_v49 = vld [vmem:[%s14528_s1 + $0x720] sm:$0xff]   ;;  %v11288_v52 = vld [vmem:[%s14528_s1 + $0x768] sm:$0xff]  }
  0xc3   :  { %10195 = vmatpush3.bf16.msra.mxu0 %v11237_v51  ;;  %7547 = vmatprep.mubr.bf16.mxu0 %v1807_v22  ;;  %v11287_v51 = vld [vmem:[%s14528_s1 + $0x7a0] sm:$0xff]   ;;  %v11308_v22 = vld [vmem:[%s14528_s1 + $0x888] sm:$0xff]  }
  0xc4   :  { %7508 = vmatmul.mubr.bf16.vlgmr.msra.gmra.mrb[20].mxu1 %v1767_v54  ;;  %10196 = vmatprep.subr.bf16.mxu0 %v11240_v55  ;;  %v11290_v54 = vld [vmem:[%s14528_s1 + $0x7e8] sm:$0xff]  }
  0xc5   :  { %10217 = vmatpush3.bf16.msra.mxu1 %v11239_v53  ;;  %7587 = vmatprep.mubr.bf16.mxu1 %v1817_v27  ;;  %v11289_v53 = vld [vmem:[%s14528_s1 + $0x728] sm:$0xff]   ;;  %v11313_v27 = vld [vmem:[%s14528_s1 + $0x858] sm:$0xff]  }
  0xc6   :  { %10218 = vmatprep.subr.bf16.mxu1 %v11242_v57  ;;  %v11291_v55 = vld [vmem:[%s14528_s1 + $0x7a8] sm:$0xff]   ;;  %v11292_v57 = vld [vmem:[%s14528_s1 + $0x770] sm:$0xff]  }
  0xc7   :  { %10197 = vmatpush3.bf16.msra.mxu0 %v11241_v56  ;;  %v9135_v56 = vld [vmem:[%s14529_s2] ss:$0 sm:$0xff] }
  0xc8   :  { %10198 = vmatprep.subr.bf16.mxu0 %v11244_v59  ;;  %v11293_v59 = vld [vmem:[%s14528_s1 + $0x730] sm:$0xff]  }
  0xc9   :  { %10219 = vmatpush3.bf16.msra.mxu1 %v11243_v58 }
  0xca   :  { %10220 = vmatprep.subr.bf16.mxu1 %v11246_v61  ;;  %v11294_v61 = vld [vmem:[%s14528_s1 + $0x7f0] sm:$0xff]  }
  0xcb   :  { %10199 = vmatpush3.bf16.msra.mxu0 %v11245_v60 }
  0xcc   :  { %10200 = vmatprep.subr.bf16.mxu0 %v11248_v63 }
  0xcd   :  { %10221 = vmatpush3.bf16.msra.mxu1 %v11247_v62 }
  0xce   :  { %10222 = vmatprep.subr.bf16.mxu1 %v11250_v1  ;;  %v11295_v1 = vld [vmem:[%s14528_s1 + $0x7b0] sm:$0xff]  }
  0xcf   :  { %10201 = vmatpush3.bf16.msra.mxu0 %v11249_v0 }
  0xd0   :  { %10202 = vmatprep.subr.bf16.mxu0 %v11252_v3 }
  0xd1   :  { %10223 = vmatpush3.bf16.msra.mxu1 %v11251_v2  ;;  %v11296_v2 = vld [vmem:[%s14528_s1 + $0x778] sm:$0xff]  }
  0xd2   :  { %10224 = vmatprep.subr.bf16.mxu1 %v11254_v5 }
  0xd3   :  { %10203 = vmatpush3.bf16.msra.mxu0 %v11253_v4 }
  0xd4   :  { %10204 = vmatprep.subr.bf16.mxu0 %v11256_v7  ;;  %v11297_v7 = vld [vmem:[%s14528_s1 + $0x738] sm:$0xff]  }
  0xd5   :  { %10225 = vmatpush3.bf16.msra.mxu1 %v11255_v6 }
  0xd6   :  { %10226 = vmatprep.subr.bf16.mxu1 %v11258_v9  ;;  %v11298_v9 = vld [vmem:[%s14528_s1 + $0x7f8] sm:$0xff]  }
  0xd7   :  { %10205 = vmatpush3.bf16.msra.mxu0 %v11257_v8 }
  0xd8   :  { %10206 = vmatprep.subr.bf16.mxu0 %v11260_v11 }
  0xd9   :  { %10227 = vmatpush3.bf16.msra.mxu1 %v11259_v10 }
  0xda   :  { %10228 = vmatprep.subr.bf16.mxu1 %v11262_v13  ;;  %v1800_v13 = vrot.slane %v12616_v19, %v12012_v41  ;;  %v11305_v19 = vld [vmem:[%s14528_s1 + $0x848] sm:$0xff]  }
  0xdb   :  { %10207 = vmatpush3.bf16.msra.mxu0 %v11261_v16  ;;  %v11303_v16 = vld [vmem:[%s14528_s1 + $0x8c0] sm:$0xff]  }
  0xdc   :  { %10208 = vmatprep.subr.bf16.mxu0 %v11264_v17  ;;  %v11304_v17 = vld [vmem:[%s14528_s1 + $0x880] sm:$0xff]   ;;  %v1816_v18 = vcombine.high %v1800_v13, %v1800_v13 }
  0xdd   :  { %10229 = vmatpush3.bf16.msra.mxu1 %v11263_v20  ;;  %v11306_v20 = vld [vmem:[%s14528_s1 + $0x808] sm:$0xff]  }
  0xde   :  { %10230 = vmatprep.subr.bf16.mxu1 %v11266_v21  ;;  %v11307_v21 = vld [vmem:[%s14528_s1 + $0x8c8] sm:$0xff]  }
  0xdf   :  { %10209 = vmatpush3.bf16.msra.mxu0 %v11265_v24  ;;  %v11310_v24 = vld [vmem:[%s14528_s1 + $0x810] sm:$0xff]  }
  0xe0   :  { %10238 = vmatprep.subr.bf16.mxu0 %v11268_v26  ;;  %v11312_v26 = vld [vmem:[%s14528_s1 + $0x890] sm:$0xff]  }
  0xe1   :  { %10231 = vmatpush3.bf16.msra.mxu1 %v11267_v28  ;;  %v11314_v28 = vld [vmem:[%s14528_s1 + $0x818] sm:$0xff]  }
  0xe2   :  { %7548 = vmatmul.mubr.bf16.vlgmr.msra.gmra.mrb[24].mxu0 %v1793_v25  ;;  %10260 = vmatprep.subr.bf16.mxu1 %v11270_v30  ;;  %v11311_v25 = vld [vmem:[%s14528_s1 + $0x8d0] sm:$0xff]   ;;  %v11316_v30 = vld [vmem:[%s14528_s1 + $0x898] sm:$0xff]  }
  0xe3   :  { %10239 = vmatpush3.bf16.msra.mxu0 %v11269_v31  ;;  %7627 = vmatprep.mubr.bf16.mxu0 %v1814_v29  ;;  %v11315_v29 = vld [vmem:[%s14528_s1 + $0x8d8] sm:$0xff]   ;;  %v11317_v31 = vld [vmem:[%s14528_s1 + $0x860] sm:$0xff]  }
  0xe4   :  { %7588 = vmatmul.mubr.bf16.vlgmr.msra.gmra.mrb[24].mxu1 %v1815_v32  ;;  %10240 = vmatprep.subr.bf16.mxu0 %v11272_v33  ;;  %v11318_v32 = vld [vmem:[%s14528_s1 + $0x820] sm:$0xff]  }
  0xe5   :  { %10261 = vmatpush3.bf16.msra.mxu1 %v11271_v34  ;;  %7667 = vmatprep.mubr.bf16.mxu1 %v1818_v35  ;;  %v11319_v33 = vld [vmem:[%s14528_s1 + $0x8e0] sm:$0xff]   ;;  %v11321_v35 = vld [vmem:[%s14528_s1 + $0x868] sm:$0xff]  }
  0xe6   :  { %10262 = vmatprep.subr.bf16.mxu1 %v11274_v36  ;;  %v11320_v34 = vld [vmem:[%s14528_s1 + $0x8a0] sm:$0xff]   ;;  %v11322_v36 = vld [vmem:[%s14528_s1 + $0x828] sm:$0xff]  }
  0xe7   :  { %10241 = vmatpush3.bf16.msra.mxu0 %v11273_v37  ;;  %v11323_v37 = vld [vmem:[%s14528_s1 + $0x8e8] sm:$0xff]  }
  0xe8   :  { %10242 = vmatprep.subr.bf16.mxu0 %v11276_v38  ;;  %v11324_v38 = vld [vmem:[%s14528_s1 + $0x8a8] sm:$0xff]  }
  0xe9   :  { %10263 = vmatpush3.bf16.msra.mxu1 %v11275_v39  ;;  %v11325_v39 = vld [vmem:[%s14528_s1 + $0x870] sm:$0xff]  }
  0xea   :  { %10264 = vmatprep.subr.bf16.mxu1 %v11278_v40 }
  0xeb   :  { %10243 = vmatpush3.bf16.msra.mxu0 %v11277_v42  ;;  %v11326_v42 = vld [vmem:[%s14528_s1 + $0x830] sm:$0xff]  }
  0xec   :  { %10244 = vmatprep.subr.bf16.mxu0 %v11280_v43  ;;  %v11327_v43 = vld [vmem:[%s14528_s1 + $0x8f0] sm:$0xff]  }
  0xed   :  { %10265 = vmatpush3.bf16.msra.mxu1 %v11279_v44 }
  0xee   :  { %10266 = vmatprep.subr.bf16.mxu1 %v11282_v46 }
  0xef   :  { %10245 = vmatpush3.bf16.msra.mxu0 %v11281_v45  ;;  %v26_v45 = vld [vmem:[%s14527_s0 + $0x20] sm:$0xff] }
  0xf0   :  { %10246 = vmatprep.subr.bf16.mxu0 %v11284_v48 }
  0xf1   :  { %10267 = vmatpush3.bf16.msra.mxu1 %v11283_v47 }
  0xf2   :  { %10268 = vmatprep.subr.bf16.mxu1 %v11286_v50  ;;  %v11329_v50 = vld [vmem:[%s14528_s1 + $0x878] sm:$0xff]  }
  0xf3   :  { %10247 = vmatpush3.bf16.msra.mxu0 %v11285_v49  ;;  %v11328_v49 = vld [vmem:[%s14528_s1 + $0x8b0] sm:$0xff]  }
  0xf4   :  { %10248 = vmatprep.subr.bf16.mxu0 %v11288_v52  ;;  %v1819_v52 = vcombine.high %v26_v45, %v26_v45 }
  0xf5   :  { %v9946_v58 = vpop.f32.mrb[0].mxu0  ;;  %10269 = vmatpush3.bf16.msra.mxu1 %v11287_v51  ;;  %v1826_v51 = vrot.slane %v26_v45, %v12012_v41 }
  0xf6   :  { %v9947_v60 = vpop.f32.mrb[1].mxu0  ;;  %10270 = vmatprep.subr.bf16.mxu1 %v11290_v54 }
  0xf7   :  { %v9948_v62 = vadd.f32 %v9947_v60, %v9946_v58  ;;  %v9949_v63 = vpop.f32.mrb[2].mxu0  ;;  %v9968_v0 = vpop.f32.mrb[0].mxu1  ;;  %10249 = vmatpush3.bf16.msra.mxu0 %v11289_v53  ;;  %v1834_v58 = vcombine.high %v1826_v51, %v1826_v51  ;;  %v11331_v60 = vld [vmem:[%s14528_s1 + $0x8f8] sm:$0xff]  }
  0xf8   :  { %v9950_v3 = vpop.f32.mrb[3].mxu0  ;;  %v9969_v4 = vpop.f32.mrb[1].mxu1  ;;  %10250 = vmatprep.subr.bf16.mxu0 %v11292_v57  ;;  %v11330_v57 = vld [vmem:[%s14528_s1 + $0x838] sm:$0xff]  }
  0xf9   :  { %v7070_v5 = vadd.f32 %v9948_v62, %v9135_v56  ;;  %v9970_v6 = vadd.f32 %v9969_v4, %v9968_v0  ;;  %10271 = vmatpush3.bf16.msra.mxu1 %v11291_v55  ;;  %v9971_v8 = vpop.f32.mrb[2].mxu1  ;;  %v12837_v62 = vrot.slane %v1819_v52, %v12012_v41  ;;  %v1856_v0 = vrot.slane %v1834_v58, %v12012_v41  ;;  %v11333_v3 = vld [vmem:[%s14528_s1 + $0x940] sm:$0xff]   ;;  %v11365_v52 = vld [vmem:[%s14528_s1 + $0x9b8] sm:$0xff]  }
  0xfa   :  { %10272 = vmatprep.subr.bf16.mxu1 %v11294_v61  ;;  %v9972_v10 = vpop.f32.mrb[3].mxu1 }
  0xfb   :  { %v12731_v11 = vadd.f32 %v9970_v6, %v7070_v5  ;;  %10251 = vmatpush3.bf16.msra.mxu0 %v11293_v59  ;;  %v1835_v4 = vcombine.high %v12837_v62, %v12837_v62  ;;  %v1866_v5 = vcombine.high %v1856_v0, %v1856_v0  ;;  %v11334_v6 = vld [vmem:[%s14528_s1 + $0x900] sm:$0xff]  }
  0xfc   :  { %10252 = vmatprep.subr.bf16.mxu0 %v11296_v2  ;;  %v1842_v2 = vrot.slane %v1826_v51, %v12012_v41 }
  0xfd   :  { %10273 = vmatpush3.bf16.msra.mxu1 %v11295_v1  ;;  %v11332_v1 = vld [vmem:[%s14528_s1 + $0x8b8] sm:$0xff]   ;;  %v1863_v8 = vrot.slane %v1835_v4, %v12012_v41 }
  0xfe   :  { %10274 = vmatprep.subr.bf16.mxu1 %v11298_v9  ;;  %v11336_v9 = vld [vmem:[%s14528_s1 + $0x980] sm:$0xff]   ;;  %v1864_v10 = vcombine.high %v1842_v2, %v1842_v2  ;;  %v11379_v4 = vld [vmem:[%s14528_s1 + $0xa18] sm:$0xff]  }
  0xff   :  { %10253 = vmatpush3.bf16.msra.mxu0 %v11297_v7  ;;  %v11335_v7 = vld [vmem:[%s14528_s1 + $0x9c0] sm:$0xff]  }
 0x100   :  { %10282 = vmatprep.subr.bf16.mxu0 %v11301_v14  ;;  %v11339_v14 = vld [vmem:[%s14528_s1 + $0x9c8] sm:$0xff]  }
 0x101   :  { %10275 = vmatpush3.bf16.msra.mxu1 %v11300_v12  ;;  %v11338_v12 = vld [vmem:[%s14528_s1 + $0x908] sm:$0xff]  }
 0x102   :  { %7628 = vmatmul.mubr.bf16.vlgmr.msra.gmra.mrb[28].mxu0 %v1800_v13  ;;  %10304 = vmatprep.subr.bf16.mxu1 %v11303_v16  ;;  %v1867_v13 = vcombine.high %v1863_v8, %v1863_v8  ;;  %v11341_v16 = vld [vmem:[%s14528_s1 + $0x950] sm:$0xff]  }
 0x103   :  { %10283 = vmatpush3.bf16.msra.mxu0 %v11302_v15  ;;  %7707 = vmatprep.mubr.bf16.mxu0 %v1856_v0  ;;  %v11340_v15 = vld [vmem:[%s14528_s1 + $0x988] sm:$0xff]   ;;  %v11375_v0 = vld [vmem:[%s14528_s1 + $0xa10] sm:$0xff]  }
 0x104   :  { %7668 = vmatmul.mubr.bf16.vlgmr.msra.gmra.mrb[28].mxu1 %v1816_v18  ;;  %10284 = vmatprep.subr.bf16.mxu0 %v11305_v19  ;;  %v11343_v18 = vld [vmem:[%s14528_s1 + $0x9d0] sm:$0xff]  }
 0x105   :  { %10305 = vmatpush3.bf16.msra.mxu1 %v11304_v17  ;;  %7747 = vmatprep.mubr.bf16.mxu1 %v1866_v5  ;;  %v11342_v17 = vld [vmem:[%s14528_s1 + $0x910] sm:$0xff]   ;;  %v11380_v5 = vld [vmem:[%s14528_s1 + $0xad8] sm:$0xff]  }
 0x106   :  { %10306 = vmatprep.subr.bf16.mxu1 %v11307_v21  ;;  %v11344_v19 = vld [vmem:[%s14528_s1 + $0x990] sm:$0xff]   ;;  %v11346_v21 = vld [vmem:[%s14528_s1 + $0x918] sm:$0xff]  }
 0x107   :  { %10285 = vmatpush3.bf16.msra.mxu0 %v11306_v20  ;;  %v11345_v20 = vld [vmem:[%s14528_s1 + $0x958] sm:$0xff]  }
 0x108   :  { %10286 = vmatprep.subr.bf16.mxu0 %v11309_v23  ;;  %v11348_v23 = vld [vmem:[%s14528_s1 + $0x998] sm:$0xff]  }
 0x109   :  { %10307 = vmatpush3.bf16.msra.mxu1 %v11308_v22  ;;  %v11347_v22 = vld [vmem:[%s14528_s1 + $0x9d8] sm:$0xff]  }
 0x10a   :  { %10308 = vmatprep.subr.bf16.mxu1 %v11311_v25  ;;  %v11350_v25 = vld [vmem:[%s14528_s1 + $0x920] sm:$0xff]  }
 0x10b   :  { %10287 = vmatpush3.bf16.msra.mxu0 %v11310_v24  ;;  %v11349_v24 = vld [vmem:[%s14528_s1 + $0x960] sm:$0xff]  }
 0x10c   :  { %10288 = vmatprep.subr.bf16.mxu0 %v11313_v27  ;;  %v11352_v27 = vld [vmem:[%s14528_s1 + $0x9a0] sm:$0xff]  }
 0x10d   :  { %10309 = vmatpush3.bf16.msra.mxu1 %v11312_v26  ;;  %v11351_v26 = vld [vmem:[%s14528_s1 + $0x9e0] sm:$0xff]  }
 0x10e   :  { %10310 = vmatprep.subr.bf16.mxu1 %v11315_v29  ;;  %v11354_v29 = vld [vmem:[%s14528_s1 + $0x928] sm:$0xff]  }
 0x10f   :  { %10289 = vmatpush3.bf16.msra.mxu0 %v11314_v28  ;;  %v11353_v28 = vld [vmem:[%s14528_s1 + $0x968] sm:$0xff]  }
 0x110   :  { %10290 = vmatprep.subr.bf16.mxu0 %v11317_v31  ;;  %v11356_v31 = vld [vmem:[%s14528_s1 + $0x9a8] sm:$0xff]  }
 0x111   :  { %10311 = vmatpush3.bf16.msra.mxu1 %v11316_v30  ;;  %v11355_v30 = vld [vmem:[%s14528_s1 + $0x9e8] sm:$0xff]  }
 0x112   :  { %10312 = vmatprep.subr.bf16.mxu1 %v11319_v33 }
 0x113   :  { %10291 = vmatpush3.bf16.msra.mxu0 %v11318_v32  ;;  %v11357_v32 = vld [vmem:[%s14528_s1 + $0x970] sm:$0xff]  }
 0x114   :  { %10292 = vmatprep.subr.bf16.mxu0 %v11321_v35 }
 0x115   :  { %v9990_v40 = vpop.f32.mrb[4].mxu0  ;;  %10313 = vmatpush3.bf16.msra.mxu1 %v11320_v34  ;;  %v11358_v34 = vld [vmem:[%s14528_s1 + $0x930] sm:$0xff]  }
 0x116   :  { %v9991_v44 = vpop.f32.mrb[5].mxu0  ;;  %10314 = vmatprep.subr.bf16.mxu1 %v11323_v37 }
 0x117   :  { %v9992_v46 = vadd.f32 %v9991_v44, %v9990_v40  ;;  %v9993_v47 = vpop.f32.mrb[6].mxu0  ;;  %v10012_v48 = vpop.f32.mrb[4].mxu1  ;;  %10293 = vmatpush3.bf16.msra.mxu0 %v11322_v36  ;;  %v11359_v36 = vld [vmem:[%s14528_s1 + $0x9f0] sm:$0xff]  }
 0x118   :  { %v9994_v53 = vpop.f32.mrb[7].mxu0  ;;  %v10013_v54 = vpop.f32.mrb[5].mxu1  ;;  %10294 = vmatprep.subr.bf16.mxu0 %v11325_v39  ;;  %v11360_v40 = vld [vmem:[%s14528_s1 + $0x9b0] sm:$0xff]   ;;  %v11362_v47 = vld [vmem:[%s14528_s1 + $0x938] sm:$0xff]  }
 0x119   :  { %v7150_v55 = vadd.f32 %v9992_v46, %v12731_v11  ;;  %v10014_v56 = vadd.f32 %v10013_v54, %v10012_v48  ;;  %10315 = vmatpush3.bf16.msra.mxu1 %v11324_v38  ;;  %v10015_v59 = vpop.f32.mrb[6].mxu1  ;;  %v11337_v11 = vld [vmem:[%s14528_s1 + $0x948] sm:$0xff]   ;;  %v1849_v53 = vrot.slane %v12837_v62, %v12012_v41  ;;  %v11366_v54 = vld [vmem:[%s14528_s1 + $0xa40] sm:$0xff]  }
 0x11a   :  { %10316 = vmatprep.subr.bf16.mxu1 %v11327_v43  ;;  %v10016_v61 = vpop.f32.mrb[7].mxu1  ;;  %v11370_v59 = vld [vmem:[%s14528_s1 + $0xa48] sm:$0xff]  }
 0x11b   :  { %v12839_v63 = vadd.f32 %v10014_v56, %v7150_v55  ;;  %10295 = vmatpush3.bf16.msra.mxu0 %v11326_v42  ;;  %v11361_v42 = vld [vmem:[%s14528_s1 + $0x978] sm:$0xff]   ;;  %v11367_v55 = vld [vmem:[%s14528_s1 + $0xa00] sm:$0xff]   ;;  %v1865_v58 = vcombine.high %v1849_v53, %v1849_v53  ;;  %v11372_v61 = vld [vmem:[%s14528_s1 + $0xac8] sm:$0xff]  }
 0x11c   :  { %10296 = vmatprep.subr.bf16.mxu0 %v11329_v50  ;;  %v11368_v56 = vld [vmem:[%s14528_s1 + $0xac0] sm:$0xff]   ;;  %v11373_v62 = vld [vmem:[%s14528_s1 + $0xa88] sm:$0xff]  }
 0x11d   :  { %10317 = vmatpush3.bf16.msra.mxu1 %v11328_v49  ;;  %v11363_v49 = vld [vmem:[%s14528_s1 + $0x9f8] sm:$0xff]  }
 0x11e   :  { %10318 = vmatprep.subr.bf16.mxu1 %v11331_v60  ;;  %v11371_v60 = vld [vmem:[%s14528_s1 + $0xa08] sm:$0xff]  }
 0x11f   :  { %10297 = vmatpush3.bf16.msra.mxu0 %v11330_v57  ;;  %v11369_v57 = vld [vmem:[%s14528_s1 + $0xa80] sm:$0xff]  }
 0x120   :  { %10326 = vmatprep.subr.bf16.mxu0 %v11333_v3  ;;  %v11378_v3 = vld [vmem:[%s14528_s1 + $0xa58] sm:$0xff]  }
 0x121   :  { %10319 = vmatpush3.bf16.msra.mxu1 %v11332_v1  ;;  %v11376_v1 = vld [vmem:[%s14528_s1 + $0xad0] sm:$0xff]  }
 0x122   :  { %7708 = vmatmul.mubr.bf16.vlgmr.msra.gmra.mrb[32].mxu0 %v1842_v2  ;;  %10348 = vmatprep.subr.bf16.mxu1 %v11335_v7  ;;  %v11377_v2 = vld [vmem:[%s14528_s1 + $0xa90] sm:$0xff]   ;;  %v11382_v7 = vld [vmem:[%s14528_s1 + $0xa60] sm:$0xff]  }
 0x123   :  { %10327 = vmatpush3.bf16.msra.mxu0 %v11334_v6  ;;  %7787 = vmatprep.mubr.bf16.mxu0 %v1863_v8  ;;  %v11381_v6 = vld [vmem:[%s14528_s1 + $0xa98] sm:$0xff]   ;;  %v11383_v8 = vld [vmem:[%s14528_s1 + $0xa20] sm:$0xff]  }
 0x124   :  { %7748 = vmatmul.mubr.bf16.vlgmr.msra.gmra.mrb[32].mxu1 %v1864_v10  ;;  %10328 = vmatprep.subr.bf16.mxu0 %v11337_v11  ;;  %v11385_v10 = vld [vmem:[%s14528_s1 + $0xaa0] sm:$0xff]   ;;  %v11386_v11 = vld [vmem:[%s14528_s1 + $0xa68] sm:$0xff]  }
 0x125   :  { %10349 = vmatpush3.bf16.msra.mxu1 %v11336_v9  ;;  %7827 = vmatprep.mubr.bf16.mxu1 %v1867_v13  ;;  %v11384_v9 = vld [vmem:[%s14528_s1 + $0xae0] sm:$0xff]   ;;  %v11388_v13 = vld [vmem:[%s14528_s1 + $0xae8] sm:$0xff]  }
 0x126   :  { %10350 = vmatprep.subr.bf16.mxu1 %v11339_v14  ;;  %v11389_v14 = vld [vmem:[%s14528_s1 + $0xaa8] sm:$0xff]  }
 0x127   :  { %10329 = vmatpush3.bf16.msra.mxu0 %v11338_v12  ;;  %v11387_v12 = vld [vmem:[%s14528_s1 + $0xa28] sm:$0xff]  }
 0x128   :  { %10330 = vmatprep.subr.bf16.mxu0 %v11341_v16 }
 0x129   :  { %10351 = vmatpush3.bf16.msra.mxu1 %v11340_v15  ;;  %v11390_v15 = vld [vmem:[%s14528_s1 + $0xa70] sm:$0xff]  }
 0x12a   :  { %10352 = vmatprep.subr.bf16.mxu1 %v11343_v18 }
 0x12b   :  { %10331 = vmatpush3.bf16.msra.mxu0 %v11342_v17  ;;  %v11391_v17 = vld [vmem:[%s14528_s1 + $0xa30] sm:$0xff]  }
 0x12c   :  { %10332 = vmatprep.subr.bf16.mxu0 %v11345_v20 }
 0x12d   :  { %10353 = vmatpush3.bf16.msra.mxu1 %v11344_v19  ;;  %v11392_v19 = vld [vmem:[%s14528_s1 + $0xaf0] sm:$0xff]  }
 0x12e   :  { %10354 = vmatprep.subr.bf16.mxu1 %v11347_v22 }
 0x12f   :  { %10333 = vmatpush3.bf16.msra.mxu0 %v11346_v21 }
 0x130   :  { %10334 = vmatprep.subr.bf16.mxu0 %v11349_v24  ;;  %v11394_v24 = vld [vmem:[%s14528_s1 + $0xa78] sm:$0xff]  }
 0x131   :  { %10355 = vmatpush3.bf16.msra.mxu1 %v11348_v23  ;;  %v11393_v23 = vld [vmem:[%s14528_s1 + $0xab0] sm:$0xff]  }
 0x132   :  { %10356 = vmatprep.subr.bf16.mxu1 %v11351_v26 }
 0x133   :  { %10335 = vmatpush3.bf16.msra.mxu0 %v11350_v25  ;;  %v27_v25 = vld [vmem:[%s14527_s0 + $0x28] sm:$0xff] }
 0x134   :  { %10336 = vmatprep.subr.bf16.mxu0 %v11353_v28  ;;  %v1875_v28 = vrot.slane %v27_v25, %v12012_v41 }
 0x135   :  { %v10034_v33 = vpop.f32.mrb[8].mxu0  ;;  %10357 = vmatpush3.bf16.msra.mxu1 %v11352_v27 }
 0x136   :  { %v10035_v35 = vpop.f32.mrb[9].mxu0  ;;  %10358 = vmatprep.subr.bf16.mxu1 %v11355_v30 }
 0x137   :  { %v10036_v37 = vadd.f32 %v10035_v35, %v10034_v33  ;;  %v10037_v38 = vpop.f32.mrb[10].mxu0  ;;  %v10056_v39 = vpop.f32.mrb[8].mxu1  ;;  %10337 = vmatpush3.bf16.msra.mxu0 %v11354_v29  ;;  %v1868_v29 = vcombine.high %v27_v25, %v27_v25  ;;  %v1883_v35 = vcombine.high %v1875_v28, %v1875_v28 }
 0x138   :  { %v10038_v43 = vpop.f32.mrb[11].mxu0  ;;  %v10057_v44 = vpop.f32.mrb[9].mxu1  ;;  %10338 = vmatprep.subr.bf16.mxu0 %v11357_v32  ;;  %v11395_v32 = vld [vmem:[%s14528_s1 + $0xa38] sm:$0xff]  }
 0x139   :  { %v7230_v45 = vadd.f32 %v10036_v37, %v12839_v63  ;;  %v10058_v46 = vadd.f32 %v10057_v44, %v10056_v39  ;;  %10359 = vmatpush3.bf16.msra.mxu1 %v11356_v31  ;;  %v10059_v48 = vpop.f32.mrb[10].mxu1  ;;  %v11374_v63 = vld [vmem:[%s14528_s1 + $0xa50] sm:$0xff]   ;;  %v13049_v37 = vrot.slane %v1868_v29, %v12012_v41  ;;  %v11397_v39 = vld [vmem:[%s14528_s1 + $0xab8] sm:$0xff]   ;;  %v11398_v43 = vld [vmem:[%s14528_s1 + $0xb40] sm:$0xff]  }
 0x13a   :  { %10360 = vmatprep.subr.bf16.mxu1 %v11359_v36  ;;  %v10060_v50 = vpop.f32.mrb[11].mxu1  ;;  %v11431_v29 = vld [vmem:[%s14528_s1 + $0xc40] sm:$0xff]  }
 0x13b   :  { %v12943_v51 = vadd.f32 %v10058_v46, %v7230_v45  ;;  %10339 = vmatpush3.bf16.msra.mxu0 %v11358_v34  ;;  %v11396_v34 = vld [vmem:[%s14528_s1 + $0xaf8] sm:$0xff]   ;;  %v1884_v44 = vcombine.high %v13049_v37, %v13049_v37  ;;  %v11399_v45 = vld [vmem:[%s14528_s1 + $0xb00] sm:$0xff]  }
 0x13c   :  { %10340 = vmatprep.subr.bf16.mxu0 %v11361_v42  ;;  %v1891_v42 = vrot.slane %v1875_v28, %v12012_v41  ;;  %v1898_v28 = vrot.slane %v13049_v37, %v12012_v41  ;;  %v11438_v37 = vld [vmem:[%s14528_s1 + $0xc88] sm:$0xff]  }
 0x13d   :  { %10361 = vmatpush3.bf16.msra.mxu1 %v11360_v40  ;;  %v1905_v40 = vrot.slane %v1883_v35, %v12012_v41  ;;  %v1912_v48 = vrot.slane %v1884_v44, %v12012_v41  ;;  %v11436_v35 = vld [vmem:[%s14528_s1 + $0xc08] sm:$0xff]   ;;  %v11444_v44 = vld [vmem:[%s14528_s1 + $0xc18] sm:$0xff]  }
 0x13e   :  { %10362 = vmatprep.subr.bf16.mxu1 %v11363_v49  ;;  %v11401_v49 = vld [vmem:[%s14528_s1 + $0xb80] sm:$0xff]   ;;  %v1913_v50 = vcombine.high %v1891_v42, %v1891_v42 }
 0x13f   :  { %10341 = vmatpush3.bf16.msra.mxu0 %v11362_v47  ;;  %v1915_v46 = vcombine.high %v1905_v40, %v1905_v40  ;;  %v11400_v47 = vld [vmem:[%s14528_s1 + $0xbc0] sm:$0xff]  }
 0x140   :  { %10370 = vmatprep.subr.bf16.mxu0 %v11366_v54  ;;  %v11404_v54 = vld [vmem:[%s14528_s1 + $0xbc8] sm:$0xff]  }
 0x141   :  { %10363 = vmatpush3.bf16.msra.mxu1 %v11365_v52  ;;  %v11403_v52 = vld [vmem:[%s14528_s1 + $0xb08] sm:$0xff]  }
 0x142   :  { %7788 = vmatmul.mubr.bf16.vlgmr.msra.gmra.mrb[36].mxu0 %v1849_v53  ;;  %10392 = vmatprep.subr.bf16.mxu1 %v11368_v56  ;;  %v1916_v53 = vcombine.high %v1912_v48, %v1912_v48  ;;  %v11406_v56 = vld [vmem:[%s14528_s1 + $0xb50] sm:$0xff]  }
 0x143   :  { %10371 = vmatpush3.bf16.msra.mxu0 %v11367_v55  ;;  %7867 = vmatprep.mubr.bf16.mxu0 %v1905_v40  ;;  %v11405_v55 = vld [vmem:[%s14528_s1 + $0xb88] sm:$0xff]   ;;  %v11441_v40 = vld [vmem:[%s14528_s1 + $0xcd0] sm:$0xff]  }
 0x144   :  { %7828 = vmatmul.mubr.bf16.vlgmr.msra.gmra.mrb[36].mxu1 %v1865_v58  ;;  %10372 = vmatprep.subr.bf16.mxu0 %v11370_v59  ;;  %v11408_v58 = vld [vmem:[%s14528_s1 + $0xbd0] sm:$0xff]  }
 0x145   :  { %10393 = vmatpush3.bf16.msra.mxu1 %v11369_v57  ;;  %7907 = vmatprep.mubr.bf16.mxu1 %v1915_v46  ;;  %v11407_v57 = vld [vmem:[%s14528_s1 + $0xb10] sm:$0xff]   ;;  %v11446_v46 = vld [vmem:[%s14528_s1 + $0xc98] sm:$0xff]  }
 0x146   :  { %10394 = vmatprep.subr.bf16.mxu1 %v11372_v61  ;;  %v11409_v59 = vld [vmem:[%s14528_s1 + $0xb90] sm:$0xff]   ;;  %v11411_v61 = vld [vmem:[%s14528_s1 + $0xb18] sm:$0xff]  }
 0x147   :  { %10373 = vmatpush3.bf16.msra.mxu0 %v11371_v60  ;;  %v11410_v60 = vld [vmem:[%s14528_s1 + $0xb58] sm:$0xff]  }
 0x148   :  { %10374 = vmatprep.subr.bf16.mxu0 %v11374_v63  ;;  %v11413_v63 = vld [vmem:[%s14528_s1 + $0xb98] sm:$0xff]  }
 0x149   :  { %10395 = vmatpush3.bf16.msra.mxu1 %v11373_v62  ;;  %v11412_v62 = vld [vmem:[%s14528_s1 + $0xbd8] sm:$0xff]  }
 0x14a   :  { %10396 = vmatprep.subr.bf16.mxu1 %v11376_v1  ;;  %v11415_v1 = vld [vmem:[%s14528_s1 + $0xb20] sm:$0xff]  }
 0x14b   :  { %10375 = vmatpush3.bf16.msra.mxu0 %v11375_v0  ;;  %v11414_v0 = vld [vmem:[%s14528_s1 + $0xb60] sm:$0xff]  }
 0x14c   :  { %10376 = vmatprep.subr.bf16.mxu0 %v11378_v3  ;;  %v11417_v3 = vld [vmem:[%s14528_s1 + $0xba0] sm:$0xff]  }
 0x14d   :  { %10397 = vmatpush3.bf16.msra.mxu1 %v11377_v2  ;;  %v11416_v2 = vld [vmem:[%s14528_s1 + $0xbe0] sm:$0xff]  }
 0x14e   :  { %10398 = vmatprep.subr.bf16.mxu1 %v11380_v5  ;;  %v11419_v5 = vld [vmem:[%s14528_s1 + $0xb28] sm:$0xff]  }
 0x14f   :  { %10377 = vmatpush3.bf16.msra.mxu0 %v11379_v4  ;;  %v11418_v4 = vld [vmem:[%s14528_s1 + $0xb68] sm:$0xff]  }
 0x150   :  { %10378 = vmatprep.subr.bf16.mxu0 %v11382_v7  ;;  %v11421_v7 = vld [vmem:[%s14528_s1 + $0xba8] sm:$0xff]  }
 0x151   :  { %10399 = vmatpush3.bf16.msra.mxu1 %v11381_v6  ;;  %v11420_v6 = vld [vmem:[%s14528_s1 + $0xbe8] sm:$0xff]  }
 0x152   :  { %10400 = vmatprep.subr.bf16.mxu1 %v11384_v9 }
 0x153   :  { %10379 = vmatpush3.bf16.msra.mxu0 %v11383_v8  ;;  %v11422_v8 = vld [vmem:[%s14528_s1 + $0xb70] sm:$0xff]  }
 0x154   :  { %10380 = vmatprep.subr.bf16.mxu0 %v11386_v11 }
 0x155   :  { %v10078_v16 = vpop.f32.mrb[12].mxu0  ;;  %10401 = vmatpush3.bf16.msra.mxu1 %v11385_v10  ;;  %v11423_v10 = vld [vmem:[%s14528_s1 + $0xb30] sm:$0xff]  }
 0x156   :  { %v10079_v18 = vpop.f32.mrb[13].mxu0  ;;  %10402 = vmatprep.subr.bf16.mxu1 %v11388_v13 }
 0x157   :  { %v10080_v20 = vadd.f32 %v10079_v18, %v10078_v16  ;;  %v10081_v21 = vpop.f32.mrb[14].mxu0  ;;  %v10100_v22 = vpop.f32.mrb[12].mxu1  ;;  %10381 = vmatpush3.bf16.msra.mxu0 %v11387_v12  ;;  %v11424_v12 = vld [vmem:[%s14528_s1 + $0xbf0] sm:$0xff]  }
 0x158   :  { %v10082_v26 = vpop.f32.mrb[15].mxu0  ;;  %v10101_v27 = vpop.f32.mrb[13].mxu1  ;;  %10382 = vmatprep.subr.bf16.mxu0 %v11390_v15  ;;  %v11425_v16 = vld [vmem:[%s14528_s1 + $0xbb0] sm:$0xff]  }
 0x159   :  { %v7310_v30 = vadd.f32 %v10080_v20, %v12943_v51  ;;  %v10102_v31 = vadd.f32 %v10101_v27, %v10100_v22  ;;  %10403 = vmatpush3.bf16.msra.mxu1 %v11389_v14  ;;  %v10103_v33 = vpop.f32.mrb[14].mxu1  ;;  %v11402_v51 = vld [vmem:[%s14528_s1 + $0xb48] sm:$0xff]   ;;  %v11427_v22 = vld [vmem:[%s14528_s1 + $0xb38] sm:$0xff]  }
 0x15a   :  { %10404 = vmatprep.subr.bf16.mxu1 %v11392_v19  ;;  %v10104_v36 = vpop.f32.mrb[15].mxu1  ;;  %v11430_v27 = vld [vmem:[%s14528_s1 + $0xbb8] sm:$0xff]   ;;  %v1914_v33 = vcombine.high %v1898_v28, %v1898_v28 }
 0x15b   :  { %v13051_v38 = vadd.f32 %v10102_v31, %v7310_v30  ;;  %10383 = vmatpush3.bf16.msra.mxu0 %v11391_v17  ;;  %v11426_v17 = vld [vmem:[%s14528_s1 + $0xb78] sm:$0xff]   ;;  %v11432_v30 = vld [vmem:[%s14528_s1 + $0xc00] sm:$0xff]   ;;  %v11437_v36 = vld [vmem:[%s14528_s1 + $0xcc8] sm:$0xff]  }
 0x15c   :  { %10384 = vmatprep.subr.bf16.mxu0 %v11394_v24  ;;  %v11428_v24 = vld [vmem:[%s14528_s1 + $0xbf8] sm:$0xff]   ;;  %v11433_v31 = vld [vmem:[%s14528_s1 + $0xcc0] sm:$0xff]  }
 0x15d   :  { %10405 = vmatpush3.bf16.msra.mxu1 %v11393_v23 }
 0x15e   :  { %10406 = vmatprep.subr.bf16.mxu1 %v11396_v34  ;;  %v11435_v34 = vld [vmem:[%s14528_s1 + $0xc48] sm:$0xff]  }
 0x15f   :  { %10385 = vmatpush3.bf16.msra.mxu0 %v11395_v32  ;;  %v11434_v32 = vld [vmem:[%s14528_s1 + $0xc80] sm:$0xff]  }
 0x160   :  { %10414 = vmatprep.subr.bf16.mxu0 %v11398_v43  ;;  %v11443_v43 = vld [vmem:[%s14528_s1 + $0xc58] sm:$0xff]  }
 0x161   :  { %10407 = vmatpush3.bf16.msra.mxu1 %v11397_v39  ;;  %v11440_v39 = vld [vmem:[%s14528_s1 + $0xc10] sm:$0xff]  }
 0x162   :  { %7868 = vmatmul.mubr.bf16.vlgmr.msra.gmra.mrb[40].mxu0 %v1891_v42  ;;  %10436 = vmatprep.subr.bf16.mxu1 %v11400_v47  ;;  %v11442_v42 = vld [vmem:[%s14528_s1 + $0xc90] sm:$0xff]   ;;  %v11447_v47 = vld [vmem:[%s14528_s1 + $0xc60] sm:$0xff]  }
 0x163   :  { %10415 = vmatpush3.bf16.msra.mxu0 %v11399_v45  ;;  %7947 = vmatprep.mubr.bf16.mxu0 %v1912_v48  ;;  %v11445_v45 = vld [vmem:[%s14528_s1 + $0xcd8] sm:$0xff]   ;;  %v11448_v48 = vld [vmem:[%s14528_s1 + $0xc20] sm:$0xff]  }
 0x164   :  { %7908 = vmatmul.mubr.bf16.vlgmr.msra.gmra.mrb[40].mxu1 %v1913_v50  ;;  %10416 = vmatprep.subr.bf16.mxu0 %v11402_v51  ;;  %v11450_v50 = vld [vmem:[%s14528_s1 + $0xca0] sm:$0xff]   ;;  %v11451_v51 = vld [vmem:[%s14528_s1 + $0xc68] sm:$0xff]  }
 0x165   :  { %10437 = vmatpush3.bf16.msra.mxu1 %v11401_v49  ;;  %7987 = vmatprep.mubr.bf16.mxu1 %v1916_v53  ;;  %v11449_v49 = vld [vmem:[%s14528_s1 + $0xce0] sm:$0xff]   ;;  %v11453_v53 = vld [vmem:[%s14528_s1 + $0xce8] sm:$0xff]  }
 0x166   :  { %10438 = vmatprep.subr.bf16.mxu1 %v11404_v54  ;;  %v11454_v54 = vld [vmem:[%s14528_s1 + $0xca8] sm:$0xff]  }
 0x167   :  { %10417 = vmatpush3.bf16.msra.mxu0 %v11403_v52  ;;  %v11452_v52 = vld [vmem:[%s14528_s1 + $0xc28] sm:$0xff]  }
 0x168   :  { %10418 = vmatprep.subr.bf16.mxu0 %v11406_v56 }
 0x169   :  { %10439 = vmatpush3.bf16.msra.mxu1 %v11405_v55  ;;  %v11455_v55 = vld [vmem:[%s14528_s1 + $0xc70] sm:$0xff]  }
 0x16a   :  { %10440 = vmatprep.subr.bf16.mxu1 %v11408_v58 }
 0x16b   :  { %10419 = vmatpush3.bf16.msra.mxu0 %v11407_v57  ;;  %v11456_v57 = vld [vmem:[%s14528_s1 + $0xc30] sm:$0xff]  }
 0x16c   :  { %10420 = vmatprep.subr.bf16.mxu0 %v11410_v60 }
 0x16d   :  { %10441 = vmatpush3.bf16.msra.mxu1 %v11409_v59  ;;  %v11457_v59 = vld [vmem:[%s14528_s1 + $0xcf0] sm:$0xff]  }
 0x16e   :  { %10442 = vmatprep.subr.bf16.mxu1 %v11412_v62 }
 0x16f   :  { %10421 = vmatpush3.bf16.msra.mxu0 %v11411_v61 }
 0x170   :  { %10422 = vmatprep.subr.bf16.mxu0 %v11414_v0 }
 0x171   :  { %10443 = vmatpush3.bf16.msra.mxu1 %v11413_v63  ;;  %v11458_v63 = vld [vmem:[%s14528_s1 + $0xcb0] sm:$0xff]  }
 0x172   :  { %10444 = vmatprep.subr.bf16.mxu1 %v11416_v2  ;;  %v11459_v2 = vld [vmem:[%s14528_s1 + $0xc78] sm:$0xff]  }
 0x173   :  { %10423 = vmatpush3.bf16.msra.mxu0 %v11415_v1 }
 0x174   :  { %10424 = vmatprep.subr.bf16.mxu0 %v11418_v4 }
 0x175   :  { %v10122_v9 = vpop.f32.mrb[16].mxu0  ;;  %10445 = vmatpush3.bf16.msra.mxu1 %v11417_v3  ;;  %v28_v3 = vld [vmem:[%s14527_s0 + $0x30] sm:$0xff] }
 0x176   :  { %v10123_v11 = vpop.f32.mrb[17].mxu0  ;;  %10446 = vmatprep.subr.bf16.mxu1 %v11420_v6  ;;  %v11460_v6 = vld [vmem:[%s14528_s1 + $0xc38] sm:$0xff]  }
 0x177   :  { %v10124_v13 = vadd.f32 %v10123_v11, %v10122_v9  ;;  %v10125_v14 = vpop.f32.mrb[18].mxu0  ;;  %v10144_v15 = vpop.f32.mrb[16].mxu1  ;;  %10425 = vmatpush3.bf16.msra.mxu0 %v11419_v5  ;;  %v1917_v9 = vcombine.high %v28_v3, %v28_v3 }
 0x178   :  { %v10126_v18 = vpop.f32.mrb[19].mxu0  ;;  %v10145_v19 = vpop.f32.mrb[17].mxu1  ;;  %10426 = vmatprep.subr.bf16.mxu0 %v11422_v8  ;;  %v11462_v14 = vld [vmem:[%s14528_s1 + $0xcb8] sm:$0xff]  }
 0x179   :  { %v7390_v20 = vadd.f32 %v10124_v13, %v13051_v38  ;;  %v10146_v21 = vadd.f32 %v10145_v19, %v10144_v15  ;;  %10447 = vmatpush3.bf16.msra.mxu1 %v11421_v7  ;;  %v10147_v23 = vpop.f32.mrb[18].mxu1  ;;  %v11439_v38 = vld [vmem:[%s14528_s1 + $0xc50] sm:$0xff]   ;;  %v1924_v7 = vrot.slane %v28_v3, %v12012_v41  ;;  %v13266_v15 = vrot.slane %v1917_v9, %v12012_v41  ;;  %v11464_v19 = vld [vmem:[%s14528_s1 + $0xd00] sm:$0xff]   ;;  %v11495_v3 = vld [vmem:[%s14528_s1 + $0xdb8] sm:$0xff]  }
 0x17a   :  { %10448 = vmatprep.subr.bf16.mxu1 %v11424_v12  ;;  %v10148_v25 = vpop.f32.mrb[19].mxu1  ;;  %v11466_v23 = vld [vmem:[%s14528_s1 + $0xd80] sm:$0xff]  }
 0x17b   :  { %v13155_v26 = vadd.f32 %v10146_v21, %v7390_v20  ;;  %10427 = vmatpush3.bf16.msra.mxu0 %v11423_v10  ;;  %v11461_v10 = vld [vmem:[%s14528_s1 + $0xcf8] sm:$0xff]   ;;  %v1932_v13 = vcombine.high %v1924_v7, %v1924_v7  ;;  %v1933_v20 = vcombine.high %v13266_v15, %v13266_v15  ;;  %v11465_v21 = vld [vmem:[%s14528_s1 + $0xdc0] sm:$0xff]  }
 0x17c   :  { %10428 = vmatprep.subr.bf16.mxu0 %v11426_v17  ;;  %v11463_v17 = vld [vmem:[%s14528_s1 + $0xd40] sm:$0xff]  }
 0x17d   :  { %10449 = vmatpush3.bf16.msra.mxu1 %v11425_v16  ;;  %v1940_v16 = vrot.slane %v1924_v7, %v12012_v41  ;;  %v1954_v18 = vrot.slane %v1932_v13, %v12012_v41  ;;  %v11498_v7 = vld [vmem:[%s14528_s1 + $0xec0] sm:$0xff]   ;;  %v11503_v13 = vld [vmem:[%s14528_s1 + $0xe88] sm:$0xff]  }
 0x17e   :  { %10450 = vmatprep.subr.bf16.mxu1 %v11428_v24  ;;  %v1961_v24 = vrot.slane %v1933_v20, %v12012_v41  ;;  %v11510_v20 = vld [vmem:[%s14528_s1 + $0xed8] sm:$0xff]  }
 0x17f   :  { %10429 = vmatpush3.bf16.msra.mxu0 %v11427_v22  ;;  %v1964_v22 = vcombine.high %v1954_v18, %v1954_v18  ;;  %v1962_v25 = vcombine.high %v1940_v16, %v1940_v16 }
 0x180   :  { %10458 = vmatprep.subr.bf16.mxu0 %v11431_v29  ;;  %v11469_v29 = vld [vmem:[%s14528_s1 + $0xdc8] sm:$0xff]  }
 0x181   :  { %10451 = vmatpush3.bf16.msra.mxu1 %v11430_v27  ;;  %v11468_v27 = vld [vmem:[%s14528_s1 + $0xd08] sm:$0xff]  }
 0x182   :  { %7948 = vmatmul.mubr.bf16.vlgmr.msra.gmra.mrb[44].mxu0 %v1898_v28  ;;  %10480 = vmatprep.subr.bf16.mxu1 %v11433_v31  ;;  %v1965_v28 = vcombine.high %v1961_v24, %v1961_v24  ;;  %v11471_v31 = vld [vmem:[%s14528_s1 + $0xd50] sm:$0xff]  }
 0x183   :  { %10459 = vmatpush3.bf16.msra.mxu0 %v11432_v30  ;;  %8027 = vmatprep.mubr.bf16.mxu0 %v1954_v18  ;;  %v11470_v30 = vld [vmem:[%s14528_s1 + $0xd88] sm:$0xff]   ;;  %v11508_v18 = vld [vmem:[%s14528_s1 + $0xe58] sm:$0xff]  }
 0x184   :  { %7988 = vmatmul.mubr.bf16.vlgmr.msra.gmra.mrb[44].mxu1 %v1914_v33  ;;  %10460 = vmatprep.subr.bf16.mxu0 %v11435_v34  ;;  %v11473_v33 = vld [vmem:[%s14528_s1 + $0xdd0] sm:$0xff]  }
 0x185   :  { %10481 = vmatpush3.bf16.msra.mxu1 %v11434_v32  ;;  %8067 = vmatprep.mubr.bf16.mxu1 %v1964_v22  ;;  %v11472_v32 = vld [vmem:[%s14528_s1 + $0xd10] sm:$0xff]   ;;  %v11512_v22 = vld [vmem:[%s14528_s1 + $0xe60] sm:$0xff]  }
 0x186   :  { %10482 = vmatprep.subr.bf16.mxu1 %v11437_v36  ;;  %v11474_v34 = vld [vmem:[%s14528_s1 + $0xd90] sm:$0xff]   ;;  %v11476_v36 = vld [vmem:[%s14528_s1 + $0xd18] sm:$0xff]  }
 0x187   :  { %10461 = vmatpush3.bf16.msra.mxu0 %v11436_v35  ;;  %v11475_v35 = vld [vmem:[%s14528_s1 + $0xd58] sm:$0xff]  }
 0x188   :  { %10462 = vmatprep.subr.bf16.mxu0 %v11439_v38  ;;  %v11478_v38 = vld [vmem:[%s14528_s1 + $0xd98] sm:$0xff]  }
 0x189   :  { %10483 = vmatpush3.bf16.msra.mxu1 %v11438_v37  ;;  %v11477_v37 = vld [vmem:[%s14528_s1 + $0xdd8] sm:$0xff]  }
 0x18a   :  { %10484 = vmatprep.subr.bf16.mxu1 %v11441_v40  ;;  %v11480_v40 = vld [vmem:[%s14528_s1 + $0xd20] sm:$0xff]  }
 0x18b   :  { %10463 = vmatpush3.bf16.msra.mxu0 %v11440_v39  ;;  %v11479_v39 = vld [vmem:[%s14528_s1 + $0xd60] sm:$0xff]  }
 0x18c   :  { %10464 = vmatprep.subr.bf16.mxu0 %v11443_v43  ;;  %v11482_v43 = vld [vmem:[%s14528_s1 + $0xda0] sm:$0xff]  }
 0x18d   :  { %10485 = vmatpush3.bf16.msra.mxu1 %v11442_v42  ;;  %v11481_v42 = vld [vmem:[%s14528_s1 + $0xde0] sm:$0xff]  }
 0x18e   :  { %10486 = vmatprep.subr.bf16.mxu1 %v11445_v45  ;;  %v11484_v45 = vld [vmem:[%s14528_s1 + $0xd28] sm:$0xff]  }
 0x18f   :  { %10465 = vmatpush3.bf16.msra.mxu0 %v11444_v44  ;;  %v11483_v44 = vld [vmem:[%s14528_s1 + $0xd68] sm:$0xff]  }
 0x190   :  { %10466 = vmatprep.subr.bf16.mxu0 %v11447_v47  ;;  %v11486_v47 = vld [vmem:[%s14528_s1 + $0xda8] sm:$0xff]  }
 0x191   :  { %10487 = vmatpush3.bf16.msra.mxu1 %v11446_v46  ;;  %v11485_v46 = vld [vmem:[%s14528_s1 + $0xde8] sm:$0xff]  }
 0x192   :  { %10488 = vmatprep.subr.bf16.mxu1 %v11449_v49 }
 0x193   :  { %10467 = vmatpush3.bf16.msra.mxu0 %v11448_v48  ;;  %v11487_v48 = vld [vmem:[%s14528_s1 + $0xd70] sm:$0xff]  }
 0x194   :  { %10468 = vmatprep.subr.bf16.mxu0 %v11451_v51 }
 0x195   :  { %v10166_v56 = vpop.f32.mrb[20].mxu0  ;;  %10489 = vmatpush3.bf16.msra.mxu1 %v11450_v50  ;;  %v11488_v50 = vld [vmem:[%s14528_s1 + $0xd30] sm:$0xff]  }
 0x196   :  { %v10167_v58 = vpop.f32.mrb[21].mxu0  ;;  %10490 = vmatprep.subr.bf16.mxu1 %v11453_v53 }
 0x197   :  { %v10168_v60 = vadd.f32 %v10167_v58, %v10166_v56  ;;  %v10169_v61 = vpop.f32.mrb[22].mxu0  ;;  %v10188_v62 = vpop.f32.mrb[20].mxu1  ;;  %10469 = vmatpush3.bf16.msra.mxu0 %v11452_v52  ;;  %v11489_v52 = vld [vmem:[%s14528_s1 + $0xdf0] sm:$0xff]  }
 0x198   :  { %v10170_v0 = vpop.f32.mrb[23].mxu0  ;;  %v10189_v1 = vpop.f32.mrb[21].mxu1  ;;  %10470 = vmatprep.subr.bf16.mxu0 %v11455_v55  ;;  %v11490_v56 = vld [vmem:[%s14528_s1 + $0xdb0] sm:$0xff]  }
 0x199   :  { %v7470_v4 = vadd.f32 %v10168_v60, %v13155_v26  ;;  %v10190_v5 = vadd.f32 %v10189_v1, %v10188_v62  ;;  %10491 = vmatpush3.bf16.msra.mxu1 %v11454_v54  ;;  %v10191_v8 = vpop.f32.mrb[22].mxu1  ;;  %v11467_v26 = vld [vmem:[%s14528_s1 + $0xd48] sm:$0xff]   ;;  %v11492_v62 = vld [vmem:[%s14528_s1 + $0xd38] sm:$0xff]  }
 0x19a   :  { %10492 = vmatprep.subr.bf16.mxu1 %v11457_v59  ;;  %v10192_v11 = vpop.f32.mrb[23].mxu1  ;;  %v11493_v0 = vld [vmem:[%s14528_s1 + $0xdf8] sm:$0xff]   ;;  %v11499_v8 = vld [vmem:[%s14528_s1 + $0xe80] sm:$0xff]  }
 0x19b   :  { %v13260_v12 = vadd.f32 %v10190_v5, %v7470_v4  ;;  %10471 = vmatpush3.bf16.msra.mxu0 %v11456_v57  ;;  %v11491_v57 = vld [vmem:[%s14528_s1 + $0xd78] sm:$0xff]   ;;  %v1947_v4 = vrot.slane %v13266_v15, %v12012_v41  ;;  %v11496_v5 = vld [vmem:[%s14528_s1 + $0xe40] sm:$0xff]   ;;  %v11501_v11 = vld [vmem:[%s14528_s1 + $0xe08] sm:$0xff]  }
 0x19c   :  { %10472 = vmatprep.subr.bf16.mxu0 %v11459_v2  ;;  %v11505_v15 = vld [vmem:[%s14528_s1 + $0xe10] sm:$0xff]  }
 0x19d   :  { %10493 = vmatpush3.bf16.msra.mxu1 %v11458_v63  ;;  %v1963_v9 = vcombine.high %v1947_v4, %v1947_v4 }
 0x19e   :  { %10494 = vmatprep.subr.bf16.mxu1 %v11461_v10  ;;  %v11500_v10 = vld [vmem:[%s14528_s1 + $0xe48] sm:$0xff]  }
 0x19f   :  { %10473 = vmatpush3.bf16.msra.mxu0 %v11460_v6  ;;  %v11497_v6 = vld [vmem:[%s14528_s1 + $0xe00] sm:$0xff]  }
 0x1a0   :  { %10502 = vmatprep.subr.bf16.mxu0 %v11463_v17  ;;  %v11507_v17 = vld [vmem:[%s14528_s1 + $0xe90] sm:$0xff]  }
 0x1a1   :  { %10495 = vmatpush3.bf16.msra.mxu1 %v11462_v14  ;;  %v11504_v14 = vld [vmem:[%s14528_s1 + $0xe50] sm:$0xff]  }
 0x1a2   :  { %8028 = vmatmul.mubr.bf16.vlgmr.msra.gmra.mrb[48].mxu0 %v1940_v16  ;;  %10524 = vmatprep.subr.bf16.mxu1 %v11465_v21  ;;  %v11506_v16 = vld [vmem:[%s14528_s1 + $0xed0] sm:$0xff]   ;;  %v11511_v21 = vld [vmem:[%s14528_s1 + $0xe98] sm:$0xff]  }
 0x1a3   :  { %10503 = vmatpush3.bf16.msra.mxu0 %v11464_v19  ;;  %8107 = vmatprep.mubr.bf16.mxu0 %v1961_v24  ;;  %v11509_v19 = vld [vmem:[%s14528_s1 + $0xe18] sm:$0xff]   ;;  %v11514_v24 = vld [vmem:[%s14528_s1 + $0xee0] sm:$0xff]  }
 0x1a4   :  { %8068 = vmatmul.mubr.bf16.vlgmr.msra.gmra.mrb[48].mxu1 %v1962_v25  ;;  %10504 = vmatprep.subr.bf16.mxu0 %v11467_v26  ;;  %v11515_v25 = vld [vmem:[%s14528_s1 + $0xea0] sm:$0xff]   ;;  %v11516_v26 = vld [vmem:[%s14528_s1 + $0xe68] sm:$0xff]  }
 0x1a5   :  { %10525 = vmatpush3.bf16.msra.mxu1 %v11466_v23  ;;  %8147 = vmatprep.mubr.bf16.mxu1 %v1965_v28  ;;  %v11513_v23 = vld [vmem:[%s14528_s1 + $0xe20] sm:$0xff]   ;;  %v11518_v28 = vld [vmem:[%s14528_s1 + $0xee8] sm:$0xff]  }
 0x1a6   :  { %10526 = vmatprep.subr.bf16.mxu1 %v11469_v29  ;;  %v11519_v29 = vld [vmem:[%s14528_s1 + $0xea8] sm:$0xff]  }
 0x1a7   :  { %10505 = vmatpush3.bf16.msra.mxu0 %v11468_v27  ;;  %v11517_v27 = vld [vmem:[%s14528_s1 + $0xe28] sm:$0xff]  }
 0x1a8   :  { %10506 = vmatprep.subr.bf16.mxu0 %v11471_v31 }
 0x1a9   :  { %10527 = vmatpush3.bf16.msra.mxu1 %v11470_v30  ;;  %v11520_v30 = vld [vmem:[%s14528_s1 + $0xe70] sm:$0xff]  }
 0x1aa   :  { %10528 = vmatprep.subr.bf16.mxu1 %v11473_v33 }
 0x1ab   :  { %10507 = vmatpush3.bf16.msra.mxu0 %v11472_v32  ;;  %v11521_v32 = vld [vmem:[%s14528_s1 + $0xe30] sm:$0xff]  }
 0x1ac   :  { %10508 = vmatprep.subr.bf16.mxu0 %v11475_v35 }
 0x1ad   :  { %10529 = vmatpush3.bf16.msra.mxu1 %v11474_v34  ;;  %v11522_v34 = vld [vmem:[%s14528_s1 + $0xef0] sm:$0xff]  }
 0x1ae   :  { %10530 = vmatprep.subr.bf16.mxu1 %v11477_v37 }
 0x1af   :  { %10509 = vmatpush3.bf16.msra.mxu0 %v11476_v36 }
 0x1b0   :  { %10510 = vmatprep.subr.bf16.mxu0 %v11479_v39 }
 0x1b1   :  { %10531 = vmatpush3.bf16.msra.mxu1 %v11478_v38 }
 0x1b2   :  { %10532 = vmatprep.subr.bf16.mxu1 %v11481_v42  ;;  %v11524_v42 = vld [vmem:[%s14528_s1 + $0xe78] sm:$0xff]  }
 0x1b3   :  { %10511 = vmatpush3.bf16.msra.mxu0 %v11480_v40  ;;  %v11523_v40 = vld [vmem:[%s14528_s1 + $0xeb0] sm:$0xff]  }
 0x1b4   :  { %10512 = vmatprep.subr.bf16.mxu0 %v11483_v44 }
 0x1b5   :  { %v10210_v49 = vpop.f32.mrb[24].mxu0  ;;  %10533 = vmatpush3.bf16.msra.mxu1 %v11482_v43 }
 0x1b6   :  { %v10211_v51 = vpop.f32.mrb[25].mxu0  ;;  %10534 = vmatprep.subr.bf16.mxu1 %v11485_v46  ;;  %v29_v46 = vld [vmem:[%s14527_s0 + $0x38] sm:$0xff] }
 0x1b7   :  { %v10212_v53 = vadd.f32 %v10211_v51, %v10210_v49  ;;  %v10213_v54 = vpop.f32.mrb[26].mxu0  ;;  %v10232_v55 = vpop.f32.mrb[24].mxu1  ;;  %10513 = vmatpush3.bf16.msra.mxu0 %v11484_v45  ;;  %v11525_v45 = vld [vmem:[%s14528_s1 + $0xe38] sm:$0xff]   ;;  %v1973_v49 = vrot.slane %v29_v46, %v12012_v41  ;;  %v1966_v51 = vcombine.high %v29_v46, %v29_v46  ;;  %v11562_v46 = vld [vmem:[%s14528_s1 + $0x1000] sm:$0xff]  }
 0x1b8   :  { %v10214_v58 = vpop.f32.mrb[27].mxu0  ;;  %v10233_v59 = vpop.f32.mrb[25].mxu1  ;;  %10514 = vmatprep.subr.bf16.mxu0 %v11487_v48  ;;  %v11526_v48 = vld [vmem:[%s14528_s1 + $0xef8] sm:$0xff]  }
 0x1b9   :  { %v7550_v60 = vadd.f32 %v10212_v53, %v13260_v12  ;;  %v10234_v61 = vadd.f32 %v10233_v59, %v10232_v55  ;;  %10535 = vmatpush3.bf16.msra.mxu1 %v11486_v47  ;;  %v10235_v63 = vpop.f32.mrb[26].mxu1  ;;  %v11502_v12 = vld [vmem:[%s14528_s1 + $0xec8] sm:$0xff]   ;;  %v11527_v53 = vld [vmem:[%s14528_s1 + $0xeb8] sm:$0xff]   ;;  %v1981_v54 = vcombine.high %v1973_v49, %v1973_v49  ;;  %v1989_v55 = vrot.slane %v1973_v49, %v12012_v41  ;;  %v11529_v58 = vld [vmem:[%s14528_s1 + $0xf00] sm:$0xff]  }
 0x1ba   :  { %10536 = vmatprep.subr.bf16.mxu1 %v11489_v52  ;;  %v10236_v1 = vpop.f32.mrb[27].mxu1 }
 0x1bb   :  { %v13367_v2 = vadd.f32 %v10234_v61, %v7550_v60  ;;  %10515 = vmatpush3.bf16.msra.mxu0 %v11488_v50  ;;  %v2003_v59 = vrot.slane %v1981_v54, %v12012_v41  ;;  %v11530_v60 = vld [vmem:[%s14528_s1 + $0xfc0] sm:$0xff]   ;;  %v11532_v1 = vld [vmem:[%s14528_s1 + $0xf48] sm:$0xff]   ;;  %v11569_v54 = vld [vmem:[%s14528_s1 + $0x1050] sm:$0xff]  }
 0x1bc   :  { %10516 = vmatprep.subr.bf16.mxu0 %v11491_v57  ;;  %v13482_v57 = vrot.slane %v1966_v51, %v12012_v41  ;;  %v11566_v51 = vld [vmem:[%s14528_s1 + $0x1008] sm:$0xff]  }
 0x1bd   :  { %10537 = vmatpush3.bf16.msra.mxu1 %v11490_v56  ;;  %v11528_v56 = vld [vmem:[%s14528_s1 + $0xf40] sm:$0xff]   ;;  %v2013_v63 = vcombine.high %v2003_v59, %v2003_v59 }
 0x1be   :  { %10538 = vmatprep.subr.bf16.mxu1 %v11493_v0  ;;  %v1982_v61 = vcombine.high %v13482_v57, %v13482_v57  ;;  %v2011_v0 = vcombine.high %v1989_v55, %v1989_v55 }
 0x1bf   :  { %10517 = vmatpush3.bf16.msra.mxu0 %v11492_v62  ;;  %v11531_v62 = vld [vmem:[%s14528_s1 + $0xf80] sm:$0xff]  }
 0x1c0   :  { %10546 = vmatprep.subr.bf16.mxu0 %v11496_v5 }
 0x1c1   :  { %10539 = vmatpush3.bf16.msra.mxu1 %v11495_v3  ;;  %v11533_v3 = vld [vmem:[%s14528_s1 + $0xf08] sm:$0xff]  }
 0x1c2   :  { %8108 = vmatmul.mubr.bf16.vlgmr.msra.gmra.mrb[52].mxu0 %v1947_v4  ;;  %10568 = vmatprep.subr.bf16.mxu1 %v11498_v7  ;;  %v11534_v4 = vld [vmem:[%s14528_s1 + $0xfc8] sm:$0xff]   ;;  %v11536_v7 = vld [vmem:[%s14528_s1 + $0xf50] sm:$0xff]  }
 0x1c3   :  { %10547 = vmatpush3.bf16.msra.mxu0 %v11497_v6  ;;  %8187 = vmatprep.mubr.bf16.mxu0 %v2003_v59  ;;  %v11535_v6 = vld [vmem:[%s14528_s1 + $0xf88] sm:$0xff]   ;;  %v11574_v59 = vld [vmem:[%s14528_s1 + $0x1018] sm:$0xff]  }
 0x1c4   :  { %8148 = vmatmul.mubr.bf16.vlgmr.msra.gmra.mrb[52].mxu1 %v1963_v9  ;;  %10548 = vmatprep.subr.bf16.mxu0 %v11500_v10  ;;  %v11538_v9 = vld [vmem:[%s14528_s1 + $0xfd0] sm:$0xff]  }
 0x1c5   :  { %10569 = vmatpush3.bf16.msra.mxu1 %v11499_v8  ;;  %8227 = vmatprep.mubr.bf16.mxu1 %v2013_v63  ;;  %v11537_v8 = vld [vmem:[%s14528_s1 + $0xf10] sm:$0xff]   ;;  %v11578_v63 = vld [vmem:[%s14528_s1 + $0x1020] sm:$0xff]  }
 0x1c6   :  { %10570 = vmatprep.subr.bf16.mxu1 %v11502_v12  ;;  %v11539_v10 = vld [vmem:[%s14528_s1 + $0xf90] sm:$0xff]   ;;  %v11541_v12 = vld [vmem:[%s14528_s1 + $0xf18] sm:$0xff]  }
 0x1c7   :  { %10549 = vmatpush3.bf16.msra.mxu0 %v11501_v11  ;;  %v11540_v11 = vld [vmem:[%s14528_s1 + $0xf58] sm:$0xff]  }
 0x1c8   :  { %10550 = vmatprep.subr.bf16.mxu0 %v11504_v14  ;;  %v11543_v14 = vld [vmem:[%s14528_s1 + $0xf98] sm:$0xff]  }
 0x1c9   :  { %10571 = vmatpush3.bf16.msra.mxu1 %v11503_v13  ;;  %v11542_v13 = vld [vmem:[%s14528_s1 + $0xfd8] sm:$0xff]  }
 0x1ca   :  { %10572 = vmatprep.subr.bf16.mxu1 %v11506_v16  ;;  %v11545_v16 = vld [vmem:[%s14528_s1 + $0xf20] sm:$0xff]  }
 0x1cb   :  { %10551 = vmatpush3.bf16.msra.mxu0 %v11505_v15  ;;  %v11544_v15 = vld [vmem:[%s14528_s1 + $0xf60] sm:$0xff]  }
 0x1cc   :  { %10552 = vmatprep.subr.bf16.mxu0 %v11508_v18  ;;  %v11547_v18 = vld [vmem:[%s14528_s1 + $0xfa0] sm:$0xff]  }
 0x1cd   :  { %10573 = vmatpush3.bf16.msra.mxu1 %v11507_v17  ;;  %v11546_v17 = vld [vmem:[%s14528_s1 + $0xfe0] sm:$0xff]  }
 0x1ce   :  { %10574 = vmatprep.subr.bf16.mxu1 %v11510_v20  ;;  %v11549_v20 = vld [vmem:[%s14528_s1 + $0xf28] sm:$0xff]  }
 0x1cf   :  { %10553 = vmatpush3.bf16.msra.mxu0 %v11509_v19  ;;  %v11548_v19 = vld [vmem:[%s14528_s1 + $0xf68] sm:$0xff]  }
 0x1d0   :  { %10554 = vmatprep.subr.bf16.mxu0 %v11512_v22  ;;  %v11551_v22 = vld [vmem:[%s14528_s1 + $0xfa8] sm:$0xff]  }
 0x1d1   :  { %10575 = vmatpush3.bf16.msra.mxu1 %v11511_v21  ;;  %v11550_v21 = vld [vmem:[%s14528_s1 + $0xfe8] sm:$0xff]  }
 0x1d2   :  { %10576 = vmatprep.subr.bf16.mxu1 %v11514_v24 }
 0x1d3   :  { %10555 = vmatpush3.bf16.msra.mxu0 %v11513_v23  ;;  %v11552_v23 = vld [vmem:[%s14528_s1 + $0xf70] sm:$0xff]  }
 0x1d4   :  { %10556 = vmatprep.subr.bf16.mxu0 %v11516_v26 }
 0x1d5   :  { %v10254_v31 = vpop.f32.mrb[28].mxu0  ;;  %10577 = vmatpush3.bf16.msra.mxu1 %v11515_v25  ;;  %v11553_v25 = vld [vmem:[%s14528_s1 + $0xf30] sm:$0xff]  }
 0x1d6   :  { %v10255_v33 = vpop.f32.mrb[29].mxu0  ;;  %10578 = vmatprep.subr.bf16.mxu1 %v11518_v28 }
 0x1d7   :  { %v10256_v35 = vadd.f32 %v10255_v33, %v10254_v31  ;;  %v10257_v36 = vpop.f32.mrb[30].mxu0  ;;  %v10276_v37 = vpop.f32.mrb[28].mxu1  ;;  %10557 = vmatpush3.bf16.msra.mxu0 %v11517_v27  ;;  %v11554_v27 = vld [vmem:[%s14528_s1 + $0xff0] sm:$0xff]  }
 0x1d8   :  { %v10258_v38 = vpop.f32.mrb[31].mxu0  ;;  %v10277_v39 = vpop.f32.mrb[29].mxu1  ;;  %10558 = vmatprep.subr.bf16.mxu0 %v11520_v30  ;;  %v11555_v31 = vld [vmem:[%s14528_s1 + $0xfb0] sm:$0xff]  }
 0x1d9   :  { %v7630_v43 = vadd.f32 %v10256_v35, %v13367_v2  ;;  %v10278_v44 = vadd.f32 %v10277_v39, %v10276_v37  ;;  %10579 = vmatpush3.bf16.msra.mxu1 %v11519_v29  ;;  %v10279_v47 = vpop.f32.mrb[30].mxu1  ;;  %v2010_v2 = vrot.slane %v1982_v61, %v12012_v41  ;;  %v11557_v37 = vld [vmem:[%s14528_s1 + $0xf38] sm:$0xff]  }
 0x1da   :  { %10580 = vmatprep.subr.bf16.mxu1 %v11522_v34  ;;  %v10280_v50 = vpop.f32.mrb[31].mxu1  ;;  %v11558_v39 = vld [vmem:[%s14528_s1 + $0xff8] sm:$0xff]   ;;  %v11563_v47 = vld [vmem:[%s14528_s1 + $0x10c0] sm:$0xff]  }
 0x1db   :  { %v13472_v52 = vadd.f32 %v10278_v44, %v7630_v43  ;;  %10559 = vmatpush3.bf16.msra.mxu0 %v11521_v32  ;;  %v2014_v5 = vcombine.high %v2010_v2, %v2010_v2  ;;  %v11556_v32 = vld [vmem:[%s14528_s1 + $0xf78] sm:$0xff]   ;;  %v1996_v44 = vrot.slane %v13482_v57, %v12012_v41  ;;  %v11565_v50 = vld [vmem:[%s14528_s1 + $0x1048] sm:$0xff]   ;;  %v11572_v57 = vld [vmem:[%s14528_s1 + $0x1090] sm:$0xff]  }
 0x1dc   :  { %10560 = vmatprep.subr.bf16.mxu0 %v11524_v42  ;;  %v11560_v43 = vld [vmem:[%s14528_s1 + $0xfb8] sm:$0xff]  }
 0x1dd   :  { %10581 = vmatpush3.bf16.msra.mxu1 %v11523_v40  ;;  %v2012_v49 = vcombine.high %v1996_v44, %v1996_v44  ;;  %v11576_v61 = vld [vmem:[%s14528_s1 + $0x1098] sm:$0xff]  }
 0x1de   :  { %10582 = vmatprep.subr.bf16.mxu1 %v11526_v48  ;;  %v11564_v48 = vld [vmem:[%s14528_s1 + $0x1080] sm:$0xff]  }
 0x1df   :  { %10561 = vmatpush3.bf16.msra.mxu0 %v11525_v45  ;;  %v11561_v45 = vld [vmem:[%s14528_s1 + $0x1040] sm:$0xff]  }
 0x1e0   :  { %10590 = vmatprep.subr.bf16.mxu0 %v11528_v56  ;;  %v11571_v56 = vld [vmem:[%s14528_s1 + $0x10d0] sm:$0xff]  }
 0x1e1   :  { %10583 = vmatpush3.bf16.msra.mxu1 %v11527_v53  ;;  %v11568_v53 = vld [vmem:[%s14528_s1 + $0x1088] sm:$0xff]  }
 0x1e2   :  { %8188 = vmatmul.mubr.bf16.vlgmr.msra.gmra.mrb[56].mxu0 %v1989_v55  ;;  %10612 = vmatprep.subr.bf16.mxu1 %v11530_v60  ;;  %v11570_v55 = vld [vmem:[%s14528_s1 + $0x1010] sm:$0xff]   ;;  %v11575_v60 = vld [vmem:[%s14528_s1 + $0x10d8] sm:$0xff]  }
 0x1e3   :  { %10591 = vmatpush3.bf16.msra.mxu0 %v11529_v58  ;;  %8267 = vmatprep.mubr.bf16.mxu0 %v2010_v2  ;;  %v11573_v58 = vld [vmem:[%s14528_s1 + $0x1058] sm:$0xff]   ;;  %v11581_v2 = vld [vmem:[%s14528_s1 + $0x1068] sm:$0xff]  }
 0x1e4   :  { %8228 = vmatmul.mubr.bf16.vlgmr.msra.gmra.mrb[56].mxu1 %v2011_v0  ;;  %10592 = vmatprep.subr.bf16.mxu0 %v11532_v1  ;;  %v11579_v0 = vld [vmem:[%s14528_s1 + $0x10e0] sm:$0xff]  }
 0x1e5   :  { %10613 = vmatpush3.bf16.msra.mxu1 %v11531_v62  ;;  %8307 = vmatprep.mubr.bf16.mxu1 %v2014_v5  ;;  %v11577_v62 = vld [vmem:[%s14528_s1 + $0x1060] sm:$0xff]   ;;  %v11584_v5 = vld [vmem:[%s14528_s1 + $0x10a8] sm:$0xff]  }
 0x1e6   :  { %10614 = vmatprep.subr.bf16.mxu1 %v11534_v4  ;;  %v11580_v1 = vld [vmem:[%s14528_s1 + $0x10a0] sm:$0xff]   ;;  %v11583_v4 = vld [vmem:[%s14528_s1 + $0x10e8] sm:$0xff]  }
 0x1e7   :  { %10593 = vmatpush3.bf16.msra.mxu0 %v11533_v3  ;;  %v11582_v3 = vld [vmem:[%s14528_s1 + $0x1028] sm:$0xff]  }
 0x1e8   :  { %10594 = vmatprep.subr.bf16.mxu0 %v11536_v7 }
 0x1e9   :  { %10615 = vmatpush3.bf16.msra.mxu1 %v11535_v6  ;;  %v11585_v6 = vld [vmem:[%s14528_s1 + $0x1070] sm:$0xff]  }
 0x1ea   :  { %10616 = vmatprep.subr.bf16.mxu1 %v11538_v9 }
 0x1eb   :  { %10595 = vmatpush3.bf16.msra.mxu0 %v11537_v8  ;;  %v11586_v8 = vld [vmem:[%s14528_s1 + $0x1030] sm:$0xff]  }
 0x1ec   :  { %10596 = vmatprep.subr.bf16.mxu0 %v11540_v11 }
 0x1ed   :  { %10617 = vmatpush3.bf16.msra.mxu1 %v11539_v10  ;;  %v11587_v10 = vld [vmem:[%s14528_s1 + $0x10f0] sm:$0xff]  }
 0x1ee   :  { %10618 = vmatprep.subr.bf16.mxu1 %v11542_v13 }
 0x1ef   :  { %10597 = vmatpush3.bf16.msra.mxu0 %v11541_v12 }
 0x1f0   :  { %10598 = vmatprep.subr.bf16.mxu0 %v11544_v15 }
 0x1f1   :  { %10619 = vmatpush3.bf16.msra.mxu1 %v11543_v14 }
 0x1f2   :  { %10620 = vmatprep.subr.bf16.mxu1 %v11546_v17  ;;  %v11589_v17 = vld [vmem:[%s14528_s1 + $0x1078] sm:$0xff]  }
 0x1f3   :  { %10599 = vmatpush3.bf16.msra.mxu0 %v11545_v16  ;;  %v11588_v16 = vld [vmem:[%s14528_s1 + $0x10b0] sm:$0xff]  }
 0x1f4   :  { %10600 = vmatprep.subr.bf16.mxu0 %v11548_v19 }
 0x1f5   :  { %v10298_v24 = vpop.f32.mrb[32].mxu0  ;;  %10621 = vmatpush3.bf16.msra.mxu1 %v11547_v18 }
 0x1f6   :  { %v10299_v26 = vpop.f32.mrb[33].mxu0  ;;  %10622 = vmatprep.subr.bf16.mxu1 %v11550_v21  ;;  %v11591_v21 = vld [vmem:[%s14528_s1 + $0x10f8] sm:$0xff]  }
 0x1f7   :  { %v10300_v28 = vadd.f32 %v10299_v26, %v10298_v24  ;;  %v10301_v29 = vpop.f32.mrb[34].mxu0  ;;  %v10320_v30 = vpop.f32.mrb[32].mxu1  ;;  %10601 = vmatpush3.bf16.msra.mxu0 %v11549_v20  ;;  %v11590_v20 = vld [vmem:[%s14528_s1 + $0x1038] sm:$0xff]  }
 0x1f8   :  { %v10302_v33 = vpop.f32.mrb[35].mxu0  ;;  %v10321_v34 = vpop.f32.mrb[33].mxu1  ;;  %10602 = vmatprep.subr.bf16.mxu0 %v11552_v23  ;;  %v11592_v26 = vld [vmem:[%s14528_s1 + $0x10b8] sm:$0xff]   ;;  %v11593_v29 = vld [vmem:[%s14528_s1 + $0x1140] sm:$0xff]  }
 0x1f9   :  { %v7710_v35 = vadd.f32 %v10300_v28, %v13472_v52  ;;  %v10322_v36 = vadd.f32 %v10321_v34, %v10320_v30  ;;  %10623 = vmatpush3.bf16.msra.mxu1 %v11551_v22  ;;  %v10323_v38 = vpop.f32.mrb[34].mxu1  ;;  %v11567_v52 = vld [vmem:[%s14528_s1 + $0x10c8] sm:$0xff]   ;;  %v30_v22 = vld [vmem:[%s14527_s0 + $0x40] sm:$0xff] }
 0x1fa   :  { %10624 = vmatprep.subr.bf16.mxu1 %v11554_v27  ;;  %v10324_v40 = vpop.f32.mrb[35].mxu1  ;;  %v2015_v28 = vcombine.high %v30_v22, %v30_v22  ;;  %v11595_v34 = vld [vmem:[%s14528_s1 + $0x11c0] sm:$0xff]  }
 0x1fb   :  { %v13579_v42 = vadd.f32 %v10322_v36, %v7710_v35  ;;  %10603 = vmatpush3.bf16.msra.mxu0 %v11553_v25  ;;  %v2022_v25 = vrot.slane %v30_v22, %v12012_v41  ;;  %v11596_v36 = vld [vmem:[%s14528_s1 + $0x1180] sm:$0xff]  }
 0x1fc   :  { %10604 = vmatprep.subr.bf16.mxu0 %v11556_v32  ;;  %v11594_v32 = vld [vmem:[%s14528_s1 + $0x1100] sm:$0xff]   ;;  %v13697_v33 = vrot.slane %v2015_v28, %v12012_v41  ;;  %v11633_v28 = vld [vmem:[%s14528_s1 + $0x1288] sm:$0xff]  }
 0x1fd   :  { %10625 = vmatpush3.bf16.msra.mxu1 %v11555_v31  ;;  %v2030_v30 = vcombine.high %v2022_v25, %v2022_v25  ;;  %v2038_v31 = vrot.slane %v2022_v25, %v12012_v41  ;;  %v11628_v22 = vld [vmem:[%s14528_s1 + $0x12c0] sm:$0xff]   ;;  %v11630_v25 = vld [vmem:[%s14528_s1 + $0x1248] sm:$0xff]  }
 0x1fe   :  { %10626 = vmatprep.subr.bf16.mxu1 %v11558_v39  ;;  %v11597_v39 = vld [vmem:[%s14528_s1 + $0x1148] sm:$0xff]  }
 0x1ff   :  { %10605 = vmatpush3.bf16.msra.mxu0 %v11557_v37  ;;  %v2052_v35 = vrot.slane %v2030_v30, %v12012_v41  ;;  %v2031_v37 = vcombine.high %v13697_v33, %v13697_v33  ;;  %v2060_v38 = vcombine.high %v2038_v31, %v2038_v31  ;;  %v11635_v30 = vld [vmem:[%s14528_s1 + $0x1210] sm:$0xff]  }
 0x200   :  { %10634 = vmatprep.subr.bf16.mxu0 %v11561_v45  ;;  %v11600_v45 = vld [vmem:[%s14528_s1 + $0x1188] sm:$0xff]  }
 0x201   :  { %10627 = vmatpush3.bf16.msra.mxu1 %v11560_v43  ;;  %v2062_v40 = vcombine.high %v2052_v35, %v2052_v35  ;;  %v2059_v43 = vrot.slane %v2031_v37, %v12012_v41  ;;  %v11642_v37 = vld [vmem:[%s14528_s1 + $0x1260] sm:$0xff]  }
 0x202   :  { %8268 = vmatmul.mubr.bf16.vlgmr.msra.gmra.mrb[60].mxu0 %v1996_v44  ;;  %10656 = vmatprep.subr.bf16.mxu1 %v11563_v47  ;;  %v11599_v44 = vld [vmem:[%s14528_s1 + $0x11c8] sm:$0xff]   ;;  %v11601_v47 = vld [vmem:[%s14528_s1 + $0x1150] sm:$0xff]  }
 0x203   :  { %10635 = vmatpush3.bf16.msra.mxu0 %v11562_v46  ;;  %8347 = vmatprep.mubr.bf16.mxu0 %v2052_v35  ;;  %v2063_v46 = vcombine.high %v2059_v43, %v2059_v43  ;;  %v11640_v35 = vld [vmem:[%s14528_s1 + $0x12d8] sm:$0xff]  }
 0x204   :  { %8308 = vmatmul.mubr.bf16.vlgmr.msra.gmra.mrb[60].mxu1 %v2012_v49  ;;  %10636 = vmatprep.subr.bf16.mxu0 %v11565_v50  ;;  %v11603_v49 = vld [vmem:[%s14528_s1 + $0x11d0] sm:$0xff]  }
 0x205   :  { %10657 = vmatpush3.bf16.msra.mxu1 %v11564_v48  ;;  %8387 = vmatprep.mubr.bf16.mxu1 %v2062_v40  ;;  %v11602_v48 = vld [vmem:[%s14528_s1 + $0x1110] sm:$0xff]   ;;  %v11645_v40 = vld [vmem:[%s14528_s1 + $0x12a0] sm:$0xff]  }
 0x206   :  { %10658 = vmatprep.subr.bf16.mxu1 %v11567_v52  ;;  %v11604_v50 = vld [vmem:[%s14528_s1 + $0x1190] sm:$0xff]   ;;  %v11606_v52 = vld [vmem:[%s14528_s1 + $0x1118] sm:$0xff]  }
 0x207   :  { %10637 = vmatpush3.bf16.msra.mxu0 %v11566_v51  ;;  %v11605_v51 = vld [vmem:[%s14528_s1 + $0x1158] sm:$0xff]  }
 0x208   :  { %10638 = vmatprep.subr.bf16.mxu0 %v11569_v54  ;;  %v11608_v54 = vld [vmem:[%s14528_s1 + $0x1198] sm:$0xff]  }
 0x209   :  { %10659 = vmatpush3.bf16.msra.mxu1 %v11568_v53  ;;  %v11607_v53 = vld [vmem:[%s14528_s1 + $0x11d8] sm:$0xff]  }
 0x20a   :  { %10660 = vmatprep.subr.bf16.mxu1 %v11571_v56  ;;  %v11610_v56 = vld [vmem:[%s14528_s1 + $0x1120] sm:$0xff]  }
 0x20b   :  { %10639 = vmatpush3.bf16.msra.mxu0 %v11570_v55  ;;  %v11609_v55 = vld [vmem:[%s14528_s1 + $0x1160] sm:$0xff]  }
 0x20c   :  { %10640 = vmatprep.subr.bf16.mxu0 %v11573_v58  ;;  %v11612_v58 = vld [vmem:[%s14528_s1 + $0x11a0] sm:$0xff]  }
 0x20d   :  { %10661 = vmatpush3.bf16.msra.mxu1 %v11572_v57  ;;  %v11611_v57 = vld [vmem:[%s14528_s1 + $0x11e0] sm:$0xff]  }
 0x20e   :  { %10662 = vmatprep.subr.bf16.mxu1 %v11575_v60  ;;  %v11614_v60 = vld [vmem:[%s14528_s1 + $0x1128] sm:$0xff]  }
 0x20f   :  { %10641 = vmatpush3.bf16.msra.mxu0 %v11574_v59  ;;  %v11613_v59 = vld [vmem:[%s14528_s1 + $0x1168] sm:$0xff]  }
 0x210   :  { %10642 = vmatprep.subr.bf16.mxu0 %v11577_v62  ;;  %v11616_v62 = vld [vmem:[%s14528_s1 + $0x11a8] sm:$0xff]  }
 0x211   :  { %10663 = vmatpush3.bf16.msra.mxu1 %v11576_v61  ;;  %v11615_v61 = vld [vmem:[%s14528_s1 + $0x11e8] sm:$0xff]  }
 0x212   :  { %10664 = vmatprep.subr.bf16.mxu1 %v11579_v0 }
 0x213   :  { %10643 = vmatpush3.bf16.msra.mxu0 %v11578_v63  ;;  %v11617_v63 = vld [vmem:[%s14528_s1 + $0x1170] sm:$0xff]  }
 0x214   :  { %10644 = vmatprep.subr.bf16.mxu0 %v11581_v2 }
 0x215   :  { %v10342_v7 = vpop.f32.mrb[36].mxu0  ;;  %10665 = vmatpush3.bf16.msra.mxu1 %v11580_v1  ;;  %v11618_v1 = vld [vmem:[%s14528_s1 + $0x1130] sm:$0xff]  }
 0x216   :  { %v10343_v9 = vpop.f32.mrb[37].mxu0  ;;  %10666 = vmatprep.subr.bf16.mxu1 %v11583_v4 }
 0x217   :  { %v10344_v11 = vadd.f32 %v10343_v9, %v10342_v7  ;;  %v10345_v12 = vpop.f32.mrb[38].mxu0  ;;  %v10364_v13 = vpop.f32.mrb[36].mxu1  ;;  %10645 = vmatpush3.bf16.msra.mxu0 %v11582_v3  ;;  %v11619_v3 = vld [vmem:[%s14528_s1 + $0x11f0] sm:$0xff]  }
 0x218   :  { %v10346_v14 = vpop.f32.mrb[39].mxu0  ;;  %v10365_v15 = vpop.f32.mrb[37].mxu1  ;;  %10646 = vmatprep.subr.bf16.mxu0 %v11585_v6  ;;  %v11620_v7 = vld [vmem:[%s14528_s1 + $0x11b0] sm:$0xff]  }
 0x219   :  { %v7790_v18 = vadd.f32 %v10344_v11, %v13579_v42  ;;  %v10366_v19 = vadd.f32 %v10365_v15, %v10364_v13  ;;  %10667 = vmatpush3.bf16.msra.mxu1 %v11584_v5  ;;  %v10367_v23 = vpop.f32.mrb[38].mxu1  ;;  %v11598_v42 = vld [vmem:[%s14528_s1 + $0x1108] sm:$0xff]   ;;  %v11622_v13 = vld [vmem:[%s14528_s1 + $0x1138] sm:$0xff]  }
 0x21a   :  { %10668 = vmatprep.subr.bf16.mxu1 %v11587_v10  ;;  %v10368_v27 = vpop.f32.mrb[39].mxu1  ;;  %v11623_v15 = vld [vmem:[%s14528_s1 + $0x11f8] sm:$0xff]   ;;  %v11629_v23 = vld [vmem:[%s14528_s1 + $0x1280] sm:$0xff]  }
 0x21b   :  { %v13683_v24 = vadd.f32 %v10366_v19, %v7790_v18  ;;  %10647 = vmatpush3.bf16.msra.mxu0 %v11586_v8  ;;  %v11621_v8 = vld [vmem:[%s14528_s1 + $0x1178] sm:$0xff]   ;;  %v2045_v19 = vrot.slane %v13697_v33, %v12012_v41  ;;  %v11632_v27 = vld [vmem:[%s14528_s1 + $0x12c8] sm:$0xff]  }
 0x21c   :  { %10648 = vmatprep.subr.bf16.mxu0 %v11589_v17  ;;  %v11625_v18 = vld [vmem:[%s14528_s1 + $0x11b8] sm:$0xff]  }
 0x21d   :  { %10669 = vmatpush3.bf16.msra.mxu1 %v11588_v16  ;;  %v11638_v33 = vld [vmem:[%s14528_s1 + $0x1258] sm:$0xff]  }
 0x21e   :  { %10670 = vmatprep.subr.bf16.mxu1 %v11591_v21  ;;  %v11627_v21 = vld [vmem:[%s14528_s1 + $0x1200] sm:$0xff]  }
 0x21f   :  { %10649 = vmatpush3.bf16.msra.mxu0 %v11590_v20  ;;  %v11626_v20 = vld [vmem:[%s14528_s1 + $0x1240] sm:$0xff]  }
 0x220   :  { %10678 = vmatprep.subr.bf16.mxu0 %v11593_v29  ;;  %v11634_v29 = vld [vmem:[%s14528_s1 + $0x1250] sm:$0xff]  }
 0x221   :  { %10671 = vmatpush3.bf16.msra.mxu1 %v11592_v26  ;;  %v11631_v26 = vld [vmem:[%s14528_s1 + $0x1208] sm:$0xff]  }
 0x222   :  { %8348 = vmatmul.mubr.bf16.vlgmr.msra.gmra.mrb[64].mxu0 %v2038_v31  ;;  %10700 = vmatprep.subr.bf16.mxu1 %v11595_v34  ;;  %v11636_v31 = vld [vmem:[%s14528_s1 + $0x12d0] sm:$0xff]   ;;  %v11639_v34 = vld [vmem:[%s14528_s1 + $0x1218] sm:$0xff]  }
 0x223   :  { %10679 = vmatpush3.bf16.msra.mxu0 %v11594_v32  ;;  %8427 = vmatprep.mubr.bf16.mxu0 %v2059_v43  ;;  %v11637_v32 = vld [vmem:[%s14528_s1 + $0x1290] sm:$0xff]   ;;  %v11647_v43 = vld [vmem:[%s14528_s1 + $0x1228] sm:$0xff]  }
 0x224   :  { %8388 = vmatmul.mubr.bf16.vlgmr.msra.gmra.mrb[64].mxu1 %v2060_v38  ;;  %10680 = vmatprep.subr.bf16.mxu0 %v11597_v39  ;;  %v11643_v38 = vld [vmem:[%s14528_s1 + $0x1220] sm:$0xff]  }
 0x225   :  { %10701 = vmatpush3.bf16.msra.mxu1 %v11596_v36  ;;  %8467 = vmatprep.mubr.bf16.mxu1 %v2063_v46  ;;  %v11641_v36 = vld [vmem:[%s14528_s1 + $0x1298] sm:$0xff]   ;;  %v11644_v39 = vld [vmem:[%s14528_s1 + $0x12e0] sm:$0xff]   ;;  %v11650_v46 = vld [vmem:[%s14528_s1 + $0x1270] sm:$0xff]  }
 0x226   :  { %10702 = vmatprep.subr.bf16.mxu1 %v11599_v44  ;;  %v11648_v44 = vld [vmem:[%s14528_s1 + $0x12e8] sm:$0xff]  }
 0x227   :  { %10681 = vmatpush3.bf16.msra.mxu0 %v11598_v42  ;;  %v11646_v42 = vld [vmem:[%s14528_s1 + $0x1268] sm:$0xff]  }
 0x228   :  { %10682 = vmatprep.subr.bf16.mxu0 %v11601_v47 }
 0x229   :  { %10703 = vmatpush3.bf16.msra.mxu1 %v11600_v45  ;;  %v11649_v45 = vld [vmem:[%s14528_s1 + $0x12a8] sm:$0xff]  }
 0x22a   :  { %10704 = vmatprep.subr.bf16.mxu1 %v11603_v49 }
 0x22b   :  { %10683 = vmatpush3.bf16.msra.mxu0 %v11602_v48  ;;  %v11651_v48 = vld [vmem:[%s14528_s1 + $0x1230] sm:$0xff]  }
 0x22c   :  { %10684 = vmatprep.subr.bf16.mxu0 %v11605_v51 }
 0x22d   :  { %10705 = vmatpush3.bf16.msra.mxu1 %v11604_v50  ;;  %v11652_v50 = vld [vmem:[%s14528_s1 + $0x12f0] sm:$0xff]  }
 0x22e   :  { %10706 = vmatprep.subr.bf16.mxu1 %v11607_v53 }
 0x22f   :  { %10685 = vmatpush3.bf16.msra.mxu0 %v11606_v52 }
 0x230   :  { %10686 = vmatprep.subr.bf16.mxu0 %v11609_v55 }
 0x231   :  { %10707 = vmatpush3.bf16.msra.mxu1 %v11608_v54 }
 0x232   :  { %10708 = vmatprep.subr.bf16.mxu1 %v11611_v57  ;;  %v11654_v57 = vld [vmem:[%s14528_s1 + $0x1278] sm:$0xff]  }
 0x233   :  { %10687 = vmatpush3.bf16.msra.mxu0 %v11610_v56  ;;  %v11653_v56 = vld [vmem:[%s14528_s1 + $0x12b0] sm:$0xff]  }
 0x234   :  { %10688 = vmatprep.subr.bf16.mxu0 %v11613_v59 }
 0x235   :  { %v10386_v0 = vpop.f32.mrb[40].mxu0  ;;  %10709 = vmatpush3.bf16.msra.mxu1 %v11612_v58 }
 0x236   :  { %v10387_v2 = vpop.f32.mrb[41].mxu0  ;;  %10710 = vmatprep.subr.bf16.mxu1 %v11615_v61 }
 0x237   :  { %v10388_v4 = vadd.f32 %v10387_v2, %v10386_v0  ;;  %v10389_v5 = vpop.f32.mrb[42].mxu0  ;;  %v10408_v6 = vpop.f32.mrb[40].mxu1  ;;  %10689 = vmatpush3.bf16.msra.mxu0 %v11614_v60  ;;  %v11655_v60 = vld [vmem:[%s14528_s1 + $0x1238] sm:$0xff]   ;;  %v31_v0 = vld [vmem:[%s14527_s0 + $0x48] sm:$0xff] }
 0x238   :  { %v10390_v9 = vpop.f32.mrb[43].mxu0  ;;  %v10409_v10 = vpop.f32.mrb[41].mxu1  ;;  %10690 = vmatprep.subr.bf16.mxu0 %v11617_v63  ;;  %v11656_v63 = vld [vmem:[%s14528_s1 + $0x12f8] sm:$0xff]   ;;  %v2071_v2 = vrot.slane %v31_v0, %v12012_v41  ;;  %v11658_v5 = vld [vmem:[%s14528_s1 + $0x1340] sm:$0xff]  }
 0x239   :  { %v7870_v11 = vadd.f32 %v10388_v4, %v13683_v24  ;;  %v10410_v12 = vadd.f32 %v10409_v10, %v10408_v6  ;;  %10711 = vmatpush3.bf16.msra.mxu1 %v11616_v62  ;;  %v10411_v14 = vpop.f32.mrb[42].mxu1  ;;  %v2061_v24 = vcombine.high %v2045_v19, %v2045_v19  ;;  %v2064_v4 = vcombine.high %v31_v0, %v31_v0  ;;  %v11660_v9 = vld [vmem:[%s14528_s1 + $0x13c0] sm:$0xff]  }
 0x23a   :  { %10712 = vmatprep.subr.bf16.mxu1 %v11619_v3  ;;  %v10412_v16 = vpop.f32.mrb[43].mxu1  ;;  %v11657_v3 = vld [vmem:[%s14528_s1 + $0x12b8] sm:$0xff]   ;;  %v2079_v6 = vcombine.high %v2071_v2, %v2071_v2  ;;  %v11662_v14 = vld [vmem:[%s14528_s1 + $0x1348] sm:$0xff]  }
 0x23b   :  { %v13791_v17 = vadd.f32 %v10410_v12, %v7870_v11  ;;  %10691 = vmatpush3.bf16.msra.mxu0 %v11618_v1  ;;  %v11659_v11 = vld [vmem:[%s14528_s1 + $0x1300] sm:$0xff]  }
 0x23c   :  { %10692 = vmatprep.subr.bf16.mxu0 %v11621_v8  ;;  %v13906_v8 = vrot.slane %v2064_v4, %v12012_v41  ;;  %v2101_v10 = vrot.slane %v2079_v6, %v12012_v41  ;;  %v11661_v16 = vld [vmem:[%s14528_s1 + $0x1380] sm:$0xff]   ;;  %v11698_v4 = vld [vmem:[%s14528_s1 + $0x1488] sm:$0xff]   ;;  %v11700_v6 = vld [vmem:[%s14528_s1 + $0x1410] sm:$0xff]  }
 0x23d   :  { %10713 = vmatpush3.bf16.msra.mxu1 %v11620_v7  ;;  %v2087_v7 = vrot.slane %v2071_v2, %v12012_v41  ;;  %v11696_v2 = vld [vmem:[%s14528_s1 + $0x1408] sm:$0xff]  }
 0x23e   :  { %10714 = vmatprep.subr.bf16.mxu1 %v11623_v15  ;;  %v2080_v12 = vcombine.high %v13906_v8, %v13906_v8  ;;  %v2111_v15 = vcombine.high %v2101_v10, %v2101_v10 }
 0x23f   :  { %10693 = vmatpush3.bf16.msra.mxu0 %v11622_v13  ;;  %v2109_v13 = vcombine.high %v2087_v7, %v2087_v7 }
 0x240   :  { %10722 = vmatprep.subr.bf16.mxu0 %v11626_v20 }
 0x241   :  { %10715 = vmatpush3.bf16.msra.mxu1 %v11625_v18  ;;  %v11664_v18 = vld [vmem:[%s14528_s1 + $0x13c8] sm:$0xff]  }
 0x242   :  { %8428 = vmatmul.mubr.bf16.vlgmr.msra.gmra.mrb[68].mxu0 %v2045_v19  ;;  %10744 = vmatprep.subr.bf16.mxu1 %v11628_v22  ;;  %v11663_v19 = vld [vmem:[%s14528_s1 + $0x1308] sm:$0xff]  }
 0x243   :  { %10723 = vmatpush3.bf16.msra.mxu0 %v11627_v21  ;;  %8507 = vmatprep.mubr.bf16.mxu0 %v2101_v10  ;;  %v11666_v21 = vld [vmem:[%s14528_s1 + $0x1350] sm:$0xff]   ;;  %v11665_v22 = vld [vmem:[%s14528_s1 + $0x1388] sm:$0xff]   ;;  %v11704_v10 = vld [vmem:[%s14528_s1 + $0x1418] sm:$0xff]  }
 0x244   :  { %8468 = vmatmul.mubr.bf16.vlgmr.msra.gmra.mrb[68].mxu1 %v2061_v24  ;;  %10724 = vmatprep.subr.bf16.mxu0 %v11630_v25  ;;  %v11667_v24 = vld [vmem:[%s14528_s1 + $0x1310] sm:$0xff]   ;;  %v11670_v25 = vld [vmem:[%s14528_s1 + $0x1358] sm:$0xff]  }
 0x245   :  { %10745 = vmatpush3.bf16.msra.mxu1 %v11629_v23  ;;  %8547 = vmatprep.mubr.bf16.mxu1 %v2111_v15  ;;  %v11668_v23 = vld [vmem:[%s14528_s1 + $0x13d0] sm:$0xff]   ;;  %v11709_v15 = vld [vmem:[%s14528_s1 + $0x14e0] sm:$0xff]  }
 0x246   :  { %10746 = vmatprep.subr.bf16.mxu1 %v11632_v27  ;;  %v11672_v27 = vld [vmem:[%s14528_s1 + $0x13d8] sm:$0xff]  }
 0x247   :  { %10725 = vmatpush3.bf16.msra.mxu0 %v11631_v26  ;;  %v11669_v26 = vld [vmem:[%s14528_s1 + $0x1390] sm:$0xff]  }
 0x248   :  { %10726 = vmatprep.subr.bf16.mxu0 %v11634_v29  ;;  %v11674_v29 = vld [vmem:[%s14528_s1 + $0x1360] sm:$0xff]  }
 0x249   :  { %10747 = vmatpush3.bf16.msra.mxu1 %v11633_v28  ;;  %v11671_v28 = vld [vmem:[%s14528_s1 + $0x1318] sm:$0xff]  }
 0x24a   :  { %10748 = vmatprep.subr.bf16.mxu1 %v11636_v31  ;;  %v11676_v31 = vld [vmem:[%s14528_s1 + $0x13e0] sm:$0xff]  }
 0x24b   :  { %10727 = vmatpush3.bf16.msra.mxu0 %v11635_v30  ;;  %v11673_v30 = vld [vmem:[%s14528_s1 + $0x1398] sm:$0xff]  }
 0x24c   :  { %10728 = vmatprep.subr.bf16.mxu0 %v11638_v33  ;;  %v11678_v33 = vld [vmem:[%s14528_s1 + $0x1368] sm:$0xff]  }
 0x24d   :  { %10749 = vmatpush3.bf16.msra.mxu1 %v11637_v32  ;;  %v11675_v32 = vld [vmem:[%s14528_s1 + $0x1320] sm:$0xff]  }
 0x24e   :  { %10750 = vmatprep.subr.bf16.mxu1 %v11640_v35  ;;  %v11680_v35 = vld [vmem:[%s14528_s1 + $0x13e8] sm:$0xff]  }
 0x24f   :  { %10729 = vmatpush3.bf16.msra.mxu0 %v11639_v34  ;;  %v11677_v34 = vld [vmem:[%s14528_s1 + $0x13a0] sm:$0xff]  }
 0x250   :  { %10730 = vmatprep.subr.bf16.mxu0 %v11642_v37 }
 0x251   :  { %10751 = vmatpush3.bf16.msra.mxu1 %v11641_v36  ;;  %v11679_v36 = vld [vmem:[%s14528_s1 + $0x1328] sm:$0xff]  }
 0x252   :  { %10752 = vmatprep.subr.bf16.mxu1 %v11644_v39 }
 0x253   :  { %10731 = vmatpush3.bf16.msra.mxu0 %v11643_v38  ;;  %v11682_v38 = vld [vmem:[%s14528_s1 + $0x1370] sm:$0xff]  }
 0x254   :  { %10732 = vmatprep.subr.bf16.mxu0 %v11646_v42 }
 0x255   :  { %v10430_v47 = vpop.f32.mrb[44].mxu0  ;;  %10753 = vmatpush3.bf16.msra.mxu1 %v11645_v40  ;;  %v11681_v40 = vld [vmem:[%s14528_s1 + $0x13a8] sm:$0xff]  }
 0x256   :  { %v10431_v49 = vpop.f32.mrb[45].mxu0  ;;  %10754 = vmatprep.subr.bf16.mxu1 %v11648_v44 }
 0x257   :  { %v10432_v51 = vadd.f32 %v10431_v49, %v10430_v47  ;;  %v10433_v52 = vpop.f32.mrb[46].mxu0  ;;  %v10452_v53 = vpop.f32.mrb[44].mxu1  ;;  %10733 = vmatpush3.bf16.msra.mxu0 %v11647_v43  ;;  %v11685_v49 = vld [vmem:[%s14528_s1 + $0x13b0] sm:$0xff]  }
 0x258   :  { %v10434_v54 = vpop.f32.mrb[47].mxu0  ;;  %v10453_v55 = vpop.f32.mrb[45].mxu1  ;;  %10734 = vmatprep.subr.bf16.mxu0 %v11650_v46  ;;  %v11684_v46 = vld [vmem:[%s14528_s1 + $0x13f0] sm:$0xff]   ;;  %v11686_v52 = vld [vmem:[%s14528_s1 + $0x1378] sm:$0xff]  }
 0x259   :  { %v7950_v58 = vadd.f32 %v10432_v51, %v13791_v17  ;;  %v10454_v59 = vadd.f32 %v10453_v55, %v10452_v53  ;;  %10755 = vmatpush3.bf16.msra.mxu1 %v11649_v45  ;;  %v10455_v61 = vpop.f32.mrb[46].mxu1  ;;  %v2108_v17 = vrot.slane %v2080_v12, %v12012_v41  ;;  %v11683_v45 = vld [vmem:[%s14528_s1 + $0x1330] sm:$0xff]   ;;  %v11687_v54 = vld [vmem:[%s14528_s1 + $0x1338] sm:$0xff]  }
 0x25a   :  { %10756 = vmatprep.subr.bf16.mxu1 %v11652_v50  ;;  %v10456_v1 = vpop.f32.mrb[47].mxu1  ;;  %v11692_v61 = vld [vmem:[%s14528_s1 + $0x1400] sm:$0xff]   ;;  %v11706_v12 = vld [vmem:[%s14528_s1 + $0x1498] sm:$0xff]  }
 0x25b   :  { %v13889_v62 = vadd.f32 %v10454_v59, %v7950_v58  ;;  %10735 = vmatpush3.bf16.msra.mxu0 %v11651_v48  ;;  %v2112_v20 = vcombine.high %v2108_v17, %v2108_v17  ;;  %v11690_v58 = vld [vmem:[%s14528_s1 + $0x13b8] sm:$0xff]   ;;  %v2094_v59 = vrot.slane %v13906_v8, %v12012_v41  ;;  %v11695_v1 = vld [vmem:[%s14528_s1 + $0x1448] sm:$0xff]   ;;  %v11702_v8 = vld [vmem:[%s14528_s1 + $0x1490] sm:$0xff]  }
 0x25c   :  { %10736 = vmatprep.subr.bf16.mxu0 %v11654_v57  ;;  %v11688_v57 = vld [vmem:[%s14528_s1 + $0x13f8] sm:$0xff]  }
 0x25d   :  { %10757 = vmatpush3.bf16.msra.mxu1 %v11653_v56  ;;  %v2110_v0 = vcombine.high %v2094_v59, %v2094_v59 }
 0x25e   :  { %10758 = vmatprep.subr.bf16.mxu1 %v11656_v63  ;;  %v11694_v63 = vld [vmem:[%s14528_s1 + $0x1480] sm:$0xff]  }
 0x25f   :  { %10737 = vmatpush3.bf16.msra.mxu0 %v11655_v60  ;;  %v11691_v60 = vld [vmem:[%s14528_s1 + $0x1440] sm:$0xff]  }
 0x260   :  { %10766 = vmatprep.subr.bf16.mxu0 %v11658_v5  ;;  %v11699_v5 = vld [vmem:[%s14528_s1 + $0x1450] sm:$0xff]  }
 0x261   :  { %10759 = vmatpush3.bf16.msra.mxu1 %v11657_v3  ;;  %v11697_v3 = vld [vmem:[%s14528_s1 + $0x14c8] sm:$0xff]  }
 0x262   :  { %10788 = vmatprep.subr.bf16.mxu1 %v11660_v9  ;;  %8508 = vmatmul.mubr.bf16.vlgmr.msra.gmra.mrb[72].mxu0 %v2087_v7  ;;  %v11701_v7 = vld [vmem:[%s14528_s1 + $0x14d0] sm:$0xff]   ;;  %v11703_v9 = vld [vmem:[%s14528_s1 + $0x1458] sm:$0xff]  }
 0x263   :  { %10767 = vmatpush3.bf16.msra.mxu0 %v11659_v11  ;;  %8587 = vmatprep.mubr.bf16.mxu0 %v2108_v17  ;;  %v11705_v11 = vld [vmem:[%s14528_s1 + $0x14d8] sm:$0xff]   ;;  %v11711_v17 = vld [vmem:[%s14528_s1 + $0x1468] sm:$0xff]  }
 0x264   :  { %8548 = vmatmul.mubr.bf16.vlgmr.msra.gmra.mrb[72].mxu1 %v2109_v13  ;;  %10768 = vmatprep.subr.bf16.mxu0 %v11662_v14  ;;  %v11707_v13 = vld [vmem:[%s14528_s1 + $0x1460] sm:$0xff]  }
 0x265   :  { %10789 = vmatpush3.bf16.msra.mxu1 %v11661_v16  ;;  %8627 = vmatprep.mubr.bf16.mxu1 %v2112_v20  ;;  %v11708_v14 = vld [vmem:[%s14528_s1 + $0x1420] sm:$0xff]   ;;  %v11714_v20 = vld [vmem:[%s14528_s1 + $0x14a8] sm:$0xff]  }
 0x266   :  { %10790 = vmatprep.subr.bf16.mxu1 %v11664_v18  ;;  %v11710_v16 = vld [vmem:[%s14528_s1 + $0x14a0] sm:$0xff]   ;;  %v11712_v18 = vld [vmem:[%s14528_s1 + $0x1428] sm:$0xff]  }
 0x267   :  { %10769 = vmatpush3.bf16.msra.mxu0 %v11663_v19  ;;  %v11713_v19 = vld [vmem:[%s14528_s1 + $0x14e8] sm:$0xff]  }
 0x268   :  { %10770 = vmatprep.subr.bf16.mxu0 %v11666_v21 }
 0x269   :  { %10791 = vmatpush3.bf16.msra.mxu1 %v11665_v22  ;;  %v11715_v22 = vld [vmem:[%s14528_s1 + $0x1470] sm:$0xff]  }
 0x26a   :  { %10792 = vmatprep.subr.bf16.mxu1 %v11668_v23 }
 0x26b   :  { %10771 = vmatpush3.bf16.msra.mxu0 %v11667_v24  ;;  %v11716_v24 = vld [vmem:[%s14528_s1 + $0x1430] sm:$0xff]  }
 0x26c   :  { %10772 = vmatprep.subr.bf16.mxu0 %v11670_v25 }
 0x26d   :  { %10793 = vmatpush3.bf16.msra.mxu1 %v11669_v26 }
 0x26e   :  { %10794 = vmatprep.subr.bf16.mxu1 %v11672_v27 }
 0x26f   :  { %10773 = vmatpush3.bf16.msra.mxu0 %v11671_v28 }
 0x270   :  { %10774 = vmatprep.subr.bf16.mxu0 %v11674_v29 }
 0x271   :  { %10795 = vmatpush3.bf16.msra.mxu1 %v11673_v30  ;;  %v11717_v30 = vld [vmem:[%s14528_s1 + $0x14f0] sm:$0xff]  }
 0x272   :  { %10796 = vmatprep.subr.bf16.mxu1 %v11676_v31  ;;  %v11718_v31 = vld [vmem:[%s14528_s1 + $0x14b0] sm:$0xff]  }
 0x273   :  { %10775 = vmatpush3.bf16.msra.mxu0 %v11675_v32 }
 0x274   :  { %10776 = vmatprep.subr.bf16.mxu0 %v11678_v33 }
 0x275   :  { %v10474_v37 = vpop.f32.mrb[48].mxu0  ;;  %10797 = vmatpush3.bf16.msra.mxu1 %v11677_v34  ;;  %v11719_v34 = vld [vmem:[%s14528_s1 + $0x1478] sm:$0xff]  }
 0x276   :  { %v10475_v39 = vpop.f32.mrb[49].mxu0  ;;  %10798 = vmatprep.subr.bf16.mxu1 %v11680_v35 }
 0x277   :  { %v10476_v42 = vadd.f32 %v10475_v39, %v10474_v37  ;;  %v10477_v43 = vpop.f32.mrb[50].mxu0  ;;  %v10496_v44 = vpop.f32.mrb[48].mxu1  ;;  %10777 = vmatpush3.bf16.msra.mxu0 %v11679_v36  ;;  %v11720_v37 = vld [vmem:[%s14528_s1 + $0x1438] sm:$0xff]  }
 0x278   :  { %v10478_v47 = vpop.f32.mrb[51].mxu0  ;;  %v10497_v48 = vpop.f32.mrb[49].mxu1  ;;  %10778 = vmatprep.subr.bf16.mxu0 %v11682_v38  ;;  %v11721_v39 = vld [vmem:[%s14528_s1 + $0x14f8] sm:$0xff]  }
 0x279   :  { %v8030_v50 = vadd.f32 %v10476_v42, %v13889_v62  ;;  %v10498_v51 = vadd.f32 %v10497_v48, %v10496_v44  ;;  %v10499_v53 = vpop.f32.mrb[50].mxu1  ;;  %10799 = vmatpush3.bf16.msra.mxu1 %v11681_v40  ;;  %v11693_v62 = vld [vmem:[%s14528_s1 + $0x14c0] sm:$0xff]   ;;  %v32_v40 = vld [vmem:[%s14527_s0 + $0x50] sm:$0xff]  ;;  %v11722_v43 = vld [vmem:[%s14528_s1 + $0x14b8] sm:$0xff]  }
 0x27a   :  { %v10500_v55 = vpop.f32.mrb[51].mxu1  ;;  %10800 = vmatprep.subr.bf16.mxu1 %v11684_v46  ;;  %v2120_v42 = vrot.slane %v32_v40, %v12012_v41  ;;  %v2113_v44 = vcombine.high %v32_v40, %v32_v40  ;;  %v11724_v48 = vld [vmem:[%s14528_s1 + $0x1500] sm:$0xff]   ;;  %v11760_v40 = vld [vmem:[%s14528_s1 + $0x1648] sm:$0xff]  }
 0x27b   :  { %v14000_v56 = vadd.f32 %v10498_v51, %v8030_v50  ;;  %10779 = vmatpush3.bf16.msra.mxu0 %v11683_v45  ;;  %v11723_v45 = vld [vmem:[%s14528_s1 + $0x1540] sm:$0xff]   ;;  %v11727_v55 = vld [vmem:[%s14528_s1 + $0x1548] sm:$0xff]  }
 0x27c   :  { %10780 = vmatprep.subr.bf16.mxu0 %v11686_v52  ;;  %v2128_v46 = vcombine.high %v2120_v42, %v2120_v42  ;;  %v2136_v47 = vrot.slane %v2120_v42, %v12012_v41  ;;  %v11725_v50 = vld [vmem:[%s14528_s1 + $0x15c0] sm:$0xff]   ;;  %v11761_v42 = vld [vmem:[%s14528_s1 + $0x1608] sm:$0xff]  }
 0x27d   :  { %10801 = vmatpush3.bf16.msra.mxu1 %v11685_v49  ;;  %v14121_v49 = vrot.slane %v2113_v44, %v12012_v41  ;;  %v11726_v52 = vld [vmem:[%s14528_s1 + $0x1580] sm:$0xff]   ;;  %v11763_v44 = vld [vmem:[%s14528_s1 + $0x1688] sm:$0xff]  }
 0x27e   :  { %10802 = vmatprep.subr.bf16.mxu1 %v11688_v57  ;;  %v2150_v51 = vrot.slane %v2128_v46, %v12012_v41  ;;  %v11728_v57 = vld [vmem:[%s14528_s1 + $0x1508] sm:$0xff]   ;;  %v11765_v46 = vld [vmem:[%s14528_s1 + $0x1610] sm:$0xff]  }
 0x27f   :  { %10781 = vmatpush3.bf16.msra.mxu0 %v11687_v54  ;;  %v2129_v53 = vcombine.high %v14121_v49, %v14121_v49  ;;  %v2158_v54 = vcombine.high %v2136_v47, %v2136_v47 }
 0x280   :  { %10810 = vmatprep.subr.bf16.mxu0 %v11691_v60  ;;  %v11730_v60 = vld [vmem:[%s14528_s1 + $0x1588] sm:$0xff]  }
 0x281   :  { %10803 = vmatpush3.bf16.msra.mxu1 %v11690_v58  ;;  %v2157_v58 = vrot.slane %v2129_v53, %v12012_v41  ;;  %v11772_v53 = vld [vmem:[%s14528_s1 + $0x1660] sm:$0xff]  }
 0x282   :  { %8588 = vmatmul.mubr.bf16.vlgmr.msra.gmra.mrb[76].mxu0 %v2094_v59  ;;  %10832 = vmatprep.subr.bf16.mxu1 %v11693_v62  ;;  %v11729_v59 = vld [vmem:[%s14528_s1 + $0x15c8] sm:$0xff]   ;;  %v11731_v62 = vld [vmem:[%s14528_s1 + $0x1550] sm:$0xff]  }
 0x283   :  { %10811 = vmatpush3.bf16.msra.mxu0 %v11692_v61  ;;  %8667 = vmatprep.mubr.bf16.mxu0 %v2150_v51  ;;  %v2161_v61 = vcombine.high %v2157_v58, %v2157_v58 }
 0x284   :  { %8628 = vmatmul.mubr.bf16.vlgmr.msra.gmra.mrb[76].mxu1 %v2110_v0  ;;  %10812 = vmatprep.subr.bf16.mxu0 %v11695_v1  ;;  %v11733_v0 = vld [vmem:[%s14528_s1 + $0x15d0] sm:$0xff]  }
 0x285   :  { %10833 = vmatpush3.bf16.msra.mxu1 %v11694_v63  ;;  %v11732_v63 = vld [vmem:[%s14528_s1 + $0x1510] sm:$0xff]  }
 0x286   :  { %10834 = vmatprep.subr.bf16.mxu1 %v11697_v3  ;;  %v11734_v1 = vld [vmem:[%s14528_s1 + $0x1590] sm:$0xff]   ;;  %v11736_v3 = vld [vmem:[%s14528_s1 + $0x1518] sm:$0xff]  }
 0x287   :  { %10813 = vmatpush3.bf16.msra.mxu0 %v11696_v2  ;;  %v11735_v2 = vld [vmem:[%s14528_s1 + $0x1558] sm:$0xff]  }
 0x288   :  { %10814 = vmatprep.subr.bf16.mxu0 %v11699_v5  ;;  %v11738_v5 = vld [vmem:[%s14528_s1 + $0x1598] sm:$0xff]  }
 0x289   :  { %10835 = vmatpush3.bf16.msra.mxu1 %v11698_v4  ;;  %v11737_v4 = vld [vmem:[%s14528_s1 + $0x15d8] sm:$0xff]  }
 0x28a   :  { %10836 = vmatprep.subr.bf16.mxu1 %v11701_v7  ;;  %v11740_v7 = vld [vmem:[%s14528_s1 + $0x1520] sm:$0xff]  }
 0x28b   :  { %10815 = vmatpush3.bf16.msra.mxu0 %v11700_v6  ;;  %v11739_v6 = vld [vmem:[%s14528_s1 + $0x1560] sm:$0xff]  }
 0x28c   :  { %10816 = vmatprep.subr.bf16.mxu0 %v11703_v9  ;;  %v11742_v9 = vld [vmem:[%s14528_s1 + $0x15a0] sm:$0xff]  }
 0x28d   :  { %10837 = vmatpush3.bf16.msra.mxu1 %v11702_v8  ;;  %v11741_v8 = vld [vmem:[%s14528_s1 + $0x15e0] sm:$0xff]  }
 0x28e   :  { %10838 = vmatprep.subr.bf16.mxu1 %v11705_v11  ;;  %v11744_v11 = vld [vmem:[%s14528_s1 + $0x1528] sm:$0xff]  }
 0x28f   :  { %10817 = vmatpush3.bf16.msra.mxu0 %v11704_v10  ;;  %v11743_v10 = vld [vmem:[%s14528_s1 + $0x1568] sm:$0xff]  }
 0x290   :  { %10818 = vmatprep.subr.bf16.mxu0 %v11707_v13 }
 0x291   :  { %10839 = vmatpush3.bf16.msra.mxu1 %v11706_v12  ;;  %v11745_v12 = vld [vmem:[%s14528_s1 + $0x15e8] sm:$0xff]  }
 0x292   :  { %10840 = vmatprep.subr.bf16.mxu1 %v11709_v15 }
 0x293   :  { %10819 = vmatpush3.bf16.msra.mxu0 %v11708_v14  ;;  %v11746_v14 = vld [vmem:[%s14528_s1 + $0x15a8] sm:$0xff]  }
 0x294   :  { %10820 = vmatprep.subr.bf16.mxu0 %v11711_v17 }
 0x295   :  { %v10518_v21 = vpop.f32.mrb[52].mxu0  ;;  %10841 = vmatpush3.bf16.msra.mxu1 %v11710_v16  ;;  %v11747_v16 = vld [vmem:[%s14528_s1 + $0x1570] sm:$0xff]  }
 0x296   :  { %v10519_v23 = vpop.f32.mrb[53].mxu0  ;;  %10842 = vmatprep.subr.bf16.mxu1 %v11713_v19 }
 0x297   :  { %v10520_v25 = vadd.f32 %v10519_v23, %v10518_v21  ;;  %v10521_v26 = vpop.f32.mrb[54].mxu0  ;;  %v10540_v27 = vpop.f32.mrb[52].mxu1  ;;  %10821 = vmatpush3.bf16.msra.mxu0 %v11712_v18  ;;  %v11749_v21 = vld [vmem:[%s14528_s1 + $0x15f0] sm:$0xff]  }
 0x298   :  { %v10522_v28 = vpop.f32.mrb[55].mxu0  ;;  %v10541_v29 = vpop.f32.mrb[53].mxu1  ;;  %10822 = vmatprep.subr.bf16.mxu0 %v11715_v22  ;;  %v11750_v26 = vld [vmem:[%s14528_s1 + $0x15b0] sm:$0xff]  }
 0x299   :  { %v8110_v32 = vadd.f32 %v10520_v25, %v14000_v56  ;;  %v10542_v33 = vadd.f32 %v10541_v29, %v10540_v27  ;;  %10843 = vmatpush3.bf16.msra.mxu1 %v11714_v20  ;;  %v10543_v35 = vpop.f32.mrb[54].mxu1  ;;  %v2160_v56 = vcombine.high %v2150_v51, %v2150_v51  ;;  %v11748_v20 = vld [vmem:[%s14528_s1 + $0x1530] sm:$0xff]   ;;  %v11751_v28 = vld [vmem:[%s14528_s1 + $0x1578] sm:$0xff]  }
 0x29a   :  { %10844 = vmatprep.subr.bf16.mxu1 %v11717_v30  ;;  %v10544_v38 = vpop.f32.mrb[55].mxu1  ;;  %v11756_v35 = vld [vmem:[%s14528_s1 + $0x1640] sm:$0xff]   ;;  %v11770_v51 = vld [vmem:[%s14528_s1 + $0x16d8] sm:$0xff]  }
 0x29b   :  { %v14098_v36 = vadd.f32 %v10542_v33, %v8110_v32  ;;  %10823 = vmatpush3.bf16.msra.mxu0 %v11716_v24  ;;  %8707 = vmatprep.mubr.bf16.mxu1 %v2160_v56  ;;  %v11753_v32 = vld [vmem:[%s14528_s1 + $0x15f8] sm:$0xff]   ;;  %v11759_v38 = vld [vmem:[%s14528_s1 + $0x1680] sm:$0xff]  }
 0x29c   :  { %10824 = vmatprep.subr.bf16.mxu0 %v11719_v34  ;;  %v11755_v33 = vld [vmem:[%s14528_s1 + $0x15b8] sm:$0xff]   ;;  %v2143_v34 = vrot.slane %v14121_v49, %v12012_v41  ;;  %v11775_v56 = vld [vmem:[%s14528_s1 + $0x16a0] sm:$0xff]  }
 0x29d   :  { %10845 = vmatpush3.bf16.msra.mxu1 %v11718_v31  ;;  %v11752_v31 = vld [vmem:[%s14528_s1 + $0x1538] sm:$0xff]  }
 0x29e   :  { %10846 = vmatprep.subr.bf16.mxu1 %v11721_v39  ;;  %v2159_v39 = vcombine.high %v2143_v34, %v2143_v34  ;;  %v11768_v49 = vld [vmem:[%s14528_s1 + $0x1658] sm:$0xff]  }
 0x29f   :  { %10825 = vmatpush3.bf16.msra.mxu0 %v11720_v37  ;;  %v11758_v37 = vld [vmem:[%s14528_s1 + $0x16c0] sm:$0xff]  }
 0x2a0   :  { %10854 = vmatprep.subr.bf16.mxu0 %v11723_v45  ;;  %v11764_v45 = vld [vmem:[%s14528_s1 + $0x1650] sm:$0xff]  }
 0x2a1   :  { %10847 = vmatpush3.bf16.msra.mxu1 %v11722_v43  ;;  %v11762_v43 = vld [vmem:[%s14528_s1 + $0x16c8] sm:$0xff]  }
 0x2a2   :  { %10876 = vmatprep.subr.bf16.mxu1 %v11725_v50  ;;  %8668 = vmatmul.mubr.bf16.vlgmr.msra.gmra.mrb[80].mxu0 %v2136_v47  ;;  %v11766_v47 = vld [vmem:[%s14528_s1 + $0x16d0] sm:$0xff]   ;;  %v11769_v50 = vld [vmem:[%s14528_s1 + $0x1618] sm:$0xff]  }
 0x2a3   :  { %10855 = vmatpush3.bf16.msra.mxu0 %v11724_v48  ;;  %8747 = vmatprep.mubr.bf16.mxu0 %v2157_v58  ;;  %v11767_v48 = vld [vmem:[%s14528_s1 + $0x1690] sm:$0xff]   ;;  %v11777_v58 = vld [vmem:[%s14528_s1 + $0x1628] sm:$0xff]  }
 0x2a4   :  { %8708 = vmatmul.mubr.bf16.vlgmr.msra.gmra.mrb[80].mxu1 %v2158_v54  ;;  %10856 = vmatprep.subr.bf16.mxu0 %v11727_v55  ;;  %v11773_v54 = vld [vmem:[%s14528_s1 + $0x1620] sm:$0xff]  }
 0x2a5   :  { %10877 = vmatpush3.bf16.msra.mxu1 %v11726_v52  ;;  %8787 = vmatprep.mubr.bf16.mxu1 %v2161_v61  ;;  %v11771_v52 = vld [vmem:[%s14528_s1 + $0x1698] sm:$0xff]   ;;  %v11774_v55 = vld [vmem:[%s14528_s1 + $0x16e0] sm:$0xff]   ;;  %v11779_v61 = vld [vmem:[%s14528_s1 + $0x16a8] sm:$0xff]  }
 0x2a6   :  { %10878 = vmatprep.subr.bf16.mxu1 %v11729_v59  ;;  %v11778_v59 = vld [vmem:[%s14528_s1 + $0x16e8] sm:$0xff]  }
 0x2a7   :  { %10857 = vmatpush3.bf16.msra.mxu0 %v11728_v57  ;;  %v11776_v57 = vld [vmem:[%s14528_s1 + $0x1668] sm:$0xff]  }
 0x2a8   :  { %10858 = vmatprep.subr.bf16.mxu0 %v11731_v62 }
 0x2a9   :  { %10879 = vmatpush3.bf16.msra.mxu1 %v11730_v60 }
 0x2aa   :  { %10880 = vmatprep.subr.bf16.mxu1 %v11733_v0 }
 0x2ab   :  { %10859 = vmatpush3.bf16.msra.mxu0 %v11732_v63  ;;  %v11780_v63 = vld [vmem:[%s14528_s1 + $0x1670] sm:$0xff]  }
 0x2ac   :  { %10860 = vmatprep.subr.bf16.mxu0 %v11735_v2 }
 0x2ad   :  { %10881 = vmatpush3.bf16.msra.mxu1 %v11734_v1 }
 0x2ae   :  { %10882 = vmatprep.subr.bf16.mxu1 %v11737_v4 }
 0x2af   :  { %10861 = vmatpush3.bf16.msra.mxu0 %v11736_v3 }
 0x2b0   :  { %10862 = vmatprep.subr.bf16.mxu0 %v11739_v6  ;;  %v11782_v6 = vld [vmem:[%s14528_s1 + $0x16f0] sm:$0xff]  }
 0x2b1   :  { %10883 = vmatpush3.bf16.msra.mxu1 %v11738_v5  ;;  %v11781_v5 = vld [vmem:[%s14528_s1 + $0x1630] sm:$0xff]  }
 0x2b2   :  { %10884 = vmatprep.subr.bf16.mxu1 %v11741_v8 }
 0x2b3   :  { %10863 = vmatpush3.bf16.msra.mxu0 %v11740_v7 }
 0x2b4   :  { %10864 = vmatprep.subr.bf16.mxu0 %v11743_v10 }
 0x2b5   :  { %v10562_v13 = vpop.f32.mrb[56].mxu0  ;;  %10885 = vmatpush3.bf16.msra.mxu1 %v11742_v9  ;;  %v11783_v9 = vld [vmem:[%s14528_s1 + $0x16b0] sm:$0xff]  }
 0x2b6   :  { %v10563_v15 = vpop.f32.mrb[57].mxu0  ;;  %10886 = vmatprep.subr.bf16.mxu1 %v11745_v12  ;;  %v11784_v12 = vld [vmem:[%s14528_s1 + $0x1678] sm:$0xff]  }
 0x2b7   :  { %v10564_v17 = vadd.f32 %v10563_v15, %v10562_v13  ;;  %v10565_v18 = vpop.f32.mrb[58].mxu0  ;;  %v10584_v19 = vpop.f32.mrb[56].mxu1  ;;  %10865 = vmatpush3.bf16.msra.mxu0 %v11744_v11  ;;  %v11786_v15 = vld [vmem:[%s14528_s1 + $0x16f8] sm:$0xff]  }
 0x2b8   :  { %v10566_v22 = vpop.f32.mrb[59].mxu0  ;;  %v10585_v23 = vpop.f32.mrb[57].mxu1  ;;  %10866 = vmatprep.subr.bf16.mxu0 %v11747_v16  ;;  %v33_v16 = vld [vmem:[%s14527_s0 + $0x58] sm:$0xff] }
 0x2b9   :  { %v8190_v24 = vadd.f32 %v10564_v17, %v14098_v36  ;;  %v10586_v25 = vadd.f32 %v10585_v23, %v10584_v19  ;;  %v10587_v27 = vpop.f32.mrb[58].mxu1  ;;  %10887 = vmatpush3.bf16.msra.mxu1 %v11746_v14  ;;  %v11757_v36 = vld [vmem:[%s14528_s1 + $0x1600] sm:$0xff]   ;;  %v11785_v14 = vld [vmem:[%s14528_s1 + $0x1638] sm:$0xff]   ;;  %v2169_v17 = vrot.slane %v33_v16, %v12012_v41  ;;  %v2162_v19 = vcombine.high %v33_v16, %v33_v16  ;;  %v11825_v16 = vld [vmem:[%s14528_s1 + $0x1850] sm:$0xff]  }
 0x2ba   :  { %v10588_v29 = vpop.f32.mrb[59].mxu1  ;;  %10888 = vmatprep.subr.bf16.mxu1 %v11749_v21  ;;  %v11787_v18 = vld [vmem:[%s14528_s1 + $0x16b8] sm:$0xff]  }
 0x2bb   :  { %v14209_v30 = vadd.f32 %v10586_v25, %v8190_v24  ;;  %10867 = vmatpush3.bf16.msra.mxu0 %v11748_v20  ;;  %v11788_v20 = vld [vmem:[%s14528_s1 + $0x1740] sm:$0xff]   ;;  %v2177_v21 = vcombine.high %v2169_v17, %v2169_v17  ;;  %v2185_v22 = vrot.slane %v2169_v17, %v12012_v41  ;;  %v14330_v23 = vrot.slane %v2162_v19, %v12012_v41  ;;  %v11792_v29 = vld [vmem:[%s14528_s1 + $0x1748] sm:$0xff]   ;;  %v11826_v17 = vld [vmem:[%s14528_s1 + $0x1810] sm:$0xff]  }
 0x2bc   :  { %10868 = vmatprep.subr.bf16.mxu0 %v11751_v28  ;;  %v11790_v24 = vld [vmem:[%s14528_s1 + $0x17c0] sm:$0xff]   ;;  %v11828_v19 = vld [vmem:[%s14528_s1 + $0x1818] sm:$0xff]  }
 0x2bd   :  { %10889 = vmatpush3.bf16.msra.mxu1 %v11750_v26  ;;  %v2199_v25 = vrot.slane %v2177_v21, %v12012_v41  ;;  %v11789_v26 = vld [vmem:[%s14528_s1 + $0x1700] sm:$0xff]   ;;  %v2178_v27 = vcombine.high %v14330_v23, %v14330_v23  ;;  %v2207_v28 = vcombine.high %v2185_v22, %v2185_v22 }
 0x2be   :  { %10890 = vmatprep.subr.bf16.mxu1 %v11753_v32  ;;  %v9136_v21 = vld.sshfl [vmem:[%s14527_s0 + $0x60] sm:$0x11 pattern:$0x75316420] }
 0x2bf   :  { %10869 = vmatpush3.bf16.msra.mxu0 %v11752_v31  ;;  %v11791_v31 = vld [vmem:[%s14528_s1 + $0x1780] sm:$0xff]   ;;  %v2206_v32 = vrot.slane %v2178_v27, %v12012_v41 }
 0x2c0   :  { %10898 = vmatprep.subr.bf16.mxu0 %v11756_v35 }
 0x2c1   :  { %10891 = vmatpush3.bf16.msra.mxu1 %v11755_v33  ;;  %v11794_v33 = vld [vmem:[%s14528_s1 + $0x17c8] sm:$0xff]   ;;  %v2210_v35 = vcombine.high %v2206_v32, %v2206_v32 }
 0x2c2   :  { %8748 = vmatmul.mubr.bf16.vlgmr.msra.gmra.mrb[84].mxu0 %v2143_v34  ;;  %10920 = vmatprep.subr.bf16.mxu1 %v11758_v37  ;;  %v11793_v34 = vld [vmem:[%s14528_s1 + $0x1708] sm:$0xff]  }
 0x2c3   :  { %10899 = vmatpush3.bf16.msra.mxu0 %v11757_v36  ;;  %8827 = vmatprep.mubr.bf16.mxu0 %v2199_v25  ;;  %v11796_v36 = vld [vmem:[%s14528_s1 + $0x1750] sm:$0xff]   ;;  %v11795_v37 = vld [vmem:[%s14528_s1 + $0x1788] sm:$0xff]  }
 0x2c4   :  { %8788 = vmatmul.mubr.bf16.vlgmr.msra.gmra.mrb[84].mxu1 %v2159_v39  ;;  %10900 = vmatprep.subr.bf16.mxu0 %v11760_v40  ;;  %v11797_v39 = vld [vmem:[%s14528_s1 + $0x1710] sm:$0xff]   ;;  %v11800_v40 = vld [vmem:[%s14528_s1 + $0x1758] sm:$0xff]  }
 0x2c5   :  { %10921 = vmatpush3.bf16.msra.mxu1 %v11759_v38  ;;  %v11798_v38 = vld [vmem:[%s14528_s1 + $0x17d0] sm:$0xff]  }
 0x2c6   :  { %10922 = vmatprep.subr.bf16.mxu1 %v11762_v43  ;;  %v11802_v43 = vld [vmem:[%s14528_s1 + $0x17d8] sm:$0xff]  }
 0x2c7   :  { %10901 = vmatpush3.bf16.msra.mxu0 %v11761_v42  ;;  %v11799_v42 = vld [vmem:[%s14528_s1 + $0x1790] sm:$0xff]  }
 0x2c8   :  { %10902 = vmatprep.subr.bf16.mxu0 %v11764_v45  ;;  %v11804_v45 = vld [vmem:[%s14528_s1 + $0x1760] sm:$0xff]  }
 0x2c9   :  { %10923 = vmatpush3.bf16.msra.mxu1 %v11763_v44  ;;  %v11801_v44 = vld [vmem:[%s14528_s1 + $0x1718] sm:$0xff]  }
 0x2ca   :  { %10924 = vmatprep.subr.bf16.mxu1 %v11766_v47  ;;  %v11806_v47 = vld [vmem:[%s14528_s1 + $0x17e0] sm:$0xff]  }
 0x2cb   :  { %10903 = vmatpush3.bf16.msra.mxu0 %v11765_v46  ;;  %v11803_v46 = vld [vmem:[%s14528_s1 + $0x1798] sm:$0xff]  }
 0x2cc   :  { %10904 = vmatprep.subr.bf16.mxu0 %v11768_v49  ;;  %v11808_v49 = vld [vmem:[%s14528_s1 + $0x1768] sm:$0xff]  }
 0x2cd   :  { %10925 = vmatpush3.bf16.msra.mxu1 %v11767_v48  ;;  %v11805_v48 = vld [vmem:[%s14528_s1 + $0x1720] sm:$0xff]  }
 0x2ce   :  { %10926 = vmatprep.subr.bf16.mxu1 %v11770_v51 }
 0x2cf   :  { %10905 = vmatpush3.bf16.msra.mxu0 %v11769_v50  ;;  %v11807_v50 = vld [vmem:[%s14528_s1 + $0x17a0] sm:$0xff]  }
 0x2d0   :  { %10906 = vmatprep.subr.bf16.mxu0 %v11772_v53 }
 0x2d1   :  { %10927 = vmatpush3.bf16.msra.mxu1 %v11771_v52  ;;  %v11810_v52 = vld [vmem:[%s14528_s1 + $0x17e8] sm:$0xff]  }
 0x2d2   :  { %10928 = vmatprep.subr.bf16.mxu1 %v11774_v55 }
 0x2d3   :  { %10907 = vmatpush3.bf16.msra.mxu0 %v11773_v54  ;;  %v11809_v54 = vld [vmem:[%s14528_s1 + $0x1728] sm:$0xff]  }
 0x2d4   :  { %10908 = vmatprep.subr.bf16.mxu0 %v11776_v57 }
 0x2d5   :  { %v10606_v60 = vpop.f32.mrb[60].mxu0  ;;  %10929 = vmatpush3.bf16.msra.mxu1 %v11775_v56 }
 0x2d6   :  { %v10607_v62 = vpop.f32.mrb[61].mxu0  ;;  %10930 = vmatprep.subr.bf16.mxu1 %v11778_v59  ;;  %v11812_v59 = vld [vmem:[%s14528_s1 + $0x1770] sm:$0xff]  }
 0x2d7   :  { %v10608_v0 = vadd.f32 %v10607_v62, %v10606_v60  ;;  %v10609_v1 = vpop.f32.mrb[62].mxu0  ;;  %v10628_v2 = vpop.f32.mrb[60].mxu1  ;;  %10909 = vmatpush3.bf16.msra.mxu0 %v11777_v58  ;;  %v11811_v58 = vld [vmem:[%s14528_s1 + $0x17a8] sm:$0xff]  }
 0x2d8   :  { %v10610_v3 = vpop.f32.mrb[63].mxu0  ;;  %v10629_v4 = vpop.f32.mrb[61].mxu1  ;;  %10910 = vmatprep.subr.bf16.mxu0 %v11780_v63 }
 0x2d9   :  { %v8270_v7 = vadd.f32 %v10608_v0, %v14209_v30  ;;  %v10630_v8 = vadd.f32 %v10629_v4, %v10628_v2  ;;  %v10631_v10 = vpop.f32.mrb[62].mxu1  ;;  %10931 = vmatpush3.bf16.msra.mxu1 %v11779_v61  ;;  %v2209_v30 = vcombine.high %v2199_v25, %v2199_v25  ;;  %v11814_v0 = vld [vmem:[%s14528_s1 + $0x17f0] sm:$0xff]  }
 0x2da   :  { %v10632_v13 = vpop.f32.mrb[63].mxu1  ;;  %10932 = vmatprep.subr.bf16.mxu1 %v11782_v6  ;;  %v11813_v2 = vld [vmem:[%s14528_s1 + $0x1730] sm:$0xff]   ;;  %v11821_v10 = vld [vmem:[%s14528_s1 + $0x1840] sm:$0xff]  }
 0x2db   :  { %v14307_v11 = vadd.f32 %v10630_v8, %v8270_v7  ;;  %10911 = vmatpush3.bf16.msra.mxu0 %v11781_v5  ;;  %8867 = vmatprep.mubr.bf16.mxu1 %v2209_v30  ;;  %v11816_v5 = vld [vmem:[%s14528_s1 + $0x1778] sm:$0xff]   ;;  %v11815_v6 = vld [vmem:[%s14528_s1 + $0x17b0] sm:$0xff]  }
 0x2dc   :  { %10912 = vmatprep.subr.bf16.mxu0 %v11784_v12  ;;  %v11818_v7 = vld [vmem:[%s14528_s1 + $0x17f8] sm:$0xff]   ;;  %v11822_v12 = vld [vmem:[%s14528_s1 + $0x1800] sm:$0xff]  }
 0x2dd   :  { %10933 = vmatpush3.bf16.msra.mxu1 %v11783_v9  ;;  %v11817_v8 = vld [vmem:[%s14528_s1 + $0x1738] sm:$0xff]   ;;  %v2192_v9 = vrot.slane %v14330_v23, %v12012_v41  ;;  %v2218_v23 = vcombine.high %v9136_v21, %v9136_v21 }
 0x2de   :  { %10934 = vmatprep.subr.bf16.mxu1 %v11786_v15  ;;  %v11824_v15 = vld [vmem:[%s14528_s1 + $0x1808] sm:$0xff]  }
 0x2df   :  { %10913 = vmatpush3.bf16.msra.mxu0 %v11785_v14  ;;  %v2208_v13 = vcombine.high %v2192_v9, %v2192_v9  ;;  %v11823_v14 = vld [vmem:[%s14528_s1 + $0x1848] sm:$0xff]   ;;  %v2232_v25 = vrot.slane %v2218_v23, %v12012_v41 }
 0x2e0   :  { %10942 = vmatprep.subr.bf16.mxu0 %v11788_v20  ;;  %v11829_v20 = vld [vmem:[%s14528_s1 + $0x1860] sm:$0xff]  }
 0x2e1   :  { %10935 = vmatpush3.bf16.msra.mxu1 %v11787_v18  ;;  %v11827_v18 = vld [vmem:[%s14528_s1 + $0x1858] sm:$0xff]  }
 0x2e2   :  { %10964 = vmatprep.subr.bf16.mxu1 %v11790_v24  ;;  %8828 = vmatmul.mubr.bf16.vlgmr.msra.gmra.mrb[88].mxu0 %v2185_v22  ;;  %v11830_v22 = vld [vmem:[%s14528_s1 + $0x1820] sm:$0xff]   ;;  %v11831_v24 = vld [vmem:[%s14528_s1 + $0x1868] sm:$0xff]  }
 0x2e3   :  { %10943 = vmatpush3.bf16.msra.mxu0 %v11789_v26  ;;  %8907 = vmatprep.mubr.bf16.mxu0 %v2206_v32 }
 0x2e4   :  { %8868 = vmatmul.mubr.bf16.vlgmr.msra.gmra.mrb[88].mxu1 %v2207_v28  ;;  %10944 = vmatprep.subr.bf16.mxu0 %v11792_v29 }
 0x2e5   :  { %10965 = vmatpush3.bf16.msra.mxu1 %v11791_v31  ;;  %8947 = vmatprep.mubr.bf16.mxu1 %v2210_v35 }
 0x2e6   :  { %10966 = vmatprep.subr.bf16.mxu1 %v11794_v33 }
 0x2e7   :  { %10945 = vmatpush3.bf16.msra.mxu0 %v11793_v34 }
 0x2e8   :  { %10946 = vmatprep.subr.bf16.mxu0 %v11796_v36 }
 0x2e9   :  { %10967 = vmatpush3.bf16.msra.mxu1 %v11795_v37 }
 0x2ea   :  { %10968 = vmatprep.subr.bf16.mxu1 %v11798_v38 }
 0x2eb   :  { %10947 = vmatpush3.bf16.msra.mxu0 %v11797_v39 }
 0x2ec   :  { %10948 = vmatprep.subr.bf16.mxu0 %v11800_v40 }
 0x2ed   :  { %10969 = vmatpush3.bf16.msra.mxu1 %v11799_v42 }
 0x2ee   :  { %10970 = vmatprep.subr.bf16.mxu1 %v11802_v43 }
 0x2ef   :  { %10949 = vmatpush3.bf16.msra.mxu0 %v11801_v44 }
 0x2f0   :  { %10950 = vmatprep.subr.bf16.mxu0 %v11804_v45 }
 0x2f1   :  { %10971 = vmatpush3.bf16.msra.mxu1 %v11803_v46 }
 0x2f2   :  { %10972 = vmatprep.subr.bf16.mxu1 %v11806_v47 }
 0x2f3   :  { %10951 = vmatpush3.bf16.msra.mxu0 %v11805_v48 }
 0x2f4   :  { %10952 = vmatprep.subr.bf16.mxu0 %v11808_v49 }
 0x2f5   :  { %v10650_v51 = vpop.f32.mrb[64].mxu0  ;;  %10973 = vmatpush3.bf16.msra.mxu1 %v11807_v50 }
 0x2f6   :  { %v10651_v53 = vpop.f32.mrb[65].mxu0  ;;  %10974 = vmatprep.subr.bf16.mxu1 %v11810_v52 }
 0x2f7   :  { %v10652_v55 = vadd.f32 %v10651_v53, %v10650_v51  ;;  %v10653_v56 = vpop.f32.mrb[66].mxu0  ;;  %v10672_v57 = vpop.f32.mrb[64].mxu1  ;;  %10953 = vmatpush3.bf16.msra.mxu0 %v11809_v54 }
 0x2f8   :  { %v10654_v60 = vpop.f32.mrb[67].mxu0  ;;  %v10673_v61 = vpop.f32.mrb[65].mxu1  ;;  %10954 = vmatprep.subr.bf16.mxu0 %v11812_v59 }
 0x2f9   :  { %v8350_v62 = vadd.f32 %v10652_v55, %v14307_v11  ;;  %v10674_v63 = vadd.f32 %v10673_v61, %v10672_v57  ;;  %v10675_v1 = vpop.f32.mrb[66].mxu1  ;;  %10975 = vmatpush3.bf16.msra.mxu1 %v11811_v58  ;;  %v11820_v11 = vld [vmem:[%s14528_s1 + $0x17b8] sm:$0xff]  }
 0x2fa   :  { %v10676_v3 = vpop.f32.mrb[67].mxu1  ;;  %10976 = vmatprep.subr.bf16.mxu1 %v11814_v0 }
 0x2fb   :  { %v8390_v4 = vadd.f32 %v10674_v63, %v8350_v62  ;;  %10955 = vmatpush3.bf16.msra.mxu0 %v11813_v2 }
 0x2fc   :  { %10956 = vmatprep.subr.bf16.mxu0 %v11816_v5 }
 0x2fd   :  { %10977 = vmatpush3.bf16.msra.mxu1 %v11815_v6 }
 0x2fe   :  { %10978 = vmatprep.subr.bf16.mxu1 %v11818_v7 }
 0x2ff   :  { %10957 = vmatpush3.bf16.msra.mxu0 %v11817_v8 }
 0x300   :  { %10986 = vmatprep.subr.bf16.mxu0 %v11821_v10 }
 0x301   :  { %10979 = vmatpush3.bf16.msra.mxu1 %v11820_v11 }
 0x302   :  { %8908 = vmatmul.mubr.bf16.vlgmr.msra.gmra.mrb[92].mxu0 %v2192_v9 }
 0x303   :  { %10987 = vmatpush3.bf16.msra.mxu0 %v11822_v12  ;;  %8987 = vmatprep.mubr.bf16.mxu0 %v2232_v25 }
 0x304   :  { %8948 = vmatmul.mubr.bf16.vlgmr.msra.gmra.mrb[92].mxu1 %v2208_v13  ;;  %10988 = vmatprep.subr.bf16.mxu0 %v11823_v14 }
 0x307   :  { %10989 = vmatpush3.bf16.msra.mxu0 %v11824_v15 }
 0x308   :  { %10990 = vmatprep.subr.bf16.mxu0 %v11825_v16 }
 0x30b   :  { %10991 = vmatpush3.bf16.msra.mxu0 %v11826_v17 }
 0x30c   :  { %10992 = vmatprep.subr.bf16.mxu0 %v11827_v18 }
 0x30f   :  { %10993 = vmatpush3.bf16.msra.mxu0 %v11828_v19 }
 0x310   :  { %10994 = vmatprep.subr.bf16.mxu0 %v11829_v20 }
 0x315   :  { %v10694_v26 = vpop.f32.mrb[68].mxu0 }
 0x316   :  { %10 = vsyncpa [#allocation3], 0  ;;  %10995 = vmatpush3.bf16.msra.mxu0 %v11830_v22  ;;  %v10695_v27 = vpop.f32.mrb[69].mxu0  ;;  %v11832_v28 = vld [vmem:[%s14528_s1 + $0x1828] sm:$0xff]   ;;  %v11833_v32 = vld [vmem:[%s14528_s1 + $0x1870] sm:$0xff]   ;;  %v2225_v44 = vrot.slane %v9136_v21, %v12012_v41  ;;  %v11874_v5 = vmov 0.0  }
 0x317   :  { %v10696_v29 = vadd.f32 %v10695_v27, %v10694_v26  ;;  %10996 = vmatprep.subr.bf16.mxu0 %v11831_v24  ;;  %v10697_v30 = vpop.f32.mrb[70].mxu0  ;;  %v10716_v31 = vpop.f32.mrb[68].mxu1  ;;  %v11834_v38 = vld [vmem:[%s14528_s1 + $0x1830] sm:$0xff]   ;;  %v11835_v42 = vld [vmem:[%s14528_s1 + $0x1878] sm:$0xff]   ;;  %11017 = vmatprep.subr.bf16.mxu1 %v11874_v5  ;;  %v11838_v6 = vld [vmem:[%s14530_s3 + $0x8] sm:$0xff]   ;;  %vm11875_vm0 = vmmov 0  }
 0x318   :  { %v10698_v33 = vpop.f32.mrb[71].mxu0  ;;  %v10717_v34 = vpop.f32.mrb[69].mxu1  ;;  %v11836_v43 = vld [vmem:[%s14528_s1 + $0x1838] sm:$0xff]   ;;  %v11839_v7 = vld [vmem:[%s14530_s3 + $0x10] sm:$0xff]   ;;  %v11841_v9 = vld [vmem:[%s14530_s3 + $0x20] sm:$0xff]   ;;  %11033 = vmatprep.mubr.msk.bf16.mxu1 %vm11875_vm0, %v11874_v5  ;;  %vm9108_vm1 = vcmask 74752  }
 0x319   :  { %v8430_v35 = vadd.f32 %v10696_v29, %v8390_v4  ;;  %v10718_v36 = vadd.f32 %v10717_v34, %v10716_v31  ;;  %v10719_v37 = vpop.f32.mrb[70].mxu1  ;;  %v11837_v4 = vld [vmem:[%s14530_s3] sm:$0xff]   ;;  %v11840_v8 = vld [vmem:[%s14530_s3 + $0x18] sm:$0xff]   ;;  %v11842_v10 = vld [vmem:[%s14530_s3 + $0x28] sm:$0xff]  }
 0x31a   :  { %10997 = vmatpush3.bf16.msra.mxu0 %v11832_v28  ;;  %v10720_v39 = vpop.f32.mrb[71].mxu1  ;;  %11018 = vmatpush3.bf16.msra.mxu1 %v11837_v4  ;;  %v11843_v16 = vld [vmem:[%s14530_s3 + $0x30] sm:$0xff]   ;;  %v11844_v24 = vld [vmem:[%s14530_s3 + $0x38] sm:$0xff]  }
 0x31b   :  { %v8470_v40 = vadd.f32 %v10718_v36, %v8430_v35  ;;  %10998 = vmatprep.subr.bf16.mxu0 %v11833_v32  ;;  %11019 = vmatprep.subr.bf16.mxu1 %v11874_v5 }
 0x31e   :  { %10999 = vmatpush3.bf16.msra.mxu0 %v11834_v38  ;;  %11020 = vmatpush3.bf16.msra.mxu1 %v11838_v6 }
 0x31f   :  { %11000 = vmatprep.subr.bf16.mxu0 %v11835_v42  ;;  %11021 = vmatprep.subr.bf16.mxu1 %v11874_v5 }
 0x322   :  { %11001 = vmatpush3.bf16.msra.mxu0 %v11836_v43  ;;  %11022 = vmatpush3.bf16.msra.mxu1 %v11839_v7 }
 0x323   :  { %11023 = vmatprep.subr.bf16.mxu1 %v11874_v5 }
 0x325   :  { %8988 = vmatmul.mubr.bf16.vlgmr.msra.gmra.mrb[96].mxu0 %v2225_v44 }
 0x326   :  { %11024 = vmatpush3.bf16.msra.mxu1 %v11840_v8 }
 0x327   :  { %11025 = vmatprep.subr.bf16.mxu1 %v11874_v5 }
 0x32a   :  { %11026 = vmatpush3.bf16.msra.mxu1 %v11841_v9 }
 0x32b   :  { %11027 = vmatprep.subr.bf16.mxu1 %v11874_v5 }
 0x32e   :  { %11028 = vmatpush3.bf16.msra.mxu1 %v11842_v10 }
 0x32f   :  { %11029 = vmatprep.subr.bf16.mxu1 %v11874_v5 }
 0x332   :  { %11030 = vmatpush3.bf16.msra.mxu1 %v11843_v16 }
 0x333   :  { %11031 = vmatprep.subr.bf16.mxu1 %v11874_v5  ;;  %v9921_v5 = vld [vmem:[%s14531_s4] ss:$0 sm:$0xff]  ;;  %s11876_s4 = smov [#allocation2]  }
 0x334   :  { %s9127_s11 = sshll.u32 %s11876_s4, 4  ;;  %s9128_s11 = int_to_ptr.vmem [resolvable:$true] %s9127_s11 }
 0x335   :  { %v10738_v45 = vpop.f32.mrb[72].mxu0  ;;  %s11849_s12 = scalar_lea.vmem %s9128_s11, 32  ;;  %p11854_p1 = scmp.lt.s32.totalorder %s9128_s11, %s9128_s11 }
 0x336   :  { %v10739_v46 = vpop.f32.mrb[73].mxu0  ;;  %11032 = vmatpush3.bf16.msra.mxu1 %v11844_v24  ;;  %p11850_p0 = scmp.ne.s32.totalorder %s9128_s11, %s11849_s12  ;;  %p11855_p2 = scmp.lt.s32.totalorder %s11849_s12, %s11849_s12 }
 0x337   :  { %v10740_v47 = vadd.f32 %v10739_v46, %v10738_v45  ;;  %v10741_v48 = vpop.f32.mrb[74].mxu0  ;;  %v10760_v49 = vpop.f32.mrb[72].mxu1 }
 0x338   :  { %v10742_v50 = vpop.f32.mrb[75].mxu0  ;;  %v10761_v51 = vpop.f32.mrb[73].mxu1  ;;  %p11856_p3 = por %p11855_p2, %p11854_p1 }
 0x339   :  { %v8510_v52 = vadd.f32 %v10740_v47, %v8470_v40  ;;  %v10762_v53 = vadd.f32 %v10761_v51, %v10760_v49  ;;  %v10763_v54 = vpop.f32.mrb[74].mxu1 }
 0x33a   :  { %v10764_v55 = vpop.f32.mrb[75].mxu1  ;;  %p11857_p4 = pnand %p11856_p3, %p11850_p0 }
 0x33b   :  { %v8550_v56 = vadd.f32 %v10762_v53, %v8510_v52 }
 0x355   :  { %v10782_v57 = vpop.f32.mrb[76].mxu0 }
 0x356   :  { %v10783_v58 = vpop.f32.mrb[77].mxu0 }
 0x357   :  { %v10784_v59 = vadd.f32 %v10783_v58, %v10782_v57  ;;  %v10785_v60 = vpop.f32.mrb[78].mxu0  ;;  %v10804_v61 = vpop.f32.mrb[76].mxu1 }
 0x358   :  { %v10786_v41 = vpop.f32.mrb[79].mxu0  ;;  %v10805_v62 = vpop.f32.mrb[77].mxu1 }
 0x359   :  { %v8590_v63 = vadd.f32 %v10784_v59, %v8550_v56  ;;  %v10806_v0 = vadd.f32 %v10805_v62, %v10804_v61  ;;  %v10807_v1 = vpop.f32.mrb[78].mxu1 }
 0x35a   :  { %v10808_v2 = vpop.f32.mrb[79].mxu1 }
 0x35b   :  { %v8630_v3 = vadd.f32 %v10806_v0, %v8590_v63 }
 0x375   :  { %v10826_v11 = vpop.f32.mrb[80].mxu0 }
 0x376   :  { %v10827_v12 = vpop.f32.mrb[81].mxu0 }
 0x377   :  { %v10828_v13 = vadd.f32 %v10827_v12, %v10826_v11  ;;  %v10829_v14 = vpop.f32.mrb[82].mxu0  ;;  %v10848_v15 = vpop.f32.mrb[80].mxu1 }
 0x378   :  { %v10830_v17 = vpop.f32.mrb[83].mxu0  ;;  %v10849_v18 = vpop.f32.mrb[81].mxu1 }
 0x379   :  { %v8670_v19 = vadd.f32 %v10828_v13, %v8630_v3  ;;  %v10850_v20 = vadd.f32 %v10849_v18, %v10848_v15  ;;  %v10851_v21 = vpop.f32.mrb[82].mxu1 }
 0x37a   :  { %v10852_v22 = vpop.f32.mrb[83].mxu1 }
 0x37b   :  { %v8710_v23 = vadd.f32 %v10850_v20, %v8670_v19 }
 0x395   :  { %v10870_v25 = vpop.f32.mrb[84].mxu0 }
 0x396   :  { %v10871_v26 = vpop.f32.mrb[85].mxu0 }
 0x397   :  { %v10872_v27 = vadd.f32 %v10871_v26, %v10870_v25  ;;  %v10873_v28 = vpop.f32.mrb[86].mxu0  ;;  %v10892_v29 = vpop.f32.mrb[84].mxu1 }
 0x398   :  { %v10874_v30 = vpop.f32.mrb[87].mxu0  ;;  %v10893_v31 = vpop.f32.mrb[85].mxu1 }
 0x399   :  { %v8750_v32 = vadd.f32 %v10872_v27, %v8710_v23  ;;  %v10894_v33 = vadd.f32 %v10893_v31, %v10892_v29  ;;  %v10895_v34 = vpop.f32.mrb[86].mxu1 }
 0x39a   :  { %v10896_v35 = vpop.f32.mrb[87].mxu1 }
 0x39b   :  { %v8790_v36 = vadd.f32 %v10894_v33, %v8750_v32 }
 0x3b5   :  { %v10914_v37 = vpop.f32.mrb[88].mxu0 }
 0x3b6   :  { %v10915_v38 = vpop.f32.mrb[89].mxu0 }
 0x3b7   :  { %v10916_v39 = vadd.f32 %v10915_v38, %v10914_v37  ;;  %v10917_v40 = vpop.f32.mrb[90].mxu0  ;;  %v10936_v42 = vpop.f32.mrb[88].mxu1 }
 0x3b8   :  { %v10918_v43 = vpop.f32.mrb[91].mxu0  ;;  %v10937_v44 = vpop.f32.mrb[89].mxu1 }
 0x3b9   :  { %v8830_v45 = vadd.f32 %v10916_v39, %v8790_v36  ;;  %v10938_v46 = vadd.f32 %v10937_v44, %v10936_v42  ;;  %v10939_v47 = vpop.f32.mrb[90].mxu1 }
 0x3ba   :  { %v10940_v48 = vpop.f32.mrb[91].mxu1 }
 0x3bb   :  { %v8870_v49 = vadd.f32 %v10938_v46, %v8830_v45 }
 0x3d5   :  { %v10958_v50 = vpop.f32.mrb[92].mxu0 }
 0x3d6   :  { %v10959_v51 = vpop.f32.mrb[93].mxu0 }
 0x3d7   :  { %v10960_v52 = vadd.f32 %v10959_v51, %v10958_v50  ;;  %v10961_v53 = vpop.f32.mrb[94].mxu0  ;;  %v10980_v54 = vpop.f32.mrb[92].mxu1 }
 0x3d8   :  { %v10962_v55 = vpop.f32.mrb[95].mxu0  ;;  %v10981_v56 = vpop.f32.mrb[93].mxu1 }
 0x3d9   :  { %v8910_v57 = vadd.f32 %v10960_v52, %v8870_v49  ;;  %v10982_v58 = vadd.f32 %v10981_v56, %v10980_v54  ;;  %v10983_v59 = vpop.f32.mrb[94].mxu1 }
 0x3da   :  { %v10984_v60 = vpop.f32.mrb[95].mxu1 }
 0x3db   :  { %v8950_v61 = vadd.f32 %v10982_v58, %v8910_v57 }
 0x3f8   :  { %v11002_v41 = vpop.f32.mrb[96].mxu0 }
 0x3f9   :  { %v11003_v62 = vpop.f32.mrb[97].mxu0 }
 0x3fa   :  { %v11004_v63 = vadd.f32 %v11003_v62, %v11002_v41  ;;  %v11005_v0 = vpop.f32.mrb[98].mxu0 }
 0x3fb   :  { %v11006_v1 = vpop.f32.mrb[99].mxu0 }
 0x3fc   :  { %v8990_v2 = vadd.f32 %v11004_v63, %v8950_v61 }
 0x3fe   :  { %v8995_v3 = vmax.f32 %v8990_v2, 0.0 }
 0x400   :  { %v8996_v4 = vpack.c.bf16 %v8995_v3, %v8995_v3 }
 0x402   :  { %11034 = vmatmul.mubr.bf16.vlgmr.msra.gmra.mrb[96].mxu1 %v8996_v4 }
 0x4d5   :  { %v9102_v6 = vpop.f32.mrb[96].mxu1 }
 0x4d6   :  { %v9103_v7 = vadd.f32 %v9921_v5, %v9102_v6  ;;  %v11035_v8 = vpop.f32.mrb[97].mxu1 }
 0x4d7   :  { %v9105_v9 = vpop.f32.mrb[98].mxu1 }
 0x4d8   :  { %v11036_v10 = vpop.f32.mrb[99].mxu1  ;;  %v9109_v11 = vsel %vm9108_vm1, %v9103_v7, -inf }
 0x4d9   :  { %9110 = vmax.xlane.f32.xlu0 %v9109_v11 }
 0x566   :  { %v9111_v12 = vpop.xlane.xlu0 %9110 }
 0x567   :  { %v9112_v13 = vsub.f32 %v9103_v7, %v9111_v12 }
 0x569   :  { %v9113_v14 = vmul.f32 1.442695, %v9112_v13 }
 0x56b   :  { %11845 = vpow2.f32 %v9113_v14 }
 0x575   :  { %v11846_v15 = vpop.eup %11845 }
 0x576   :  { %v9115_v16 = vsel %vm9108_vm1, %v11846_v15, 0.0 }
 0x577   :  { %9116 = vadd.xlane.f32.xlu0 %v9115_v16 }
 0x604   :  { %v9117_v17 = vpop.xlane.xlu0 %9116 }
 0x605   :  { %11847 = vrcp.f32 %v9117_v17 }
 0x60f   :  { %v11848_v18 = vpop.eup %11847 }
 0x610   :  { %v9119_v19 = vmul.f32 %v11848_v18, %v11846_v15 }
 0x612   :  { %9120 = vst.msk [vmem:[#allocation2] sm:$0x3] %vm9108_vm1, %v9119_v19 }
 0x613   :  { %11860 = shalt.err (!%p11857_p4)
}
 0x614   :  { %s11861_s14 = scalar_lea.hbm %s14532_s5, 32 }
 0x615   :  { %p11862_p5 = scmp.ne.s32.totalorder %s14532_s5, %s11861_s14  ;;  %p11865_p6 = scmp.lt.u32.totalorder %s11861_s14, %s14532_s5 }
 0x617   :  { %p11867_p7 = pnand %p11865_p6, %p11862_p5 }
 0x619   :  { %11870 = shalt.err (!%p11867_p7)
}
 0x61a   :  { %9130 = dma.vmem_to_hbm [thread:$0]  %s9128_s11, 32, %s14532_s5, [#allocation3]  }
 0x61b   :  { %11871 = dma.done.wait [#allocation3], 32  }
 0x61c   :  { %11872 = vsyncadd [#allocation3], 4294967264 }
 0x61d   :  { %9134 = vsyncpa [#allocation3], 1 }

</bundles_post_ra>
